<compile_context>
chip_gen: v7x
topology: tpu7x:2x2x1
jax: 0.10.0
libtpu: 0.0.40
codegen_flags: <defaults>
</compile_context>

<pallas_src>
import functools

import jax
import jax.numpy as jnp
from jax import lax
from jax.experimental import pallas as pl
from jax.experimental.pallas import tpu as pltpu


# ----------------------------------------------------------------------------
# Kernel 1: row-tiled projections
#   qx = x@Wq+bq, kx = x@Wk+bk, Wh_all = x@W_all, Wh1/Wh2 = Wh_all @ a1/a2
# ----------------------------------------------------------------------------
def proj_kernel(x_ref, wq_ref, bq_ref, wk_ref, bk_ref, wall_ref,
                a1bd_ref, a2bd_ref,
                qx_ref, kx_ref, whall_ref, wh1_ref, wh2_ref):
    f32 = jnp.float32
    bf16 = jnp.bfloat16
    x = x_ref[...]                                               # (T, Fin) bf16
    qx = jnp.dot(x, wq_ref[...], preferred_element_type=f32) + bq_ref[...]
    kx = jnp.dot(x, wk_ref[...], preferred_element_type=f32) + bk_ref[...]
    qx_ref[...] = qx.astype(bf16)
    kx_ref[...] = kx.astype(bf16)
    wh = jnp.dot(x, wall_ref[...], preferred_element_type=f32)   # (T, H*nhid)
    wh_b = wh.astype(bf16)
    whall_ref[...] = wh_b
    # Block-diagonal a1/a2 -> per-head attention terms via the MXU (no XLU sums)
    wh1_ref[...] = jnp.dot(wh_b, a1bd_ref[...], preferred_element_type=f32)
    wh2_ref[...] = jnp.dot(wh_b, a2bd_ref[...], preferred_element_type=f32)


# ----------------------------------------------------------------------------
# Kernel 2: row-tiled hidden attention heads (concat=True, elu) fused with the
#           output-layer projection (x_cat @ W_out, and its a1/a2 terms).
# ----------------------------------------------------------------------------
def hidden_attn_kernel(qx_ref, kx_ref, whall_ref, wh1_ref, wh2T_ref,
                       wout_ref, a1o_ref, a2o_ref,
                       who_ref, wh1o_ref, wh2o_ref, *, alpha, nheads, nhid):
    f32 = jnp.float32
    bf16 = jnp.bfloat16
    neg_big = jnp.float32(-9e15)
    tile_r = qx_ref.shape[0]
    fout = wout_ref.shape[1]

    # adj > 0  <=>  (qx@kx^T)^2 > 0 ; NT dot_general so no materialized transpose
    dot = lax.dot_general(qx_ref[...], kx_ref[...], (((1,), (1,)), ((), ())),
                          preferred_element_type=f32)            # (T, N)
    adj_mask = (dot * dot) > 0.0

    who = jnp.zeros((tile_r, fout), f32)
    for h in range(nheads):                 # static; H is small
        e = wh1_ref[:, h:h + 1] + wh2T_ref[h:h + 1, :]           # (T, N)
        e = jnp.where(e > 0, e, alpha * e)                       # LeakyReLU
        att = jnp.where(adj_mask, e, neg_big)
        att = att - jnp.max(att, axis=1, keepdims=True)          # softmax dim=1
        att = jnp.exp(att)
        att = att / jnp.sum(att, axis=1, keepdims=True)          # exact division
        hp = jnp.dot(att.astype(bf16),
                     whall_ref[:, h * nhid:(h + 1) * nhid],
                     preferred_element_type=f32)                 # (T, nhid)
        hp = jnp.where(hp > 0, hp, jnp.exp(jnp.minimum(hp, 0.0)) - 1.0)  # ELU
        # torch.cat(dim=1) followed by @ W_out == sum of per-head block matmuls
        who = who + jnp.dot(hp.astype(bf16),
                            wout_ref[h * nhid:(h + 1) * nhid, :],
                            preferred_element_type=f32)

    who_b = who.astype(bf16)
    who_ref[...] = who_b                                         # (T, Fout)
    wh1o_ref[...] = jnp.dot(who_b, a1o_ref[...], preferred_element_type=f32)
    wh2o_ref[...] = jnp.dot(who_b, a2o_ref[...], preferred_element_type=f32)


# ----------------------------------------------------------------------------
# Kernel 3: row-tiled output attention (concat=False) + elu + log_softmax
# ----------------------------------------------------------------------------
def out_attn_kernel(qx_ref, kx_ref, who_ref, wh1o_ref, wh2oT_ref, out_ref,
                    *, alpha):
    f32 = jnp.float32
    neg_big = jnp.float32(-9e15)
    dot = lax.dot_general(qx_ref[...], kx_ref[...], (((1,), (1,)), ((), ())),
                          preferred_element_type=f32)            # (T, N)
    adj_mask = (dot * dot) > 0.0
    e = wh1o_ref[...] + wh2oT_ref[...]                           # (T, N)
    e = jnp.where(e > 0, e, alpha * e)
    att = jnp.where(adj_mask, e, neg_big)
    att = att - jnp.max(att, axis=1, keepdims=True)
    att = jnp.exp(att)
    att = att / jnp.sum(att, axis=1, keepdims=True)
    hp = jnp.dot(att.astype(jnp.bfloat16), who_ref[...],
                 preferred_element_type=f32)                     # (T, Fout)
    hp = jnp.where(hp > 0, hp, jnp.exp(jnp.minimum(hp, 0.0)) - 1.0)   # elu
    m = jnp.max(hp, axis=1, keepdims=True)                       # log_softmax dim=1
    z = hp - m
    out_ref[...] = z - jnp.log(jnp.sum(jnp.exp(z), axis=1, keepdims=True))


# ----------------------------------------------------------------------------
# Wrapper: parameter re-layout (fused under jit) + three row-tiled pallas_calls
# ----------------------------------------------------------------------------
def _head_blockdiag_cols(a):
    # a: (H, F) -> (H*F, H) with a[h] placed in column h, rows h*F:(h+1)*F.
    H, F = a.shape
    eye = jnp.eye(H, dtype=a.dtype)
    return (a[:, :, None] * eye[:, None, :]).reshape(H * F, H)


def gat_forward(x, params, *, alpha=0.2, tile_r=128):
    N, Fin = x.shape
    W_heads = params["W_heads"]                       # (H, Fin, nhid)
    H, _, nhid = W_heads.shape
    W_out = params["W_out"]                           # (H*nhid, Fout)
    Fout = W_out.shape[1]

    tile_r = min(tile_r, N)
    assert N % tile_r == 0, "demo requires N divisible by tile_r"
    nt = N // tile_r

    f32, bf16 = jnp.float32, jnp.bfloat16
    # bf16 MXU operands (f32 accumulation inside the kernels).
    x_b = x.astype(bf16)
    wq_b, wk_b = params["wq"].astype(bf16), params["wk"].astype(bf16)
    bq, bk = params["bq"].astype(f32), params["bk"].astype(f32)
    W_all_b = jnp.transpose(W_heads, (1, 0, 2)).reshape(Fin, H * nhid).astype(bf16)
    a1_bd_b = _head_blockdiag_cols(params["a1_heads"]).astype(bf16)   # (H*nhid, H)
    a2_bd_b = _head_blockdiag_cols(params["a2_heads"]).astype(bf16)   # (H*nhid, H)
    W_out_b = W_out.astype(bf16)
    a1_out_b = params["a1_out"].astype(bf16)          # (Fout, 1)
    a2_out_b = params["a2_out"].astype(bf16)          # (Fout, 1)

    cparams = pltpu.CompilerParams(
        dimension_semantics=("parallel",),            # 2x on v7x (2 TCs/chip)
        vmem_limit_bytes=48 * 1024 * 1024)            # safe on v5e/v6e/v7x

    row = lambda i: (i, 0)        # row-tiled operand / output
    const = lambda i: (0, 0)      # resident weight / full-extent operand

    # ---- pass 1: projections ------------------------------------------------
    qx, kx, wh_all, wh1, wh2 = pl.pallas_call(
        proj_kernel,
        grid=(nt,),
        in_specs=[
            pl.BlockSpec((tile_r, Fin), row),             # x
            pl.BlockSpec((Fin, Fin), const),              # Wq
            pl.BlockSpec((1, Fin), const),                # bq
            pl.BlockSpec((Fin, Fin), const),              # Wk
            pl.BlockSpec((1, Fin), const),                # bk
            pl.BlockSpec((Fin, H * nhid), const),         # W_all
            pl.BlockSpec((H * nhid, H), const),           # a1 block-diag
            pl.BlockSpec((H * nhid, H), const),           # a2 block-diag
        ],
        out_specs=[
            pl.BlockSpec((tile_r, Fin), row),             # qx
            pl.BlockSpec((tile_r, Fin), row),             # kx
            pl.BlockSpec((tile_r, H * nhid), row),        # Wh_all
            pl.BlockSpec((tile_r, H), row),               # Wh1 per head
            pl.BlockSpec((tile_r, H), row),               # Wh2 per head
        ],
        out_shape=[
            jax.ShapeDtypeStruct((N, Fin), bf16),
            jax.ShapeDtypeStruct((N, Fin), bf16),
            jax.ShapeDtypeStruct((N, H * nhid), bf16),
            jax.ShapeDtypeStruct((N, H), f32),
            jax.ShapeDtypeStruct((N, H), f32),
        ],
        compiler_params=cparams,
    )(x_b, wq_b, bq, wk_b, bk, W_all_b, a1_bd_b, a2_bd_b)

    wh2T = wh2.T                                          # (H, N), wrapper-side plumbing

    # ---- pass 2: hidden heads + output-layer projection ----------------------
    kern2 = functools.partial(hidden_attn_kernel, alpha=float(alpha),
                              nheads=H, nhid=nhid)
    wh_o, wh1_o, wh2_o = pl.pallas_call(
        kern2,
        grid=(nt,),
        in_specs=[
            pl.BlockSpec((tile_r, Fin), row),             # qx (rows)
            pl.BlockSpec((N, Fin), const),                # kx (full)
            pl.BlockSpec((N, H * nhid), const),           # Wh_all (full)
            pl.BlockSpec((tile_r, H), row),               # Wh1 (rows)
            pl.BlockSpec((H, N), const),                  # Wh2^T (full)
            pl.BlockSpec((H * nhid, Fout), const),        # W_out
            pl.BlockSpec((Fout, 1), const),               # a1_out
            pl.BlockSpec((Fout, 1), const),               # a2_out
        ],
        out_specs=[
            pl.BlockSpec((tile_r, Fout), row),            # Wh_o
            pl.BlockSpec((tile_r, 1), row),               # Wh1_o
            pl.BlockSpec((tile_r, 1), row),               # Wh2_o
        ],
        out_shape=[
            jax.ShapeDtypeStruct((N, Fout), bf16),
            jax.ShapeDtypeStruct((N, 1), f32),
            jax.ShapeDtypeStruct((N, 1), f32),
        ],
        compiler_params=cparams,
    )(qx, kx, wh_all, wh1, wh2T, W_out_b, a1_out_b, a2_out_b)

    wh2_oT = wh2_o.T                                      # (1, N)

    # ---- pass 3: output attention + elu + log_softmax ------------------------
    kern3 = functools.partial(out_attn_kernel, alpha=float(alpha))
    out = pl.pallas_call(
        kern3,
        grid=(nt,),
        in_specs=[
            pl.BlockSpec((tile_r, Fin), row),             # qx (rows)
            pl.BlockSpec((N, Fin), const),                # kx (full)
            pl.BlockSpec((N, Fout), const),               # Wh_o (full)
            pl.BlockSpec((tile_r, 1), row),               # Wh1_o (rows)
            pl.BlockSpec((1, N), const),                  # Wh2_o^T (full)
        ],
        out_specs=pl.BlockSpec((tile_r, Fout), row),
        out_shape=jax.ShapeDtypeStruct((N, Fout), f32),
        compiler_params=cparams,
    )(qx, kx, wh_o, wh1_o, wh2_oT)

    return out


# ----------------------------------------------------------------------------
# Deterministic parameter init (shapes follow the PyTorch module __init__)
# ----------------------------------------------------------------------------
def xavier_uniform(key, shape, gain=1.414):
    fan_in, fan_out = shape[-2], shape[-1]
    bound = gain * (6.0 / (fan_in + fan_out)) ** 0.5
    return jax.random.uniform(key, shape, jnp.float32, -bound, bound)


def init_params(key, nfeat, nhid, nfeatout, nheads):
    ks = jax.random.split(key, 8)
    lin_bound = 1.0 / (nfeat ** 0.5)
    params = {
        "wq": jax.random.uniform(ks[0], (nfeat, nfeat), jnp.float32, -lin_bound, lin_bound),
        "bq": jax.random.uniform(ks[1], (1, nfeat), jnp.float32, -lin_bound, lin_bound),
        "wk": jax.random.uniform(ks[2], (nfeat, nfeat), jnp.float32, -lin_bound, lin_bound),
        "bk": jax.random.uniform(ks[3], (1, nfeat), jnp.float32, -lin_bound, lin_bound),
    }
    # hidden heads: W (H, Fin, nhid), a (H, 2*nhid, 1) split into a1/a2
    params["W_heads"] = xavier_uniform(ks[4], (nheads, nfeat, nhid))
    a_heads = xavier_uniform(ks[5], (nheads, 2 * nhid, 1))
    params["a1_heads"] = a_heads[:, :nhid, 0]         # (H, nhid)
    params["a2_heads"] = a_heads[:, nhid:, 0]         # (H, nhid)
    # output layer: W (H*nhid, nfeatout), a (2*nfeatout, 1)
    params["W_out"] = xavier_uniform(ks[6], (nhid * nheads, nfeatout))
    a_out = xavier_uniform(ks[7], (2 * nfeatout, 1))
    params["a1_out"] = a_out[:nfeatout, :]            # (nfeatout, 1)
    params["a2_out"] = a_out[nfeatout:, :]            # (nfeatout, 1)
    return params


if __name__ == "__main__":
    # Small, lane-friendly demo shapes (every matmul dim a multiple of 128,
    # and N large enough to exercise >1 row tile of the parallel grid).
    N, nfeat, nhid, nfeatout, nheads = 256, 128, 128, 128, 4

    key = jax.random.PRNGKey(0)
    kx_key, kp_key = jax.random.split(key)
    x_in = jax.random.normal(kx_key, (N, nfeat), jnp.float32)
    params = init_params(kp_key, nfeat, nhid, nfeatout, nheads)

    fwd = jax.jit(functools.partial(gat_forward, alpha=0.2, tile_r=128))
    out = fwd(x_in, params)
    jax.block_until_ready(out)
    assert out.shape == (N, nfeatout) and out.dtype == jnp.float32
    assert bool(jnp.all(jnp.isfinite(out)))
    print("KERNEL_OK")
</pallas_src>

<mosaic_0001>
module attributes {stable_mosaic.version = 11 : i64} {
  func.func @out_attn_kernel(%arg0: i32, %arg1: memref<128x128xbf16, #tpu.memory_space<vmem>>, %arg2: memref<256x128xbf16, #tpu.memory_space<vmem>>, %arg3: memref<256x128xbf16, #tpu.memory_space<vmem>>, %arg4: memref<128x1xf32, #tpu.memory_space<vmem>>, %arg5: memref<1x256xf32, #tpu.memory_space<vmem>>, %arg6: memref<128x128xf32, #tpu.memory_space<vmem>>) attributes {dimension_semantics = [#tpu.dimension_semantics<parallel>], iteration_bounds = array<i64: 2>, scalar_prefetch = 0 : i64, scratch_operands = 0 : i64, tpu.core_type = #tpu.core_type<tc>, window_params = [{transform_indices = @transform_0, window_bounds = array<i64: 128, 128>}, {pipeline_mode = #tpu.pipeline_mode<synchronous>, transform_indices = @transform_1, window_bounds = array<i64: 256, 128>}, {pipeline_mode = #tpu.pipeline_mode<synchronous>, transform_indices = @transform_2, window_bounds = array<i64: 256, 128>}, {transform_indices = @transform_3, window_bounds = array<i64: 128, 1>}, {pipeline_mode = #tpu.pipeline_mode<synchronous>, transform_indices = @transform_4, window_bounds = array<i64: 1, 256>}, {transform_indices = @transform_5, window_bounds = array<i64: 128, 128>}]} {
    %c0 = arith.constant 0 : index
    %c0_0 = arith.constant 0 : index
    %0 = vector.load %arg1[%c0, %c0_0] : memref<128x128xbf16, #tpu.memory_space<vmem>>, vector<128x128xbf16>
    %c0_1 = arith.constant 0 : index
    %c0_2 = arith.constant 0 : index
    %1 = vector.load %arg2[%c0_1, %c0_2] : memref<256x128xbf16, #tpu.memory_space<vmem>>, vector<256x128xbf16>
    %cst = arith.constant dense<0.000000e+00> : vector<128x256xf32>
    %2 = tpu.matmul %0, %1, %cst {dimension_numbers = #tpu.dot_dimension_numbers<[1], [1], [0], [0], [0, 0, 1, 0], [], []>} : vector<128x128xbf16>, vector<256x128xbf16>, vector<128x256xf32> -> vector<128x256xf32>
    %3 = arith.mulf %2, %2 : vector<128x256xf32>
    %cst_3 = arith.constant 0.000000e+00 : f32
    %4 = vector.broadcast %cst_3 : f32 to vector<128x256xf32>
    %5 = arith.cmpf ogt, %3, %4 : vector<128x256xf32>
    %c0_4 = arith.constant 0 : index
    %c0_5 = arith.constant 0 : index
    %6 = vector.load %arg4[%c0_4, %c0_5] : memref<128x1xf32, #tpu.memory_space<vmem>>, vector<128x1xf32>
    %c0_6 = arith.constant 0 : index
    %c0_7 = arith.constant 0 : index
    %7 = vector.load %arg5[%c0_6, %c0_7] : memref<1x256xf32, #tpu.memory_space<vmem>>, vector<1x256xf32>
    %8 = vector.broadcast %6 : vector<128x1xf32> to vector<128x256xf32>
    %9 = vector.broadcast %7 : vector<1x256xf32> to vector<128x256xf32>
    %10 = arith.addf %8, %9 : vector<128x256xf32>
    %cst_8 = arith.constant 0.000000e+00 : f32
    %11 = vector.broadcast %cst_8 : f32 to vector<128x256xf32>
    %12 = arith.cmpf ogt, %10, %11 : vector<128x256xf32>
    %cst_9 = arith.constant 2.000000e-01 : f32
    %13 = vector.broadcast %cst_9 : f32 to vector<128x256xf32>
    %14 = arith.mulf %13, %10 : vector<128x256xf32>
    %15 = arith.select %12, %10, %14 : vector<128x256xi1>, vector<128x256xf32>
    %cst_10 = arith.constant -9.000000e+15 : f32
    %16 = vector.broadcast %cst_10 : f32 to vector<128x256xf32>
    %17 = arith.select %5, %15, %16 : vector<128x256xi1>, vector<128x256xf32>
    %cst_11 = arith.constant dense<0xFF800000> : vector<128xf32>
    %18 = vector.multi_reduction <maximumf>, %17, %cst_11 [1] : vector<128x256xf32> to vector<128xf32>
    %19 = vector.shape_cast %18 : vector<128xf32> to vector<128x1xf32>
    %20 = vector.broadcast %19 : vector<128x1xf32> to vector<128x256xf32>
    %21 = arith.subf %17, %20 : vector<128x256xf32>
    %22 = math.exp %21 : vector<128x256xf32>
    %cst_12 = arith.constant dense<0.000000e+00> : vector<128xf32>
    %23 = vector.multi_reduction <add>, %22, %cst_12 [1] : vector<128x256xf32> to vector<128xf32>
    %24 = vector.shape_cast %23 : vector<128xf32> to vector<128x1xf32>
    %25 = vector.broadcast %24 : vector<128x1xf32> to vector<128x256xf32>
    %26 = arith.divf %22, %25 : vector<128x256xf32>
    %27 = arith.truncf %26 : vector<128x256xf32> to vector<128x256xbf16>
    %c0_13 = arith.constant 0 : index
    %c0_14 = arith.constant 0 : index
    %28 = vector.load %arg3[%c0_13, %c0_14] : memref<256x128xbf16, #tpu.memory_space<vmem>>, vector<256x128xbf16>
    %cst_15 = arith.constant dense<0.000000e+00> : vector<128x128xf32>
    %29 = tpu.matmul %27, %28, %cst_15 {dimension_numbers = #tpu.dot_dimension_numbers<[1], [0], [0], [1], [0, 0, 1, 1], [], []>} : vector<128x256xbf16>, vector<256x128xbf16>, vector<128x128xf32> -> vector<128x128xf32>
    %cst_16 = arith.constant 0.000000e+00 : f32
    %30 = vector.broadcast %cst_16 : f32 to vector<128x128xf32>
    %31 = arith.cmpf ogt, %29, %30 : vector<128x128xf32>
    %cst_17 = arith.constant 0.000000e+00 : f32
    %32 = vector.broadcast %cst_17 : f32 to vector<128x128xf32>
    %33 = arith.minimumf %29, %32 : vector<128x128xf32>
    %34 = math.exp %33 : vector<128x128xf32>
    %cst_18 = arith.constant 1.000000e+00 : f32
    %35 = vector.broadcast %cst_18 : f32 to vector<128x128xf32>
    %36 = arith.subf %34, %35 : vector<128x128xf32>
    %37 = arith.select %31, %29, %36 : vector<128x128xi1>, vector<128x128xf32>
    %cst_19 = arith.constant dense<0xFF800000> : vector<128xf32>
    %38 = vector.multi_reduction <maximumf>, %37, %cst_19 [1] : vector<128x128xf32> to vector<128xf32>
    %39 = vector.shape_cast %38 : vector<128xf32> to vector<128x1xf32>
    %40 = vector.broadcast %39 : vector<128x1xf32> to vector<128x128xf32>
    %41 = arith.subf %37, %40 : vector<128x128xf32>
    %42 = math.exp %41 : vector<128x128xf32>
    %cst_20 = arith.constant dense<0.000000e+00> : vector<128xf32>
    %43 = vector.multi_reduction <add>, %42, %cst_20 [1] : vector<128x128xf32> to vector<128xf32>
    %44 = vector.shape_cast %43 : vector<128xf32> to vector<128x1xf32>
    %45 = math.log %44 : vector<128x1xf32>
    %46 = vector.broadcast %45 : vector<128x1xf32> to vector<128x128xf32>
    %47 = arith.subf %41, %46 : vector<128x128xf32>
    %c0_21 = arith.constant 0 : index
    %c0_22 = arith.constant 0 : index
    %48 = vector.load %arg6[%c0_21, %c0_22] : memref<128x128xf32, #tpu.memory_space<vmem>>, vector<128x128xf32>
    tpu.vector_store %arg6[%c0_21, %c0_22], %47 {strides = array<i32>} : memref<128x128xf32, #tpu.memory_space<vmem>>, vector<128x128xf32>,
    return
  }
  func.func @transform_0(%arg0: i32) -> (i32, i32) {
    %c0_i32 = arith.constant 0 : i32
    %c0_i32_0 = arith.constant 0 : i32
    return %arg0, %c0_i32 : i32, i32
  }
  func.func @transform_1(%arg0: i32) -> (i32, i32) {
    %c0_i32 = arith.constant 0 : i32
    %c0_i32_0 = arith.constant 0 : i32
    %c0_i32_1 = arith.constant 0 : i32
    return %c0_i32, %c0_i32_0 : i32, i32
  }
  func.func @transform_2(%arg0: i32) -> (i32, i32) {
    %c0_i32 = arith.constant 0 : i32
    %c0_i32_0 = arith.constant 0 : i32
    %c0_i32_1 = arith.constant 0 : i32
    return %c0_i32, %c0_i32_0 : i32, i32
  }
  func.func @transform_3(%arg0: i32) -> (i32, i32) {
    %c0_i32 = arith.constant 0 : i32
    %c0_i32_0 = arith.constant 0 : i32
    return %arg0, %c0_i32 : i32, i32
  }
  func.func @transform_4(%arg0: i32) -> (i32, i32) {
    %c0_i32 = arith.constant 0 : i32
    %c0_i32_0 = arith.constant 0 : i32
    %c0_i32_1 = arith.constant 0 : i32
    return %c0_i32, %c0_i32_0 : i32, i32
  }
  func.func @transform_5(%arg0: i32) -> (i32, i32) {
    %c0_i32 = arith.constant 0 : i32
    %c0_i32_0 = arith.constant 0 : i32
    return %arg0, %c0_i32 : i32, i32
  }
}

module attributes {stable_mosaic.version = 11 : i64} {
  func.func @proj_kernel(%arg0: i32, %arg1: memref<128x128xbf16, #tpu.memory_space<vmem>>, %arg2: memref<128x128xbf16, #tpu.memory_space<vmem>>, %arg3: memref<1x128xf32, #tpu.memory_space<vmem>>, %arg4: memref<128x128xbf16, #tpu.memory_space<vmem>>, %arg5: memref<1x128xf32, #tpu.memory_space<vmem>>, %arg6: memref<128x512xbf16, #tpu.memory_space<vmem>>, %arg7: memref<512x4xbf16, #tpu.memory_space<vmem>>, %arg8: memref<512x4xbf16, #tpu.memory_space<vmem>>, %arg9: memref<128x128xbf16, #tpu.memory_space<vmem>>, %arg10: memref<128x128xbf16, #tpu.memory_space<vmem>>, %arg11: memref<128x512xbf16, #tpu.memory_space<vmem>>, %arg12: memref<128x4xf32, #tpu.memory_space<vmem>>, %arg13: memref<128x4xf32, #tpu.memory_space<vmem>>) attributes {dimension_semantics = [#tpu.dimension_semantics<parallel>], iteration_bounds = array<i64: 2>, scalar_prefetch = 0 : i64, scratch_operands = 0 : i64, tpu.core_type = #tpu.core_type<tc>, window_params = [{transform_indices = @transform_0, window_bounds = array<i64: 128, 128>}, {pipeline_mode = #tpu.pipeline_mode<synchronous>, transform_indices = @transform_1, window_bounds = array<i64: 128, 128>}, {pipeline_mode = #tpu.pipeline_mode<synchronous>, transform_indices = @transform_2, window_bounds = array<i64: 1, 128>}, {pipeline_mode = #tpu.pipeline_mode<synchronous>, transform_indices = @transform_3, window_bounds = array<i64: 128, 128>}, {pipeline_mode = #tpu.pipeline_mode<synchronous>, transform_indices = @transform_4, window_bounds = array<i64: 1, 128>}, {pipeline_mode = #tpu.pipeline_mode<synchronous>, transform_indices = @transform_5, window_bounds = array<i64: 128, 512>}, {pipeline_mode = #tpu.pipeline_mode<synchronous>, transform_indices = @transform_6, window_bounds = array<i64: 512, 4>}, {pipeline_mode = #tpu.pipeline_mode<synchronous>, transform_indices = @transform_7, window_bounds = array<i64: 512, 4>}, {transform_indices = @transform_8, window_bounds = array<i64: 128, 128>}, {transform_indices = @transform_9, window_bounds = array<i64: 128, 128>}, {transform_indices = @transform_10, window_bounds = array<i64: 128, 512>}, {transform_indices = @transform_11, window_bounds = array<i64: 128, 4>}, {transform_indices = @transform_12, window_bounds = array<i64: 128, 4>}]} {
    %c0 = arith.constant 0 : index
    %c0_0 = arith.constant 0 : index
    %0 = vector.load %arg1[%c0, %c0_0] : memref<128x128xbf16, #tpu.memory_space<vmem>>, vector<128x128xbf16>
    %c0_1 = arith.constant 0 : index
    %c0_2 = arith.constant 0 : index
    %1 = vector.load %arg2[%c0_1, %c0_2] : memref<128x128xbf16, #tpu.memory_space<vmem>>, vector<128x128xbf16>
    %cst = arith.constant dense<0.000000e+00> : vector<128x128xf32>
    %2 = tpu.matmul %0, %1, %cst {dimension_numbers = #tpu.dot_dimension_numbers<[1], [0], [0], [1], [0, 0, 1, 1], [], []>} : vector<128x128xbf16>, vector<128x128xbf16>, vector<128x128xf32> -> vector<128x128xf32>
    %c0_3 = arith.constant 0 : index
    %c0_4 = arith.constant 0 : index
    %3 = vector.load %arg3[%c0_3, %c0_4] : memref<1x128xf32, #tpu.memory_space<vmem>>, vector<1x128xf32>
    %4 = vector.broadcast %3 : vector<1x128xf32> to vector<128x128xf32>
    %5 = arith.addf %2, %4 : vector<128x128xf32>
    %c0_5 = arith.constant 0 : index
    %c0_6 = arith.constant 0 : index
    %6 = vector.load %arg4[%c0_5, %c0_6] : memref<128x128xbf16, #tpu.memory_space<vmem>>, vector<128x128xbf16>
    %cst_7 = arith.constant dense<0.000000e+00> : vector<128x128xf32>
    %7 = tpu.matmul %0, %6, %cst_7 {dimension_numbers = #tpu.dot_dimension_numbers<[1], [0], [0], [1], [0, 0, 1, 1], [], []>} : vector<128x128xbf16>, vector<128x128xbf16>, vector<128x128xf32> -> vector<128x128xf32>
    %c0_8 = arith.constant 0 : index
    %c0_9 = arith.constant 0 : index
    %8 = vector.load %arg5[%c0_8, %c0_9] : memref<1x128xf32, #tpu.memory_space<vmem>>, vector<1x128xf32>
    %9 = vector.broadcast %8 : vector<1x128xf32> to vector<128x128xf32>
    %10 = arith.addf %7, %9 : vector<128x128xf32>
    %11 = arith.truncf %5 : vector<128x128xf32> to vector<128x128xbf16>
    %c0_10 = arith.constant 0 : index
    %c0_11 = arith.constant 0 : index
    %12 = vector.load %arg9[%c0_10, %c0_11] : memref<128x128xbf16, #tpu.memory_space<vmem>>, vector<128x128xbf16>
    tpu.vector_store %arg9[%c0_10, %c0_11], %11 {strides = array<i32>} : memref<128x128xbf16, #tpu.memory_space<vmem>>, vector<128x128xbf16>,
    %13 = arith.truncf %10 : vector<128x128xf32> to vector<128x128xbf16>
    %c0_12 = arith.constant 0 : index
    %c0_13 = arith.constant 0 : index
    %14 = vector.load %arg10[%c0_12, %c0_13] : memref<128x128xbf16, #tpu.memory_space<vmem>>, vector<128x128xbf16>
    tpu.vector_store %arg10[%c0_12, %c0_13], %13 {strides = array<i32>} : memref<128x128xbf16, #tpu.memory_space<vmem>>, vector<128x128xbf16>,
    %c0_14 = arith.constant 0 : index
    %c0_15 = arith.constant 0 : index
    %15 = vector.load %arg6[%c0_14, %c0_15] : memref<128x512xbf16, #tpu.memory_space<vmem>>, vector<128x512xbf16>
    %cst_16 = arith.constant dense<0.000000e+00> : vector<128x512xf32>
    %16 = tpu.matmul %0, %15, %cst_16 {dimension_numbers = #tpu.dot_dimension_numbers<[1], [0], [0], [1], [0, 0, 1, 1], [], []>} : vector<128x128xbf16>, vector<128x512xbf16>, vector<128x512xf32> -> vector<128x512xf32>
    %17 = arith.truncf %16 : vector<128x512xf32> to vector<128x512xbf16>
    %c0_17 = arith.constant 0 : index
    %c0_18 = arith.constant 0 : index
    %18 = vector.load %arg11[%c0_17, %c0_18] : memref<128x512xbf16, #tpu.memory_space<vmem>>, vector<128x512xbf16>
    tpu.vector_store %arg11[%c0_17, %c0_18], %17 {strides = array<i32>} : memref<128x512xbf16, #tpu.memory_space<vmem>>, vector<128x512xbf16>,
    %c0_19 = arith.constant 0 : index
    %c0_20 = arith.constant 0 : index
    %19 = vector.load %arg7[%c0_19, %c0_20] : memref<512x4xbf16, #tpu.memory_space<vmem>>, vector<512x4xbf16>
    %cst_21 = arith.constant dense<0.000000e+00> : vector<128x4xf32>
    %20 = tpu.matmul %17, %19, %cst_21 {dimension_numbers = #tpu.dot_dimension_numbers<[1], [0], [0], [1], [0, 0, 1, 1], [], []>} : vector<128x512xbf16>, vector<512x4xbf16>, vector<128x4xf32> -> vector<128x4xf32>
    %c0_22 = arith.constant 0 : index
    %c0_23 = arith.constant 0 : index
    %21 = vector.load %arg12[%c0_22, %c0_23] : memref<128x4xf32, #tpu.memory_space<vmem>>, vector<128x4xf32>
    tpu.vector_store %arg12[%c0_22, %c0_23], %20 {strides = array<i32>} : memref<128x4xf32, #tpu.memory_space<vmem>>, vector<128x4xf32>,
    %c0_24 = arith.constant 0 : index
    %c0_25 = arith.constant 0 : index
    %22 = vector.load %arg8[%c0_24, %c0_25] : memref<512x4xbf16, #tpu.memory_space<vmem>>, vector<512x4xbf16>
    %cst_26 = arith.constant dense<0.000000e+00> : vector<128x4xf32>
    %23 = tpu.matmul %17, %22, %cst_26 {dimension_numbers = #tpu.dot_dimension_numbers<[1], [0], [0], [1], [0, 0, 1, 1], [], []>} : vector<128x512xbf16>, vector<512x4xbf16>, vector<128x4xf32> -> vector<128x4xf32>
    %c0_27 = arith.constant 0 : index
    %c0_28 = arith.constant 0 : index
    %24 = vector.load %arg13[%c0_27, %c0_28] : memref<128x4xf32, #tpu.memory_space<vmem>>, vector<128x4xf32>
    tpu.vector_store %arg13[%c0_27, %c0_28], %23 {strides = array<i32>} : memref<128x4xf32, #tpu.memory_space<vmem>>, vector<128x4xf32>,
    return
  }
  func.func @transform_0(%arg0: i32) -> (i32, i32) {
    %c0_i32 = arith.constant 0 : i32
    %c0_i32_0 = arith.constant 0 : i32
    return %arg0, %c0_i32 : i32, i32
  }
  func.func @transform_1(%arg0: i32) -> (i32, i32) {
    %c0_i32 = arith.constant 0 : i32
    %c0_i32_0 = arith.constant 0 : i32
    %c0_i32_1 = arith.constant 0 : i32
    return %c0_i32, %c0_i32_0 : i32, i32
  }
  func.func @transform_2(%arg0: i32) -> (i32, i32) {
    %c0_i32 = arith.constant 0 : i32
    %c0_i32_0 = arith.constant 0 : i32
    %c0_i32_1 = arith.constant 0 : i32
    return %c0_i32, %c0_i32_0 : i32, i32
  }
  func.func @transform_3(%arg0: i32) -> (i32, i32) {
    %c0_i32 = arith.constant 0 : i32
    %c0_i32_0 = arith.constant 0 : i32
    %c0_i32_1 = arith.constant 0 : i32
    return %c0_i32, %c0_i32_0 : i32, i32
  }
  func.func @transform_4(%arg0: i32) -> (i32, i32) {
    %c0_i32 = arith.constant 0 : i32
    %c0_i32_0 = arith.constant 0 : i32
    %c0_i32_1 = arith.constant 0 : i32
    return %c0_i32, %c0_i32_0 : i32, i32
  }
  func.func @transform_5(%arg0: i32) -> (i32, i32) {
    %c0_i32 = arith.constant 0 : i32
    %c0_i32_0 = arith.constant 0 : i32
    %c0_i32_1 = arith.constant 0 : i32
    return %c0_i32, %c0_i32_0 : i32, i32
  }
  func.func @transform_6(%arg0: i32) -> (i32, i32) {
    %c0_i32 = arith.constant 0 : i32
    %c0_i32_0 = arith.constant 0 : i32
    %c0_i32_1 = arith.constant 0 : i32
    return %c0_i32, %c0_i32_0 : i32, i32
  }
  func.func @transform_7(%arg0: i32) -> (i32, i32) {
    %c0_i32 = arith.constant 0 : i32
    %c0_i32_0 = arith.constant 0 : i32
    %c0_i32_1 = arith.constant 0 : i32
    return %c0_i32, %c0_i32_0 : i32, i32
  }
  func.func @transform_8(%arg0: i32) -> (i32, i32) {
    %c0_i32 = arith.constant 0 : i32
    %c0_i32_0 = arith.constant 0 : i32
    return %arg0, %c0_i32 : i32, i32
  }
  func.func @transform_9(%arg0: i32) -> (i32, i32) {
    %c0_i32 = arith.constant 0 : i32
    %c0_i32_0 = arith.constant 0 : i32
    return %arg0, %c0_i32 : i32, i32
  }
  func.func @transform_10(%arg0: i32) -> (i32, i32) {
    %c0_i32 = arith.constant 0 : i32
    %c0_i32_0 = arith.constant 0 : i32
    return %arg0, %c0_i32 : i32, i32
  }
  func.func @transform_11(%arg0: i32) -> (i32, i32) {
    %c0_i32 = arith.constant 0 : i32
    %c0_i32_0 = arith.constant 0 : i32
    return %arg0, %c0_i32 : i32, i32
  }
  func.func @transform_12(%arg0: i32) -> (i32, i32) {
    %c0_i32 = arith.constant 0 : i32
    %c0_i32_0 = arith.constant 0 : i32
    return %arg0, %c0_i32 : i32, i32
  }
}

module attributes {stable_mosaic.version = 11 : i64} {
  func.func @hidden_attn_kernel(%arg0: i32, %arg1: memref<128x128xbf16, #tpu.memory_space<vmem>>, %arg2: memref<256x128xbf16, #tpu.memory_space<vmem>>, %arg3: memref<256x512xbf16, #tpu.memory_space<vmem>>, %arg4: memref<128x4xf32, #tpu.memory_space<vmem>>, %arg5: memref<4x256xf32, #tpu.memory_space<vmem>>, %arg6: memref<512x128xbf16, #tpu.memory_space<vmem>>, %arg7: memref<128x1xbf16, #tpu.memory_space<vmem>>, %arg8: memref<128x1xbf16, #tpu.memory_space<vmem>>, %arg9: memref<128x128xbf16, #tpu.memory_space<vmem>>, %arg10: memref<128x1xf32, #tpu.memory_space<vmem>>, %arg11: memref<128x1xf32, #tpu.memory_space<vmem>>) attributes {dimension_semantics = [#tpu.dimension_semantics<parallel>], iteration_bounds = array<i64: 2>, scalar_prefetch = 0 : i64, scratch_operands = 0 : i64, tpu.core_type = #tpu.core_type<tc>, window_params = [{transform_indices = @transform_0, window_bounds = array<i64: 128, 128>}, {pipeline_mode = #tpu.pipeline_mode<synchronous>, transform_indices = @transform_1, window_bounds = array<i64: 256, 128>}, {pipeline_mode = #tpu.pipeline_mode<synchronous>, transform_indices = @transform_2, window_bounds = array<i64: 256, 512>}, {transform_indices = @transform_3, window_bounds = array<i64: 128, 4>}, {pipeline_mode = #tpu.pipeline_mode<synchronous>, transform_indices = @transform_4, window_bounds = array<i64: 4, 256>}, {pipeline_mode = #tpu.pipeline_mode<synchronous>, transform_indices = @transform_5, window_bounds = array<i64: 512, 128>}, {pipeline_mode = #tpu.pipeline_mode<synchronous>, transform_indices = @transform_6, window_bounds = array<i64: 128, 1>}, {pipeline_mode = #tpu.pipeline_mode<synchronous>, transform_indices = @transform_7, window_bounds = array<i64: 128, 1>}, {transform_indices = @transform_8, window_bounds = array<i64: 128, 128>}, {transform_indices = @transform_9, window_bounds = array<i64: 128, 1>}, {transform_indices = @transform_10, window_bounds = array<i64: 128, 1>}]} {
    %c0 = arith.constant 0 : index
    %c0_0 = arith.constant 0 : index
    %0 = vector.load %arg1[%c0, %c0_0] : memref<128x128xbf16, #tpu.memory_space<vmem>>, vector<128x128xbf16>
    %c0_1 = arith.constant 0 : index
    %c0_2 = arith.constant 0 : index
    %1 = vector.load %arg2[%c0_1, %c0_2] : memref<256x128xbf16, #tpu.memory_space<vmem>>, vector<256x128xbf16>
    %cst = arith.constant dense<0.000000e+00> : vector<128x256xf32>
    %2 = tpu.matmul %0, %1, %cst {dimension_numbers = #tpu.dot_dimension_numbers<[1], [1], [0], [0], [0, 0, 1, 0], [], []>} : vector<128x128xbf16>, vector<256x128xbf16>, vector<128x256xf32> -> vector<128x256xf32>
    %3 = arith.mulf %2, %2 : vector<128x256xf32>
    %cst_3 = arith.constant 0.000000e+00 : f32
    %4 = vector.broadcast %cst_3 : f32 to vector<128x256xf32>
    %5 = arith.cmpf ogt, %3, %4 : vector<128x256xf32>
    %cst_4 = arith.constant 0.000000e+00 : f32
    %6 = vector.broadcast %cst_4 : f32 to vector<128x128xf32>
    %c0_5 = arith.constant 0 : index
    %c0_6 = arith.constant 0 : index
    %7 = vector.load %arg4[%c0_5, %c0_6] : memref<128x4xf32, #tpu.memory_space<vmem>>, vector<128x1xf32>
    %c0_7 = arith.constant 0 : index
    %c0_8 = arith.constant 0 : index
    %8 = vector.load %arg5[%c0_7, %c0_8] : memref<4x256xf32, #tpu.memory_space<vmem>>, vector<1x256xf32>
    %9 = vector.broadcast %7 : vector<128x1xf32> to vector<128x256xf32>
    %10 = vector.broadcast %8 : vector<1x256xf32> to vector<128x256xf32>
    %11 = arith.addf %9, %10 : vector<128x256xf32>
    %cst_9 = arith.constant 0.000000e+00 : f32
    %12 = vector.broadcast %cst_9 : f32 to vector<128x256xf32>
    %13 = arith.cmpf ogt, %11, %12 : vector<128x256xf32>
    %cst_10 = arith.constant 2.000000e-01 : f32
    %14 = vector.broadcast %cst_10 : f32 to vector<128x256xf32>
    %15 = arith.mulf %14, %11 : vector<128x256xf32>
    %16 = arith.select %13, %11, %15 : vector<128x256xi1>, vector<128x256xf32>
    %cst_11 = arith.constant -9.000000e+15 : f32
    %17 = vector.broadcast %cst_11 : f32 to vector<128x256xf32>
    %18 = arith.select %5, %16, %17 : vector<128x256xi1>, vector<128x256xf32>
    %cst_12 = arith.constant dense<0xFF800000> : vector<128xf32>
    %19 = vector.multi_reduction <maximumf>, %18, %cst_12 [1] : vector<128x256xf32> to vector<128xf32>
    %20 = vector.shape_cast %19 : vector<128xf32> to vector<128x1xf32>
    %21 = vector.broadcast %20 : vector<128x1xf32> to vector<128x256xf32>
    %22 = arith.subf %18, %21 : vector<128x256xf32>
    %23 = math.exp %22 : vector<128x256xf32>
    %cst_13 = arith.constant dense<0.000000e+00> : vector<128xf32>
    %24 = vector.multi_reduction <add>, %23, %cst_13 [1] : vector<128x256xf32> to vector<128xf32>
    %25 = vector.shape_cast %24 : vector<128xf32> to vector<128x1xf32>
    %26 = vector.broadcast %25 : vector<128x1xf32> to vector<128x256xf32>
    %27 = arith.divf %23, %26 : vector<128x256xf32>
    %28 = arith.truncf %27 : vector<128x256xf32> to vector<128x256xbf16>
    %c0_14 = arith.constant 0 : index
    %c0_15 = arith.constant 0 : index
    %29 = vector.load %arg3[%c0_14, %c0_15] : memref<256x512xbf16, #tpu.memory_space<vmem>>, vector<256x128xbf16>
    %cst_16 = arith.constant dense<0.000000e+00> : vector<128x128xf32>
    %30 = tpu.matmul %28, %29, %cst_16 {dimension_numbers = #tpu.dot_dimension_numbers<[1], [0], [0], [1], [0, 0, 1, 1], [], []>} : vector<128x256xbf16>, vector<256x128xbf16>, vector<128x128xf32> -> vector<128x128xf32>
    %cst_17 = arith.constant 0.000000e+00 : f32
    %31 = vector.broadcast %cst_17 : f32 to vector<128x128xf32>
    %32 = arith.cmpf ogt, %30, %31 : vector<128x128xf32>
    %cst_18 = arith.constant 0.000000e+00 : f32
    %33 = vector.broadcast %cst_18 : f32 to vector<128x128xf32>
    %34 = arith.minimumf %30, %33 : vector<128x128xf32>
    %35 = math.exp %34 : vector<128x128xf32>
    %cst_19 = arith.constant 1.000000e+00 : f32
    %36 = vector.broadcast %cst_19 : f32 to vector<128x128xf32>
    %37 = arith.subf %35, %36 : vector<128x128xf32>
    %38 = arith.select %32, %30, %37 : vector<128x128xi1>, vector<128x128xf32>
    %39 = arith.truncf %38 : vector<128x128xf32> to vector<128x128xbf16>
    %c0_20 = arith.constant 0 : index
    %c0_21 = arith.constant 0 : index
    %40 = vector.load %arg6[%c0_20, %c0_21] : memref<512x128xbf16, #tpu.memory_space<vmem>>, vector<128x128xbf16>
    %cst_22 = arith.constant dense<0.000000e+00> : vector<128x128xf32>
    %41 = tpu.matmul %39, %40, %cst_22 {dimension_numbers = #tpu.dot_dimension_numbers<[1], [0], [0], [1], [0, 0, 1, 1], [], []>} : vector<128x128xbf16>, vector<128x128xbf16>, vector<128x128xf32> -> vector<128x128xf32>
    %42 = arith.addf %6, %41 : vector<128x128xf32>
    %c0_23 = arith.constant 0 : index
    %c1 = arith.constant 1 : index
    %43 = vector.load %arg4[%c0_23, %c1] : memref<128x4xf32, #tpu.memory_space<vmem>>, vector<128x1xf32>
    %c1_24 = arith.constant 1 : index
    %c0_25 = arith.constant 0 : index
    %44 = vector.load %arg5[%c1_24, %c0_25] : memref<4x256xf32, #tpu.memory_space<vmem>>, vector<1x256xf32>
    %45 = vector.broadcast %43 : vector<128x1xf32> to vector<128x256xf32>
    %46 = vector.broadcast %44 : vector<1x256xf32> to vector<128x256xf32>
    %47 = arith.addf %45, %46 : vector<128x256xf32>
    %cst_26 = arith.constant 0.000000e+00 : f32
    %48 = vector.broadcast %cst_26 : f32 to vector<128x256xf32>
    %49 = arith.cmpf ogt, %47, %48 : vector<128x256xf32>
    %cst_27 = arith.constant 2.000000e-01 : f32
    %50 = vector.broadcast %cst_27 : f32 to vector<128x256xf32>
    %51 = arith.mulf %50, %47 : vector<128x256xf32>
    %52 = arith.select %49, %47, %51 : vector<128x256xi1>, vector<128x256xf32>
    %cst_28 = arith.constant -9.000000e+15 : f32
    %53 = vector.broadcast %cst_28 : f32 to vector<128x256xf32>
    %54 = arith.select %5, %52, %53 : vector<128x256xi1>, vector<128x256xf32>
    %cst_29 = arith.constant dense<0xFF800000> : vector<128xf32>
    %55 = vector.multi_reduction <maximumf>, %54, %cst_29 [1] : vector<128x256xf32> to vector<128xf32>
    %56 = vector.shape_cast %55 : vector<128xf32> to vector<128x1xf32>
    %57 = vector.broadcast %56 : vector<128x1xf32> to vector<128x256xf32>
    %58 = arith.subf %54, %57 : vector<128x256xf32>
    %59 = math.exp %58 : vector<128x256xf32>
    %cst_30 = arith.constant dense<0.000000e+00> : vector<128xf32>
    %60 = vector.multi_reduction <add>, %59, %cst_30 [1] : vector<128x256xf32> to vector<128xf32>
    %61 = vector.shape_cast %60 : vector<128xf32> to vector<128x1xf32>
    %62 = vector.broadcast %61 : vector<128x1xf32> to vector<128x256xf32>
    %63 = arith.divf %59, %62 : vector<128x256xf32>
    %64 = arith.truncf %63 : vector<128x256xf32> to vector<128x256xbf16>
    %c0_31 = arith.constant 0 : index
    %c128 = arith.constant 128 : index
    %65 = vector.load %arg3[%c0_31, %c128] : memref<256x512xbf16, #tpu.memory_space<vmem>>, vector<256x128xbf16>
    %cst_32 = arith.constant dense<0.000000e+00> : vector<128x128xf32>
    %66 = tpu.matmul %64, %65, %cst_32 {dimension_numbers = #tpu.dot_dimension_numbers<[1], [0], [0], [1], [0, 0, 1, 1], [], []>} : vector<128x256xbf16>, vector<256x128xbf16>, vector<128x128xf32> -> vector<128x128xf32>
    %cst_33 = arith.constant 0.000000e+00 : f32
    %67 = vector.broadcast %cst_33 : f32 to vector<128x128xf32>
    %68 = arith.cmpf ogt, %66, %67 : vector<128x128xf32>
    %cst_34 = arith.constant 0.000000e+00 : f32
    %69 = vector.broadcast %cst_34 : f32 to vector<128x128xf32>
    %70 = arith.minimumf %66, %69 : vector<128x128xf32>
    %71 = math.exp %70 : vector<128x128xf32>
    %cst_35 = arith.constant 1.000000e+00 : f32
    %72 = vector.broadcast %cst_35 : f32 to vector<128x128xf32>
    %73 = arith.subf %71, %72 : vector<128x128xf32>
    %74 = arith.select %68, %66, %73 : vector<128x128xi1>, vector<128x128xf32>
    %75 = arith.truncf %74 : vector<128x128xf32> to vector<128x128xbf16>
    %c128_36 = arith.constant 128 : index
    %c0_37 = arith.constant 0 : index
    %76 = vector.load %arg6[%c128_36, %c0_37] : memref<512x128xbf16, #tpu.memory_space<vmem>>, vector<128x128xbf16>
    %cst_38 = arith.constant dense<0.000000e+00> : vector<128x128xf32>
    %77 = tpu.matmul %75, %76, %cst_38 {dimension_numbers = #tpu.dot_dimension_numbers<[1], [0], [0], [1], [0, 0, 1, 1], [], []>} : vector<128x128xbf16>, vector<128x128xbf16>, vector<128x128xf32> -> vector<128x128xf32>
    %78 = arith.addf %42, %77 : vector<128x128xf32>
    %c0_39 = arith.constant 0 : index
    %c2 = arith.constant 2 : index
    %79 = vector.load %arg4[%c0_39, %c2] : memref<128x4xf32, #tpu.memory_space<vmem>>, vector<128x1xf32>
    %c2_40 = arith.constant 2 : index
    %c0_41 = arith.constant 0 : index
    %80 = vector.load %arg5[%c2_40, %c0_41] : memref<4x256xf32, #tpu.memory_space<vmem>>, vector<1x256xf32>
    %81 = vector.broadcast %79 : vector<128x1xf32> to vector<128x256xf32>
    %82 = vector.broadcast %80 : vector<1x256xf32> to vector<128x256xf32>
    %83 = arith.addf %81, %82 : vector<128x256xf32>
    %cst_42 = arith.constant 0.000000e+00 : f32
    %84 = vector.broadcast %cst_42 : f32 to vector<128x256xf32>
    %85 = arith.cmpf ogt, %83, %84 : vector<128x256xf32>
    %cst_43 = arith.constant 2.000000e-01 : f32
    %86 = vector.broadcast %cst_43 : f32 to vector<128x256xf32>
    %87 = arith.mulf %86, %83 : vector<128x256xf32>
    %88 = arith.select %85, %83, %87 : vector<128x256xi1>, vector<128x256xf32>
    %cst_44 = arith.constant -9.000000e+15 : f32
    %89 = vector.broadcast %cst_44 : f32 to vector<128x256xf32>
    %90 = arith.select %5, %88, %89 : vector<128x256xi1>, vector<128x256xf32>
    %cst_45 = arith.constant dense<0xFF800000> : vector<128xf32>
    %91 = vector.multi_reduction <maximumf>, %90, %cst_45 [1] : vector<128x256xf32> to vector<128xf32>
    %92 = vector.shape_cast %91 : vector<128xf32> to vector<128x1xf32>
    %93 = vector.broadcast %92 : vector<128x1xf32> to vector<128x256xf32>
    %94 = arith.subf %90, %93 : vector<128x256xf32>
    %95 = math.exp %94 : vector<128x256xf32>
    %cst_46 = arith.constant dense<0.000000e+00> : vector<128xf32>
    %96 = vector.multi_reduction <add>, %95, %cst_46 [1] : vector<128x256xf32> to vector<128xf32>
    %97 = vector.shape_cast %96 : vector<128xf32> to vector<128x1xf32>
    %98 = vector.broadcast %97 : vector<128x1xf32> to vector<128x256xf32>
    %99 = arith.divf %95, %98 : vector<128x256xf32>
    %100 = arith.truncf %99 : vector<128x256xf32> to vector<128x256xbf16>
    %c0_47 = arith.constant 0 : index
    %c256 = arith.constant 256 : index
    %101 = vector.load %arg3[%c0_47, %c256] : memref<256x512xbf16, #tpu.memory_space<vmem>>, vector<256x128xbf16>
    %cst_48 = arith.constant dense<0.000000e+00> : vector<128x128xf32>
    %102 = tpu.matmul %100, %101, %cst_48 {dimension_numbers = #tpu.dot_dimension_numbers<[1], [0], [0], [1], [0, 0, 1, 1], [], []>} : vector<128x256xbf16>, vector<256x128xbf16>, vector<128x128xf32> -> vector<128x128xf32>
    %cst_49 = arith.constant 0.000000e+00 : f32
    %103 = vector.broadcast %cst_49 : f32 to vector<128x128xf32>
    %104 = arith.cmpf ogt, %102, %103 : vector<128x128xf32>
    %cst_50 = arith.constant 0.000000e+00 : f32
    %105 = vector.broadcast %cst_50 : f32 to vector<128x128xf32>
    %106 = arith.minimumf %102, %105 : vector<128x128xf32>
    %107 = math.exp %106 : vector<128x128xf32>
    %cst_51 = arith.constant 1.000000e+00 : f32
    %108 = vector.broadcast %cst_51 : f32 to vector<128x128xf32>
    %109 = arith.subf %107, %108 : vector<128x128xf32>
    %110 = arith.select %104, %102, %109 : vector<128x128xi1>, vector<128x128xf32>
    %111 = arith.truncf %110 : vector<128x128xf32> to vector<128x128xbf16>
    %c256_52 = arith.constant 256 : index
    %c0_53 = arith.constant 0 : index
    %112 = vector.load %arg6[%c256_52, %c0_53] : memref<512x128xbf16, #tpu.memory_space<vmem>>, vector<128x128xbf16>
    %cst_54 = arith.constant dense<0.000000e+00> : vector<128x128xf32>
    %113 = tpu.matmul %111, %112, %cst_54 {dimension_numbers = #tpu.dot_dimension_numbers<[1], [0], [0], [1], [0, 0, 1, 1], [], []>} : vector<128x128xbf16>, vector<128x128xbf16>, vector<128x128xf32> -> vector<128x128xf32>
    %114 = arith.addf %78, %113 : vector<128x128xf32>
    %c0_55 = arith.constant 0 : index
    %c3 = arith.constant 3 : index
    %115 = vector.load %arg4[%c0_55, %c3] : memref<128x4xf32, #tpu.memory_space<vmem>>, vector<128x1xf32>
    %c3_56 = arith.constant 3 : index
    %c0_57 = arith.constant 0 : index
    %116 = vector.load %arg5[%c3_56, %c0_57] : memref<4x256xf32, #tpu.memory_space<vmem>>, vector<1x256xf32>
    %117 = vector.broadcast %115 : vector<128x1xf32> to vector<128x256xf32>
    %118 = vector.broadcast %116 : vector<1x256xf32> to vector<128x256xf32>
    %119 = arith.addf %117, %118 : vector<128x256xf32>
    %cst_58 = arith.constant 0.000000e+00 : f32
    %120 = vector.broadcast %cst_58 : f32 to vector<128x256xf32>
    %121 = arith.cmpf ogt, %119, %120 : vector<128x256xf32>
    %cst_59 = arith.constant 2.000000e-01 : f32
    %122 = vector.broadcast %cst_59 : f32 to vector<128x256xf32>
    %123 = arith.mulf %122, %119 : vector<128x256xf32>
    %124 = arith.select %121, %119, %123 : vector<128x256xi1>, vector<128x256xf32>
    %cst_60 = arith.constant -9.000000e+15 : f32
    %125 = vector.broadcast %cst_60 : f32 to vector<128x256xf32>
    %126 = arith.select %5, %124, %125 : vector<128x256xi1>, vector<128x256xf32>
    %cst_61 = arith.constant dense<0xFF800000> : vector<128xf32>
    %127 = vector.multi_reduction <maximumf>, %126, %cst_61 [1] : vector<128x256xf32> to vector<128xf32>
    %128 = vector.shape_cast %127 : vector<128xf32> to vector<128x1xf32>
    %129 = vector.broadcast %128 : vector<128x1xf32> to vector<128x256xf32>
    %130 = arith.subf %126, %129 : vector<128x256xf32>
    %131 = math.exp %130 : vector<128x256xf32>
    %cst_62 = arith.constant dense<0.000000e+00> : vector<128xf32>
    %132 = vector.multi_reduction <add>, %131, %cst_62 [1] : vector<128x256xf32> to vector<128xf32>
    %133 = vector.shape_cast %132 : vector<128xf32> to vector<128x1xf32>
    %134 = vector.broadcast %133 : vector<128x1xf32> to vector<128x256xf32>
    %135 = arith.divf %131, %134 : vector<128x256xf32>
    %136 = arith.truncf %135 : vector<128x256xf32> to vector<128x256xbf16>
    %c0_63 = arith.constant 0 : index
    %c384 = arith.constant 384 : index
    %137 = vector.load %arg3[%c0_63, %c384] : memref<256x512xbf16, #tpu.memory_space<vmem>>, vector<256x128xbf16>
    %cst_64 = arith.constant dense<0.000000e+00> : vector<128x128xf32>
    %138 = tpu.matmul %136, %137, %cst_64 {dimension_numbers = #tpu.dot_dimension_numbers<[1], [0], [0], [1], [0, 0, 1, 1], [], []>} : vector<128x256xbf16>, vector<256x128xbf16>, vector<128x128xf32> -> vector<128x128xf32>
    %cst_65 = arith.constant 0.000000e+00 : f32
    %139 = vector.broadcast %cst_65 : f32 to vector<128x128xf32>
    %140 = arith.cmpf ogt, %138, %139 : vector<128x128xf32>
    %cst_66 = arith.constant 0.000000e+00 : f32
    %141 = vector.broadcast %cst_66 : f32 to vector<128x128xf32>
    %142 = arith.minimumf %138, %141 : vector<128x128xf32>
    %143 = math.exp %142 : vector<128x128xf32>
    %cst_67 = arith.constant 1.000000e+00 : f32
    %144 = vector.broadcast %cst_67 : f32 to vector<128x128xf32>
    %145 = arith.subf %143, %144 : vector<128x128xf32>
    %146 = arith.select %140, %138, %145 : vector<128x128xi1>, vector<128x128xf32>
    %147 = arith.truncf %146 : vector<128x128xf32> to vector<128x128xbf16>
    %c384_68 = arith.constant 384 : index
    %c0_69 = arith.constant 0 : index
    %148 = vector.load %arg6[%c384_68, %c0_69] : memref<512x128xbf16, #tpu.memory_space<vmem>>, vector<128x128xbf16>
    %cst_70 = arith.constant dense<0.000000e+00> : vector<128x128xf32>
    %149 = tpu.matmul %147, %148, %cst_70 {dimension_numbers = #tpu.dot_dimension_numbers<[1], [0], [0], [1], [0, 0, 1, 1], [], []>} : vector<128x128xbf16>, vector<128x128xbf16>, vector<128x128xf32> -> vector<128x128xf32>
    %150 = arith.addf %114, %149 : vector<128x128xf32>
    %151 = arith.truncf %150 : vector<128x128xf32> to vector<128x128xbf16>
    %c0_71 = arith.constant 0 : index
    %c0_72 = arith.constant 0 : index
    %152 = vector.load %arg9[%c0_71, %c0_72] : memref<128x128xbf16, #tpu.memory_space<vmem>>, vector<128x128xbf16>
    tpu.vector_store %arg9[%c0_71, %c0_72], %151 {strides = array<i32>} : memref<128x128xbf16, #tpu.memory_space<vmem>>, vector<128x128xbf16>,
    %c0_73 = arith.constant 0 : index
    %c0_74 = arith.constant 0 : index
    %153 = vector.load %arg7[%c0_73, %c0_74] : memref<128x1xbf16, #tpu.memory_space<vmem>>, vector<128x1xbf16>
    %cst_75 = arith.constant dense<0.000000e+00> : vector<128x1xf32>
    %154 = tpu.matmul %151, %153, %cst_75 {dimension_numbers = #tpu.dot_dimension_numbers<[1], [0], [0], [1], [0, 0, 1, 1], [], []>} : vector<128x128xbf16>, vector<128x1xbf16>, vector<128x1xf32> -> vector<128x1xf32>
    %c0_76 = arith.constant 0 : index
    %c0_77 = arith.constant 0 : index
    %155 = vector.load %arg10[%c0_76, %c0_77] : memref<128x1xf32, #tpu.memory_space<vmem>>, vector<128x1xf32>
    tpu.vector_store %arg10[%c0_76, %c0_77], %154 {strides = array<i32>} : memref<128x1xf32, #tpu.memory_space<vmem>>, vector<128x1xf32>,
    %c0_78 = arith.constant 0 : index
    %c0_79 = arith.constant 0 : index
    %156 = vector.load %arg8[%c0_78, %c0_79] : memref<128x1xbf16, #tpu.memory_space<vmem>>, vector<128x1xbf16>
    %cst_80 = arith.constant dense<0.000000e+00> : vector<128x1xf32>
    %157 = tpu.matmul %151, %156, %cst_80 {dimension_numbers = #tpu.dot_dimension_numbers<[1], [0], [0], [1], [0, 0, 1, 1], [], []>} : vector<128x128xbf16>, vector<128x1xbf16>, vector<128x1xf32> -> vector<128x1xf32>
    %c0_81 = arith.constant 0 : index
    %c0_82 = arith.constant 0 : index
    %158 = vector.load %arg11[%c0_81, %c0_82] : memref<128x1xf32, #tpu.memory_space<vmem>>, vector<128x1xf32>
    tpu.vector_store %arg11[%c0_81, %c0_82], %157 {strides = array<i32>} : memref<128x1xf32, #tpu.memory_space<vmem>>, vector<128x1xf32>,
    return
  }
  func.func @transform_0(%arg0: i32) -> (i32, i32) {
    %c0_i32 = arith.constant 0 : i32
    %c0_i32_0 = arith.constant 0 : i32
    return %arg0, %c0_i32 : i32, i32
  }
  func.func @transform_1(%arg0: i32) -> (i32, i32) {
    %c0_i32 = arith.constant 0 : i32
    %c0_i32_0 = arith.constant 0 : i32
    %c0_i32_1 = arith.constant 0 : i32
    return %c0_i32, %c0_i32_0 : i32, i32
  }
  func.func @transform_2(%arg0: i32) -> (i32, i32) {
    %c0_i32 = arith.constant 0 : i32
    %c0_i32_0 = arith.constant 0 : i32
    %c0_i32_1 = arith.constant 0 : i32
    return %c0_i32, %c0_i32_0 : i32, i32
  }
  func.func @transform_3(%arg0: i32) -> (i32, i32) {
    %c0_i32 = arith.constant 0 : i32
    %c0_i32_0 = arith.constant 0 : i32
    return %arg0, %c0_i32 : i32, i32
  }
  func.func @transform_4(%arg0: i32) -> (i32, i32) {
    %c0_i32 = arith.constant 0 : i32
    %c0_i32_0 = arith.constant 0 : i32
    %c0_i32_1 = arith.constant 0 : i32
    return %c0_i32, %c0_i32_0 : i32, i32
  }
  func.func @transform_5(%arg0: i32) -> (i32, i32) {
    %c0_i32 = arith.constant 0 : i32
    %c0_i32_0 = arith.constant 0 : i32
    %c0_i32_1 = arith.constant 0 : i32
    return %c0_i32, %c0_i32_0 : i32, i32
  }
  func.func @transform_6(%arg0: i32) -> (i32, i32) {
    %c0_i32 = arith.constant 0 : i32
    %c0_i32_0 = arith.constant 0 : i32
    %c0_i32_1 = arith.constant 0 : i32
    return %c0_i32, %c0_i32_0 : i32, i32
  }
  func.func @transform_7(%arg0: i32) -> (i32, i32) {
    %c0_i32 = arith.constant 0 : i32
    %c0_i32_0 = arith.constant 0 : i32
    %c0_i32_1 = arith.constant 0 : i32
    return %c0_i32, %c0_i32_0 : i32, i32
  }
  func.func @transform_8(%arg0: i32) -> (i32, i32) {
    %c0_i32 = arith.constant 0 : i32
    %c0_i32_0 = arith.constant 0 : i32
    return %arg0, %c0_i32 : i32, i32
  }
  func.func @transform_9(%arg0: i32) -> (i32, i32) {
    %c0_i32 = arith.constant 0 : i32
    %c0_i32_0 = arith.constant 0 : i32
    return %arg0, %c0_i32 : i32, i32
  }
  func.func @transform_10(%arg0: i32) -> (i32, i32) {
    %c0_i32 = arith.constant 0 : i32
    %c0_i32_0 = arith.constant 0 : i32
    return %arg0, %c0_i32 : i32, i32
  }
}

</mosaic_0001>

<bundles_post_ra>
// kernel: gat_forward.5
= control target key start
LH: loop header
LB: loop body
LE: loop exit
PB: predicated region body
PF: predicated region fallthrough
CT: control target
= control target key end

     0   :  { %10 = vsyncpa [#allocation3], 0  ;;  %s2944_s0 = inlined_call_operand.vmem [shape: bf16[256,128], index: 0, kind: input, shape index: {}]   ;;  %s2945_s1 = inlined_call_operand.vmem [shape: bf16[256,128], index: 1, kind: input, shape index: {}]   ;;  %s2946_s2 = inlined_call_operand.vmem [shape: bf16[256,128], index: 2, kind: input, shape index: {}]   ;;  %s2947_s3 = inlined_call_operand.vmem [shape: f32[256,1], index: 3, kind: input, shape index: {}]   ;;  %s2948_s4 = inlined_call_operand.vmem [shape: f32[1,256], index: 4, kind: input, shape index: {}]   ;;  %s2949_s5 = inlined_call_operand.hbm [shape: f32[256,128], index: 5, kind: output, shape index: {}]  }
   0x1   :  { %12 = vsyncpa [#allocation3 + $0x1], 0  ;;  %s2268_s18 = smov 0   ;;  %s2270_s19 = smov 0  }
   0x2   :  { %s2272_s20 = smov 0   ;;  %s2274_s21 = smov 0  }
   0x3 LB: > { %s2289_s22 = sadd.s32 4294967295, %s2232_s21   ;;  %s1727_s23 = sadd.s32 4294967294, %s2232_s21   ;;  %s2232_s21 = sphi %s2274_s21, %s2955_s21   ;;  %s2228_s20 = sphi %s2272_s20, %s2954_s20   ;;  %s2224_s19 = sphi %s2270_s19, %s2953_s19   ;;  %s2220_s18 = sphi %s2268_s18, %s2952_s18  }
   0x4   : > { %s2293_s24 = sadd.s32 1, %s2232_s21   ;;  %s140_s25 = sadd.s32 1, %s2228_s20 }
   0x5   : > { %s137_s26 = ssub.s32 %s2232_s21, %s2293_s24  ;;  %p150_p0 = scmp.ne.s32.totalorder %s2228_s20, %s2224_s19 }
   0x6   : > { %p138_p1 = scmp.eq.s32.totalorder %s137_s26, 0  ;;  %p151_p2 = scmp.eq.s32.totalorder %s2289_s22, 1 }
   0x7   : > { %p156_p3 = scmp.ne.s32.totalorder %s2224_s19, %s2220_s18  ;;  %p157_p4 = scmp.eq.s32.totalorder %s1727_s23, 1 }
   0x8   : > { %s2304_s27 = scalar_select %p138_p1, %s2228_s20, %s140_s25  }
   0x9   : > { %p2306_p5 = por %p151_p2, %p150_p0  ;;  %p2310_p6 = por %p157_p4, %p156_p3 }
   0xa   : > { %p1730_p7 = scmp.ge.s32.totalorder %s2232_s21, 1  ;;  %p202_p8 = scmp.lt.s32.totalorder %s2232_s21, 3 }
   0xc   : > { %p203_p9 = pnand %p1730_p7, %p202_p8 }
   0xd   : > { %v1938_v0 = vld [vmem:[%s2945_s1 + $0x40] sm:$0xff] (!%p203_p9)   ;;  %s1732_s7 = sshll.u32 (!%p203_p9), %s2289_s22, 4  ;;  %v1940_v2 = vld [vmem:[%s2945_s1 + $0x48] sm:$0xff] (!%p203_p9)   ;;  %v2234_v3 = vmov (!%p203_p9), 0   ;;  %v1942_v5 = vld [vmem:[%s2945_s1 + $0x50] sm:$0xff] (!%p203_p9)   ;;  %v716_v41 = vlaneseq (!%p203_p9)  ;;  %s1797_s26 = sshll.u32 (!%p203_p9), %s2289_s22, 11 }
   0xe   : > { %206 = sbr.rel (%p203_p9) target bundleno = 1239 (0x4d7), region = 40  ;;  %v1939_v1 = vld [vmem:[%s2945_s1] sm:$0xff] (!%p203_p9)   ;;  %p236_p10 = scmp.lt.s32.totalorder (!%p203_p9), %s1732_s7, 31  ;;  %1798 = vmatprep.subr.bf16.mxu0 (!%p203_p9), %v1938_v0  ;;  %1936 = vset.pattern.permute.xlu0 (!%p203_p9), %v2234_v3  ;;  %v1941_v4 = vld [vmem:[%s2945_s1 + $0x8] sm:$0xff] (!%p203_p9)   ;;  %v1943_v6 = vld [vmem:[%s2945_s1 + $0x10] sm:$0xff] (!%p203_p9)  }
   0xf   : > { %1799 = vmatpush3.bf16.xpose.msra.mxu0 (!%p203_p9), %v1939_v1  ;;  %1937 = vset.pattern.permute.xlu1 (!%p203_p9), %v2234_v3  ;;  %v1944_v7 = vld [vmem:[%s2945_s1 + $0x58] sm:$0xff] (!%p203_p9)   ;;  %v1946_v11 = vld [vmem:[%s2945_s1 + $0x60] sm:$0xff] (!%p203_p9)   ;;  %v1948_v18 = vld [vmem:[%s2945_s1 + $0x68] sm:$0xff] (!%p203_p9)   ;;  %v717_v42 = vshrl.u32 (!%p203_p9), %v716_v41, 7  ;;  %s2235_s11 = smov (!%p203_p9), [#allocation2]  }
  0x10   : > { %1800 = vmatprep.subr.bf16.mxu0 (!%p203_p9), %v1940_v2  ;;  %v1945_v9 = vld [vmem:[%s2945_s1 + $0x18] sm:$0xff] (!%p203_p9)   ;;  %v1947_v15 = vld [vmem:[%s2945_s1 + $0x20] sm:$0xff] (!%p203_p9)   ;;  %v1949_v23 = vld [vmem:[%s2945_s1 + $0x28] sm:$0xff] (!%p203_p9)   ;;  %s2174_s13 = sshll.u32 (!%p203_p9), %s2235_s11, 4  ;;  %s2175_s13 = int_to_ptr.vmem [resolvable:$false] %s2174_s13 }
  0x11   : > { %v1950_v24 = vld [vmem:[%s2945_s1 + $0x70] sm:$0xff] (!%p203_p9)   ;;  %v1952_v30 = vld [vmem:[%s2945_s1 + $0x78] sm:$0xff] (!%p203_p9)   ;;  %v718_v43 = vsub.s32 (!%p203_p9), 0, %v717_v42  ;;  %v634_v44 = vld [vmem:[%s2948_s4] sm:$0x3] (!%p203_p9)  ;;  %v722_v45 = vsub.s32 (!%p203_p9), 1, %v717_v42 }
  0x12   : > { %v1951_v29 = vld [vmem:[%s2945_s1 + $0x30] sm:$0xff] (!%p203_p9)   ;;  %v1953_v33 = vld [vmem:[%s2945_s1 + $0x38] sm:$0xff] (!%p203_p9)   ;;  %s2176_s14 = scalar_lea.vmem (!%p203_p9), %s2175_s13, 4096 }
  0x13   : > { %v2402_v46 = vrot.slane (!%p203_p9), %v634_v44, %v718_v43  ;;  %v2404_v47 = vrot.slane (!%p203_p9), %v634_v44, %v722_v45 }
  0x15   : > { %s2957_s7 = smov (!%p236_p10, %s1732_s7), 31 }
  0x16   : > { %s1733_s16 = sshll.u32 %s2957_s7, 2  ;;  %s1735_s9 = sshll.u32 %s2957_s7, 3 }
  0x17   : > { %1801 = vmatpush3.bf16.xpose.msra.mxu0 %v1941_v4  ;;  %s2335_s25 = scalar_lea.vmem %s2944_s0, %s1733_s16  ;;  %s2347_s12 = scalar_lea.vmem %s2947_s3, %s1735_s9 }
  0x18   : > { %1802 = vmatprep.subr.bf16.mxu0 %v1942_v5  ;;  %v1954_v8 = vld [vmem:[%s2335_s25] sm:$0xff]   ;;  %v620_v12 = vld [vmem:[%s2347_s12 + $0x10] sm:$0xff]  ;;  %v619_v13 = vld [vmem:[%s2347_s12 + $0x8] sm:$0xff]  ;;  %s2894_s9 = scalar_lea.hbm %s2949_s5, %s1797_s26 }
  0x19   : > { %1814 = vmatprep.mubr.bf16.mxu0 %v1954_v8  ;;  %v618_v10 = vld [vmem:[%s2347_s12] sm:$0xff]  ;;  %647 = vperm.xlu1 %1937, %v620_v12   ;;  %v621_v14 = vld [vmem:[%s2347_s12 + $0x18] sm:$0xff]  ;;  %v623_v17 = vld [vmem:[%s2347_s12 + $0x28] sm:$0xff] }
  0x1a   : > { %637 = vperm.xlu0 %1936, %v618_v10   ;;  %v622_v16 = vld [vmem:[%s2347_s12 + $0x20] sm:$0xff]  ;;  %v624_v19 = vld [vmem:[%s2347_s12 + $0x30] sm:$0xff]  ;;  %v625_v20 = vld [vmem:[%s2347_s12 + $0x38] sm:$0xff] }
  0x1b   : > { %v626_v21 = vld [vmem:[%s2347_s12 + $0x40] sm:$0xff]  ;;  %v627_v22 = vld [vmem:[%s2347_s12 + $0x48] sm:$0xff]  ;;  %v628_v25 = vld [vmem:[%s2347_s12 + $0x50] sm:$0xff] }
  0x1c   : > { %v629_v26 = vld [vmem:[%s2347_s12 + $0x58] sm:$0xff]  ;;  %v630_v27 = vld [vmem:[%s2347_s12 + $0x60] sm:$0xff]  ;;  %v631_v28 = vld [vmem:[%s2347_s12 + $0x68] sm:$0xff] }
  0x1d   : > { %652 = vperm.xlu1 %1937, %v621_v14   ;;  %v632_v31 = vld [vmem:[%s2347_s12 + $0x70] sm:$0xff]  ;;  %v633_v32 = vld [vmem:[%s2347_s12 + $0x78] sm:$0xff]  ;;  %v1955_v34 = vld [vmem:[%s2335_s25 + $0x8] sm:$0xff]  }
  0x1e   : > { %642 = vperm.xlu0 %1936, %v619_v13   ;;  %v1956_v35 = vld [vmem:[%s2335_s25 + $0x10] sm:$0xff]   ;;  %v1957_v36 = vld [vmem:[%s2335_s25 + $0x18] sm:$0xff]   ;;  %v1958_v37 = vld [vmem:[%s2335_s25 + $0x20] sm:$0xff]  }
  0x1f   : > { %1803 = vmatpush3.bf16.xpose.msra.mxu0 %v1943_v6  ;;  %v1959_v38 = vld [vmem:[%s2335_s25 + $0x28] sm:$0xff]   ;;  %v1960_v39 = vld [vmem:[%s2335_s25 + $0x30] sm:$0xff]   ;;  %v1961_v40 = vld [vmem:[%s2335_s25 + $0x38] sm:$0xff]   ;;  %s232_s25 = sand.u32 1, %s2224_s19  }
  0x20   : > { %1804 = vmatprep.subr.bf16.mxu0 %v1944_v7  ;;  %s1731_s17 = sshll.u32 %s232_s25, 7  ;;  %s2903_s22 = scalar_lea.sflag [#allocation3], %s232_s25 }
  0x21   : > { %662 = vperm.xlu1 %1937, %v623_v17   ;;  %s2859_s23 = scalar_lea.vmem [#allocation2], %s1731_s17 }
  0x22   : > { %657 = vperm.xlu0 %1936, %v622_v16   ;;  %s1653_s30 = sshll.u32 %s2859_s23, 4  ;;  %s2896_s30 = int_to_ptr.vmem [resolvable:$true] %s1653_s30 }
  0x23   : > { %s2170_s10 = scalar_lea.vmem %s2896_s30, 2048  ;;  %p2177_p0 = scmp.lt.s32.totalorder %s2896_s30, %s2175_s13 }
  0x24   : > { %p2171_p11 = scmp.ne.s32.totalorder %s2896_s30, %s2170_s10  ;;  %p2178_p1 = scmp.lt.s32.totalorder %s2176_s14, %s2170_s10 }
  0x25   : > { %672 = vperm.xlu1 %1937, %v625_v20  }
  0x26   : > { %667 = vperm.xlu0 %1936, %v624_v19   ;;  %p2172_p12 = pnand %p2171_p11, %p2306_p5  ;;  %p2179_p2 = por %p2178_p1, %p2177_p0 }
  0x27   : > { %1805 = vmatpush3.bf16.xpose.msra.mxu0 %v1945_v9 }
  0x28   : > { %1806 = vmatprep.subr.bf16.mxu0 %v1946_v11  ;;  %p2173_p13 = pneg %p2172_p12 }
  0x29   : > { %682 = vperm.xlu1 %1937, %v627_v22  }
  0x2a   : > { %677 = vperm.xlu0 %1936, %v626_v21   ;;  %p2180_p3 = pnand %p2179_p2, %p2173_p13 }
  0x2d   : > { %692 = vperm.xlu1 %1937, %v629_v26  }
  0x2e   : > { %687 = vperm.xlu0 %1936, %v628_v25  }
  0x2f   : > { %1807 = vmatpush3.bf16.xpose.msra.mxu0 %v1947_v15 }
  0x30   : > { %1808 = vmatprep.subr.bf16.mxu0 %v1948_v18 }
  0x31   : > { %702 = vperm.xlu1 %1937, %v631_v28  }
  0x32   : > { %697 = vperm.xlu0 %1936, %v630_v27  }
  0x35   : > { %712 = vperm.xlu1 %1937, %v633_v32  }
  0x36   : > { %707 = vperm.xlu0 %1936, %v632_v31  }
  0x37   : > { %1809 = vmatpush3.bf16.xpose.msra.mxu0 %v1949_v23 }
  0x38   : > { %1810 = vmatprep.subr.bf16.mxu0 %v1950_v24 }
  0x3f   : > { %1811 = vmatpush3.bf16.xpose.msra.mxu0 %v1951_v29 }
  0x40   : > { %1812 = vmatprep.subr.bf16.mxu0 %v1952_v30 }
  0x47   : > { %1813 = vmatpush3.bf16.xpose.msra.mxu0 %v1953_v33 }
  0x4e   : > { %1815 = vmatmul.mubr.bf16.vlgmr.msra.gmra.mrb[0].mxu0 %v1954_v8 }
  0x4f   : > { %1816 = vmatprep.mubr.bf16.mxu0 %v1955_v34 }
  0x56   : > { %1817 = vmatmul.mubr.bf16.gmra.mrb[4].mxu0 %v1955_v34 }
  0x57   : > { %1818 = vmatprep.mubr.bf16.mxu0 %v1956_v35 }
  0x5e   : > { %1819 = vmatmul.mubr.bf16.gmra.mrb[8].mxu0 %v1956_v35 }
  0x5f   : > { %1820 = vmatprep.mubr.bf16.mxu0 %v1957_v36 }
  0x66   : > { %1821 = vmatmul.mubr.bf16.gmra.mrb[12].mxu0 %v1957_v36 }
  0x67   : > { %1822 = vmatprep.mubr.bf16.mxu0 %v1958_v37 }
  0x6e   : > { %1823 = vmatmul.mubr.bf16.gmra.mrb[16].mxu0 %v1958_v37 }
  0x6f   : > { %1824 = vmatprep.mubr.bf16.mxu0 %v1959_v38 }
  0x76   : > { %1825 = vmatmul.mubr.bf16.gmra.mrb[20].mxu0 %v1959_v38 }
  0x77   : > { %1826 = vmatprep.mubr.bf16.mxu0 %v1960_v39 }
  0x7e   : > { %1827 = vmatmul.mubr.bf16.gmra.mrb[24].mxu0 %v1960_v39 }
  0x7f   : > { %1828 = vmatprep.mubr.bf16.mxu0 %v1961_v40 }
  0x86   : > { %1829 = vmatmul.mubr.bf16.gmra.mrb[28].mxu0 %v1961_v40 }
  0x98   : > { %v648_v52 = vpop.permute.xlu1 %647 }
  0x99   : > { %v638_v48 = vpop.permute.xlu0 %637  ;;  %v730_v55 = vadd.f32 %v2402_v46, %v648_v52  ;;  %v731_v58 = vadd.f32 %v2404_v47, %v648_v52 }
  0x9a   : > { %v726_v49 = vadd.f32 %v2402_v46, %v638_v48  ;;  %v727_v50 = vadd.f32 %v2404_v47, %v638_v48 }
  0x9b   : > { %v794_v61 = vmul.f32 0.2, %v730_v55  ;;  %vm762_vm7 = vcmp.gt.f32.partialorder %v730_v55, 0.0  ;;  %v795_v17 = vmul.f32 0.2, %v731_v58  ;;  %vm763_vm9 = vcmp.gt.f32.partialorder %v731_v58, 0.0 }
  0x9c   : > { %v790_v53 = vmul.f32 0.2, %v726_v49  ;;  %v791_v56 = vmul.f32 0.2, %v727_v50  ;;  %vm758_vm0 = vcmp.gt.f32.partialorder %v726_v49, 0.0  ;;  %vm759_vm1 = vcmp.gt.f32.partialorder %v727_v50, 0.0  ;;  %v653_v2 = vpop.permute.xlu1 %652 }
  0x9d   : > { %v643_v51 = vpop.permute.xlu0 %642  ;;  %v732_v6 = vadd.f32 %v2402_v46, %v653_v2  ;;  %v733_v9 = vadd.f32 %v2404_v47, %v653_v2  ;;  %v826_v27 = vsel %vm762_vm7, %v730_v55, %v794_v61  ;;  %v827_v37 = vsel %vm763_vm9, %v731_v58, %v795_v17 }
  0x9e   : > { %v728_v54 = vadd.f32 %v2402_v46, %v643_v51  ;;  %v729_v57 = vadd.f32 %v2404_v47, %v643_v51  ;;  %v822_v63 = vsel %vm758_vm0, %v726_v49, %v790_v53  ;;  %v823_v4 = vsel %vm759_vm1, %v727_v50, %v791_v56 }
  0x9f   : > { %v796_v20 = vmul.f32 0.2, %v732_v6  ;;  %v797_v21 = vmul.f32 0.2, %v733_v9  ;;  %vm764_vm11 = vcmp.gt.f32.partialorder %v732_v6, 0.0  ;;  %vm765_vm12 = vcmp.gt.f32.partialorder %v733_v9, 0.0 }
  0xa0   : > { %v792_v60 = vmul.f32 0.2, %v728_v54  ;;  %v793_v1 = vmul.f32 0.2, %v729_v57  ;;  %vm760_vm2 = vcmp.gt.f32.partialorder %v728_v54, 0.0  ;;  %vm761_vm4 = vcmp.gt.f32.partialorder %v729_v57, 0.0  ;;  %v663_v25 = vpop.permute.xlu1 %662 }
  0xa1   : > { %v658_v19 = vpop.permute.xlu0 %657  ;;  %v736_v30 = vadd.f32 %v2402_v46, %v663_v25  ;;  %v737_v31 = vadd.f32 %v2404_v47, %v663_v25  ;;  %v828_v41 = vsel %vm764_vm11, %v732_v6, %v796_v20  ;;  %v829_v42 = vsel %vm765_vm12, %v733_v9, %v797_v21 }
  0xa2   : > { %v824_v13 = vsel %vm760_vm2, %v728_v54, %v792_v60  ;;  %v825_v15 = vsel %vm761_vm4, %v729_v57, %v793_v1  ;;  %v734_v24 = vadd.f32 %v2402_v46, %v658_v19  ;;  %v735_v29 = vadd.f32 %v2404_v47, %v658_v19 }
  0xa3   : > { %v800_v50 = vmul.f32 0.2, %v736_v30  ;;  %v801_v51 = vmul.f32 0.2, %v737_v31  ;;  %vm768_vm2 = vcmp.gt.f32.partialorder %v736_v30, 0.0  ;;  %vm769_vm4 = vcmp.gt.f32.partialorder %v737_v31, 0.0 }
  0xa4   : > { %v798_v39 = vmul.f32 0.2, %v734_v24  ;;  %v799_v44 = vmul.f32 0.2, %v735_v29  ;;  %vm766_vm0 = vcmp.gt.f32.partialorder %v734_v24, 0.0  ;;  %v673_v55 = vpop.permute.xlu1 %672  ;;  %vm767_vm1 = vcmp.gt.f32.partialorder %v735_v29, 0.0 }
  0xa5   : > { %v668_v49 = vpop.permute.xlu0 %667  ;;  %v740_v58 = vadd.f32 %v2402_v46, %v673_v55  ;;  %v832_v6 = vsel %vm768_vm2, %v736_v30, %v800_v50 }
  0xa6   : > { %v738_v53 = vadd.f32 %v2402_v46, %v668_v49  ;;  %v739_v54 = vadd.f32 %v2404_v47, %v668_v49  ;;  %v831_v2 = vsel %vm767_vm1, %v735_v29, %v799_v44 }
  0xa7   : > { %v804_v17 = vmul.f32 0.2, %v740_v58 }
  0xa8   : > { %vm771_vm9 = vcmp.gt.f32.partialorder %v739_v54, 0.0 }
 0x121   : > { %v475_v59 = vpop.f32.mrb[0].mxu0 }
 0x122   : > { %v554_v62 = vmul.f32 %v475_v59, %v475_v59  ;;  %v477_v0 = vpop.f32.mrb[1].mxu0 }
 0x123   : > { %v555_v3 = vmul.f32 %v477_v0, %v477_v0  ;;  %v479_v5 = vpop.f32.mrb[2].mxu0 }
 0x124   : > { %vm586_vm3 = vcmp.gt.f32.partialorder %v554_v62, 0.0  ;;  %v556_v7 = vmul.f32 %v479_v5, %v479_v5  ;;  %v481_v8 = vpop.f32.mrb[3].mxu0  ;;  %v830_v62 = vsel %vm766_vm0, %v734_v24, %v798_v39 }
 0x125   : > { %v2414_v10 = vsel %vm586_vm3, %v822_v63, -9e+15  ;;  %vm587_vm5 = vcmp.gt.f32.partialorder %v555_v3, 0.0  ;;  %v557_v11 = vmul.f32 %v481_v8, %v481_v8  ;;  %v833_v8 = vsel %vm769_vm4, %v737_v31, %v801_v51 }
 0x126   : > { %v2416_v12 = vsel %vm587_vm5, %v823_v4, -9e+15  ;;  %vm588_vm6 = vcmp.gt.f32.partialorder %v556_v7, 0.0  ;;  %v741_v4 = vadd.f32 %v2404_v47, %v673_v55 }
 0x127   : > { %v2418_v14 = vsel %vm588_vm6, %v824_v13, -9e+15  ;;  %vm589_vm8 = vcmp.gt.f32.partialorder %v557_v11, 0.0  ;;  %v886_v16 = vmax.f32 %v2414_v10, %v2416_v12  ;;  %v802_v11 = vmul.f32 0.2, %v738_v53 }
 0x128   : > { %v2422_v18 = vsel %vm589_vm8, %v825_v15, -9e+15  ;;  %v803_v15 = vmul.f32 0.2, %v739_v54  ;;  %vm770_vm8 = vcmp.gt.f32.partialorder %v738_v53, 0.0  ;;  %vm773_vm12 = vcmp.gt.f32.partialorder %v741_v4, 0.0 }
 0x129   : > { %887 = vmax.xlane.f32.xlu0 %v886_v16  ;;  %v485_v22 = vpop.f32.mrb[4].mxu0  ;;  %v889_v23 = vmax.f32 %v2418_v14, %v2422_v18  ;;  %v678_v16 = vpop.permute.xlu0 %677  ;;  %v834_v30 = vsel %vm770_vm8, %v738_v53, %v802_v11 }
 0x12a   : > { %v558_v26 = vmul.f32 %v485_v22, %v485_v22  ;;  %v487_v28 = vpop.f32.mrb[5].mxu0  ;;  %v742_v21 = vadd.f32 %v2402_v46, %v678_v16  ;;  %v805_v22 = vmul.f32 0.2, %v741_v4 }
 0x12b   : > { %v559_v32 = vmul.f32 %v487_v28, %v487_v28  ;;  %890 = vmax.xlane.f32.xlu1 %v889_v23  ;;  %v489_v33 = vpop.f32.mrb[6].mxu0  ;;  %v683_v23 = vpop.permute.xlu1 %682 }
 0x12c   : > { %vm590_vm10 = vcmp.gt.f32.partialorder %v558_v26, 0.0  ;;  %v560_v34 = vmul.f32 %v489_v33, %v489_v33  ;;  %v491_v35 = vpop.f32.mrb[7].mxu0  ;;  %v743_v26 = vadd.f32 %v2404_v47, %v678_v16  ;;  %v806_v44 = vmul.f32 0.2, %v742_v21 }
 0x12d   : > { %v2431_v36 = vsel %vm590_vm10, %v826_v27, -9e+15  ;;  %vm591_vm13 = vcmp.gt.f32.partialorder %v559_v32, 0.0  ;;  %v561_v38 = vmul.f32 %v491_v35, %v491_v35  ;;  %v744_v27 = vadd.f32 %v2402_v46, %v683_v23  ;;  %v688_v51 = vpop.permute.xlu0 %687 }
 0x12e   : > { %v2433_v40 = vsel %vm591_vm13, %v827_v37, -9e+15  ;;  %vm592_vm14 = vcmp.gt.f32.partialorder %v560_v34, 0.0  ;;  %vm772_vm10 = vcmp.gt.f32.partialorder %v740_v58, 0.0  ;;  %v835_v34 = vsel %vm771_vm9, %v739_v54, %v803_v15 }
 0x12f   : > { %vm593_vm15 = vcmp.gt.f32.partialorder %v561_v38, 0.0  ;;  %v892_v43 = vmax.f32 %v2431_v36, %v2433_v40  ;;  %v2437_v45 = vsel %vm592_vm14, %v828_v41, -9e+15  ;;  %v745_v37 = vadd.f32 %v2404_v47, %v683_v23 }
 0x130   : > { %v2439_v48 = vsel %vm593_vm15, %v829_v42, -9e+15  ;;  %v836_v39 = vsel %vm772_vm10, %v740_v58, %v804_v17  ;;  %v837_v42 = vsel %vm773_vm12, %v741_v4, %v805_v22  ;;  %v807_v50 = vmul.f32 0.2, %v743_v26 }
 0x131   : > { %893 = vmax.xlane.f32.xlu0 %v892_v43  ;;  %v495_v52 = vpop.f32.mrb[8].mxu0  ;;  %v895_v61 = vmax.f32 %v2437_v45, %v2439_v48  ;;  %vm774_vm0 = vcmp.gt.f32.partialorder %v742_v21, 0.0  ;;  %v746_v55 = vadd.f32 %v2402_v46, %v688_v51  ;;  %vm775_vm1 = vcmp.gt.f32.partialorder %v743_v26, 0.0  ;;  %v698_v23 = vpop.permute.xlu0 %697 }
 0x132   : > { %v562_v56 = vmul.f32 %v495_v52, %v495_v52  ;;  %v497_v57 = vpop.f32.mrb[9].mxu0  ;;  %v808_v52 = vmul.f32 0.2, %v744_v27  ;;  %vm776_vm2 = vcmp.gt.f32.partialorder %v744_v27, 0.0  ;;  %vm777_vm4 = vcmp.gt.f32.partialorder %v745_v37, 0.0 }
 0x133   : > { %v563_v59 = vmul.f32 %v497_v57, %v497_v57  ;;  %v499_v60 = vpop.f32.mrb[10].mxu0  ;;  %v693_v57 = vpop.permute.xlu1 %692  ;;  %vm778_vm8 = vcmp.gt.f32.partialorder %v746_v55, 0.0 }
 0x134   : > { %vm594_vm3 = vcmp.gt.f32.partialorder %v562_v56, 0.0  ;;  %v564_v63 = vmul.f32 %v499_v60, %v499_v60  ;;  %v501_v0 = vpop.f32.mrb[11].mxu0  ;;  %v809_v56 = vmul.f32 0.2, %v745_v37  ;;  %v747_v60 = vadd.f32 %v2404_v47, %v688_v51 }
 0x135   : > { %v2446_v1 = vsel %vm594_vm3, %v830_v62, -9e+15  ;;  %vm595_vm5 = vcmp.gt.f32.partialorder %v563_v59, 0.0  ;;  %v565_v3 = vmul.f32 %v501_v0, %v501_v0  ;;  %896 = vmax.xlane.f32.xlu0 %v895_v61  ;;  %v748_v61 = vadd.f32 %v2402_v46, %v693_v57 }
 0x136   : > { %v2449_v5 = vsel %vm595_vm5, %v831_v2, -9e+15  ;;  %vm596_vm6 = vcmp.gt.f32.partialorder %v564_v63, 0.0  ;;  %v838_v0 = vsel %vm774_vm0, %v742_v21, %v806_v44  ;;  %v840_v15 = vsel %vm776_vm2, %v744_v27, %v808_v52 }
 0x137   : > { %v2451_v7 = vsel %vm596_vm6, %v832_v6, -9e+15  ;;  %vm597_vm7 = vcmp.gt.f32.partialorder %v565_v3, 0.0  ;;  %v898_v9 = vmax.f32 %v2446_v1, %v2449_v5  ;;  %v839_v6 = vsel %vm775_vm1, %v743_v26, %v807_v50 }
 0x138   : > { %v2455_v13 = vsel %vm597_vm7, %v833_v8, -9e+15  ;;  %v841_v17 = vsel %vm777_vm4, %v745_v37, %v809_v56  ;;  %v811_v22 = vmul.f32 0.2, %v747_v60  ;;  %v750_v27 = vadd.f32 %v2402_v46, %v698_v23  ;;  %v708_v56 = vpop.permute.xlu0 %707 }
 0x139   : > { %899 = vmax.xlane.f32.xlu1 %v898_v9  ;;  %v505_v19 = vpop.f32.mrb[12].mxu0  ;;  %v901_v20 = vmax.f32 %v2451_v7, %v2455_v13  ;;  %v749_v9 = vadd.f32 %v2404_v47, %v693_v57  ;;  %vm779_vm9 = vcmp.gt.f32.partialorder %v747_v60, 0.0  ;;  %vm780_vm10 = vcmp.gt.f32.partialorder %v748_v61, 0.0 }
 0x13a   : > { %v566_v24 = vmul.f32 %v505_v19, %v505_v19  ;;  %v507_v25 = vpop.f32.mrb[13].mxu0  ;;  %v843_v50 = vsel %vm779_vm9, %v747_v60, %v811_v22  ;;  %vm782_vm0 = vcmp.gt.f32.partialorder %v750_v27, 0.0 }
 0x13b   : > { %v567_v28 = vmul.f32 %v507_v25, %v507_v25  ;;  %902 = vmax.xlane.f32.xlu0 %v901_v20  ;;  %v509_v29 = vpop.f32.mrb[14].mxu0  ;;  %v810_v20 = vmul.f32 0.2, %v746_v55  ;;  %vm781_vm12 = vcmp.gt.f32.partialorder %v749_v9, 0.0 }
 0x13c   : > { %vm598_vm11 = vcmp.gt.f32.partialorder %v566_v24, 0.0  ;;  %v568_v31 = vmul.f32 %v509_v29, %v509_v29  ;;  %v511_v32 = vpop.f32.mrb[15].mxu0  ;;  %v812_v24 = vmul.f32 0.2, %v748_v61  ;;  %v703_v29 = vpop.permute.xlu1 %702 }
 0x13d   : > { %v2462_v33 = vsel %vm598_vm11, %v834_v30, -9e+15  ;;  %vm599_vm13 = vcmp.gt.f32.partialorder %v567_v28, 0.0  ;;  %v569_v35 = vmul.f32 %v511_v32, %v511_v32  ;;  %v813_v28 = vmul.f32 0.2, %v749_v9 }
 0x13e   : > { %v2465_v38 = vsel %vm599_vm13, %v835_v34, -9e+15  ;;  %vm600_vm14 = vcmp.gt.f32.partialorder %v568_v31, 0.0  ;;  %v751_v32 = vadd.f32 %v2404_v47, %v698_v23  ;;  %v752_v34 = vadd.f32 %v2402_v46, %v703_v29 }
 0x13f   : > { %v2467_v41 = vsel %vm600_vm14, %v836_v39, -9e+15  ;;  %vm601_vm15 = vcmp.gt.f32.partialorder %v569_v35, 0.0  ;;  %v904_v43 = vmax.f32 %v2462_v33, %v2465_v38  ;;  %v842_v39 = vsel %vm778_vm8, %v746_v55, %v810_v20 }
 0x140   : > { %v2471_v49 = vsel %vm601_vm15, %v837_v42, -9e+15  ;;  %v753_v52 = vadd.f32 %v2404_v47, %v703_v29  ;;  %v815_v60 = vmul.f32 0.2, %v751_v32  ;;  %vm783_vm1 = vcmp.gt.f32.partialorder %v751_v32, 0.0 }
 0x141   : > { %905 = vmax.xlane.f32.xlu1 %v904_v43  ;;  %v515_v53 = vpop.f32.mrb[16].mxu0  ;;  %v907_v54 = vmax.f32 %v2467_v41, %v2471_v49  ;;  %vm784_vm2 = vcmp.gt.f32.partialorder %v752_v34, 0.0 }
 0x142   : > { %v570_v58 = vmul.f32 %v515_v53, %v515_v53  ;;  %v517_v59 = vpop.f32.mrb[17].mxu0  ;;  %vm785_vm4 = vcmp.gt.f32.partialorder %v753_v52, 0.0 }
 0x143   : > { %v571_v62 = vmul.f32 %v517_v59, %v517_v59  ;;  %908 = vmax.xlane.f32.xlu0 %v907_v54  ;;  %v519_v63 = vpop.f32.mrb[18].mxu0  ;;  %v844_v54 = vsel %vm780_vm10, %v748_v61, %v812_v24  ;;  %v814_v59 = vmul.f32 0.2, %v750_v27 }
 0x144   : > { %vm602_vm3 = vcmp.gt.f32.partialorder %v570_v58, 0.0  ;;  %v572_v2 = vmul.f32 %v519_v63, %v519_v63  ;;  %v521_v3 = vpop.f32.mrb[19].mxu0  ;;  %v845_v58 = vsel %vm781_vm12, %v749_v9, %v813_v28 }
 0x145   : > { %v2478_v4 = vsel %vm602_vm3, %v838_v0, -9e+15  ;;  %vm603_vm5 = vcmp.gt.f32.partialorder %v571_v62, 0.0  ;;  %v573_v8 = vmul.f32 %v521_v3, %v521_v3  ;;  %v713_v62 = vpop.permute.xlu1 %712  ;;  %v816_v0 = vmul.f32 0.2, %v752_v34 }
 0x146   : > { %v2481_v11 = vsel %vm603_vm5, %v839_v6, -9e+15  ;;  %vm604_vm6 = vcmp.gt.f32.partialorder %v572_v2, 0.0  ;;  %v754_v3 = vadd.f32 %v2402_v46, %v708_v56  ;;  %v817_v6 = vmul.f32 0.2, %v753_v52 }
 0x147   : > { %v2483_v16 = vsel %vm604_vm6, %v840_v15, -9e+15  ;;  %vm605_vm7 = vcmp.gt.f32.partialorder %v573_v8, 0.0  ;;  %v910_v19 = vmax.f32 %v2478_v4, %v2481_v11  ;;  %v755_v15 = vadd.f32 %v2404_v47, %v708_v56 }
 0x148   : > { %v2487_v21 = vsel %vm605_vm7, %v841_v17, -9e+15  ;;  %v756_v17 = vadd.f32 %v2402_v46, %v713_v62  ;;  %v846_v22 = vsel %vm782_vm0, %v750_v27, %v814_v59  ;;  %v757_v29 = vadd.f32 %v2404_v47, %v713_v62 }
 0x149   : > { %911 = vmax.xlane.f32.xlu1 %v910_v19  ;;  %v525_v25 = vpop.f32.mrb[20].mxu0  ;;  %v913_v26 = vmax.f32 %v2483_v16, %v2487_v21  ;;  %v848_v46 = vsel %vm784_vm2, %v752_v34, %v816_v0  ;;  %vm786_vm8 = vcmp.gt.f32.partialorder %v754_v3, 0.0  ;;  %vm787_vm9 = vcmp.gt.f32.partialorder %v755_v15, 0.0 }
 0x14a   : > { %v574_v30 = vmul.f32 %v525_v25, %v525_v25  ;;  %v527_v31 = vpop.f32.mrb[21].mxu0  ;;  %vm788_vm10 = vcmp.gt.f32.partialorder %v756_v17, 0.0  ;;  %vm789_vm12 = vcmp.gt.f32.partialorder %v757_v29, 0.0 }
 0x14b   : > { %v575_v35 = vmul.f32 %v527_v31, %v527_v31  ;;  %914 = vmax.xlane.f32.xlu0 %v913_v26  ;;  %v529_v37 = vpop.f32.mrb[22].mxu0  ;;  %v847_v26 = vsel %vm783_vm1, %v751_v32, %v815_v60 }
 0x14c   : > { %vm606_vm11 = vcmp.gt.f32.partialorder %v574_v30, 0.0  ;;  %v576_v42 = vmul.f32 %v529_v37, %v529_v37  ;;  %v531_v43 = vpop.f32.mrb[23].mxu0  ;;  %v818_v37 = vmul.f32 0.2, %v754_v3 }
 0x14d   : > { %v2494_v44 = vsel %vm606_vm11, %v842_v39, -9e+15  ;;  %vm607_vm13 = vcmp.gt.f32.partialorder %v575_v35, 0.0  ;;  %v577_v51 = vmul.f32 %v531_v43, %v531_v43  ;;  %v849_v35 = vsel %vm785_vm4, %v753_v52, %v817_v6 }
 0x14e   : > { %v2497_v53 = vsel %vm607_vm13, %v843_v50, -9e+15  ;;  %vm608_vm14 = vcmp.gt.f32.partialorder %v576_v42, 0.0  ;;  %v819_v42 = vmul.f32 0.2, %v755_v15  ;;  %v850_v56 = vsel %vm786_vm8, %v754_v3, %v818_v37 }
 0x14f   : > { %v2499_v57 = vsel %vm608_vm14, %v844_v54, -9e+15  ;;  %vm609_vm15 = vcmp.gt.f32.partialorder %v577_v51, 0.0  ;;  %v916_v55 = vmax.f32 %v2494_v44, %v2497_v53  ;;  %v820_v43 = vmul.f32 0.2, %v756_v17 }
 0x150   : > { %v2503_v63 = vsel %vm609_vm15, %v845_v58, -9e+15  ;;  %v821_v51 = vmul.f32 0.2, %v757_v29  ;;  %v851_v62 = vsel %vm787_vm9, %v755_v15, %v819_v42  ;;  %v1962_v15 = vld [vmem:[%s2946_s2 + $0x40] sm:$0xff]  }
 0x151   : > { %917 = vmax.xlane.f32.xlu1 %v916_v55  ;;  %v535_v2 = vpop.f32.mrb[24].mxu0  ;;  %v919_v61 = vmax.f32 %v2499_v57, %v2503_v63  ;;  %1830 = vmatprep.subr.bf16.mxu1 %v1962_v15 }
 0x152   : > { %v578_v8 = vmul.f32 %v535_v2, %v535_v2  ;;  %v537_v9 = vpop.f32.mrb[25].mxu0  ;;  %v852_v2 = vsel %vm788_vm10, %v756_v17, %v820_v43  ;;  %v853_v6 = vsel %vm789_vm12, %v757_v29, %v821_v51  ;;  %v1963_v17 = vld [vmem:[%s2946_s2] sm:$0xff]  }
 0x153   : > { %v579_v19 = vmul.f32 %v537_v9, %v537_v9  ;;  %920 = vmax.xlane.f32.xlu0 %v919_v61  ;;  %v539_v20 = vpop.f32.mrb[26].mxu0  ;;  %1831 = vmatpush3.bf16.msra.mxu1 %v1963_v17 }
 0x154   : > { %vm610_vm3 = vcmp.gt.f32.partialorder %v578_v8, 0.0  ;;  %v580_v23 = vmul.f32 %v539_v20, %v539_v20  ;;  %v541_v24 = vpop.f32.mrb[27].mxu0  ;;  %v1965_v20 = vld [vmem:[%s2946_s2 + $0x8] sm:$0xff]  }
 0x155   : > { %v2510_v25 = vsel %vm610_vm3, %v846_v22, -9e+15  ;;  %vm611_vm5 = vcmp.gt.f32.partialorder %v579_v19, 0.0  ;;  %v581_v28 = vmul.f32 %v541_v24, %v541_v24  ;;  %v1964_v19 = vld [vmem:[%s2946_s2 + $0x48] sm:$0xff]   ;;  %v1966_v22 = vld [vmem:[%s2946_s2 + $0x50] sm:$0xff]   ;;  %v1968_v24 = vld [vmem:[%s2946_s2 + $0x58] sm:$0xff]  }
 0x156   : > { %v2513_v30 = vsel %vm611_vm5, %v847_v26, -9e+15  ;;  %vm612_vm6 = vcmp.gt.f32.partialorder %v580_v23, 0.0  ;;  %1832 = vmatprep.subr.bf16.mxu1 %v1964_v19  ;;  %v1967_v23 = vld [vmem:[%s2946_s2 + $0x10] sm:$0xff]   ;;  %v1969_v26 = vld [vmem:[%s2946_s2 + $0x18] sm:$0xff]  }
 0x157   : > { %v2515_v31 = vsel %vm612_vm6, %v848_v46, -9e+15  ;;  %vm613_vm7 = vcmp.gt.f32.partialorder %v581_v28, 0.0  ;;  %v922_v27 = vmax.f32 %v2510_v25, %v2513_v30  ;;  %1833 = vmatpush3.bf16.msra.mxu1 %v1965_v20 }
 0x158   : > { %v2519_v39 = vsel %vm613_vm7, %v849_v35, -9e+15  ;;  %1834 = vmatprep.subr.bf16.mxu1 %v1966_v22 }
 0x159   : > { %923 = vmax.xlane.f32.xlu1 %v922_v27  ;;  %v545_v32 = vpop.f32.mrb[28].mxu0  ;;  %v925_v47 = vmax.f32 %v2515_v31, %v2519_v39 }
 0x15a   : > { %v582_v50 = vmul.f32 %v545_v32, %v545_v32  ;;  %v547_v34 = vpop.f32.mrb[29].mxu0 }
 0x15b   : > { %v583_v54 = vmul.f32 %v547_v34, %v547_v34  ;;  %926 = vmax.xlane.f32.xlu0 %v925_v47  ;;  %v549_v52 = vpop.f32.mrb[30].mxu0  ;;  %1835 = vmatpush3.bf16.msra.mxu1 %v1967_v23 }
 0x15c   : > { %vm614_vm11 = vcmp.gt.f32.partialorder %v582_v50, 0.0  ;;  %v584_v58 = vmul.f32 %v549_v52, %v549_v52  ;;  %v551_v55 = vpop.f32.mrb[31].mxu0  ;;  %1836 = vmatprep.subr.bf16.mxu1 %v1968_v24 }
 0x15d   : > { %v2523_v59 = vsel %vm614_vm11, %v850_v56, -9e+15  ;;  %vm615_vm13 = vcmp.gt.f32.partialorder %v583_v54, 0.0  ;;  %v585_v60 = vmul.f32 %v551_v55, %v551_v55 }
 0x15e   : > { %v2525_v0 = vsel %vm615_vm13, %v851_v62, -9e+15  ;;  %vm616_vm14 = vcmp.gt.f32.partialorder %v584_v58, 0.0 }
 0x15f   : > { %v2527_v61 = vsel %vm616_vm14, %v852_v2, -9e+15  ;;  %vm617_vm15 = vcmp.gt.f32.partialorder %v585_v60, 0.0  ;;  %v928_v8 = vmax.f32 %v2523_v59, %v2525_v0  ;;  %1837 = vmatpush3.bf16.msra.mxu1 %v1969_v26 }
 0x160   : > { %v2531_v3 = vsel %vm617_vm15, %v853_v6, -9e+15 }
 0x161   : > { %929 = vmax.xlane.f32.xlu1 %v928_v8  ;;  %v931_v9 = vmax.f32 %v2527_v61, %v2531_v3 }
 0x163   : > { %932 = vmax.xlane.f32.xlu0 %v931_v9 }
 0x1b6   : > { %v888_v28 = vpop.xlane.xlu0 %887 }
 0x1b7   : > { %v934_v29 = vsub.f32 %v2414_v10, %v888_v28  ;;  %v935_v46 = vsub.f32 %v2416_v12, %v888_v28 }
 0x1b8   : > { %v891_v35 = vpop.xlane.xlu1 %890 }
 0x1b9   : > { %v966_v27 = vmul.f32 1.442695, %v934_v29  ;;  %v968_v37 = vmul.f32 1.442695, %v935_v46  ;;  %v936_v42 = vsub.f32 %v2418_v14, %v891_v35  ;;  %v937_v32 = vsub.f32 %v2422_v18, %v891_v35 }
 0x1bb   : > { %1978 = vpow2.f32 %v966_v27  ;;  %v970_v47 = vmul.f32 1.442695, %v936_v42  ;;  %v972_v43 = vmul.f32 1.442695, %v937_v32 }
 0x1bc   : > { %1980 = vpow2.f32 %v968_v37 }
 0x1bd   : > { %1982 = vpow2.f32 %v970_v47 }
 0x1be   : > { %1984 = vpow2.f32 %v972_v43  ;;  %v894_v50 = vpop.xlane.xlu0 %893 }
 0x1bf   : > { %v938_v34 = vsub.f32 %v2431_v36, %v894_v50  ;;  %v939_v10 = vsub.f32 %v2433_v40, %v894_v50 }
 0x1c1   : > { %v974_v51 = vmul.f32 1.442695, %v938_v34  ;;  %v976_v12 = vmul.f32 1.442695, %v939_v10 }
 0x1c2   : > { %v897_v54 = vpop.xlane.xlu0 %896 }
 0x1c3   : > { %1986 = vpow2.f32 %v974_v51  ;;  %v940_v52 = vsub.f32 %v2437_v45, %v897_v54  ;;  %v941_v14 = vsub.f32 %v2439_v48, %v897_v54  ;;  %v1970_v51 = vld [vmem:[%s2946_s2 + $0x60] sm:$0xff]  }
 0x1c4   : > { %1988 = vpow2.f32 %v976_v12  ;;  %1838 = vmatprep.subr.bf16.mxu1 %v1970_v51 }
 0x1c5   : > { %v2567_v18 = vpop.eup %1978  ;;  %v978_v56 = vmul.f32 1.442695, %v940_v52  ;;  %v980_v58 = vmul.f32 1.442695, %v941_v14 }
 0x1c6   : > { %v2569_v55 = vpop.eup %1980  ;;  %v900_v62 = vpop.xlane.xlu1 %899 }
 0x1c7   : > { %v2571_v60 = vpop.eup %1982  ;;  %1990 = vpow2.f32 %v978_v56  ;;  %v942_v36 = vsub.f32 %v2446_v1, %v900_v62  ;;  %v943_v40 = vsub.f32 %v2449_v5, %v900_v62  ;;  %v1030_v45 = vadd.f32 %v2569_v55, %v2567_v18  ;;  %v1972_v56 = vld [vmem:[%s2946_s2 + $0x68] sm:$0xff]  }
 0x1c8   : > { %v2577_v2 = vpop.eup %1984  ;;  %1992 = vpow2.f32 %v980_v58  ;;  %v903_v48 = vpop.xlane.xlu0 %902 }
 0x1c9   : > { %v982_v6 = vmul.f32 1.442695, %v942_v36  ;;  %v984_v8 = vmul.f32 1.442695, %v943_v40  ;;  %v944_v9 = vsub.f32 %v2451_v7, %v903_v48  ;;  %v945_v15 = vsub.f32 %v2455_v13, %v903_v48  ;;  %1031 = vadd.xlane.f32.xlu1 %v1030_v45 }
 0x1ca   : > { %v1033_v17 = vadd.f32 %v2577_v2, %v2571_v60 }
 0x1cb   : > { %1994 = vpow2.f32 %v982_v6  ;;  %v986_v1 = vmul.f32 1.442695, %v944_v9  ;;  %v988_v5 = vmul.f32 1.442695, %v945_v15  ;;  %v1974_v9 = vld [vmem:[%s2946_s2 + $0x70] sm:$0xff]  }
 0x1cc   : > { %1996 = vpow2.f32 %v984_v8  ;;  %1034 = vadd.xlane.f32.xlu0 %v1033_v17  ;;  %v1975_v15 = vld [vmem:[%s2946_s2 + $0x30] sm:$0xff]  }
 0x1cd   : > { %v2583_v19 = vpop.eup %1986  ;;  %1998 = vpow2.f32 %v986_v1 }
 0x1ce   : > { %v2585_v20 = vpop.eup %1988  ;;  %2000 = vpow2.f32 %v988_v5  ;;  %v906_v22 = vpop.xlane.xlu1 %905 }
 0x1cf   : > { %v946_v7 = vsub.f32 %v2462_v33, %v906_v22  ;;  %v947_v13 = vsub.f32 %v2465_v38, %v906_v22  ;;  %v1036_v23 = vadd.f32 %v2585_v20, %v2583_v19 }
 0x1d0   : > { %v909_v24 = vpop.xlane.xlu0 %908 }
 0x1d1   : > { %v2591_v26 = vpop.eup %1990  ;;  %v990_v28 = vmul.f32 1.442695, %v946_v7  ;;  %v992_v29 = vmul.f32 1.442695, %v947_v13  ;;  %v948_v46 = vsub.f32 %v2467_v41, %v909_v24  ;;  %v949_v35 = vsub.f32 %v2471_v49, %v909_v24  ;;  %1037 = vadd.xlane.f32.xlu1 %v1036_v23  ;;  %v1976_v24 = vld [vmem:[%s2946_s2 + $0x78] sm:$0xff]  }
 0x1d2   : > { %v2595_v27 = vpop.eup %1992 }
 0x1d3   : > { %2002 = vpow2.f32 %v990_v28  ;;  %v994_v37 = vmul.f32 1.442695, %v948_v46  ;;  %v996_v33 = vmul.f32 1.442695, %v949_v35  ;;  %v1039_v38 = vadd.f32 %v2595_v27, %v2591_v26  ;;  %v1977_v28 = vld [vmem:[%s2946_s2 + $0x38] sm:$0xff]  }
 0x1d4   : > { %2004 = vpow2.f32 %v992_v29 }
 0x1d5   : > { %v2599_v42 = vpop.eup %1994  ;;  %2006 = vpow2.f32 %v994_v37  ;;  %1040 = vadd.xlane.f32.xlu0 %v1039_v38 }
 0x1d6   : > { %v2601_v32 = vpop.eup %1996  ;;  %2008 = vpow2.f32 %v996_v33  ;;  %v912_v41 = vpop.xlane.xlu1 %911 }
 0x1d7   : > { %v2603_v47 = vpop.eup %1998  ;;  %v950_v49 = vsub.f32 %v2478_v4, %v912_v41  ;;  %v951_v43 = vsub.f32 %v2481_v11, %v912_v41  ;;  %v1042_v50 = vadd.f32 %v2601_v32, %v2599_v42  ;;  %v1971_v4 = vld [vmem:[%s2946_s2 + $0x20] sm:$0xff]  }
 0x1d8   : > { %v2609_v34 = vpop.eup %2000  ;;  %v915_v10 = vpop.xlane.xlu0 %914  ;;  %1839 = vmatpush3.bf16.msra.mxu1 %v1971_v4 }
 0x1d9   : > { %v998_v12 = vmul.f32 1.442695, %v950_v49  ;;  %v1000_v54 = vmul.f32 1.442695, %v951_v43  ;;  %v952_v52 = vsub.f32 %v2483_v16, %v915_v10  ;;  %v953_v14 = vsub.f32 %v2487_v21, %v915_v10  ;;  %1043 = vadd.xlane.f32.xlu1 %v1042_v50  ;;  %v1973_v16 = vld [vmem:[%s2946_s2 + $0x28] sm:$0xff]   ;;  %1840 = vmatprep.subr.bf16.mxu1 %v1972_v56 }
 0x1da   : > { %v1045_v11 = vadd.f32 %v2609_v34, %v2603_v47 }
 0x1db   : > { %2010 = vpow2.f32 %v998_v12  ;;  %v1002_v58 = vmul.f32 1.442695, %v952_v52  ;;  %v1004_v62 = vmul.f32 1.442695, %v953_v14 }
 0x1dc   : > { %2012 = vpow2.f32 %v1000_v54  ;;  %1046 = vadd.xlane.f32.xlu0 %v1045_v11  ;;  %1841 = vmatpush3.bf16.msra.mxu1 %v1973_v16 }
 0x1dd   : > { %v2627_v21 = vpop.eup %2002  ;;  %2014 = vpow2.f32 %v1002_v58  ;;  %1842 = vmatprep.subr.bf16.mxu1 %v1974_v9 }
 0x1de   : > { %v2629_v36 = vpop.eup %2004  ;;  %2016 = vpow2.f32 %v1004_v62  ;;  %v918_v40 = vpop.xlane.xlu1 %917 }
 0x1df   : > { %v2631_v45 = vpop.eup %2006  ;;  %v954_v48 = vsub.f32 %v2494_v44, %v918_v40  ;;  %v955_v6 = vsub.f32 %v2497_v53, %v918_v40  ;;  %v1048_v8 = vadd.f32 %v2629_v36, %v2627_v21 }
 0x1e0   : > { %v2643_v17 = vpop.eup %2008  ;;  %v921_v1 = vpop.xlane.xlu0 %920  ;;  %1843 = vmatpush3.bf16.msra.mxu1 %v1975_v15 }
 0x1e1   : > { %v1006_v5 = vmul.f32 1.442695, %v954_v48  ;;  %v1008_v22 = vmul.f32 1.442695, %v955_v6  ;;  %v956_v44 = vsub.f32 %v2499_v57, %v921_v1  ;;  %v957_v53 = vsub.f32 %v2503_v63, %v921_v1  ;;  %1049 = vadd.xlane.f32.xlu1 %v1048_v8  ;;  %1844 = vmatprep.subr.bf16.mxu1 %v1976_v24 }
 0x1e2   : > { %v1051_v7 = vadd.f32 %v2643_v17, %v2631_v45 }
 0x1e3   : > { %2018 = vpow2.f32 %v1006_v5  ;;  %v1010_v13 = vmul.f32 1.442695, %v956_v44  ;;  %v1012_v23 = vmul.f32 1.442695, %v957_v53 }
 0x1e4   : > { %2020 = vpow2.f32 %v1008_v22  ;;  %1052 = vadd.xlane.f32.xlu0 %v1051_v7  ;;  %1845 = vmatpush3.bf16.msra.mxu1 %v1977_v28 }
 0x1e5   : > { %v2655_v57 = vpop.eup %2010  ;;  %2022 = vpow2.f32 %v1010_v13 }
 0x1e6   : > { %v2657_v63 = vpop.eup %2012  ;;  %2024 = vpow2.f32 %v1012_v23  ;;  %v924_v29 = vpop.xlane.xlu1 %923 }
 0x1e7   : > { %v2659_v46 = vpop.eup %2014  ;;  %v958_v35 = vsub.f32 %v2510_v25, %v924_v29  ;;  %v959_v37 = vsub.f32 %v2513_v30, %v924_v29  ;;  %v1054_v33 = vadd.f32 %v2657_v63, %v2655_v57 }
 0x1e8   : > { %v2665_v38 = vpop.eup %2016  ;;  %v927_v41 = vpop.xlane.xlu0 %926 }
 0x1e9   : > { %v1014_v49 = vmul.f32 1.442695, %v958_v35  ;;  %v1016_v43 = vmul.f32 1.442695, %v959_v37  ;;  %v960_v50 = vsub.f32 %v2515_v31, %v927_v41  ;;  %v961_v10 = vsub.f32 %v2519_v39, %v927_v41  ;;  %1055 = vadd.xlane.f32.xlu1 %v1054_v33 }
 0x1ea   : > { %v1057_v51 = vadd.f32 %v2665_v38, %v2659_v46 }
 0x1eb   : > { %2026 = vpow2.f32 %v1014_v49  ;;  %v1018_v25 = vmul.f32 1.442695, %v960_v50  ;;  %v1020_v30 = vmul.f32 1.442695, %v961_v10 }
 0x1ec   : > { %2028 = vpow2.f32 %v1016_v43  ;;  %1058 = vadd.xlane.f32.xlu0 %v1057_v51 }
 0x1ed   : > { %v2671_v12 = vpop.eup %2018  ;;  %2030 = vpow2.f32 %v1018_v25 }
 0x1ee   : > { %v2673_v54 = vpop.eup %2020  ;;  %2032 = vpow2.f32 %v1020_v30  ;;  %v930_v52 = vpop.xlane.xlu1 %929 }
 0x1ef   : > { %v2675_v14 = vpop.eup %2022  ;;  %v962_v31 = vsub.f32 %v2523_v59, %v930_v52  ;;  %v963_v39 = vsub.f32 %v2525_v0, %v930_v52  ;;  %v1060_v4 = vadd.f32 %v2673_v54, %v2671_v12 }
 0x1f0   : > { %v2681_v11 = vpop.eup %2024  ;;  %v933_v56 = vpop.xlane.xlu0 %932 }
 0x1f1   : > { %v1022_v58 = vmul.f32 1.442695, %v962_v31  ;;  %v1024_v62 = vmul.f32 1.442695, %v963_v39  ;;  %1061 = vadd.xlane.f32.xlu1 %v1060_v4  ;;  %v964_v16 = vsub.f32 %v2527_v61, %v933_v56  ;;  %v965_v40 = vsub.f32 %v2531_v3, %v933_v56 }
 0x1f2   : > { %v1063_v48 = vadd.f32 %v2681_v11, %v2675_v14 }
 0x1f3   : > { %2034 = vpow2.f32 %v1022_v58  ;;  %v1026_v59 = vmul.f32 1.442695, %v964_v16  ;;  %v1028_v6 = vmul.f32 1.442695, %v965_v40 }
 0x1f4   : > { %2036 = vpow2.f32 %v1024_v62  ;;  %1064 = vadd.xlane.f32.xlu0 %v1063_v48 }
 0x1f5   : > { %v2687_v0 = vpop.eup %2026  ;;  %2038 = vpow2.f32 %v1026_v59 }
 0x1f6   : > { %v2689_v8 = vpop.eup %2028  ;;  %2040 = vpow2.f32 %v1028_v6 }
 0x1f7   : > { %v2691_v9 = vpop.eup %2030  ;;  %v1066_v61 = vadd.f32 %v2689_v8, %v2687_v0 }
 0x1f8   : > { %v2695_v3 = vpop.eup %2032 }
 0x1f9   : > { %1067 = vadd.xlane.f32.xlu1 %v1066_v61  ;;  %v1069_v15 = vadd.f32 %v2695_v3, %v2691_v9 }
 0x1fb   : > { %1070 = vadd.xlane.f32.xlu0 %v1069_v15 }
 0x1fd   : > { %v2699_v1 = vpop.eup %2034 }
 0x1fe   : > { %v2701_v5 = vpop.eup %2036 }
 0x1ff   : > { %v2703_v22 = vpop.eup %2038  ;;  %v1072_v44 = vadd.f32 %v2701_v5, %v2699_v1 }
 0x200   : > { %v2707_v53 = vpop.eup %2040 }
 0x201   : > { %1073 = vadd.xlane.f32.xlu1 %v1072_v44  ;;  %v1075_v7 = vadd.f32 %v2707_v53, %v2703_v22 }
 0x203   : > { %1076 = vadd.xlane.f32.xlu0 %v1075_v7 }
 0x256   : > { %v1032_v13 = vpop.xlane.xlu1 %1031 }
 0x257   : > { %2042 = vrcp.f32 %v1032_v13 }
 0x259   : > { %v1035_v23 = vpop.xlane.xlu0 %1034 }
 0x25a   : > { %2044 = vrcp.f32 %v1035_v23 }
 0x25e   : > { %v1038_v24 = vpop.xlane.xlu1 %1037 }
 0x25f   : > { %2046 = vrcp.f32 %v1038_v24 }
 0x261   : > { %v2043_v28 = vpop.eup %2042 }
 0x262   : > { %v1041_v29 = vpop.xlane.xlu0 %1040  ;;  %v1080_v37 = vmul.f32 %v2043_v28, %v2569_v55  ;;  %v1079_v41 = vmul.f32 %v2043_v28, %v2567_v18 }
 0x263   : > { %2048 = vrcp.f32 %v1041_v29 }
 0x264   : > { %v2045_v35 = vpop.eup %2044 }
 0x265   : > { %v1083_v33 = vmul.f32 %v2045_v35, %v2577_v2  ;;  %v1082_v49 = vmul.f32 %v2045_v35, %v2571_v60 }
 0x266   : > { %v1044_v43 = vpop.xlane.xlu1 %1043 }
 0x267   : > { %v1127_v50 = vpack.c.bf16 %v1083_v33, %v1080_v37  ;;  %v1126_v10 = vpack.c.bf16 %v1082_v49, %v1079_v41  ;;  %2050 = vrcp.f32 %v1044_v43 }
 0x269   : > { %1302 = vmatprep.mubr.bf16.mxu1 %v1127_v50  ;;  %v1047_v51 = vpop.xlane.xlu0 %1046  ;;  %v2047_v25 = vpop.eup %2046 }
 0x26a   : > { %2052 = vrcp.f32 %v1047_v51  ;;  %1303 = vmatmul.mubr.bf16.vlgmr.msra.gmra.mrb[0].mxu1 %v1126_v10  ;;  %v1086_v31 = vmul.f32 %v2047_v25, %v2585_v20  ;;  %v1085_v2 = vmul.f32 %v2047_v25, %v2583_v19 }
 0x26d   : > { %v2049_v30 = vpop.eup %2048 }
 0x26e   : > { %v1050_v52 = vpop.xlane.xlu1 %1049  ;;  %v1089_v55 = vmul.f32 %v2049_v30, %v2595_v27  ;;  %v1088_v18 = vmul.f32 %v2049_v30, %v2591_v26 }
 0x26f   : > { %2054 = vrcp.f32 %v1050_v52 }
 0x270   : > { %v1129_v60 = vpack.c.bf16 %v1089_v55, %v1086_v31  ;;  %v1128_v39 = vpack.c.bf16 %v1088_v18, %v1085_v2 }
 0x271   : > { %v1053_v4 = vpop.xlane.xlu0 %1052  ;;  %v2051_v56 = vpop.eup %2050 }
 0x272   : > { %2056 = vrcp.f32 %v1053_v4  ;;  %1310 = vmatprep.mubr.bf16.mxu1 %v1129_v60  ;;  %v1092_v62 = vmul.f32 %v2051_v56, %v2601_v32  ;;  %v1091_v19 = vmul.f32 %v2051_v56, %v2599_v42 }
 0x273   : > { %1311 = vmatmul.mubr.bf16.gmra.mrb[4].mxu1 %v1128_v39 }
 0x274   : > { %v2053_v58 = vpop.eup %2052 }
 0x275   : > { %v1095_v16 = vmul.f32 %v2053_v58, %v2609_v34  ;;  %v1094_v20 = vmul.f32 %v2053_v58, %v2603_v47 }
 0x276   : > { %v1056_v27 = vpop.xlane.xlu1 %1055 }
 0x277   : > { %v1131_v40 = vpack.c.bf16 %v1095_v16, %v1092_v62  ;;  %2058 = vrcp.f32 %v1056_v27  ;;  %v1130_v48 = vpack.c.bf16 %v1094_v20, %v1091_v19 }
 0x279   : > { %1318 = vmatprep.mubr.bf16.mxu1 %v1131_v40  ;;  %v1059_v26 = vpop.xlane.xlu0 %1058  ;;  %v2055_v59 = vpop.eup %2054 }
 0x27a   : > { %2060 = vrcp.f32 %v1059_v26  ;;  %v1098_v61 = vmul.f32 %v2055_v59, %v2629_v36  ;;  %v1097_v44 = vmul.f32 %v2055_v59, %v2627_v21 }
 0x27b   : > { %1319 = vmatmul.mubr.bf16.gmra.mrb[8].mxu1 %v1130_v48 }
 0x27c   : > { %v2057_v6 = vpop.eup %2056 }
 0x27d   : > { %v1101_v32 = vmul.f32 %v2057_v6, %v2643_v17  ;;  %v1100_v34 = vmul.f32 %v2057_v6, %v2631_v45 }
 0x27e   : > { %v1062_v15 = vpop.xlane.xlu1 %1061 }
 0x27f   : > { %v1133_v47 = vpack.c.bf16 %v1101_v32, %v1098_v61  ;;  %2062 = vrcp.f32 %v1062_v15  ;;  %v1132_v7 = vpack.c.bf16 %v1100_v34, %v1097_v44 }
 0x281   : > { %1326 = vmatprep.mubr.bf16.mxu1 %v1133_v47  ;;  %v1065_v42 = vpop.xlane.xlu0 %1064  ;;  %v2059_v13 = vpop.eup %2058 }
 0x282   : > { %2064 = vrcp.f32 %v1065_v42  ;;  %v1104_v24 = vmul.f32 %v2059_v13, %v2657_v63  ;;  %v1103_v29 = vmul.f32 %v2059_v13, %v2655_v57 }
 0x283   : > { %1327 = vmatmul.mubr.bf16.gmra.mrb[12].mxu1 %v1132_v7 }
 0x284   : > { %v2061_v23 = vpop.eup %2060 }
 0x285   : > { %v1107_v36 = vmul.f32 %v2061_v23, %v2665_v38  ;;  %v1106_v17 = vmul.f32 %v2061_v23, %v2659_v46 }
 0x286   : > { %v1068_v28 = vpop.xlane.xlu1 %1067 }
 0x287   : > { %2066 = vrcp.f32 %v1068_v28  ;;  %v1135_v45 = vpack.c.bf16 %v1107_v36, %v1104_v24  ;;  %v1134_v35 = vpack.c.bf16 %v1106_v17, %v1103_v29 }
 0x288   : > { %v1071_v21 = vpop.xlane.xlu0 %1070 }
 0x289   : > { %1334 = vmatprep.mubr.bf16.mxu1 %v1135_v45  ;;  %2068 = vrcp.f32 %v1071_v21  ;;  %v2063_v37 = vpop.eup %2062 }
 0x28a   : > { %v1110_v41 = vmul.f32 %v2063_v37, %v2673_v54  ;;  %v1109_v43 = vmul.f32 %v2063_v37, %v2671_v12 }
 0x28b   : > { %1335 = vmatmul.mubr.bf16.gmra.mrb[16].mxu1 %v1134_v35 }
 0x28c   : > { %v2065_v33 = vpop.eup %2064 }
 0x28d   : > { %v1113_v63 = vmul.f32 %v2065_v33, %v2681_v11  ;;  %v1112_v38 = vmul.f32 %v2065_v33, %v2675_v14 }
 0x28e   : > { %v1074_v49 = vpop.xlane.xlu1 %1073 }
 0x28f   : > { %2070 = vrcp.f32 %v1074_v49  ;;  %v1137_v46 = vpack.c.bf16 %v1113_v63, %v1110_v41  ;;  %v1136_v10 = vpack.c.bf16 %v1112_v38, %v1109_v43 }
 0x290   : > { %v1077_v50 = vpop.xlane.xlu0 %1076 }
 0x291   : > { %v2067_v57 = vpop.eup %2066  ;;  %1342 = vmatprep.mubr.bf16.mxu1 %v1137_v46  ;;  %2072 = vrcp.f32 %v1077_v50 }
 0x292   : > { %v1116_v25 = vmul.f32 %v2067_v57, %v2689_v8  ;;  %v1115_v14 = vmul.f32 %v2067_v57, %v2687_v0 }
 0x293   : > { %v2069_v51 = vpop.eup %2068  ;;  %1343 = vmatmul.mubr.bf16.gmra.mrb[20].mxu1 %v1136_v10 }
 0x294   : > { %v1119_v54 = vmul.f32 %v2069_v51, %v2695_v3  ;;  %v1118_v11 = vmul.f32 %v2069_v51, %v2691_v9 }
 0x296   : > { %v1139_v30 = vpack.c.bf16 %v1119_v54, %v1116_v25  ;;  %v1138_v31 = vpack.c.bf16 %v1118_v11, %v1115_v14 }
 0x298   : > { %1350 = vmatprep.mubr.bf16.mxu1 %v1139_v30 }
 0x299   : > { %v2071_v52 = vpop.eup %2070 }
 0x29a   : > { %v1122_v55 = vmul.f32 %v2071_v52, %v2701_v5  ;;  %v1121_v8 = vmul.f32 %v2071_v52, %v2699_v1 }
 0x29b   : > { %v2073_v12 = vpop.eup %2072  ;;  %1351 = vmatmul.mubr.bf16.gmra.mrb[24].mxu1 %v1138_v31 }
 0x29c   : > { %v1125_v2 = vmul.f32 %v2073_v12, %v2707_v53  ;;  %v1124_v18 = vmul.f32 %v2073_v12, %v2703_v22 }
 0x29e   : > { %v1141_v60 = vpack.c.bf16 %v1125_v2, %v1122_v55  ;;  %v1140_v3 = vpack.c.bf16 %v1124_v18, %v1121_v8 }
 0x2a0   : > { %1358 = vmatprep.mubr.bf16.mxu1 %v1141_v60 }
 0x2a3   : > { %1359 = vmatmul.mubr.bf16.gmra.mrb[28].mxu1 %v1140_v3 }
 0x33d   : > { %v1846_v9 = vpop.f32.mrb[0].mxu1 }
 0x33e   : > { %v1847_v39 = vpop.f32.mrb[1].mxu1 }
 0x33f   : > { %v1848_v0 = vadd.f32 %v1847_v39, %v1846_v9  ;;  %v1849_v4 = vpop.f32.mrb[2].mxu1 }
 0x340   : > { %v1850_v56 = vpop.f32.mrb[3].mxu1 }
 0x341   : > { %v1383_v58 = vmin.f32 %v1848_v0, 0.0  ;;  %v1851_v62 = vadd.f32 %v1850_v56, %v1849_v4  ;;  %vm1367_vm0 = vcmp.gt.f32.partialorder %v1848_v0, 0.0 }
 0x343   : > { %v1399_v16 = vmul.f32 1.442695, %v1383_v58  ;;  %v1384_v20 = vmin.f32 %v1851_v62, 0.0  ;;  %vm1368_vm1 = vcmp.gt.f32.partialorder %v1851_v62, 0.0 }
 0x345   : > { %2074 = vpow2.f32 %v1399_v16  ;;  %v1401_v5 = vmul.f32 1.442695, %v1384_v20 }
 0x346   : > { %v1852_v53 = vpop.f32.mrb[4].mxu1 }
 0x347   : > { %2076 = vpow2.f32 %v1401_v5  ;;  %v1853_v22 = vpop.f32.mrb[5].mxu1 }
 0x348   : > { %v1854_v27 = vadd.f32 %v1853_v22, %v1852_v53  ;;  %v1855_v40 = vpop.f32.mrb[6].mxu1 }
 0x349   : > { %v1856_v1 = vpop.f32.mrb[7].mxu1 }
 0x34a   : > { %v1385_v19 = vmin.f32 %v1854_v27, 0.0  ;;  %v1857_v26 = vadd.f32 %v1856_v1, %v1855_v40  ;;  %vm1369_vm2 = vcmp.gt.f32.partialorder %v1854_v27, 0.0 }
 0x34c   : > { %v1403_v48 = vmul.f32 1.442695, %v1385_v19  ;;  %v1386_v59 = vmin.f32 %v1857_v26, 0.0  ;;  %vm1370_vm3 = vcmp.gt.f32.partialorder %v1857_v26, 0.0 }
 0x34e   : > { %2078 = vpow2.f32 %v1403_v48  ;;  %v1405_v6 = vmul.f32 1.442695, %v1386_v59  ;;  %v1858_v61 = vpop.f32.mrb[8].mxu1 }
 0x34f   : > { %v2075_v32 = vpop.eup %2074  ;;  %v1859_v34 = vpop.f32.mrb[9].mxu1 }
 0x350   : > { %2080 = vpow2.f32 %v1405_v6  ;;  %v1860_v15 = vadd.f32 %v1859_v34, %v1858_v61  ;;  %v1861_v47 = vpop.f32.mrb[10].mxu1  ;;  %v1776_v44 = vadd.f32 -1.0, %v2075_v32 }
 0x351   : > { %v2077_v42 = vpop.eup %2076  ;;  %v1862_v7 = vpop.f32.mrb[11].mxu1 }
 0x352   : > { %v1387_v13 = vmin.f32 %v1860_v15, 0.0  ;;  %v1863_v23 = vadd.f32 %v1862_v7, %v1861_v47  ;;  %v2743_v24 = vsel %vm1367_vm0, %v1848_v0, %v1776_v44  ;;  %v1777_v36 = vadd.f32 -1.0, %v2077_v42 }
 0x353   : > { %1463 = vmax.xlane.f32.xlu1 %v2743_v24  ;;  %vm1371_vm4 = vcmp.gt.f32.partialorder %v1860_v15, 0.0 }
 0x354   : > { %v1407_v17 = vmul.f32 1.442695, %v1387_v13  ;;  %v1388_v28 = vmin.f32 %v1863_v23, 0.0  ;;  %v2746_v45 = vsel %vm1368_vm1, %v1851_v62, %v1777_v36  ;;  %vm1372_vm5 = vcmp.gt.f32.partialorder %v1863_v23, 0.0 }
 0x355   : > { %1465 = vmax.xlane.f32.xlu0 %v2746_v45 }
 0x356   : > { %2082 = vpow2.f32 %v1407_v17  ;;  %v1409_v29 = vmul.f32 1.442695, %v1388_v28  ;;  %v1864_v21 = vpop.f32.mrb[12].mxu1 }
 0x357   : > { %v1865_v35 = vpop.f32.mrb[13].mxu1 }
 0x358   : > { %v2079_v37 = vpop.eup %2078  ;;  %2084 = vpow2.f32 %v1409_v29  ;;  %v1866_v33 = vadd.f32 %v1865_v35, %v1864_v21  ;;  %v1867_v41 = vpop.f32.mrb[14].mxu1 }
 0x359   : > { %v1868_v63 = vpop.f32.mrb[15].mxu1  ;;  %v1778_v38 = vadd.f32 -1.0, %v2079_v37 }
 0x35a   : > { %v2081_v49 = vpop.eup %2080  ;;  %v1389_v46 = vmin.f32 %v1866_v33, 0.0  ;;  %v1869_v43 = vadd.f32 %v1868_v63, %v1867_v41  ;;  %vm1373_vm6 = vcmp.gt.f32.partialorder %v1866_v33, 0.0 }
 0x35b   : > { %v2749_v50 = vsel %vm1369_vm2, %v1854_v27, %v1778_v38  ;;  %v1779_v57 = vadd.f32 -1.0, %v2081_v49 }
 0x35c   : > { %v1411_v10 = vmul.f32 1.442695, %v1389_v46  ;;  %v1390_v51 = vmin.f32 %v1869_v43, 0.0  ;;  %1467 = vmax.xlane.f32.xlu1 %v2749_v50  ;;  %vm1374_vm7 = vcmp.gt.f32.partialorder %v1869_v43, 0.0 }
 0x35d   : > { %v2752_v25 = vsel %vm1370_vm3, %v1857_v26, %v1779_v57 }
 0x35e   : > { %2086 = vpow2.f32 %v1411_v10  ;;  %v1413_v54 = vmul.f32 1.442695, %v1390_v51  ;;  %1469 = vmax.xlane.f32.xlu0 %v2752_v25  ;;  %v1870_v11 = vpop.f32.mrb[16].mxu1 }
 0x35f   : > { %v1871_v30 = vpop.f32.mrb[17].mxu1 }
 0x360   : > { %v2083_v14 = vpop.eup %2082  ;;  %2088 = vpow2.f32 %v1413_v54  ;;  %v1872_v52 = vadd.f32 %v1871_v30, %v1870_v11  ;;  %v1873_v31 = vpop.f32.mrb[18].mxu1 }
 0x361   : > { %v1874_v12 = vpop.f32.mrb[19].mxu1  ;;  %v1780_v55 = vadd.f32 -1.0, %v2083_v14 }
 0x362   : > { %v2085_v2 = vpop.eup %2084  ;;  %v1391_v18 = vmin.f32 %v1872_v52, 0.0  ;;  %v1875_v60 = vadd.f32 %v1874_v12, %v1873_v31  ;;  %vm1375_vm8 = vcmp.gt.f32.partialorder %v1872_v52, 0.0 }
 0x363   : > { %v2755_v8 = vsel %vm1371_vm4, %v1860_v15, %v1780_v55  ;;  %v1781_v3 = vadd.f32 -1.0, %v2085_v2 }
 0x364   : > { %v1415_v9 = vmul.f32 1.442695, %v1391_v18  ;;  %v1392_v39 = vmin.f32 %v1875_v60, 0.0  ;;  %1471 = vmax.xlane.f32.xlu1 %v2755_v8  ;;  %vm1376_vm9 = vcmp.gt.f32.partialorder %v1875_v60, 0.0 }
 0x365   : > { %v2758_v0 = vsel %vm1372_vm5, %v1863_v23, %v1781_v3 }
 0x366   : > { %2090 = vpow2.f32 %v1415_v9  ;;  %v1417_v4 = vmul.f32 1.442695, %v1392_v39  ;;  %1473 = vmax.xlane.f32.xlu0 %v2758_v0  ;;  %v1876_v56 = vpop.f32.mrb[20].mxu1 }
 0x367   : > { %v1877_v58 = vpop.f32.mrb[21].mxu1 }
 0x368   : > { %v2087_v62 = vpop.eup %2086  ;;  %2092 = vpow2.f32 %v1417_v4  ;;  %v1878_v16 = vadd.f32 %v1877_v58, %v1876_v56  ;;  %v1879_v20 = vpop.f32.mrb[22].mxu1 }
 0x369   : > { %v1880_v5 = vpop.f32.mrb[23].mxu1  ;;  %v1782_v53 = vadd.f32 -1.0, %v2087_v62 }
 0x36a   : > { %v2089_v22 = vpop.eup %2088  ;;  %v1393_v27 = vmin.f32 %v1878_v16, 0.0  ;;  %v1881_v40 = vadd.f32 %v1880_v5, %v1879_v20  ;;  %vm1377_vm10 = vcmp.gt.f32.partialorder %v1878_v16, 0.0 }
 0x36b   : > { %v2761_v1 = vsel %vm1373_vm6, %v1866_v33, %v1782_v53  ;;  %v1783_v19 = vadd.f32 -1.0, %v2089_v22 }
 0x36c   : > { %v1419_v26 = vmul.f32 1.442695, %v1393_v27  ;;  %v1394_v48 = vmin.f32 %v1881_v40, 0.0  ;;  %1475 = vmax.xlane.f32.xlu1 %v2761_v1  ;;  %vm1378_vm11 = vcmp.gt.f32.partialorder %v1881_v40, 0.0 }
 0x36d   : > { %v2764_v59 = vsel %vm1374_vm7, %v1869_v43, %v1783_v19 }
 0x36e   : > { %2094 = vpow2.f32 %v1419_v26  ;;  %v1421_v6 = vmul.f32 1.442695, %v1394_v48  ;;  %1477 = vmax.xlane.f32.xlu0 %v2764_v59  ;;  %v1882_v61 = vpop.f32.mrb[24].mxu1 }
 0x36f   : > { %v1883_v32 = vpop.f32.mrb[25].mxu1 }
 0x370   : > { %v2091_v34 = vpop.eup %2090  ;;  %2096 = vpow2.f32 %v1421_v6  ;;  %v1884_v15 = vadd.f32 %v1883_v32, %v1882_v61  ;;  %v1885_v47 = vpop.f32.mrb[26].mxu1 }
 0x371   : > { %v1886_v44 = vpop.f32.mrb[27].mxu1  ;;  %v1784_v42 = vadd.f32 -1.0, %v2091_v34 }
 0x372   : > { %v2093_v7 = vpop.eup %2092  ;;  %v1395_v13 = vmin.f32 %v1884_v15, 0.0  ;;  %v1887_v23 = vadd.f32 %v1886_v44, %v1885_v47  ;;  %vm1379_vm12 = vcmp.gt.f32.partialorder %v1884_v15, 0.0 }
 0x373   : > { %v2767_v36 = vsel %vm1375_vm8, %v1872_v52, %v1784_v42  ;;  %v1785_v17 = vadd.f32 -1.0, %v2093_v7 }
 0x374   : > { %v1423_v28 = vmul.f32 1.442695, %v1395_v13  ;;  %v1396_v29 = vmin.f32 %v1887_v23, 0.0  ;;  %1479 = vmax.xlane.f32.xlu1 %v2767_v36  ;;  %vm1380_vm13 = vcmp.gt.f32.partialorder %v1887_v23, 0.0 }
 0x375   : > { %v2770_v21 = vsel %vm1376_vm9, %v1875_v60, %v1785_v17 }
 0x376   : > { %2098 = vpow2.f32 %v1423_v28  ;;  %v1425_v35 = vmul.f32 1.442695, %v1396_v29  ;;  %1481 = vmax.xlane.f32.xlu0 %v2770_v21  ;;  %v1888_v37 = vpop.f32.mrb[28].mxu1 }
 0x377   : > { %v1889_v33 = vpop.f32.mrb[29].mxu1 }
 0x378   : > { %v2095_v41 = vpop.eup %2094  ;;  %2100 = vpow2.f32 %v1425_v35  ;;  %v1890_v63 = vadd.f32 %v1889_v33, %v1888_v37  ;;  %v1891_v38 = vpop.f32.mrb[30].mxu1 }
 0x379   : > { %v1892_v49 = vpop.f32.mrb[31].mxu1  ;;  %v1786_v46 = vadd.f32 -1.0, %v2095_v41 }
 0x37a   : > { %v2097_v43 = vpop.eup %2096  ;;  %v1397_v57 = vmin.f32 %v1890_v63, 0.0  ;;  %v1893_v10 = vadd.f32 %v1892_v49, %v1891_v38  ;;  %vm1381_vm14 = vcmp.gt.f32.partialorder %v1890_v63, 0.0 }
 0x37b   : > { %v2773_v51 = vsel %vm1377_vm10, %v1878_v16, %v1786_v46  ;;  %v1787_v54 = vadd.f32 -1.0, %v2097_v43 }
 0x37c   : > { %v1427_v11 = vmul.f32 1.442695, %v1397_v57  ;;  %v1398_v30 = vmin.f32 %v1893_v10, 0.0  ;;  %1483 = vmax.xlane.f32.xlu1 %v2773_v51  ;;  %vm1382_vm15 = vcmp.gt.f32.partialorder %v1893_v10, 0.0 }
 0x37d   : > { %v2776_v14 = vsel %vm1378_vm11, %v1881_v40, %v1787_v54 }
 0x37e   : > { %2102 = vpow2.f32 %v1427_v11  ;;  %v1429_v52 = vmul.f32 1.442695, %v1398_v30  ;;  %1485 = vmax.xlane.f32.xlu0 %v2776_v14 }
 0x380   : > { %v2099_v31 = vpop.eup %2098  ;;  %2104 = vpow2.f32 %v1429_v52 }
 0x381   : > { %v1788_v12 = vadd.f32 -1.0, %v2099_v31 }
 0x382   : > { %v2101_v55 = vpop.eup %2100 }
 0x383   : > { %v2779_v2 = vsel %vm1379_vm12, %v1884_v15, %v1788_v12  ;;  %v1789_v18 = vadd.f32 -1.0, %v2101_v55 }
 0x384   : > { %1487 = vmax.xlane.f32.xlu1 %v2779_v2 }
 0x385   : > { %v2782_v60 = vsel %vm1380_vm13, %v1887_v23, %v1789_v18 }
 0x386   : > { %1489 = vmax.xlane.f32.xlu0 %v2782_v60 }
 0x388   : > { %v2103_v3 = vpop.eup %2102 }
 0x389   : > { %v1790_v9 = vadd.f32 -1.0, %v2103_v3 }
 0x38a   : > { %v2105_v39 = vpop.eup %2104 }
 0x38b   : > { %v2785_v4 = vsel %vm1381_vm14, %v1890_v63, %v1790_v9  ;;  %v1791_v56 = vadd.f32 -1.0, %v2105_v39 }
 0x38c   : > { %1491 = vmax.xlane.f32.xlu1 %v2785_v4 }
 0x38d   : > { %v2788_v58 = vsel %vm1382_vm15, %v1893_v10, %v1791_v56 }
 0x38e   : > { %1493 = vmax.xlane.f32.xlu0 %v2788_v58 }
 0x3e0   : > { %v1464_v62 = vpop.xlane.xlu1 %1463 }
 0x3e1   : > { %v2792_v16 = vsub.f32 %v2743_v24, %v1464_v62 }
 0x3e2   : > { %v1466_v20 = vpop.xlane.xlu0 %1465 }
 0x3e3   : > { %v1511_v5 = vmul.f32 1.442695, %v2792_v16  ;;  %v2796_v53 = vsub.f32 %v2746_v45, %v1466_v20 }
 0x3e5   : > { %2106 = vpow2.f32 %v1511_v5  ;;  %v1513_v22 = vmul.f32 1.442695, %v2796_v53 }
 0x3e7   : > { %2108 = vpow2.f32 %v1513_v22 }
 0x3e9   : > { %v1468_v27 = vpop.xlane.xlu1 %1467 }
 0x3ea   : > { %v2800_v40 = vsub.f32 %v2749_v50, %v1468_v27 }
 0x3eb   : > { %v1470_v19 = vpop.xlane.xlu0 %1469 }
 0x3ec   : > { %v1515_v26 = vmul.f32 1.442695, %v2800_v40  ;;  %v2804_v24 = vsub.f32 %v2752_v25, %v1470_v19 }
 0x3ee   : > { %2110 = vpow2.f32 %v1515_v26  ;;  %v1517_v48 = vmul.f32 1.442695, %v2804_v24 }
 0x3ef   : > { %v2107_v6 = vpop.eup %2106 }
 0x3f0   : > { %2112 = vpow2.f32 %v1517_v48  ;;  %1543 = vadd.xlane.f32.xlu1 %v2107_v6 }
 0x3f1   : > { %v2109_v45 = vpop.eup %2108  ;;  %v1472_v61 = vpop.xlane.xlu1 %1471 }
 0x3f2   : > { %v2808_v32 = vsub.f32 %v2755_v8, %v1472_v61  ;;  %1545 = vadd.xlane.f32.xlu0 %v2109_v45 }
 0x3f3   : > { %v1474_v50 = vpop.xlane.xlu0 %1473 }
 0x3f4   : > { %v1519_v34 = vmul.f32 1.442695, %v2808_v32  ;;  %v2812_v15 = vsub.f32 %v2758_v0, %v1474_v50 }
 0x3f6   : > { %2114 = vpow2.f32 %v1519_v34  ;;  %v1521_v25 = vmul.f32 1.442695, %v2812_v15 }
 0x3f8   : > { %v2111_v47 = vpop.eup %2110  ;;  %2116 = vpow2.f32 %v1521_v25 }
 0x3f9   : > { %v1476_v44 = vpop.xlane.xlu1 %1475  ;;  %1547 = vadd.xlane.f32.xlu1 %v2111_v47 }
 0x3fa   : > { %v2113_v42 = vpop.eup %2112  ;;  %v2816_v7 = vsub.f32 %v2761_v1, %v1476_v44 }
 0x3fb   : > { %1549 = vadd.xlane.f32.xlu0 %v2113_v42  ;;  %v1478_v8 = vpop.xlane.xlu0 %1477 }
 0x3fc   : > { %v1523_v13 = vmul.f32 1.442695, %v2816_v7  ;;  %v2820_v23 = vsub.f32 %v2764_v59, %v1478_v8 }
 0x3fe   : > { %2118 = vpow2.f32 %v1523_v13  ;;  %v1525_v0 = vmul.f32 1.442695, %v2820_v23 }
 0x400   : > { %v2115_v17 = vpop.eup %2114  ;;  %2120 = vpow2.f32 %v1525_v0 }
 0x401   : > { %v1480_v28 = vpop.xlane.xlu1 %1479  ;;  %1551 = vadd.xlane.f32.xlu1 %v2115_v17 }
 0x402   : > { %v2117_v29 = vpop.eup %2116  ;;  %v2824_v35 = vsub.f32 %v2767_v36, %v1480_v28 }
 0x403   : > { %1553 = vadd.xlane.f32.xlu0 %v2117_v29  ;;  %v1482_v1 = vpop.xlane.xlu0 %1481 }
 0x404   : > { %v1527_v37 = vmul.f32 1.442695, %v2824_v35  ;;  %v2828_v33 = vsub.f32 %v2770_v21, %v1482_v1 }
 0x406   : > { %2122 = vpow2.f32 %v1527_v37  ;;  %v1529_v59 = vmul.f32 1.442695, %v2828_v33 }
 0x408   : > { %v2119_v41 = vpop.eup %2118  ;;  %2124 = vpow2.f32 %v1529_v59 }
 0x409   : > { %v1484_v63 = vpop.xlane.xlu1 %1483  ;;  %1555 = vadd.xlane.f32.xlu1 %v2119_v41 }
 0x40a   : > { %v2121_v38 = vpop.eup %2120  ;;  %v2832_v49 = vsub.f32 %v2773_v51, %v1484_v63 }
 0x40b   : > { %1557 = vadd.xlane.f32.xlu0 %v2121_v38  ;;  %v1486_v36 = vpop.xlane.xlu0 %1485 }
 0x40c   : > { %v1531_v46 = vmul.f32 1.442695, %v2832_v49  ;;  %v2836_v43 = vsub.f32 %v2776_v14, %v1486_v36 }
 0x40e   : > { %2126 = vpow2.f32 %v1531_v46  ;;  %v1533_v21 = vmul.f32 1.442695, %v2836_v43 }
 0x410   : > { %v2123_v57 = vpop.eup %2122  ;;  %2128 = vpow2.f32 %v1533_v21 }
 0x411   : > { %v1488_v10 = vpop.xlane.xlu1 %1487  ;;  %1559 = vadd.xlane.f32.xlu1 %v2123_v57 }
 0x412   : > { %v2125_v54 = vpop.eup %2124  ;;  %v2840_v11 = vsub.f32 %v2779_v2, %v1488_v10 }
 0x413   : > { %1561 = vadd.xlane.f32.xlu0 %v2125_v54  ;;  %v1490_v51 = vpop.xlane.xlu0 %1489 }
 0x414   : > { %v1535_v30 = vmul.f32 1.442695, %v2840_v11  ;;  %v2844_v52 = vsub.f32 %v2782_v60, %v1490_v51 }
 0x416   : > { %2130 = vpow2.f32 %v1535_v30  ;;  %v1537_v14 = vmul.f32 1.442695, %v2844_v52 }
 0x418   : > { %v2127_v31 = vpop.eup %2126  ;;  %2132 = vpow2.f32 %v1537_v14 }
 0x419   : > { %1563 = vadd.xlane.f32.xlu1 %v2127_v31  ;;  %v1492_v12 = vpop.xlane.xlu1 %1491 }
 0x41a   : > { %v2129_v55 = vpop.eup %2128  ;;  %v2848_v18 = vsub.f32 %v2785_v4, %v1492_v12 }
 0x41b   : > { %1565 = vadd.xlane.f32.xlu0 %v2129_v55  ;;  %v1494_v2 = vpop.xlane.xlu0 %1493 }
 0x41c   : > { %v1539_v3 = vmul.f32 1.442695, %v2848_v18  ;;  %v2852_v9 = vsub.f32 %v2788_v58, %v1494_v2 }
 0x41e   : > { %2134 = vpow2.f32 %v1539_v3  ;;  %v1541_v60 = vmul.f32 1.442695, %v2852_v9 }
 0x420   : > { %v2131_v39 = vpop.eup %2130  ;;  %2136 = vpow2.f32 %v1541_v60 }
 0x421   : > { %1567 = vadd.xlane.f32.xlu1 %v2131_v39 }
 0x422   : > { %v2133_v56 = vpop.eup %2132 }
 0x423   : > { %1569 = vadd.xlane.f32.xlu0 %v2133_v56 }
 0x428   : > { %v2135_v62 = vpop.eup %2134 }
 0x429   : > { %1571 = vadd.xlane.f32.xlu1 %v2135_v62 }
 0x42a   : > { %v2137_v4 = vpop.eup %2136 }
 0x42b   : > { %1573 = vadd.xlane.f32.xlu0 %v2137_v4 }
 0x47d   : > { %v1544_v20 = vpop.xlane.xlu1 %1543 }
 0x47e   : > { %2138 = vlog2.f32 %v1544_v20 }
 0x47f   : > { %v1546_v5 = vpop.xlane.xlu0 %1545 }
 0x480   : > { %2140 = vlog2.f32 %v1546_v5 }
 0x486   : > { %v1548_v58 = vpop.xlane.xlu1 %1547 }
 0x487   : > { %2142 = vlog2.f32 %v1548_v58 }
 0x488   : > { %v2139_v22 = vpop.eup %2138  ;;  %v1550_v27 = vpop.xlane.xlu0 %1549 }
 0x489   : > { %v1576_v19 = vmul.f32 0.6931472, %v2139_v22  ;;  %2144 = vlog2.f32 %v1550_v27 }
 0x48a   : > { %v2141_v26 = vpop.eup %2140 }
 0x48b   : > { %v1607_v48 = vsub.f32 %v2792_v16, %v1576_v19  ;;  %v1578_v6 = vmul.f32 0.6931472, %v2141_v26 }
 0x48d   : > { %1623 = vst [vmem:[%s2859_s23] sm:$0xff] %v1607_v48  ;;  %v1608_v45 = vsub.f32 %v2796_v53, %v1578_v6 }
 0x48e   : > { %v1552_v61 = vpop.xlane.xlu1 %1551 }
 0x48f   : > { %1624 = vst [vmem:[%s2859_s23 + $0x8] sm:$0xff] %v1608_v45  ;;  %2146 = vlog2.f32 %v1552_v61 }
 0x490   : > { %v1554_v50 = vpop.xlane.xlu0 %1553 }
 0x491   : > { %v2143_v34 = vpop.eup %2142  ;;  %2148 = vlog2.f32 %v1554_v50 }
 0x492   : > { %v1580_v25 = vmul.f32 0.6931472, %v2143_v34 }
 0x493   : > { %v2145_v47 = vpop.eup %2144 }
 0x494   : > { %v1609_v16 = vsub.f32 %v2800_v40, %v1580_v25  ;;  %v1582_v44 = vmul.f32 0.6931472, %v2145_v47 }
 0x496   : > { %1625 = vst [vmem:[%s2859_s23 + $0x10] sm:$0xff] %v1609_v16  ;;  %v1610_v42 = vsub.f32 %v2804_v24, %v1582_v44  ;;  %v1556_v8 = vpop.xlane.xlu1 %1555 }
 0x497   : > { %2150 = vlog2.f32 %v1556_v8 }
 0x498   : > { %1626 = vst [vmem:[%s2859_s23 + $0x18] sm:$0xff] %v1610_v42  ;;  %v1558_v53 = vpop.xlane.xlu0 %1557 }
 0x499   : > { %v2147_v13 = vpop.eup %2146  ;;  %2152 = vlog2.f32 %v1558_v53 }
 0x49a   : > { %v1584_v0 = vmul.f32 0.6931472, %v2147_v13 }
 0x49b   : > { %v2149_v17 = vpop.eup %2148 }
 0x49c   : > { %v1611_v28 = vsub.f32 %v2808_v32, %v1584_v0  ;;  %v1586_v29 = vmul.f32 0.6931472, %v2149_v17 }
 0x49e   : > { %1627 = vst [vmem:[%s2859_s23 + $0x20] sm:$0xff] %v1611_v28  ;;  %v1612_v40 = vsub.f32 %v2812_v15, %v1586_v29  ;;  %v1560_v1 = vpop.xlane.xlu1 %1559 }
 0x49f   : > { %2154 = vlog2.f32 %v1560_v1 }
 0x4a0   : > { %1628 = vst [vmem:[%s2859_s23 + $0x28] sm:$0xff] %v1612_v40  ;;  %v1562_v24 = vpop.xlane.xlu0 %1561 }
 0x4a1   : > { %v2151_v37 = vpop.eup %2150  ;;  %2156 = vlog2.f32 %v1562_v24 }
 0x4a2   : > { %v1588_v59 = vmul.f32 0.6931472, %v2151_v37 }
 0x4a3   : > { %v2153_v41 = vpop.eup %2152 }
 0x4a4   : > { %v1613_v63 = vsub.f32 %v2816_v7, %v1588_v59  ;;  %v1590_v38 = vmul.f32 0.6931472, %v2153_v41 }
 0x4a6   : > { %1629 = vst [vmem:[%s2859_s23 + $0x30] sm:$0xff] %v1613_v63  ;;  %v1614_v32 = vsub.f32 %v2820_v23, %v1590_v38  ;;  %v1564_v36 = vpop.xlane.xlu1 %1563 }
 0x4a7   : > { %2158 = vlog2.f32 %v1564_v36 }
 0x4a8   : > { %1630 = vst [vmem:[%s2859_s23 + $0x38] sm:$0xff] %v1614_v32  ;;  %v1566_v15 = vpop.xlane.xlu0 %1565 }
 0x4a9   : > { %v2155_v46 = vpop.eup %2154  ;;  %2160 = vlog2.f32 %v1566_v15 }
 0x4aa   : > { %v1592_v21 = vmul.f32 0.6931472, %v2155_v46 }
 0x4ab   : > { %v2157_v57 = vpop.eup %2156 }
 0x4ac   : > { %v1615_v10 = vsub.f32 %v2824_v35, %v1592_v21  ;;  %v1594_v54 = vmul.f32 0.6931472, %v2157_v57 }
 0x4ae   : > { %1631 = vst [vmem:[%s2859_s23 + $0x40] sm:$0xff] %v1615_v10  ;;  %v1616_v7 = vsub.f32 %v2828_v33, %v1594_v54  ;;  %v1568_v51 = vpop.xlane.xlu1 %1567 }
 0x4af   : > { %2162 = vlog2.f32 %v1568_v51 }
 0x4b0   : > { %1632 = vst [vmem:[%s2859_s23 + $0x48] sm:$0xff] %v1616_v7  ;;  %v1570_v23 = vpop.xlane.xlu0 %1569 }
 0x4b1   : > { %v2159_v30 = vpop.eup %2158  ;;  %2164 = vlog2.f32 %v1570_v23 }
 0x4b2   : > { %v1596_v14 = vmul.f32 0.6931472, %v2159_v30 }
 0x4b3   : > { %v2161_v31 = vpop.eup %2160 }
 0x4b4   : > { %v1617_v12 = vsub.f32 %v2832_v49, %v1596_v14  ;;  %v1598_v55 = vmul.f32 0.6931472, %v2161_v31 }
 0x4b6   : > { %1633 = vst [vmem:[%s2859_s23 + $0x50] sm:$0xff] %v1617_v12  ;;  %v1618_v35 = vsub.f32 %v2836_v43, %v1598_v55  ;;  %v1572_v2 = vpop.xlane.xlu1 %1571 }
 0x4b7   : > { %2166 = vlog2.f32 %v1572_v2 }
 0x4b8   : > { %1634 = vst [vmem:[%s2859_s23 + $0x58] sm:$0xff] %v1618_v35  ;;  %v1574_v33 = vpop.xlane.xlu0 %1573 }
 0x4b9   : > { %v2163_v3 = vpop.eup %2162  ;;  %2168 = vlog2.f32 %v1574_v33 }
 0x4ba   : > { %v1600_v60 = vmul.f32 0.6931472, %v2163_v3 }
 0x4bb   : > { %v2165_v39 = vpop.eup %2164 }
 0x4bc   : > { %v1619_v56 = vsub.f32 %v2840_v11, %v1600_v60  ;;  %v1602_v49 = vmul.f32 0.6931472, %v2165_v39 }
 0x4be   : > { %1635 = vst [vmem:[%s2859_s23 + $0x60] sm:$0xff] %v1619_v56  ;;  %v1620_v62 = vsub.f32 %v2844_v52, %v1602_v49 }
 0x4c0   : > { %1636 = vst [vmem:[%s2859_s23 + $0x68] sm:$0xff] %v1620_v62 }
 0x4c1   : > { %v2167_v43 = vpop.eup %2166 }
 0x4c2   : > { %v1604_v4 = vmul.f32 0.6931472, %v2167_v43 }
 0x4c3   : > { %v2169_v20 = vpop.eup %2168 }
 0x4c4   : > { %v1621_v5 = vsub.f32 %v2848_v18, %v1604_v4  ;;  %v1606_v58 = vmul.f32 0.6931472, %v2169_v20 }
 0x4c6   : > { %1637 = vst [vmem:[%s2859_s23 + $0x70] sm:$0xff] %v1621_v5  ;;  %v1622_v11 = vsub.f32 %v2852_v9, %v1606_v58 }
 0x4c8   : > { %1638 = vst [vmem:[%s2859_s23 + $0x78] sm:$0xff] %v1622_v11 }
 0x4c9   : > { %2183 = shalt.err (!%p2180_p3)
}
 0x4ca   : > { %s2184_s7 = scalar_lea.hbm %s2894_s9, 2048  ;;  %s2188_s16 = scalar_lea.hbm %s2949_s5, 4096 }
 0x4cb   : > { %p2185_p4 = scmp.ne.s32.totalorder %s2894_s9, %s2184_s7  ;;  %p2189_p9 = scmp.lt.u32.totalorder %s2894_s9, %s2949_s5 }
 0x4cc   : > { %p2190_p10 = scmp.lt.u32.totalorder %s2188_s16, %s2184_s7  ;;  %p2192_p12 = scmp.lt.u32.totalorder %s2184_s7, %s2894_s9 }
 0x4cd   : > { %p2186_p7 = pnand %p2185_p4, %p2306_p5 }
 0x4ce   : > { %p2191_p11 = por %p2190_p10, %p2189_p9 }
 0x4cf   : > { %p2187_p8 = pneg %p2186_p7 }
 0x4d0   : > { %p2193_p13 = por %p2192_p12, %p2191_p11 }
 0x4d2   : > { %p2194_p0 = pnand %p2193_p13, %p2187_p8 }
 0x4d4   : > { %2197 = shalt.err (!%p2194_p0)
}
 0x4d5   : > { %s2236_s23 = smov 128   ;;  %s2237_s26 = smov 8  }
 0x4d6   : > { %1894 = dma.vmem_to_hbm [thread:$0]  (%p2306_p5), %s2896_s30, 2048, %s2894_s9, %s2903_s22, %s2236_s23, %s2236_s23, %s2237_s26  }
 0x4d7 PF: > { %p1900_p1 = scmp.ge.s32.totalorder %s2232_s21, 2  ;;  %s1668_s6 = sand.u32 1, %s2220_s18  }
 0x4d8   : > { %s1669_s8 = scalar_lea.sflag [#allocation3], %s1668_s6 }
 0x4d9   : > { %p1897_p2 = pnand %p1900_p1, %p2310_p6 }
 0x4db   : > { %2215 = dma.done.wait (!%p1897_p2), %s1669_s8, 2048  }
 0x4dc   : > { %2217 = vsyncadd (!%p1897_p2), %s1669_s8, 4294965248  ;;  %p15_p3 = scmp.ge.s32.totalorder %s2293_s24, 4   ;;  %s2952_s18 = smov %s2224_s19 }
 0x4dd   : > { %s2953_s19 = smov %s2228_s20  ;;  %s2954_s20 = smov %s2304_s27 }
 0x4de   : > { %s2955_s21 = smov %s2293_s24  ;;  %17 = sbr.rel (!%p15_p3) target bundleno = 3 (0x3), region = 78 }
 0x4e5   :  { %1674 = vsyncpa [#allocation3], 1 }
 0x4e6   :  { %1676 = vsyncpa [#allocation3 + $0x1], 1 }

// kernel: gat_forward.3
= control target key start
LH: loop header
LB: loop body
LE: loop exit
PB: predicated region body
PF: predicated region fallthrough
CT: control target
= control target key end

     0   :  { %s3738_s21 = smov 0   ;;  %s4443_s0 = inlined_call_operand.vmem [shape: bf16[256,128], index: 0, kind: input, shape index: {}]   ;;  %s4444_s1 = inlined_call_operand.vmem [shape: bf16[128,128], index: 1, kind: input, shape index: {}]   ;;  %s4445_s2 = inlined_call_operand.vmem [shape: f32[1,128], index: 2, kind: input, shape index: {}]   ;;  %s4446_s3 = inlined_call_operand.vmem [shape: bf16[128,128], index: 3, kind: input, shape index: {}]   ;;  %s4447_s4 = inlined_call_operand.vmem [shape: f32[1,128], index: 4, kind: input, shape index: {}]   ;;  %s4448_s5 = inlined_call_operand.vmem [shape: bf16[128,512], index: 5, kind: input, shape index: {}]   ;;  %s4449_s6 = inlined_call_operand.vmem [shape: bf16[512,4], index: 6, kind: input, shape index: {}]   ;;  %s4450_s7 = inlined_call_operand.vmem [shape: bf16[512,4], index: 7, kind: input, shape index: {}]   ;;  %s4451_s8 = inlined_call_operand.vmem [shape: bf16[256,128], index: 8, kind: output, shape index: {0}]   ;;  %s4452_s9 = inlined_call_operand.vmem [shape: bf16[256,128], index: 9, kind: output, shape index: {1}]   ;;  %s4453_s10 = inlined_call_operand.vmem [shape: bf16[256,512], index: 10, kind: output, shape index: {2}]   ;;  %s4454_s11 = inlined_call_operand.vmem [shape: f32[256,4], index: 11, kind: output, shape index: {3}]   ;;  %s4455_s12 = inlined_call_operand.vmem [shape: f32[256,4], index: 12, kind: output, shape index: {4}]  }
   0x1 LB: > { %s2802_s22 = sadd.s32 4294967295, %s3670_s21   ;;  %p2806_p0 = scmp.ge.s32.totalorder %s3670_s21, 1  ;;  %s3670_s21 = sphi %s3738_s21, %s23_s21  }
   0x2   : > { %p372_p1 = scmp.lt.s32.totalorder %s3670_s21, 3 }
   0x4   : > { %p373_p2 = pnand %p2806_p0, %p372_p1 }
   0x5   : > { %v3528_v0 = vld [vmem:[%s4444_s1] sm:$0xff] (!%p373_p2)   ;;  %s2807_s25 = sshll.u32 (!%p373_p2), %s2802_s22, 4  ;;  %v3530_v2 = vld [vmem:[%s4444_s1 + $0x8] sm:$0xff] (!%p373_p2)   ;;  %v3532_v4 = vld [vmem:[%s4444_s1 + $0x10] sm:$0xff] (!%p373_p2)   ;;  %v3672_v58 = vmov (!%p373_p2), 0   ;;  %vm2125_vm0 = vcmask (!%p373_p2), 31744  }
   0x6   : > { %376 = sbr.rel (%p373_p2) target bundleno = 629 (0x275), region = 52  ;;  %v3529_v1 = vld [vmem:[%s4446_s3] sm:$0xff] (!%p373_p2)   ;;  %3455 = vmatprep.subr.bf16.mxu0 (!%p373_p2), %v3528_v0  ;;  %p436_p3 = scmp.lt.s32.totalorder (!%p373_p2), %s2807_s25, 31  ;;  %v3531_v3 = vld [vmem:[%s4446_s3 + $0x8] sm:$0xff] (!%p373_p2)   ;;  %v3533_v5 = vld [vmem:[%s4446_s3 + $0x10] sm:$0xff] (!%p373_p2)  }
   0x7   : > { %3487 = vmatprep.subr.bf16.mxu1 (!%p373_p2), %v3529_v1  ;;  %3456 = vmatpush3.bf16.msra.mxu0 (!%p373_p2), %v3528_v0  ;;  %v3534_v6 = vld [vmem:[%s4444_s1 + $0x18] sm:$0xff] (!%p373_p2)   ;;  %v3536_v8 = vld [vmem:[%s4444_s1 + $0x20] sm:$0xff] (!%p373_p2)   ;;  %v3538_v10 = vld [vmem:[%s4444_s1 + $0x28] sm:$0xff] (!%p373_p2)  }
   0x8   : > { %3488 = vmatpush3.bf16.msra.mxu1 (!%p373_p2), %v3529_v1  ;;  %3457 = vmatprep.subr.bf16.mxu0 (!%p373_p2), %v3530_v2  ;;  %v3535_v7 = vld [vmem:[%s4446_s3 + $0x18] sm:$0xff] (!%p373_p2)   ;;  %v3537_v9 = vld [vmem:[%s4446_s3 + $0x20] sm:$0xff] (!%p373_p2)   ;;  %v3539_v12 = vld [vmem:[%s4446_s3 + $0x28] sm:$0xff] (!%p373_p2)  }
   0x9   : > { %3489 = vmatprep.subr.bf16.mxu1 (!%p373_p2), %v3531_v3  ;;  %v3540_v13 = vld [vmem:[%s4444_s1 + $0x30] sm:$0xff] (!%p373_p2)   ;;  %v3542_v15 = vld [vmem:[%s4444_s1 + $0x38] sm:$0xff] (!%p373_p2)   ;;  %v3600_v56 = vld [vmem:[%s4449_s6 + $0x40] sm:$0xff] (!%p373_p2)  }
   0xa   : > { %v3541_v14 = vld [vmem:[%s4446_s3 + $0x30] sm:$0xff] (!%p373_p2)   ;;  %v3543_v16 = vld [vmem:[%s4446_s3 + $0x38] sm:$0xff] (!%p373_p2)   ;;  %v3601_v57 = vld [vmem:[%s4449_s6 + $0xc0] sm:$0xff] (!%p373_p2)  }
   0xb   : > { %3458 = vmatpush3.bf16.msra.mxu0 (!%p373_p2), %v3530_v2  ;;  %v3548_v17 = vld [vmem:[%s4448_s5 + $0x4] ss:$16 sps:$4 sm:$0xff] (!%p373_p2)   ;;  %v3551_v18 = vld [vmem:[%s4448_s5 + $0xc] ss:$16 sps:$4 sm:$0xff] (!%p373_p2)   ;;  %v3546_v20 = vld [vmem:[%s4448_s5] ss:$16 sps:$4 sm:$0xff] (!%p373_p2)  }
   0xc   : > { %3490 = vmatpush3.bf16.msra.mxu1 (!%p373_p2), %v3531_v3  ;;  %3459 = vmatprep.subr.bf16.mxu0 (!%p373_p2), %v3532_v4  ;;  %v3549_v21 = vld [vmem:[%s4448_s5 + $0x8] ss:$16 sps:$4 sm:$0xff] (!%p373_p2)   ;;  %v3554_v22 = vld [vmem:[%s4448_s5 + $0x24] ss:$16 sps:$4 sm:$0xff] (!%p373_p2)   ;;  %v3557_v23 = vld [vmem:[%s4448_s5 + $0x2c] ss:$16 sps:$4 sm:$0xff] (!%p373_p2)  }
   0xd   : > { %s4457_s25 = smov (!%p436_p3, %s2807_s25), 31  ;;  %3491 = vmatprep.subr.bf16.mxu1 %v3533_v5  ;;  %v3552_v25 = vld [vmem:[%s4448_s5 + $0x20] ss:$16 sps:$4 sm:$0xff]   ;;  %v3555_v26 = vld [vmem:[%s4448_s5 + $0x28] ss:$16 sps:$4 sm:$0xff]  }
   0xe   : > { %s3773_s23 = sshll.u32 %s4457_s25, 2  ;;  %v3562_v28 = vld [vmem:[%s4448_s5 + $0x44] ss:$16 sps:$4 sm:$0xff]   ;;  %v3560_v29 = vld [vmem:[%s4448_s5 + $0x40] ss:$16 sps:$4 sm:$0xff]   ;;  %v3604_v61 = vld [vmem:[%s4449_s6 + $0x48] sm:$0xff]  }
   0xf   : > { %3460 = vmatpush3.bf16.msra.mxu0 %v3532_v4  ;;  %s3785_s13 = scalar_lea.vmem %s4443_s0, %s3773_s23  ;;  %v3565_v30 = vld [vmem:[%s4448_s5 + $0x4c] ss:$16 sps:$4 sm:$0xff]   ;;  %v3563_v31 = vld [vmem:[%s4448_s5 + $0x48] ss:$16 sps:$4 sm:$0xff]   ;;  %v3568_v32 = vld [vmem:[%s4448_s5 + $0x64] ss:$16 sps:$4 sm:$0xff]   ;;  %s4077_s18 = scalar_lea.vmem %s4451_s8, %s3773_s23 }
  0x10   : > { %3492 = vmatpush3.bf16.msra.mxu1 %v3533_v5  ;;  %3461 = vmatprep.subr.bf16.mxu0 %v3534_v6  ;;  %v3791_v11 = vld [vmem:[%s3785_s13] sm:$0xff]   ;;  %v3817_v19 = vld [vmem:[%s3785_s13 + $0x8] sm:$0xff]   ;;  %v3832_v24 = vld [vmem:[%s3785_s13 + $0x10] sm:$0xff]   ;;  %s4086_s22 = scalar_lea.vmem %s4452_s9, %s3773_s23  ;;  %s3008_s23 = sshll.u32 %s4457_s25, 4 }
  0x11   : > { %3493 = vmatprep.subr.bf16.mxu1 %v3535_v7  ;;  %3471 = vmatprep.mubr.bf16.mxu0 %v3791_v11  ;;  %v3843_v27 = vld [vmem:[%s3785_s13 + $0x18] sm:$0xff]   ;;  %v3866_v34 = vld [vmem:[%s3785_s13 + $0x20] sm:$0xff]   ;;  %v3877_v37 = vld [vmem:[%s3785_s13 + $0x28] sm:$0xff]  }
  0x12   : > { %3503 = vmatprep.mubr.bf16.mxu1 %v3791_v11  ;;  %v3571_v33 = vld [vmem:[%s4448_s5 + $0x6c] ss:$16 sps:$4 sm:$0xff]   ;;  %v3566_v35 = vld [vmem:[%s4448_s5 + $0x60] ss:$16 sps:$4 sm:$0xff]   ;;  %v3569_v36 = vld [vmem:[%s4448_s5 + $0x68] ss:$16 sps:$4 sm:$0xff]  }
  0x13   : > { %3462 = vmatpush3.bf16.msra.mxu0 %v3534_v6  ;;  %v3576_v38 = vld [vmem:[%s4448_s5 + $0x84] ss:$16 sps:$4 sm:$0xff]   ;;  %v3574_v39 = vld [vmem:[%s4448_s5 + $0x80] ss:$16 sps:$4 sm:$0xff]   ;;  %v3579_v40 = vld [vmem:[%s4448_s5 + $0x8c] ss:$16 sps:$4 sm:$0xff]  }
  0x14   : > { %3494 = vmatpush3.bf16.msra.mxu1 %v3535_v7  ;;  %3463 = vmatprep.subr.bf16.mxu0 %v3536_v8  ;;  %v3577_v41 = vld [vmem:[%s4448_s5 + $0x88] ss:$16 sps:$4 sm:$0xff]   ;;  %v3582_v42 = vld [vmem:[%s4448_s5 + $0xa4] ss:$16 sps:$4 sm:$0xff]   ;;  %v3585_v43 = vld [vmem:[%s4448_s5 + $0xac] ss:$16 sps:$4 sm:$0xff]  }
  0x15   : > { %3495 = vmatprep.subr.bf16.mxu1 %v3537_v9  ;;  %v3900_v44 = vld [vmem:[%s3785_s13 + $0x30] sm:$0xff]   ;;  %v3583_v46 = vld [vmem:[%s4448_s5 + $0xa8] ss:$16 sps:$4 sm:$0xff]   ;;  %v3593_v49 = vld [vmem:[%s4448_s5 + $0xcc] ss:$16 sps:$4 sm:$0xff]  }
  0x16   : > { %v3580_v45 = vld [vmem:[%s4448_s5 + $0xa0] ss:$16 sps:$4 sm:$0xff]   ;;  %v3911_v47 = vld [vmem:[%s3785_s13 + $0x38] sm:$0xff]   ;;  %v3590_v48 = vld [vmem:[%s4448_s5 + $0xc4] ss:$16 sps:$4 sm:$0xff]   ;;  %s4133_s13 = scalar_lea.vmem %s4453_s10, %s3008_s23 }
  0x17   : > { %3464 = vmatpush3.bf16.msra.mxu0 %v3536_v8  ;;  %v3588_v50 = vld [vmem:[%s4448_s5 + $0xc0] ss:$16 sps:$4 sm:$0xff]   ;;  %v3591_v51 = vld [vmem:[%s4448_s5 + $0xc8] ss:$16 sps:$4 sm:$0xff]   ;;  %v3596_v52 = vld [vmem:[%s4448_s5 + $0xe4] ss:$16 sps:$4 sm:$0xff]  }
  0x18   : > { %3496 = vmatpush3.bf16.msra.mxu1 %v3537_v9  ;;  %3465 = vmatprep.subr.bf16.mxu0 %v3538_v10  ;;  %v3594_v53 = vld [vmem:[%s4448_s5 + $0xe0] ss:$16 sps:$4 sm:$0xff]   ;;  %v3599_v54 = vld [vmem:[%s4448_s5 + $0xec] ss:$16 sps:$4 sm:$0xff]   ;;  %v3597_v55 = vld [vmem:[%s4448_s5 + $0xe8] ss:$16 sps:$4 sm:$0xff]  }
  0x19   : > { %3497 = vmatprep.subr.bf16.mxu1 %v3539_v12  ;;  %v3602_v59 = vld [vmem:[%s4449_s6] sm:$0xff]   ;;  %v3605_v62 = vld [vmem:[%s4449_s6 + $0xc8] sm:$0xff]   ;;  %v3608_v1 = vld [vmem:[%s4449_s6 + $0x50] sm:$0xff]  }
  0x1a   : > { %v3603_v60 = vld [vmem:[%s4449_s6 + $0x80] sm:$0xff]   ;;  %v3606_v63 = vld [vmem:[%s4449_s6 + $0x8] sm:$0xff]   ;;  %v3609_v2 = vld [vmem:[%s4449_s6 + $0xd0] sm:$0xff]  }
  0x1b   : > { %3466 = vmatpush3.bf16.msra.mxu0 %v3538_v10  ;;  %v3607_v0 = vld [vmem:[%s4449_s6 + $0x88] sm:$0xff]   ;;  %v3610_v3 = vld [vmem:[%s4449_s6 + $0x10] sm:$0xff]   ;;  %v3612_v5 = vld [vmem:[%s4449_s6 + $0x58] sm:$0xff]  }
  0x1c   : > { %3498 = vmatpush3.bf16.msra.mxu1 %v3539_v12  ;;  %3467 = vmatprep.subr.bf16.mxu0 %v3540_v13  ;;  %v3611_v4 = vld [vmem:[%s4449_s6 + $0x90] sm:$0xff]   ;;  %v3613_v6 = vld [vmem:[%s4449_s6 + $0xd8] sm:$0xff]   ;;  %v3616_v9 = vld [vmem:[%s4449_s6 + $0x60] sm:$0xff]  }
  0x1d   : > { %3499 = vmatprep.subr.bf16.mxu1 %v3541_v14  ;;  %v3614_v7 = vld [vmem:[%s4449_s6 + $0x18] sm:$0xff]   ;;  %v3617_v10 = vld [vmem:[%s4449_s6 + $0xe0] sm:$0xff]  }
  0x1e   : > { %v3615_v8 = vld [vmem:[%s4449_s6 + $0x98] sm:$0xff]   ;;  %v3619_v12 = vld [vmem:[%s4449_s6 + $0xa0] sm:$0xff]  }
  0x1f   : > { %3468 = vmatpush3.bf16.msra.mxu0 %v3540_v13  ;;  %v3620_v13 = vld [vmem:[%s4449_s6 + $0x68] sm:$0xff]  }
  0x20   : > { %3500 = vmatpush3.bf16.msra.mxu1 %v3541_v14  ;;  %3469 = vmatprep.subr.bf16.mxu0 %v3542_v15  ;;  %v3621_v14 = vld [vmem:[%s4449_s6 + $0xe8] sm:$0xff]  }
  0x21   : > { %3501 = vmatprep.subr.bf16.mxu1 %v3543_v16 }
  0x23   : > { %3470 = vmatpush3.bf16.msra.mxu0 %v3542_v15  ;;  %v3622_v15 = vld [vmem:[%s4449_s6 + $0x28] sm:$0xff]  }
  0x24   : > { %3502 = vmatpush3.bf16.msra.mxu1 %v3543_v16  ;;  %1225 = vmatprep.subr.bf16.mxu0 %v3548_v17  ;;  %v3623_v16 = vld [vmem:[%s4449_s6 + $0xa8] sm:$0xff]   ;;  %v3624_v17 = vld [vmem:[%s4449_s6 + $0x70] sm:$0xff]  }
  0x25   : > { %1338 = vmatprep.subr.bf16.mxu1 %v3551_v18  ;;  %v3625_v18 = vld [vmem:[%s4449_s6 + $0xf0] sm:$0xff]  }
  0x26   : > { %3472 = vmatmul.mubr.bf16.vlgmr.msra.gmra.mrb[0].mxu0 %v3817_v19 }
  0x27   : > { %3504 = vmatmul.mubr.bf16.vlgmr.msra.gmra.mrb[0].mxu1 %v3817_v19  ;;  %1226 = vmatpush1.bf16.msra.mxu0 %v3546_v20  ;;  %v3627_v20 = vld [vmem:[%s4449_s6 + $0xb0] sm:$0xff]  }
  0x28   : > { %1339 = vmatpush1.bf16.msra.mxu1 %v3549_v21  ;;  %1227 = vmatprep.subr.bf16.mxu0 %v3554_v22  ;;  %v3628_v21 = vld [vmem:[%s4449_s6 + $0x78] sm:$0xff]  }
  0x29   : > { %1340 = vmatprep.subr.bf16.mxu1 %v3557_v23  ;;  %3475 = vmatprep.mubr.bf16.mxu0 %v3832_v24  ;;  %v3629_v22 = vld [vmem:[%s4449_s6 + $0xf8] sm:$0xff]  }
  0x2a   : > { %3507 = vmatprep.mubr.bf16.mxu1 %v3832_v24  ;;  %v3630_v23 = vld [vmem:[%s4449_s6 + $0x38] sm:$0xff]  }
  0x2b   : > { %1228 = vmatpush1.bf16.msra.mxu0 %v3552_v25  ;;  %v3632_v25 = vld [vmem:[%s4450_s7 + $0x40] sm:$0xff]  }
  0x2c   : > { %1341 = vmatpush1.bf16.msra.mxu1 %v3555_v26  ;;  %1229 = vmatprep.subr.bf16.mxu0 %v3562_v28  ;;  %v3633_v26 = vld [vmem:[%s4450_s7 + $0xc0] sm:$0xff]  }
  0x2d   : > { %1342 = vmatprep.subr.bf16.mxu1 %v3565_v30  ;;  %v4062_v28 = vld [vmem:[%s4445_s2] ss:$0 sm:$0xff] }
  0x2e   : > { %3476 = vmatmul.mubr.bf16.gmra.mrb[4].mxu0 %v3843_v27  ;;  %v4067_v30 = vld [vmem:[%s4447_s4] ss:$0 sm:$0xff] }
  0x2f   : > { %3508 = vmatmul.mubr.bf16.gmra.mrb[4].mxu1 %v3843_v27  ;;  %1230 = vmatpush1.bf16.msra.mxu0 %v3560_v29 }
  0x30   : > { %1343 = vmatpush1.bf16.msra.mxu1 %v3563_v31  ;;  %1231 = vmatprep.subr.bf16.mxu0 %v3568_v32 }
  0x31   : > { %1344 = vmatprep.subr.bf16.mxu1 %v3571_v33  ;;  %3479 = vmatprep.mubr.bf16.mxu0 %v3866_v34 }
  0x32   : > { %3511 = vmatprep.mubr.bf16.mxu1 %v3866_v34 }
  0x33   : > { %1232 = vmatpush1.bf16.msra.mxu0 %v3566_v35 }
  0x34   : > { %1345 = vmatpush1.bf16.msra.mxu1 %v3569_v36  ;;  %1233 = vmatprep.subr.bf16.mxu0 %v3576_v38 }
  0x35   : > { %1346 = vmatprep.subr.bf16.mxu1 %v3579_v40 }
  0x36   : > { %3480 = vmatmul.mubr.bf16.gmra.mrb[8].mxu0 %v3877_v37 }
  0x37   : > { %3512 = vmatmul.mubr.bf16.gmra.mrb[8].mxu1 %v3877_v37  ;;  %1234 = vmatpush1.bf16.msra.mxu0 %v3574_v39 }
  0x38   : > { %1347 = vmatpush1.bf16.msra.mxu1 %v3577_v41  ;;  %1235 = vmatprep.subr.bf16.mxu0 %v3582_v42 }
  0x39   : > { %1348 = vmatprep.subr.bf16.mxu1 %v3585_v43  ;;  %3483 = vmatprep.mubr.bf16.mxu0 %v3900_v44 }
  0x3a   : > { %3515 = vmatprep.mubr.bf16.mxu1 %v3900_v44 }
  0x3b   : > { %1236 = vmatpush1.bf16.msra.mxu0 %v3580_v45 }
  0x3c   : > { %1349 = vmatpush1.bf16.msra.mxu1 %v3583_v46  ;;  %1237 = vmatprep.subr.bf16.mxu0 %v3590_v48 }
  0x3d   : > { %1350 = vmatprep.subr.bf16.mxu1 %v3593_v49 }
  0x3e   : > { %3484 = vmatmul.mubr.bf16.gmra.mrb[12].mxu0 %v3911_v47 }
  0x3f   : > { %3516 = vmatmul.mubr.bf16.gmra.mrb[12].mxu1 %v3911_v47  ;;  %1238 = vmatpush1.bf16.msra.mxu0 %v3588_v50 }
  0x40   : > { %1351 = vmatpush1.bf16.msra.mxu1 %v3591_v51  ;;  %1239 = vmatprep.subr.bf16.mxu0 %v3596_v52 }
  0x41   : > { %1352 = vmatprep.subr.bf16.mxu1 %v3599_v54  ;;  %1257 = vmatprep.mubr.bf16.mxu0 %v3672_v58 }
  0x42   : > { %1370 = vmatprep.mubr.bf16.mxu1 %v3672_v58 }
  0x43   : > { %1240 = vmatpush1.bf16.msra.mxu0 %v3594_v53 }
  0x44   : > { %1353 = vmatpush1.bf16.msra.mxu1 %v3597_v55  ;;  %3199 = vmatprep.subr.bf16.mxu0 %v3600_v56 }
  0x45   : > { %3263 = vmatprep.subr.bf16.mxu1 %v3601_v57 }
  0x46   : > { %1258 = vmatmul.mubr.bf16.vlgmr.msra.gmra.mrb[16].mxu0 %v3791_v11 }
  0x47   : > { %1371 = vmatmul.mubr.bf16.vlgmr.msra.gmra.mrb[16].mxu1 %v3791_v11  ;;  %1267 = vmatprep.mubr.bf16.mxu0 %v3672_v58  ;;  %v3618_v11 = vld [vmem:[%s4449_s6 + $0x20] sm:$0xff]  }
  0x48   : > { %1380 = vmatprep.mubr.bf16.mxu1 %v3672_v58  ;;  %3200 = vmatpush3.bf16.msra.mxu0 %v3602_v59 }
  0x49   : > { %3264 = vmatpush3.bf16.msra.mxu1 %v3603_v60  ;;  %3201 = vmatprep.subr.bf16.mxu0 %v3604_v61 }
  0x4a   : > { %3265 = vmatprep.subr.bf16.mxu1 %v3605_v62 }
  0x4c   : > { %3202 = vmatpush3.bf16.msra.mxu0 %v3606_v63 }
  0x4d   : > { %3266 = vmatpush3.bf16.msra.mxu1 %v3607_v0  ;;  %3203 = vmatprep.subr.bf16.mxu0 %v3608_v1 }
  0x4e   : > { %1268 = vmatmul.mubr.bf16.gmra.mrb[20].mxu0 %v3817_v19  ;;  %3267 = vmatprep.subr.bf16.mxu1 %v3609_v2 }
  0x4f   : > { %1381 = vmatmul.mubr.bf16.gmra.mrb[20].mxu1 %v3817_v19  ;;  %1277 = vmatprep.mubr.bf16.mxu0 %v3672_v58  ;;  %v3626_v19 = vld [vmem:[%s4449_s6 + $0x30] sm:$0xff]  }
  0x50   : > { %1390 = vmatprep.mubr.bf16.mxu1 %v3672_v58  ;;  %3204 = vmatpush3.bf16.msra.mxu0 %v3610_v3 }
  0x51   : > { %3268 = vmatpush3.bf16.msra.mxu1 %v3611_v4  ;;  %3205 = vmatprep.subr.bf16.mxu0 %v3612_v5 }
  0x52   : > { %3269 = vmatprep.subr.bf16.mxu1 %v3613_v6 }
  0x54   : > { %3206 = vmatpush3.bf16.msra.mxu0 %v3614_v7 }
  0x55   : > { %3270 = vmatpush3.bf16.msra.mxu1 %v3615_v8  ;;  %3207 = vmatprep.subr.bf16.mxu0 %v3616_v9 }
  0x56   : > { %1278 = vmatmul.mubr.bf16.gmra.mrb[24].mxu0 %v3832_v24  ;;  %3271 = vmatprep.subr.bf16.mxu1 %v3617_v10 }
  0x57   : > { %1391 = vmatmul.mubr.bf16.gmra.mrb[24].mxu1 %v3832_v24  ;;  %1287 = vmatprep.mubr.bf16.mxu0 %v3672_v58  ;;  %v3631_v24 = vld [vmem:[%s4449_s6 + $0xb8] sm:$0xff]  }
  0x58   : > { %1400 = vmatprep.mubr.bf16.mxu1 %v3672_v58  ;;  %3208 = vmatpush3.bf16.msra.mxu0 %v3618_v11 }
  0x59   : > { %3272 = vmatpush3.bf16.msra.mxu1 %v3619_v12  ;;  %3209 = vmatprep.subr.bf16.mxu0 %v3620_v13 }
  0x5a   : > { %3273 = vmatprep.subr.bf16.mxu1 %v3621_v14 }
  0x5c   : > { %3210 = vmatpush3.bf16.msra.mxu0 %v3622_v15 }
  0x5d   : > { %3274 = vmatpush3.bf16.msra.mxu1 %v3623_v16  ;;  %3211 = vmatprep.subr.bf16.mxu0 %v3624_v17 }
  0x5e   : > { %1288 = vmatmul.mubr.bf16.gmra.mrb[28].mxu0 %v3843_v27  ;;  %3275 = vmatprep.subr.bf16.mxu1 %v3625_v18 }
  0x5f   : > { %1401 = vmatmul.mubr.bf16.gmra.mrb[28].mxu1 %v3843_v27  ;;  %1297 = vmatprep.mubr.bf16.mxu0 %v3672_v58 }
  0x60   : > { %1410 = vmatprep.mubr.bf16.mxu1 %v3672_v58  ;;  %3212 = vmatpush3.bf16.msra.mxu0 %v3626_v19 }
  0x61   : > { %3276 = vmatpush3.bf16.msra.mxu1 %v3627_v20  ;;  %3213 = vmatprep.subr.bf16.mxu0 %v3628_v21 }
  0x62   : > { %3277 = vmatprep.subr.bf16.mxu1 %v3629_v22 }
  0x64   : > { %3214 = vmatpush3.bf16.msra.mxu0 %v3630_v23 }
  0x65   : > { %3278 = vmatpush3.bf16.msra.mxu1 %v3631_v24  ;;  %3327 = vmatprep.subr.bf16.mxu0 %v3632_v25 }
  0x66   : > { %1298 = vmatmul.mubr.bf16.gmra.mrb[32].mxu0 %v3866_v34  ;;  %3391 = vmatprep.subr.bf16.mxu1 %v3633_v26 }
  0x67   : > { %1411 = vmatmul.mubr.bf16.gmra.mrb[32].mxu1 %v3866_v34  ;;  %1307 = vmatprep.mubr.bf16.mxu0 %v3672_v58 }
  0x68   : > { %1420 = vmatprep.mubr.bf16.mxu1 %v3672_v58 }
  0x6e   : > { %1308 = vmatmul.mubr.bf16.gmra.mrb[36].mxu0 %v3877_v37 }
  0x6f   : > { %1421 = vmatmul.mubr.bf16.gmra.mrb[36].mxu1 %v3877_v37  ;;  %1317 = vmatprep.mubr.bf16.mxu0 %v3672_v58 }
  0x70   : > { %1430 = vmatprep.mubr.bf16.mxu1 %v3672_v58 }
  0x76   : > { %1318 = vmatmul.mubr.bf16.gmra.mrb[40].mxu0 %v3900_v44 }
  0x77   : > { %1431 = vmatmul.mubr.bf16.gmra.mrb[40].mxu1 %v3900_v44  ;;  %1327 = vmatprep.mubr.bf16.mxu0 %v3672_v58 }
  0x78   : > { %1440 = vmatprep.mubr.bf16.mxu1 %v3672_v58 }
  0x7e   : > { %1328 = vmatmul.mubr.bf16.gmra.mrb[44].mxu0 %v3911_v47 }
  0x7f   : > { %1441 = vmatmul.mubr.bf16.gmra.mrb[44].mxu1 %v3911_v47 }
  0xf9   : > { %v3473_v27 = vpop.f32.mrb[0].mxu0 }
  0xfa   : > { %v3505_v29 = vpop.f32.mrb[0].mxu1  ;;  %v642_v31 = vpop.f32.mrb[1].mxu0  ;;  %v651_v34 = vadd.f32 %v3473_v27, %v4062_v28 }
  0xfb   : > { %v810_v32 = vpop.f32.mrb[1].mxu1  ;;  %v3474_v33 = vpop.f32.mrb[2].mxu0  ;;  %v819_v38 = vadd.f32 %v3505_v29, %v4067_v30  ;;  %v643_v39 = vadd.f32 %v4062_v28, %v642_v31 }
  0xfc   : > { %v654_v35 = vadd.f32 %v3474_v33, %v4062_v28  ;;  %v3506_v36 = vpop.f32.mrb[2].mxu1  ;;  %v645_v37 = vpop.f32.mrb[3].mxu0  ;;  %v811_v43 = vadd.f32 %v4067_v30, %v810_v32 }
  0xfd   : > { %v822_v40 = vadd.f32 %v3506_v36, %v4067_v30  ;;  %v646_v41 = vadd.f32 %v4062_v28, %v645_v37  ;;  %v813_v42 = vpop.f32.mrb[3].mxu1 }
  0xfe   : > { %v3081_v44 = vpack.c.bf16 %v654_v35, %v651_v34  ;;  %v814_v45 = vadd.f32 %v4067_v30, %v813_v42 }
  0xff   : > { %v3121_v46 = vpack.c.bf16 %v822_v40, %v819_v38  ;;  %v3076_v47 = vpack.c.bf16 %v646_v41, %v643_v39 }
 0x100   : > { %3153 = vst [vmem:[%s4077_s18 + $0x8] sm:$0xff] %v3081_v44   ;;  %v3116_v48 = vpack.c.bf16 %v814_v45, %v811_v43 }
 0x101   : > { %3160 = vst [vmem:[%s4086_s22 + $0x8] sm:$0xff] %v3121_v46   ;;  %3077 = vst [vmem:[%s4077_s18] sm:$0xff] %v3076_v47   ;;  %v3477_v49 = vpop.f32.mrb[4].mxu0 }
 0x102   : > { %3117 = vst [vmem:[%s4086_s22] sm:$0xff] %v3116_v48   ;;  %v3509_v50 = vpop.f32.mrb[4].mxu1  ;;  %v658_v51 = vpop.f32.mrb[5].mxu0  ;;  %v667_v54 = vadd.f32 %v3477_v49, %v4062_v28 }
 0x103   : > { %v826_v52 = vpop.f32.mrb[5].mxu1  ;;  %v3478_v53 = vpop.f32.mrb[6].mxu0  ;;  %v835_v58 = vadd.f32 %v3509_v50, %v4067_v30  ;;  %v659_v59 = vadd.f32 %v4062_v28, %v658_v51 }
 0x104   : > { %v670_v55 = vadd.f32 %v3478_v53, %v4062_v28  ;;  %v3510_v56 = vpop.f32.mrb[6].mxu1  ;;  %v661_v57 = vpop.f32.mrb[7].mxu0  ;;  %v827_v63 = vadd.f32 %v4067_v30, %v826_v52 }
 0x105   : > { %v838_v60 = vadd.f32 %v3510_v56, %v4067_v30  ;;  %v662_v61 = vadd.f32 %v4062_v28, %v661_v57  ;;  %v829_v62 = vpop.f32.mrb[7].mxu1 }
 0x106   : > { %v3091_v0 = vpack.c.bf16 %v670_v55, %v667_v54  ;;  %v830_v1 = vadd.f32 %v4067_v30, %v829_v62  ;;  %v3635_v62 = vld [vmem:[%s4450_s7 + $0x80] sm:$0xff]  }
 0x107   : > { %v3131_v2 = vpack.c.bf16 %v838_v60, %v835_v58  ;;  %v3086_v3 = vpack.c.bf16 %v662_v61, %v659_v59  ;;  %v3634_v59 = vld [vmem:[%s4450_s7] sm:$0xff]  }
 0x108   : > { %3155 = vst [vmem:[%s4077_s18 + $0x18] sm:$0xff] %v3091_v0   ;;  %v3126_v4 = vpack.c.bf16 %v830_v1, %v827_v63  ;;  %v3636_v63 = vld [vmem:[%s4450_s7 + $0x48] sm:$0xff]  }
 0x109   : > { %3162 = vst [vmem:[%s4086_s22 + $0x18] sm:$0xff] %v3131_v2   ;;  %3154 = vst [vmem:[%s4077_s18 + $0x10] sm:$0xff] %v3086_v3   ;;  %v3481_v5 = vpop.f32.mrb[8].mxu0  ;;  %v3637_v0 = vld [vmem:[%s4450_s7 + $0xc8] sm:$0xff]  }
 0x10a   : > { %3161 = vst [vmem:[%s4086_s22 + $0x10] sm:$0xff] %v3126_v4   ;;  %v3513_v6 = vpop.f32.mrb[8].mxu1  ;;  %v674_v7 = vpop.f32.mrb[9].mxu0  ;;  %v683_v10 = vadd.f32 %v3481_v5, %v4062_v28  ;;  %v3638_v2 = vld [vmem:[%s4450_s7 + $0x8] sm:$0xff]  }
 0x10b   : > { %v842_v8 = vpop.f32.mrb[9].mxu1  ;;  %v3482_v9 = vpop.f32.mrb[10].mxu0  ;;  %v851_v14 = vadd.f32 %v3513_v6, %v4067_v30  ;;  %v675_v15 = vadd.f32 %v4062_v28, %v674_v7  ;;  %v3639_v5 = vld [vmem:[%s4450_s7 + $0x88] sm:$0xff]   ;;  %v3640_v6 = vld [vmem:[%s4450_s7 + $0x50] sm:$0xff]  }
 0x10c   : > { %v686_v11 = vadd.f32 %v3482_v9, %v4062_v28  ;;  %v3514_v12 = vpop.f32.mrb[10].mxu1  ;;  %v677_v13 = vpop.f32.mrb[11].mxu0  ;;  %v843_v19 = vadd.f32 %v4067_v30, %v842_v8 }
 0x10d   : > { %v854_v16 = vadd.f32 %v3514_v12, %v4067_v30  ;;  %v678_v17 = vadd.f32 %v4062_v28, %v677_v13  ;;  %v845_v18 = vpop.f32.mrb[11].mxu1 }
 0x10e   : > { %v3101_v20 = vpack.c.bf16 %v686_v11, %v683_v10  ;;  %v846_v21 = vadd.f32 %v4067_v30, %v845_v18  ;;  %v3641_v10 = vld [vmem:[%s4450_s7 + $0xd0] sm:$0xff]  }
 0x10f   : > { %v3141_v22 = vpack.c.bf16 %v854_v16, %v851_v14  ;;  %v3096_v23 = vpack.c.bf16 %v678_v17, %v675_v15 }
 0x110   : > { %3157 = vst [vmem:[%s4077_s18 + $0x28] sm:$0xff] %v3101_v20   ;;  %v3136_v24 = vpack.c.bf16 %v846_v21, %v843_v19  ;;  %v3642_v19 = vld [vmem:[%s4450_s7 + $0x10] sm:$0xff]  }
 0x111   : > { %3164 = vst [vmem:[%s4086_s22 + $0x28] sm:$0xff] %v3141_v22   ;;  %3156 = vst [vmem:[%s4077_s18 + $0x20] sm:$0xff] %v3096_v23   ;;  %v3485_v25 = vpop.f32.mrb[12].mxu0  ;;  %v3643_v22 = vld [vmem:[%s4450_s7 + $0x90] sm:$0xff]   ;;  %v3644_v23 = vld [vmem:[%s4450_s7 + $0x58] sm:$0xff]  }
 0x112   : > { %3163 = vst [vmem:[%s4086_s22 + $0x20] sm:$0xff] %v3136_v24   ;;  %v3517_v26 = vpop.f32.mrb[12].mxu1  ;;  %v690_v27 = vpop.f32.mrb[13].mxu0  ;;  %v699_v32 = vadd.f32 %v3485_v25, %v4062_v28  ;;  %v3645_v24 = vld [vmem:[%s4450_s7 + $0xd8] sm:$0xff]  }
 0x113   : > { %v858_v29 = vpop.f32.mrb[13].mxu1  ;;  %v3486_v31 = vpop.f32.mrb[14].mxu0  ;;  %v867_v36 = vadd.f32 %v3517_v26, %v4067_v30  ;;  %v691_v37 = vadd.f32 %v4062_v28, %v690_v27  ;;  %v3646_v26 = vld [vmem:[%s4450_s7 + $0x18] sm:$0xff]  }
 0x114   : > { %v702_v33 = vadd.f32 %v3486_v31, %v4062_v28  ;;  %v3518_v34 = vpop.f32.mrb[14].mxu1  ;;  %v693_v35 = vpop.f32.mrb[15].mxu0  ;;  %v859_v41 = vadd.f32 %v4067_v30, %v858_v29  ;;  %v3647_v31 = vld [vmem:[%s4450_s7 + $0x98] sm:$0xff]  }
 0x115   : > { %v870_v38 = vadd.f32 %v3518_v34, %v4067_v30  ;;  %v694_v39 = vadd.f32 %v4062_v28, %v693_v35  ;;  %v861_v40 = vpop.f32.mrb[15].mxu1 }
 0x116   : > { %v3111_v42 = vpack.c.bf16 %v702_v33, %v699_v32  ;;  %v862_v43 = vadd.f32 %v4067_v30, %v861_v40  ;;  %v3648_v32 = vld [vmem:[%s4450_s7 + $0x60] sm:$0xff]  }
 0x117   : > { %v3151_v44 = vpack.c.bf16 %v870_v38, %v867_v36  ;;  %v3106_v45 = vpack.c.bf16 %v694_v39, %v691_v37  ;;  %v3649_v36 = vld [vmem:[%s4450_s7 + $0xe0] sm:$0xff]  }
 0x118   : > { %3159 = vst [vmem:[%s4077_s18 + $0x38] sm:$0xff] %v3111_v42   ;;  %v3146_v46 = vpack.c.bf16 %v862_v43, %v859_v41 }
 0x119   : > { %3166 = vst [vmem:[%s4086_s22 + $0x38] sm:$0xff] %v3151_v44   ;;  %3158 = vst [vmem:[%s4077_s18 + $0x30] sm:$0xff] %v3106_v45   ;;  %v1259_v47 = vpop.f32.mrb[16].mxu0  ;;  %v3650_v45 = vld [vmem:[%s4450_s7 + $0x20] sm:$0xff]  }
 0x11a   : > { %3165 = vst [vmem:[%s4086_s22 + $0x30] sm:$0xff] %v3146_v46   ;;  %v1372_v48 = vpop.f32.mrb[16].mxu1  ;;  %v1261_v28 = vpop.f32.mrb[17].mxu0 }
 0x11b   : > { %v3041_v49 = vpack.c.bf16 %v1261_v28, %v1259_v47  ;;  %v1374_v30 = vpop.f32.mrb[17].mxu1  ;;  %v1263_v50 = vpop.f32.mrb[18].mxu0 }
 0x11c   : > { %v3042_v51 = vpack.c.bf16 %v1374_v30, %v1372_v48  ;;  %v4135_v52 = vpack.c.bf16 %v1263_v50, %v1259_v47  ;;  %v1376_v53 = vpop.f32.mrb[18].mxu1  ;;  %v1265_v54 = vpop.f32.mrb[19].mxu0 }
 0x11d   : > { %1643 = vst [vmem:[%s4133_s13] sm:$0xff] %v3041_v49  ;;  %v4138_v55 = vpack.c.bf16 %v1376_v53, %v1372_v48  ;;  %v4140_v56 = vpack.c.bf16 %v1265_v54, %v1261_v28  ;;  %v3043_v57 = vpack.c.bf16 %v1265_v54, %v1263_v50  ;;  %v1378_v58 = vpop.f32.mrb[19].mxu1  ;;  %v3651_v48 = vld [vmem:[%s4450_s7 + $0xa0] sm:$0xff]   ;;  %v3652_v28 = vld [vmem:[%s4450_s7 + $0x68] sm:$0xff]  }
 0x11e   : > { %1644 = vst [vmem:[%s4133_s13 + $0x8] sm:$0xff] %v3042_v51  ;;  %v4146_v60 = vpack.c.bf16 %v1378_v58, %v1374_v30  ;;  %v3044_v61 = vpack.c.bf16 %v1378_v58, %v1376_v53  ;;  %v3653_v49 = vld [vmem:[%s4450_s7 + $0xe8] sm:$0xff]  }
 0x11f   : > { %1645 = vst [vmem:[%s4133_s13 + $0x10] sm:$0xff] %v3043_v57  ;;  %1963 = vmatprep.mubr.bf16.mxu0 %v4140_v56  ;;  %v3654_v50 = vld [vmem:[%s4450_s7 + $0x28] sm:$0xff]   ;;  %v3656_v57 = vld [vmem:[%s4450_s7 + $0x70] sm:$0xff]  }
 0x120   : > { %1646 = vst [vmem:[%s4133_s13 + $0x18] sm:$0xff] %v3044_v61  ;;  %2060 = vmatprep.mubr.bf16.mxu1 %v4146_v60  ;;  %1964 = vmatmul.mubr.bf16.vlgmr.msra.gmra.mrb[48].mxu0 %v4135_v52  ;;  %v3655_v54 = vld [vmem:[%s4450_s7 + $0xa8] sm:$0xff]  }
 0x121   : > { %2061 = vmatmul.mubr.bf16.vlgmr.msra.gmra.mrb[48].mxu1 %v4138_v55  ;;  %v1269_v1 = vpop.f32.mrb[20].mxu0  ;;  %3328 = vmatpush3.bf16.msra.mxu0 %v3634_v59 }
 0x122   : > { %v1382_v3 = vpop.f32.mrb[20].mxu1  ;;  %3392 = vmatpush3.bf16.msra.mxu1 %v3635_v62  ;;  %v1271_v4 = vpop.f32.mrb[21].mxu0  ;;  %3329 = vmatprep.subr.bf16.mxu0 %v3636_v63  ;;  %v3657_v62 = vld [vmem:[%s4450_s7 + $0xf0] sm:$0xff]  }
 0x123   : > { %v3045_v7 = vpack.c.bf16 %v1271_v4, %v1269_v1  ;;  %v1384_v8 = vpop.f32.mrb[21].mxu1  ;;  %v1273_v9 = vpop.f32.mrb[22].mxu0  ;;  %3393 = vmatprep.subr.bf16.mxu1 %v3637_v0 }
 0x124   : > { %v3046_v11 = vpack.c.bf16 %v1384_v8, %v1382_v3  ;;  %v4175_v12 = vpack.c.bf16 %v1273_v9, %v1269_v1  ;;  %v1386_v13 = vpop.f32.mrb[22].mxu1  ;;  %v1275_v14 = vpop.f32.mrb[23].mxu0 }
 0x125   : > { %1647 = vst [vmem:[%s4133_s13 + $0x20] sm:$0xff] %v3045_v7  ;;  %v4178_v15 = vpack.c.bf16 %v1386_v13, %v1382_v3  ;;  %v4180_v16 = vpack.c.bf16 %v1275_v14, %v1271_v4  ;;  %v3047_v17 = vpack.c.bf16 %v1275_v14, %v1273_v9  ;;  %v1388_v18 = vpop.f32.mrb[23].mxu1  ;;  %3330 = vmatpush3.bf16.msra.mxu0 %v3638_v2  ;;  %v3658_v7 = vld [vmem:[%s4450_s7 + $0x30] sm:$0xff]  }
 0x126   : > { %1648 = vst [vmem:[%s4133_s13 + $0x28] sm:$0xff] %v3046_v11  ;;  %v4186_v20 = vpack.c.bf16 %v1388_v18, %v1384_v8  ;;  %v3048_v21 = vpack.c.bf16 %v1388_v18, %v1386_v13  ;;  %3394 = vmatpush3.bf16.msra.mxu1 %v3639_v5  ;;  %3331 = vmatprep.subr.bf16.mxu0 %v3640_v6  ;;  %v3660_v11 = vld [vmem:[%s4450_s7 + $0x78] sm:$0xff]  }
 0x127   : > { %1649 = vst [vmem:[%s4133_s13 + $0x30] sm:$0xff] %v3047_v17  ;;  %1971 = vmatprep.mubr.bf16.mxu0 %v4180_v16  ;;  %3395 = vmatprep.subr.bf16.mxu1 %v3641_v10  ;;  %v3659_v10 = vld [vmem:[%s4450_s7 + $0xb0] sm:$0xff]   ;;  %v3661_v13 = vld [vmem:[%s4450_s7 + $0xf8] sm:$0xff]  }
 0x128   : > { %1650 = vst [vmem:[%s4133_s13 + $0x38] sm:$0xff] %v3048_v21  ;;  %2068 = vmatprep.mubr.bf16.mxu1 %v4186_v20  ;;  %1972 = vmatmul.mubr.bf16.gmra.mrb[52].mxu0 %v4175_v12  ;;  %v3662_v17 = vld [vmem:[%s4450_s7 + $0x38] sm:$0xff]  }
 0x129   : > { %2069 = vmatmul.mubr.bf16.gmra.mrb[52].mxu1 %v4178_v15  ;;  %v1279_v25 = vpop.f32.mrb[24].mxu0  ;;  %3332 = vmatpush3.bf16.msra.mxu0 %v3642_v19  ;;  %v3663_v21 = vld [vmem:[%s4450_s7 + $0xb8] sm:$0xff]  }
 0x12a   : > { %v1392_v27 = vpop.f32.mrb[24].mxu1  ;;  %v1281_v29 = vpop.f32.mrb[25].mxu0  ;;  %3396 = vmatpush3.bf16.msra.mxu1 %v3643_v22  ;;  %3333 = vmatprep.subr.bf16.mxu0 %v3644_v23 }
 0x12b   : > { %v3049_v33 = vpack.c.bf16 %v1281_v29, %v1279_v25  ;;  %v1394_v34 = vpop.f32.mrb[25].mxu1  ;;  %v1283_v35 = vpop.f32.mrb[26].mxu0  ;;  %3397 = vmatprep.subr.bf16.mxu1 %v3645_v24 }
 0x12c   : > { %v3050_v37 = vpack.c.bf16 %v1394_v34, %v1392_v27  ;;  %v4215_v38 = vpack.c.bf16 %v1283_v35, %v1279_v25  ;;  %v1396_v39 = vpop.f32.mrb[26].mxu1  ;;  %v1285_v40 = vpop.f32.mrb[27].mxu0 }
 0x12d   : > { %1651 = vst [vmem:[%s4133_s13 + $0x40] sm:$0xff] %v3049_v33  ;;  %v4218_v41 = vpack.c.bf16 %v1396_v39, %v1392_v27  ;;  %v4220_v42 = vpack.c.bf16 %v1285_v40, %v1281_v29  ;;  %v3051_v43 = vpack.c.bf16 %v1285_v40, %v1283_v35  ;;  %v1398_v44 = vpop.f32.mrb[27].mxu1  ;;  %3334 = vmatpush3.bf16.msra.mxu0 %v3646_v26 }
 0x12e   : > { %1652 = vst [vmem:[%s4133_s13 + $0x48] sm:$0xff] %v3050_v37  ;;  %v4226_v46 = vpack.c.bf16 %v1398_v44, %v1394_v34  ;;  %v3052_v47 = vpack.c.bf16 %v1398_v44, %v1396_v39  ;;  %3398 = vmatpush3.bf16.msra.mxu1 %v3647_v31  ;;  %3335 = vmatprep.subr.bf16.mxu0 %v3648_v32 }
 0x12f   : > { %1653 = vst [vmem:[%s4133_s13 + $0x50] sm:$0xff] %v3051_v43  ;;  %1979 = vmatprep.mubr.bf16.mxu0 %v4220_v42  ;;  %3399 = vmatprep.subr.bf16.mxu1 %v3649_v36 }
 0x130   : > { %1654 = vst [vmem:[%s4133_s13 + $0x58] sm:$0xff] %v3052_v47  ;;  %2076 = vmatprep.mubr.bf16.mxu1 %v4226_v46  ;;  %1980 = vmatmul.mubr.bf16.gmra.mrb[56].mxu0 %v4215_v38 }
 0x131   : > { %2077 = vmatmul.mubr.bf16.gmra.mrb[56].mxu1 %v4218_v41  ;;  %v1289_v30 = vpop.f32.mrb[28].mxu0  ;;  %3336 = vmatpush3.bf16.msra.mxu0 %v3650_v45 }
 0x132   : > { %v1402_v51 = vpop.f32.mrb[28].mxu1  ;;  %v1291_v53 = vpop.f32.mrb[29].mxu0  ;;  %3400 = vmatpush3.bf16.msra.mxu1 %v3651_v48  ;;  %3337 = vmatprep.subr.bf16.mxu0 %v3652_v28 }
 0x133   : > { %v3053_v58 = vpack.c.bf16 %v1291_v53, %v1289_v30  ;;  %v1404_v59 = vpop.f32.mrb[29].mxu1  ;;  %v1293_v61 = vpop.f32.mrb[30].mxu0  ;;  %3401 = vmatprep.subr.bf16.mxu1 %v3653_v49 }
 0x134   : > { %v3054_v63 = vpack.c.bf16 %v1404_v59, %v1402_v51  ;;  %v4255_v0 = vpack.c.bf16 %v1293_v61, %v1289_v30  ;;  %v1406_v1 = vpop.f32.mrb[30].mxu1  ;;  %v1295_v2 = vpop.f32.mrb[31].mxu0 }
 0x135   : > { %1655 = vst [vmem:[%s4133_s13 + $0x60] sm:$0xff] %v3053_v58  ;;  %v4258_v3 = vpack.c.bf16 %v1406_v1, %v1402_v51  ;;  %v4260_v4 = vpack.c.bf16 %v1295_v2, %v1291_v53  ;;  %v3055_v5 = vpack.c.bf16 %v1295_v2, %v1293_v61  ;;  %v1408_v6 = vpop.f32.mrb[31].mxu1  ;;  %3338 = vmatpush3.bf16.msra.mxu0 %v3654_v50 }
 0x136   : > { %1656 = vst [vmem:[%s4133_s13 + $0x68] sm:$0xff] %v3054_v63  ;;  %v4266_v8 = vpack.c.bf16 %v1408_v6, %v1404_v59  ;;  %v3056_v9 = vpack.c.bf16 %v1408_v6, %v1406_v1  ;;  %3402 = vmatpush3.bf16.msra.mxu1 %v3655_v54  ;;  %3339 = vmatprep.subr.bf16.mxu0 %v3656_v57 }
 0x137   : > { %1657 = vst [vmem:[%s4133_s13 + $0x70] sm:$0xff] %v3055_v5  ;;  %1987 = vmatprep.mubr.bf16.mxu0 %v4260_v4  ;;  %3403 = vmatprep.subr.bf16.mxu1 %v3657_v62 }
 0x138   : > { %1658 = vst [vmem:[%s4133_s13 + $0x78] sm:$0xff] %v3056_v9  ;;  %2084 = vmatprep.mubr.bf16.mxu1 %v4266_v8  ;;  %1988 = vmatmul.mubr.bf16.gmra.mrb[60].mxu0 %v4255_v0 }
 0x139   : > { %2085 = vmatmul.mubr.bf16.gmra.mrb[60].mxu1 %v4258_v3  ;;  %v1299_v14 = vpop.f32.mrb[32].mxu0  ;;  %3340 = vmatpush3.bf16.msra.mxu0 %v3658_v7 }
 0x13a   : > { %v1412_v18 = vpop.f32.mrb[32].mxu1  ;;  %v1301_v19 = vpop.f32.mrb[33].mxu0  ;;  %3404 = vmatpush3.bf16.msra.mxu1 %v3659_v10  ;;  %3341 = vmatprep.subr.bf16.mxu0 %v3660_v11 }
 0x13b   : > { %v3057_v22 = vpack.c.bf16 %v1301_v19, %v1299_v14  ;;  %v1414_v23 = vpop.f32.mrb[33].mxu1  ;;  %v1303_v24 = vpop.f32.mrb[34].mxu0  ;;  %3405 = vmatprep.subr.bf16.mxu1 %v3661_v13 }
 0x13c   : > { %v3058_v25 = vpack.c.bf16 %v1414_v23, %v1412_v18  ;;  %v4289_v26 = vpack.c.bf16 %v1303_v24, %v1299_v14  ;;  %v1416_v27 = vpop.f32.mrb[34].mxu1  ;;  %v1305_v29 = vpop.f32.mrb[35].mxu0 }
 0x13d   : > { %1659 = vst [vmem:[%s4133_s13 + $0x80] sm:$0xff] %v3057_v22  ;;  %v4292_v31 = vpack.c.bf16 %v1416_v27, %v1412_v18  ;;  %v4294_v32 = vpack.c.bf16 %v1305_v29, %v1301_v19  ;;  %v3059_v33 = vpack.c.bf16 %v1305_v29, %v1303_v24  ;;  %v1418_v34 = vpop.f32.mrb[35].mxu1  ;;  %3342 = vmatpush3.bf16.msra.mxu0 %v3662_v17 }
 0x13e   : > { %1660 = vst [vmem:[%s4133_s13 + $0x88] sm:$0xff] %v3058_v25  ;;  %v4297_v35 = vpack.c.bf16 %v1418_v34, %v1414_v23  ;;  %v3060_v36 = vpack.c.bf16 %v1418_v34, %v1416_v27  ;;  %3406 = vmatpush3.bf16.msra.mxu1 %v3663_v21 }
 0x13f   : > { %1661 = vst [vmem:[%s4133_s13 + $0x90] sm:$0xff] %v3059_v33  ;;  %1995 = vmatprep.mubr.bf16.mxu0 %v4294_v32 }
 0x140   : > { %1662 = vst [vmem:[%s4133_s13 + $0x98] sm:$0xff] %v3060_v36  ;;  %2092 = vmatprep.mubr.bf16.mxu1 %v4297_v35  ;;  %1996 = vmatmul.mubr.bf16.gmra.mrb[64].mxu0 %v4289_v26 }
 0x141   : > { %2093 = vmatmul.mubr.bf16.gmra.mrb[64].mxu1 %v4292_v31  ;;  %v1309_v37 = vpop.f32.mrb[36].mxu0 }
 0x142   : > { %v1422_v39 = vpop.f32.mrb[36].mxu1  ;;  %v1311_v40 = vpop.f32.mrb[37].mxu0 }
 0x143   : > { %v3061_v43 = vpack.c.bf16 %v1311_v40, %v1309_v37  ;;  %v1424_v44 = vpop.f32.mrb[37].mxu1  ;;  %v1313_v45 = vpop.f32.mrb[38].mxu0 }
 0x144   : > { %v3062_v47 = vpack.c.bf16 %v1424_v44, %v1422_v39  ;;  %v4305_v48 = vpack.c.bf16 %v1313_v45, %v1309_v37  ;;  %v1426_v28 = vpop.f32.mrb[38].mxu1  ;;  %v1315_v49 = vpop.f32.mrb[39].mxu0 }
 0x145   : > { %1663 = vst [vmem:[%s4133_s13 + $0xa0] sm:$0xff] %v3061_v43  ;;  %v4308_v30 = vpack.c.bf16 %v1426_v28, %v1422_v39  ;;  %v4310_v50 = vpack.c.bf16 %v1315_v49, %v1311_v40  ;;  %v3063_v51 = vpack.c.bf16 %v1315_v49, %v1313_v45  ;;  %v1428_v53 = vpop.f32.mrb[39].mxu1 }
 0x146   : > { %1664 = vst [vmem:[%s4133_s13 + $0xa8] sm:$0xff] %v3062_v47  ;;  %v4313_v54 = vpack.c.bf16 %v1428_v53, %v1424_v44  ;;  %v3064_v57 = vpack.c.bf16 %v1428_v53, %v1426_v28 }
 0x147   : > { %1665 = vst [vmem:[%s4133_s13 + $0xb0] sm:$0xff] %v3063_v51  ;;  %2003 = vmatprep.mubr.bf16.mxu0 %v4310_v50 }
 0x148   : > { %1666 = vst [vmem:[%s4133_s13 + $0xb8] sm:$0xff] %v3064_v57  ;;  %2100 = vmatprep.mubr.bf16.mxu1 %v4313_v54  ;;  %2004 = vmatmul.mubr.bf16.gmra.mrb[68].mxu0 %v4305_v48 }
 0x149   : > { %2101 = vmatmul.mubr.bf16.gmra.mrb[68].mxu1 %v4308_v30  ;;  %v1319_v58 = vpop.f32.mrb[40].mxu0 }
 0x14a   : > { %v1432_v59 = vpop.f32.mrb[40].mxu1  ;;  %v1321_v61 = vpop.f32.mrb[41].mxu0 }
 0x14b   : > { %v3065_v62 = vpack.c.bf16 %v1321_v61, %v1319_v58  ;;  %v1434_v63 = vpop.f32.mrb[41].mxu1  ;;  %v1323_v1 = vpop.f32.mrb[42].mxu0 }
 0x14c   : > { %v3066_v2 = vpack.c.bf16 %v1434_v63, %v1432_v59  ;;  %v4321_v5 = vpack.c.bf16 %v1323_v1, %v1319_v58  ;;  %v1436_v6 = vpop.f32.mrb[42].mxu1  ;;  %v1325_v7 = vpop.f32.mrb[43].mxu0 }
 0x14d   : > { %1667 = vst [vmem:[%s4133_s13 + $0xc0] sm:$0xff] %v3065_v62  ;;  %v4324_v9 = vpack.c.bf16 %v1436_v6, %v1432_v59  ;;  %v1476_v10 = vpack.c.bf16 %v1325_v7, %v1321_v61  ;;  %v3067_v11 = vpack.c.bf16 %v1325_v7, %v1323_v1  ;;  %v1438_v13 = vpop.f32.mrb[43].mxu1 }
 0x14e   : > { %1668 = vst [vmem:[%s4133_s13 + $0xc8] sm:$0xff] %v3066_v2  ;;  %v1478_v14 = vpack.c.bf16 %v1438_v13, %v1434_v63  ;;  %v3068_v17 = vpack.c.bf16 %v1438_v13, %v1436_v6 }
 0x14f   : > { %1669 = vst [vmem:[%s4133_s13 + $0xd0] sm:$0xff] %v3067_v11  ;;  %2011 = vmatprep.mubr.bf16.mxu0 %v1476_v10 }
 0x150   : > { %1670 = vst [vmem:[%s4133_s13 + $0xd8] sm:$0xff] %v3068_v17  ;;  %2108 = vmatprep.mubr.bf16.mxu1 %v1478_v14  ;;  %2012 = vmatmul.mubr.bf16.gmra.mrb[72].mxu0 %v4321_v5 }
 0x151   : > { %2109 = vmatmul.mubr.bf16.gmra.mrb[72].mxu1 %v4324_v9  ;;  %v1329_v18 = vpop.f32.mrb[44].mxu0 }
 0x152   : > { %v1442_v19 = vpop.f32.mrb[44].mxu1  ;;  %v1331_v21 = vpop.f32.mrb[45].mxu0 }
 0x153   : > { %v3069_v22 = vpack.c.bf16 %v1331_v21, %v1329_v18  ;;  %v1444_v23 = vpop.f32.mrb[45].mxu1  ;;  %v1333_v24 = vpop.f32.mrb[46].mxu0 }
 0x154   : > { %v3070_v25 = vpack.c.bf16 %v1444_v23, %v1442_v19  ;;  %v1479_v27 = vpack.c.bf16 %v1333_v24, %v1329_v18  ;;  %v1446_v29 = vpop.f32.mrb[46].mxu1  ;;  %v1335_v33 = vpop.f32.mrb[47].mxu0 }
 0x155   : > { %1671 = vst [vmem:[%s4133_s13 + $0xe0] sm:$0xff] %v3069_v22  ;;  %v1481_v34 = vpack.c.bf16 %v1446_v29, %v1442_v19  ;;  %v1480_v36 = vpack.c.bf16 %v1335_v33, %v1331_v21  ;;  %v3071_v37 = vpack.c.bf16 %v1335_v33, %v1333_v24  ;;  %v1448_v39 = vpop.f32.mrb[47].mxu1 }
 0x156   : > { %1672 = vst [vmem:[%s4133_s13 + $0xe8] sm:$0xff] %v3070_v25  ;;  %v1482_v40 = vpack.c.bf16 %v1448_v39, %v1444_v23  ;;  %v3072_v43 = vpack.c.bf16 %v1448_v39, %v1446_v29 }
 0x157   : > { %1673 = vst [vmem:[%s4133_s13 + $0xf0] sm:$0xff] %v3071_v37  ;;  %2019 = vmatprep.mubr.bf16.mxu0 %v1480_v36 }
 0x158   : > { %1674 = vst [vmem:[%s4133_s13 + $0xf8] sm:$0xff] %v3072_v43  ;;  %2116 = vmatprep.mubr.bf16.mxu1 %v1482_v40  ;;  %2020 = vmatmul.mubr.bf16.gmra.mrb[76].mxu0 %v1479_v27  ;;  %s2817_s13 = sshll.u32 %s4457_s25, 3 }
 0x159   : > { %2117 = vmatmul.mubr.bf16.gmra.mrb[76].mxu1 %v1481_v34  ;;  %2430 = vmatprep.mubr.bf16.mxu0 %v4140_v56  ;;  %s4367_s29 = scalar_lea.vmem %s4454_s11, %s2817_s13  ;;  %s4406_s15 = scalar_lea.vmem %s4455_s12, %s2817_s13 }
 0x15a   : > { %2527 = vmatprep.mubr.bf16.mxu1 %v4146_v60 }
 0x160   : > { %2431 = vmatmul.mubr.bf16.vlgmr.msra.gmra.mrb[80].mxu0 %v4135_v52 }
 0x161   : > { %2528 = vmatmul.mubr.bf16.vlgmr.msra.gmra.mrb[80].mxu1 %v4138_v55  ;;  %2438 = vmatprep.mubr.bf16.mxu0 %v4180_v16 }
 0x162   : > { %2535 = vmatprep.mubr.bf16.mxu1 %v4186_v20 }
 0x168   : > { %2439 = vmatmul.mubr.bf16.gmra.mrb[84].mxu0 %v4175_v12 }
 0x169   : > { %2536 = vmatmul.mubr.bf16.gmra.mrb[84].mxu1 %v4178_v15  ;;  %2446 = vmatprep.mubr.bf16.mxu0 %v4220_v42 }
 0x16a   : > { %2543 = vmatprep.mubr.bf16.mxu1 %v4226_v46 }
 0x170   : > { %2447 = vmatmul.mubr.bf16.gmra.mrb[88].mxu0 %v4215_v38 }
 0x171   : > { %2544 = vmatmul.mubr.bf16.gmra.mrb[88].mxu1 %v4218_v41  ;;  %2454 = vmatprep.mubr.bf16.mxu0 %v4260_v4 }
 0x172   : > { %2551 = vmatprep.mubr.bf16.mxu1 %v4266_v8 }
 0x178   : > { %2455 = vmatmul.mubr.bf16.gmra.mrb[92].mxu0 %v4255_v0 }
 0x179   : > { %2552 = vmatmul.mubr.bf16.gmra.mrb[92].mxu1 %v4258_v3  ;;  %2462 = vmatprep.mubr.bf16.mxu0 %v4294_v32 }
 0x17a   : > { %2559 = vmatprep.mubr.bf16.mxu1 %v4297_v35 }
 0x180   : > { %2463 = vmatmul.mubr.bf16.gmra.mrb[96].mxu0 %v4289_v26 }
 0x181   : > { %2560 = vmatmul.mubr.bf16.gmra.mrb[96].mxu1 %v4292_v31  ;;  %2470 = vmatprep.mubr.bf16.mxu0 %v4310_v50 }
 0x182   : > { %2567 = vmatprep.mubr.bf16.mxu1 %v4313_v54 }
 0x188   : > { %2471 = vmatmul.mubr.bf16.gmra.mrb[100].mxu0 %v4305_v48 }
 0x189   : > { %2568 = vmatmul.mubr.bf16.gmra.mrb[100].mxu1 %v4308_v30  ;;  %2478 = vmatprep.mubr.bf16.mxu0 %v1476_v10 }
 0x18a   : > { %2575 = vmatprep.mubr.bf16.mxu1 %v1478_v14 }
 0x190   : > { %2479 = vmatmul.mubr.bf16.gmra.mrb[104].mxu0 %v4321_v5 }
 0x191   : > { %2576 = vmatmul.mubr.bf16.gmra.mrb[104].mxu1 %v4324_v9  ;;  %2486 = vmatprep.mubr.bf16.mxu0 %v1480_v36 }
 0x192   : > { %2583 = vmatprep.mubr.bf16.mxu1 %v1482_v40 }
 0x198   : > { %2487 = vmatmul.mubr.bf16.gmra.mrb[108].mxu0 %v1479_v27 }
 0x199   : > { %2584 = vmatmul.mubr.bf16.gmra.mrb[108].mxu1 %v1481_v34 }
 0x1f3   : > { %v3215_v52 = vpop.f32.mrb[48].mxu0 }
 0x1f4   : > { %v3279_v55 = vpop.f32.mrb[48].mxu1  ;;  %v3216_v56 = vpop.f32.mrb[49].mxu0 }
 0x1f5   : > { %v3217_v60 = vadd.f32 %v3216_v56, %v3215_v52  ;;  %v3280_v12 = vpop.f32.mrb[49].mxu1  ;;  %v3218_v15 = vpop.f32.mrb[50].mxu0 }
 0x1f6   : > { %v3281_v16 = vadd.f32 %v3280_v12, %v3279_v55  ;;  %v3282_v20 = vpop.f32.mrb[50].mxu1  ;;  %v3219_v38 = vpop.f32.mrb[51].mxu0 }
 0x1f7   : > { %v3220_v41 = vadd.f32 %v3219_v38, %v3218_v15  ;;  %v3283_v42 = vpop.f32.mrb[51].mxu1 }
 0x1f8   : > { %v2063_v46 = vadd.f32 %v3281_v16, %v3217_v60  ;;  %v3284_v0 = vadd.f32 %v3283_v42, %v3282_v20 }
 0x1fa   : > { %2126 = vst.msk [vmem:[%s4367_s29] sm:$0xff] %vm2125_vm0, %v2063_v46  ;;  %v2066_v3 = vadd.f32 %v3284_v0, %v3220_v41 }
 0x1fb   : > { %v3221_v4 = vpop.f32.mrb[52].mxu0 }
 0x1fc   : > { %2127 = vst.msk [vmem:[%s4367_s29 + $0x8] sm:$0xff] %vm2125_vm0, %v2066_v3  ;;  %v3285_v8 = vpop.f32.mrb[52].mxu1  ;;  %v3222_v26 = vpop.f32.mrb[53].mxu0 }
 0x1fd   : > { %v3223_v31 = vadd.f32 %v3222_v26, %v3221_v4  ;;  %v3286_v32 = vpop.f32.mrb[53].mxu1  ;;  %v3224_v35 = vpop.f32.mrb[54].mxu0 }
 0x1fe   : > { %v3287_v44 = vadd.f32 %v3286_v32, %v3285_v8  ;;  %v3288_v45 = vpop.f32.mrb[54].mxu1  ;;  %v3225_v47 = vpop.f32.mrb[55].mxu0 }
 0x1ff   : > { %v3226_v48 = vadd.f32 %v3225_v47, %v3224_v35  ;;  %v3289_v28 = vpop.f32.mrb[55].mxu1 }
 0x200   : > { %v2071_v49 = vadd.f32 %v3287_v44, %v3223_v31  ;;  %v3290_v30 = vadd.f32 %v3289_v28, %v3288_v45 }
 0x202   : > { %2128 = vst.msk [vmem:[%s4367_s29 + $0x10] sm:$0xff] %vm2125_vm0, %v2071_v49  ;;  %v2074_v50 = vadd.f32 %v3290_v30, %v3226_v48 }
 0x203   : > { %v3227_v51 = vpop.f32.mrb[56].mxu0 }
 0x204   : > { %2129 = vst.msk [vmem:[%s4367_s29 + $0x18] sm:$0xff] %vm2125_vm0, %v2074_v50  ;;  %v3291_v53 = vpop.f32.mrb[56].mxu1  ;;  %v3228_v54 = vpop.f32.mrb[57].mxu0 }
 0x205   : > { %v3229_v57 = vadd.f32 %v3228_v54, %v3227_v51  ;;  %v3292_v58 = vpop.f32.mrb[57].mxu1  ;;  %v3230_v59 = vpop.f32.mrb[58].mxu0 }
 0x206   : > { %v3293_v61 = vadd.f32 %v3292_v58, %v3291_v53  ;;  %v3294_v62 = vpop.f32.mrb[58].mxu1  ;;  %v3231_v63 = vpop.f32.mrb[59].mxu0 }
 0x207   : > { %v3232_v1 = vadd.f32 %v3231_v63, %v3230_v59  ;;  %v3295_v2 = vpop.f32.mrb[59].mxu1 }
 0x208   : > { %v2079_v5 = vadd.f32 %v3293_v61, %v3229_v57  ;;  %v3296_v6 = vadd.f32 %v3295_v2, %v3294_v62 }
 0x20a   : > { %2130 = vst.msk [vmem:[%s4367_s29 + $0x20] sm:$0xff] %vm2125_vm0, %v2079_v5  ;;  %v2082_v7 = vadd.f32 %v3296_v6, %v3232_v1 }
 0x20b   : > { %v3233_v9 = vpop.f32.mrb[60].mxu0 }
 0x20c   : > { %2131 = vst.msk [vmem:[%s4367_s29 + $0x28] sm:$0xff] %vm2125_vm0, %v2082_v7  ;;  %v3297_v10 = vpop.f32.mrb[60].mxu1  ;;  %v3234_v11 = vpop.f32.mrb[61].mxu0 }
 0x20d   : > { %v3235_v13 = vadd.f32 %v3234_v11, %v3233_v9  ;;  %v3298_v14 = vpop.f32.mrb[61].mxu1  ;;  %v3236_v17 = vpop.f32.mrb[62].mxu0 }
 0x20e   : > { %v3299_v18 = vadd.f32 %v3298_v14, %v3297_v10  ;;  %v3300_v19 = vpop.f32.mrb[62].mxu1  ;;  %v3237_v21 = vpop.f32.mrb[63].mxu0 }
 0x20f   : > { %v3238_v22 = vadd.f32 %v3237_v21, %v3236_v17  ;;  %v3301_v23 = vpop.f32.mrb[63].mxu1 }
 0x210   : > { %v2087_v24 = vadd.f32 %v3299_v18, %v3235_v13  ;;  %v3302_v25 = vadd.f32 %v3301_v23, %v3300_v19 }
 0x212   : > { %2132 = vst.msk [vmem:[%s4367_s29 + $0x30] sm:$0xff] %vm2125_vm0, %v2087_v24  ;;  %v2090_v27 = vadd.f32 %v3302_v25, %v3238_v22 }
 0x213   : > { %v3239_v29 = vpop.f32.mrb[64].mxu0 }
 0x214   : > { %2133 = vst.msk [vmem:[%s4367_s29 + $0x38] sm:$0xff] %vm2125_vm0, %v2090_v27  ;;  %v3303_v33 = vpop.f32.mrb[64].mxu1  ;;  %v3240_v34 = vpop.f32.mrb[65].mxu0 }
 0x215   : > { %v3241_v36 = vadd.f32 %v3240_v34, %v3239_v29  ;;  %v3304_v37 = vpop.f32.mrb[65].mxu1  ;;  %v3242_v39 = vpop.f32.mrb[66].mxu0 }
 0x216   : > { %v3305_v40 = vadd.f32 %v3304_v37, %v3303_v33  ;;  %v3306_v43 = vpop.f32.mrb[66].mxu1  ;;  %v3243_v52 = vpop.f32.mrb[67].mxu0 }
 0x217   : > { %v3244_v55 = vadd.f32 %v3243_v52, %v3242_v39  ;;  %v3307_v56 = vpop.f32.mrb[67].mxu1 }
 0x218   : > { %v2095_v60 = vadd.f32 %v3305_v40, %v3241_v36  ;;  %v3308_v12 = vadd.f32 %v3307_v56, %v3306_v43 }
 0x21a   : > { %2134 = vst.msk [vmem:[%s4367_s29 + $0x40] sm:$0xff] %vm2125_vm0, %v2095_v60  ;;  %v2098_v15 = vadd.f32 %v3308_v12, %v3244_v55 }
 0x21b   : > { %v3245_v16 = vpop.f32.mrb[68].mxu0 }
 0x21c   : > { %2135 = vst.msk [vmem:[%s4367_s29 + $0x48] sm:$0xff] %vm2125_vm0, %v2098_v15  ;;  %v3309_v20 = vpop.f32.mrb[68].mxu1  ;;  %v3246_v38 = vpop.f32.mrb[69].mxu0 }
 0x21d   : > { %v3247_v41 = vadd.f32 %v3246_v38, %v3245_v16  ;;  %v3310_v42 = vpop.f32.mrb[69].mxu1  ;;  %v3248_v46 = vpop.f32.mrb[70].mxu0 }
 0x21e   : > { %v3311_v0 = vadd.f32 %v3310_v42, %v3309_v20  ;;  %v3312_v3 = vpop.f32.mrb[70].mxu1  ;;  %v3249_v4 = vpop.f32.mrb[71].mxu0 }
 0x21f   : > { %v3250_v8 = vadd.f32 %v3249_v4, %v3248_v46  ;;  %v3313_v26 = vpop.f32.mrb[71].mxu1 }
 0x220   : > { %v2103_v31 = vadd.f32 %v3311_v0, %v3247_v41  ;;  %v3314_v32 = vadd.f32 %v3313_v26, %v3312_v3 }
 0x222   : > { %2136 = vst.msk [vmem:[%s4367_s29 + $0x50] sm:$0xff] %vm2125_vm0, %v2103_v31  ;;  %v2106_v35 = vadd.f32 %v3314_v32, %v3250_v8 }
 0x223   : > { %v3251_v44 = vpop.f32.mrb[72].mxu0 }
 0x224   : > { %2137 = vst.msk [vmem:[%s4367_s29 + $0x58] sm:$0xff] %vm2125_vm0, %v2106_v35  ;;  %v3315_v45 = vpop.f32.mrb[72].mxu1  ;;  %v3252_v47 = vpop.f32.mrb[73].mxu0 }
 0x225   : > { %v3253_v48 = vadd.f32 %v3252_v47, %v3251_v44  ;;  %v3316_v28 = vpop.f32.mrb[73].mxu1  ;;  %v3254_v49 = vpop.f32.mrb[74].mxu0 }
 0x226   : > { %v3317_v30 = vadd.f32 %v3316_v28, %v3315_v45  ;;  %v3318_v50 = vpop.f32.mrb[74].mxu1  ;;  %v3255_v51 = vpop.f32.mrb[75].mxu0 }
 0x227   : > { %v3256_v53 = vadd.f32 %v3255_v51, %v3254_v49  ;;  %v3319_v54 = vpop.f32.mrb[75].mxu1 }
 0x228   : > { %v2111_v57 = vadd.f32 %v3317_v30, %v3253_v48  ;;  %v3320_v58 = vadd.f32 %v3319_v54, %v3318_v50 }
 0x22a   : > { %2138 = vst.msk [vmem:[%s4367_s29 + $0x60] sm:$0xff] %vm2125_vm0, %v2111_v57  ;;  %v2114_v59 = vadd.f32 %v3320_v58, %v3256_v53 }
 0x22b   : > { %v3257_v61 = vpop.f32.mrb[76].mxu0 }
 0x22c   : > { %2139 = vst.msk [vmem:[%s4367_s29 + $0x68] sm:$0xff] %vm2125_vm0, %v2114_v59  ;;  %v3321_v62 = vpop.f32.mrb[76].mxu1  ;;  %v3258_v63 = vpop.f32.mrb[77].mxu0 }
 0x22d   : > { %v3259_v1 = vadd.f32 %v3258_v63, %v3257_v61  ;;  %v3322_v2 = vpop.f32.mrb[77].mxu1  ;;  %v3260_v5 = vpop.f32.mrb[78].mxu0 }
 0x22e   : > { %v3323_v6 = vadd.f32 %v3322_v2, %v3321_v62  ;;  %v3324_v7 = vpop.f32.mrb[78].mxu1  ;;  %v3261_v9 = vpop.f32.mrb[79].mxu0 }
 0x22f   : > { %v3262_v10 = vadd.f32 %v3261_v9, %v3260_v5  ;;  %v3325_v11 = vpop.f32.mrb[79].mxu1 }
 0x230   : > { %v2119_v13 = vadd.f32 %v3323_v6, %v3259_v1  ;;  %v3326_v14 = vadd.f32 %v3325_v11, %v3324_v7 }
 0x232   : > { %2140 = vst.msk [vmem:[%s4367_s29 + $0x70] sm:$0xff] %vm2125_vm0, %v2119_v13  ;;  %v2122_v17 = vadd.f32 %v3326_v14, %v3262_v10 }
 0x233   : > { %v3343_v18 = vpop.f32.mrb[80].mxu0 }
 0x234   : > { %2141 = vst.msk [vmem:[%s4367_s29 + $0x78] sm:$0xff] %vm2125_vm0, %v2122_v17  ;;  %v3407_v19 = vpop.f32.mrb[80].mxu1  ;;  %v3344_v21 = vpop.f32.mrb[81].mxu0 }
 0x235   : > { %v3345_v22 = vadd.f32 %v3344_v21, %v3343_v18  ;;  %v3408_v23 = vpop.f32.mrb[81].mxu1  ;;  %v3346_v24 = vpop.f32.mrb[82].mxu0 }
 0x236   : > { %v3409_v25 = vadd.f32 %v3408_v23, %v3407_v19  ;;  %v3410_v27 = vpop.f32.mrb[82].mxu1  ;;  %v3347_v29 = vpop.f32.mrb[83].mxu0 }
 0x237   : > { %v3348_v33 = vadd.f32 %v3347_v29, %v3346_v24  ;;  %v3411_v34 = vpop.f32.mrb[83].mxu1 }
 0x238   : > { %v2530_v36 = vadd.f32 %v3409_v25, %v3345_v22  ;;  %v3412_v37 = vadd.f32 %v3411_v34, %v3410_v27 }
 0x23a   : > { %2592 = vst.msk [vmem:[%s4406_s15] sm:$0xff] %vm2125_vm0, %v2530_v36  ;;  %v2533_v39 = vadd.f32 %v3412_v37, %v3348_v33 }
 0x23b   : > { %v3349_v40 = vpop.f32.mrb[84].mxu0 }
 0x23c   : > { %2593 = vst.msk [vmem:[%s4406_s15 + $0x8] sm:$0xff] %vm2125_vm0, %v2533_v39  ;;  %v3413_v43 = vpop.f32.mrb[84].mxu1  ;;  %v3350_v52 = vpop.f32.mrb[85].mxu0 }
 0x23d   : > { %v3351_v55 = vadd.f32 %v3350_v52, %v3349_v40  ;;  %v3414_v56 = vpop.f32.mrb[85].mxu1  ;;  %v3352_v60 = vpop.f32.mrb[86].mxu0 }
 0x23e   : > { %v3415_v12 = vadd.f32 %v3414_v56, %v3413_v43  ;;  %v3416_v15 = vpop.f32.mrb[86].mxu1  ;;  %v3353_v16 = vpop.f32.mrb[87].mxu0 }
 0x23f   : > { %v3354_v20 = vadd.f32 %v3353_v16, %v3352_v60  ;;  %v3417_v38 = vpop.f32.mrb[87].mxu1 }
 0x240   : > { %v2538_v41 = vadd.f32 %v3415_v12, %v3351_v55  ;;  %v3418_v42 = vadd.f32 %v3417_v38, %v3416_v15 }
 0x242   : > { %2594 = vst.msk [vmem:[%s4406_s15 + $0x10] sm:$0xff] %vm2125_vm0, %v2538_v41  ;;  %v2541_v46 = vadd.f32 %v3418_v42, %v3354_v20 }
 0x243   : > { %v3355_v0 = vpop.f32.mrb[88].mxu0 }
 0x244   : > { %2595 = vst.msk [vmem:[%s4406_s15 + $0x18] sm:$0xff] %vm2125_vm0, %v2541_v46  ;;  %v3419_v3 = vpop.f32.mrb[88].mxu1  ;;  %v3356_v4 = vpop.f32.mrb[89].mxu0 }
 0x245   : > { %v3357_v8 = vadd.f32 %v3356_v4, %v3355_v0  ;;  %v3420_v26 = vpop.f32.mrb[89].mxu1  ;;  %v3358_v31 = vpop.f32.mrb[90].mxu0 }
 0x246   : > { %v3421_v32 = vadd.f32 %v3420_v26, %v3419_v3  ;;  %v3422_v35 = vpop.f32.mrb[90].mxu1  ;;  %v3359_v44 = vpop.f32.mrb[91].mxu0 }
 0x247   : > { %v3360_v45 = vadd.f32 %v3359_v44, %v3358_v31  ;;  %v3423_v47 = vpop.f32.mrb[91].mxu1 }
 0x248   : > { %v2546_v48 = vadd.f32 %v3421_v32, %v3357_v8  ;;  %v3424_v28 = vadd.f32 %v3423_v47, %v3422_v35 }
 0x24a   : > { %2596 = vst.msk [vmem:[%s4406_s15 + $0x20] sm:$0xff] %vm2125_vm0, %v2546_v48  ;;  %v2549_v49 = vadd.f32 %v3424_v28, %v3360_v45 }
 0x24b   : > { %v3361_v30 = vpop.f32.mrb[92].mxu0 }
 0x24c   : > { %2597 = vst.msk [vmem:[%s4406_s15 + $0x28] sm:$0xff] %vm2125_vm0, %v2549_v49  ;;  %v3425_v50 = vpop.f32.mrb[92].mxu1  ;;  %v3362_v51 = vpop.f32.mrb[93].mxu0 }
 0x24d   : > { %v3363_v53 = vadd.f32 %v3362_v51, %v3361_v30  ;;  %v3426_v54 = vpop.f32.mrb[93].mxu1  ;;  %v3364_v57 = vpop.f32.mrb[94].mxu0 }
 0x24e   : > { %v3427_v58 = vadd.f32 %v3426_v54, %v3425_v50  ;;  %v3428_v59 = vpop.f32.mrb[94].mxu1  ;;  %v3365_v61 = vpop.f32.mrb[95].mxu0 }
 0x24f   : > { %v3366_v62 = vadd.f32 %v3365_v61, %v3364_v57  ;;  %v3429_v63 = vpop.f32.mrb[95].mxu1 }
 0x250   : > { %v2554_v1 = vadd.f32 %v3427_v58, %v3363_v53  ;;  %v3430_v2 = vadd.f32 %v3429_v63, %v3428_v59 }
 0x252   : > { %2598 = vst.msk [vmem:[%s4406_s15 + $0x30] sm:$0xff] %vm2125_vm0, %v2554_v1  ;;  %v2557_v5 = vadd.f32 %v3430_v2, %v3366_v62 }
 0x253   : > { %v3367_v6 = vpop.f32.mrb[96].mxu0 }
 0x254   : > { %2599 = vst.msk [vmem:[%s4406_s15 + $0x38] sm:$0xff] %vm2125_vm0, %v2557_v5  ;;  %v3431_v7 = vpop.f32.mrb[96].mxu1  ;;  %v3368_v9 = vpop.f32.mrb[97].mxu0 }
 0x255   : > { %v3369_v10 = vadd.f32 %v3368_v9, %v3367_v6  ;;  %v3432_v11 = vpop.f32.mrb[97].mxu1  ;;  %v3370_v13 = vpop.f32.mrb[98].mxu0 }
 0x256   : > { %v3433_v14 = vadd.f32 %v3432_v11, %v3431_v7  ;;  %v3434_v17 = vpop.f32.mrb[98].mxu1  ;;  %v3371_v18 = vpop.f32.mrb[99].mxu0 }
 0x257   : > { %v3372_v19 = vadd.f32 %v3371_v18, %v3370_v13  ;;  %v3435_v21 = vpop.f32.mrb[99].mxu1 }
 0x258   : > { %v2562_v22 = vadd.f32 %v3433_v14, %v3369_v10  ;;  %v3436_v23 = vadd.f32 %v3435_v21, %v3434_v17 }
 0x25a   : > { %2600 = vst.msk [vmem:[%s4406_s15 + $0x40] sm:$0xff] %vm2125_vm0, %v2562_v22  ;;  %v2565_v24 = vadd.f32 %v3436_v23, %v3372_v19 }
 0x25b   : > { %v3373_v25 = vpop.f32.mrb[100].mxu0 }
 0x25c   : > { %2601 = vst.msk [vmem:[%s4406_s15 + $0x48] sm:$0xff] %vm2125_vm0, %v2565_v24  ;;  %v3437_v27 = vpop.f32.mrb[100].mxu1  ;;  %v3374_v29 = vpop.f32.mrb[101].mxu0 }
 0x25d   : > { %v3375_v33 = vadd.f32 %v3374_v29, %v3373_v25  ;;  %v3438_v34 = vpop.f32.mrb[101].mxu1  ;;  %v3376_v36 = vpop.f32.mrb[102].mxu0 }
 0x25e   : > { %v3439_v37 = vadd.f32 %v3438_v34, %v3437_v27  ;;  %v3440_v39 = vpop.f32.mrb[102].mxu1  ;;  %v3377_v40 = vpop.f32.mrb[103].mxu0 }
 0x25f   : > { %v3378_v43 = vadd.f32 %v3377_v40, %v3376_v36  ;;  %v3441_v52 = vpop.f32.mrb[103].mxu1 }
 0x260   : > { %v2570_v55 = vadd.f32 %v3439_v37, %v3375_v33  ;;  %v3442_v56 = vadd.f32 %v3441_v52, %v3440_v39 }
 0x262   : > { %2602 = vst.msk [vmem:[%s4406_s15 + $0x50] sm:$0xff] %vm2125_vm0, %v2570_v55  ;;  %v2573_v60 = vadd.f32 %v3442_v56, %v3378_v43 }
 0x263   : > { %v3379_v12 = vpop.f32.mrb[104].mxu0 }
 0x264   : > { %2603 = vst.msk [vmem:[%s4406_s15 + $0x58] sm:$0xff] %vm2125_vm0, %v2573_v60  ;;  %v3443_v15 = vpop.f32.mrb[104].mxu1  ;;  %v3380_v16 = vpop.f32.mrb[105].mxu0 }
 0x265   : > { %v3381_v20 = vadd.f32 %v3380_v16, %v3379_v12  ;;  %v3444_v38 = vpop.f32.mrb[105].mxu1  ;;  %v3382_v41 = vpop.f32.mrb[106].mxu0 }
 0x266   : > { %v3445_v42 = vadd.f32 %v3444_v38, %v3443_v15  ;;  %v3446_v46 = vpop.f32.mrb[106].mxu1  ;;  %v3383_v0 = vpop.f32.mrb[107].mxu0 }
 0x267   : > { %v3384_v3 = vadd.f32 %v3383_v0, %v3382_v41  ;;  %v3447_v4 = vpop.f32.mrb[107].mxu1 }
 0x268   : > { %v2578_v8 = vadd.f32 %v3445_v42, %v3381_v20  ;;  %v3448_v26 = vadd.f32 %v3447_v4, %v3446_v46 }
 0x26a   : > { %2604 = vst.msk [vmem:[%s4406_s15 + $0x60] sm:$0xff] %vm2125_vm0, %v2578_v8  ;;  %v2581_v31 = vadd.f32 %v3448_v26, %v3384_v3 }
 0x26b   : > { %v3385_v32 = vpop.f32.mrb[108].mxu0 }
 0x26c   : > { %2605 = vst.msk [vmem:[%s4406_s15 + $0x68] sm:$0xff] %vm2125_vm0, %v2581_v31  ;;  %v3449_v35 = vpop.f32.mrb[108].mxu1  ;;  %v3386_v44 = vpop.f32.mrb[109].mxu0 }
 0x26d   : > { %v3387_v45 = vadd.f32 %v3386_v44, %v3385_v32  ;;  %v3450_v47 = vpop.f32.mrb[109].mxu1  ;;  %v3388_v48 = vpop.f32.mrb[110].mxu0 }
 0x26e   : > { %v3451_v28 = vadd.f32 %v3450_v47, %v3449_v35  ;;  %v3452_v49 = vpop.f32.mrb[110].mxu1  ;;  %v3389_v30 = vpop.f32.mrb[111].mxu0 }
 0x26f   : > { %v3390_v50 = vadd.f32 %v3389_v30, %v3388_v48  ;;  %v3453_v51 = vpop.f32.mrb[111].mxu1 }
 0x270   : > { %v2586_v53 = vadd.f32 %v3451_v28, %v3387_v45  ;;  %v3454_v54 = vadd.f32 %v3453_v51, %v3452_v49 }
 0x272   : > { %2606 = vst.msk [vmem:[%s4406_s15 + $0x70] sm:$0xff] %vm2125_vm0, %v2586_v53  ;;  %v2589_v57 = vadd.f32 %v3454_v54, %v3390_v50 }
 0x274   : > { %2607 = vst.msk [vmem:[%s4406_s15 + $0x78] sm:$0xff] %vm2125_vm0, %v2589_v57 }
 0x275 PF: > { %s23_s21 = sadd.s32 1, %s3670_s21  }
 0x276   : > { %p20_p4 = scmp.ge.s32.totalorder %s23_s21, 4  }
 0x278   :  { %22 = sbr.rel (!%p20_p4) target bundleno = 1 (0x1), region = 130 }

// kernel: gat_forward.4
= control target key start
LH: loop header
LB: loop body
LE: loop exit
PB: predicated region body
PF: predicated region fallthrough
CT: control target
= control target key end

     0   :  { %s7038_s13 = smov 0   ;;  %s9907_s0 = inlined_call_operand.vmem [shape: bf16[256,128], index: 0, kind: input, shape index: {}]   ;;  %s9908_s1 = inlined_call_operand.vmem [shape: bf16[256,128], index: 1, kind: input, shape index: {}]   ;;  %s9909_s2 = inlined_call_operand.vmem [shape: bf16[256,512], index: 2, kind: input, shape index: {}]   ;;  %s9910_s3 = inlined_call_operand.vmem [shape: f32[256,4], index: 3, kind: input, shape index: {}]   ;;  %s9911_s4 = inlined_call_operand.vmem [shape: f32[4,256], index: 4, kind: input, shape index: {}]   ;;  %s9912_s5 = inlined_call_operand.vmem [shape: bf16[512,128], index: 5, kind: input, shape index: {}]   ;;  %s9913_s6 = inlined_call_operand.vmem [shape: bf16[128,1], index: 6, kind: input, shape index: {}]   ;;  %s9914_s7 = inlined_call_operand.vmem [shape: bf16[128,1], index: 7, kind: input, shape index: {}]   ;;  %s9915_s8 = inlined_call_operand.vmem [shape: bf16[256,128], index: 8, kind: output, shape index: {0}]   ;;  %s9916_s9 = inlined_call_operand.vmem [shape: f32[256,1], index: 9, kind: output, shape index: {1}]   ;;  %s9917_s10 = inlined_call_operand.vmem [shape: f32[256,1], index: 10, kind: output, shape index: {2}]  }
   0x1 LB: > { %s5348_s14 = sadd.s32 4294967295, %s6977_s13   ;;  %p5352_p0 = scmp.ge.s32.totalorder %s6977_s13, 1  ;;  %s6977_s13 = sphi %s7038_s13, %s21_s13  }
   0x2   : > { %p329_p1 = scmp.lt.s32.totalorder %s6977_s13, 3 }
   0x4   : > { %p330_p2 = pnand %p5352_p0, %p329_p1 }
   0x6   : > { %333 = sbr.rel (%p330_p2) target bundleno = 2099 (0x833), region = 52 }
   0xd   : > { %v6291_v0 = vld [vmem:[%s9908_s1 + $0x40] sm:$0xff]   ;;  %s5353_s17 = sshll.u32 %s5348_s14, 4  ;;  %v6293_v2 = vld [vmem:[%s9908_s1 + $0x48] sm:$0xff]   ;;  %v6979_v3 = vmov 0   ;;  %v6295_v5 = vld [vmem:[%s9908_s1 + $0x50] sm:$0xff]   ;;  %v6980_v34 = vmov 1   ;;  %v880_v42 = vlaneseq }
   0xe   : > { %v6292_v1 = vld [vmem:[%s9908_s1] sm:$0xff]   ;;  %p383_p3 = scmp.lt.s32.totalorder %s5353_s17, 31  ;;  %5647 = vmatprep.subr.bf16.mxu0 %v6291_v0  ;;  %6283 = vset.pattern.permute.xlu0 %v6979_v3  ;;  %v6294_v4 = vld [vmem:[%s9908_s1 + $0x8] sm:$0xff]   ;;  %v6296_v6 = vld [vmem:[%s9908_s1 + $0x10] sm:$0xff]  }
   0xf   : > { %5648 = vmatpush3.bf16.xpose.msra.mxu0 %v6292_v1  ;;  %6284 = vset.pattern.permute.xlu1 %v6979_v3  ;;  %v6297_v7 = vld [vmem:[%s9908_s1 + $0x58] sm:$0xff]   ;;  %v6299_v12 = vld [vmem:[%s9908_s1 + $0x60] sm:$0xff]   ;;  %v6301_v18 = vld [vmem:[%s9908_s1 + $0x68] sm:$0xff]   ;;  %v881_v43 = vshrl.u32 %v880_v42, 7 }
  0x10   : > { %5649 = vmatprep.subr.bf16.mxu0 %v6293_v2  ;;  %s10516_s17 = smov (!%p383_p3, %s5353_s17), 31  ;;  %v6298_v9 = vld [vmem:[%s9908_s1 + $0x18] sm:$0xff]   ;;  %v6300_v15 = vld [vmem:[%s9908_s1 + $0x20] sm:$0xff]   ;;  %v6302_v23 = vld [vmem:[%s9908_s1 + $0x28] sm:$0xff]  }
  0x11   : > { %s5354_s26 = sshll.u32 %s10516_s17, 2  ;;  %s7081_s15 = sshll.u32 %s10516_s17, 3  ;;  %v6303_v24 = vld [vmem:[%s9908_s1 + $0x70] sm:$0xff]   ;;  %v6305_v30 = vld [vmem:[%s9908_s1 + $0x78] sm:$0xff]   ;;  %v7153_v44 = vsub.s32 0, %v881_v43  ;;  %v7158_v46 = vsub.s32 1, %v881_v43 }
  0x12   : > { %s7069_s29 = scalar_lea.vmem %s9907_s0, %s5354_s26  ;;  %s7088_s19 = scalar_lea.vmem %s9910_s3, %s7081_s15  ;;  %v6304_v29 = vld [vmem:[%s9908_s1 + $0x30] sm:$0xff]   ;;  %v6306_v33 = vld [vmem:[%s9908_s1 + $0x38] sm:$0xff]   ;;  %v798_v45 = vld [vmem:[%s9911_s4] ss:$4 sm:$0x3] }
  0x13   : > { %v7078_v8 = vld [vmem:[%s7069_s29] sm:$0xff]   ;;  %v784_v11 = vld [vmem:[%s7088_s19 + $0x10] sm:$0xff]  ;;  %v783_v13 = vld [vmem:[%s7088_s19 + $0x8] sm:$0xff]  ;;  %10116 = vst [vmem:[#allocation2_spill] sm:$0xff] %v7153_v44  ;;  %v7161_v48 = vrot.slane %v798_v45, %v7153_v44  ;;  %v7164_v49 = vrot.slane %v798_v45, %v7158_v46  ;;  %s9870_s28 = scalar_lea.vmem %s9917_s10, %s7081_s15 }
  0x14   : > { %5663 = vmatprep.mubr.bf16.mxu0 %v7078_v8  ;;  %v782_v10 = vld [vmem:[%s7088_s19] sm:$0xff]  ;;  %811 = vperm.xlu1 %6284, %v784_v11   ;;  %v785_v14 = vld [vmem:[%s7088_s19 + $0x18] sm:$0xff]  ;;  %v787_v17 = vld [vmem:[%s7088_s19 + $0x28] sm:$0xff]  ;;  %10117 = vst [vmem:[#allocation3_spill] sm:$0xff] %v7158_v46 }
  0x15   : > { %801 = vperm.xlu0 %6283, %v782_v10   ;;  %v786_v16 = vld [vmem:[%s7088_s19 + $0x20] sm:$0xff]  ;;  %v788_v19 = vld [vmem:[%s7088_s19 + $0x30] sm:$0xff]  ;;  %v789_v20 = vld [vmem:[%s7088_s19 + $0x38] sm:$0xff] }
  0x16   : > { %v790_v21 = vld [vmem:[%s7088_s19 + $0x40] sm:$0xff]  ;;  %v791_v22 = vld [vmem:[%s7088_s19 + $0x48] sm:$0xff]  ;;  %v792_v25 = vld [vmem:[%s7088_s19 + $0x50] sm:$0xff] }
  0x17   : > { %5650 = vmatpush3.bf16.xpose.msra.mxu0 %v6294_v4  ;;  %v793_v26 = vld [vmem:[%s7088_s19 + $0x58] sm:$0xff]  ;;  %v7121_v27 = vld [vmem:[%s7088_s19 + $0x60] sm:$0xff]  ;;  %v7124_v28 = vld [vmem:[%s7088_s19 + $0x68] sm:$0xff] }
  0x18   : > { %5651 = vmatprep.subr.bf16.mxu0 %v6295_v5  ;;  %816 = vperm.xlu1 %6284, %v785_v14   ;;  %v7133_v31 = vld [vmem:[%s7088_s19 + $0x70] sm:$0xff]  ;;  %v7137_v32 = vld [vmem:[%s7088_s19 + $0x78] sm:$0xff]  ;;  %v6308_v35 = vld [vmem:[%s7069_s29 + $0x8] sm:$0xff]  }
  0x19   : > { %806 = vperm.xlu0 %6283, %v783_v13   ;;  %v6309_v36 = vld [vmem:[%s7069_s29 + $0x10] sm:$0xff]   ;;  %v6310_v37 = vld [vmem:[%s7069_s29 + $0x18] sm:$0xff]   ;;  %v6311_v38 = vld [vmem:[%s7069_s29 + $0x20] sm:$0xff]  }
  0x1a   : > { %v6312_v39 = vld [vmem:[%s7069_s29 + $0x28] sm:$0xff]   ;;  %v6313_v40 = vld [vmem:[%s7069_s29 + $0x30] sm:$0xff]   ;;  %v6314_v41 = vld [vmem:[%s7069_s29 + $0x38] sm:$0xff]   ;;  %s9832_s29 = scalar_lea.vmem %s9916_s9, %s7081_s15 }
  0x1c   : > { %826 = vperm.xlu1 %6284, %v787_v17  }
  0x1d   : > { %821 = vperm.xlu0 %6283, %v786_v16  }
  0x1f   : > { %5652 = vmatpush3.bf16.xpose.msra.mxu0 %v6296_v6 }
  0x20   : > { %5653 = vmatprep.subr.bf16.mxu0 %v6297_v7  ;;  %836 = vperm.xlu1 %6284, %v789_v20  }
  0x21   : > { %831 = vperm.xlu0 %6283, %v788_v19  }
  0x24   : > { %846 = vperm.xlu1 %6284, %v791_v22  }
  0x25   : > { %841 = vperm.xlu0 %6283, %v790_v21  }
  0x27   : > { %5654 = vmatpush3.bf16.xpose.msra.mxu0 %v6298_v9 }
  0x28   : > { %5655 = vmatprep.subr.bf16.mxu0 %v6299_v12  ;;  %856 = vperm.xlu1 %6284, %v793_v26  }
  0x29   : > { %851 = vperm.xlu0 %6283, %v792_v25  }
  0x2c   : > { %866 = vperm.xlu1 %6284, %v7124_v28  }
  0x2d   : > { %861 = vperm.xlu0 %6283, %v7121_v27  }
  0x2f   : > { %5656 = vmatpush3.bf16.xpose.msra.mxu0 %v6300_v15 }
  0x30   : > { %5657 = vmatprep.subr.bf16.mxu0 %v6301_v18  ;;  %876 = vperm.xlu1 %6284, %v7137_v32  }
  0x31   : > { %871 = vperm.xlu0 %6283, %v7133_v31  }
  0x34   : > { %6286 = vset.pattern.permute.xlu1 %v6980_v34 }
  0x35   : > { %6285 = vset.pattern.permute.xlu0 %v6980_v34  ;;  %1658 = vperm.xlu1 %6286, %v783_v13  }
  0x36   : > { %1654 = vperm.xlu0 %6285, %v782_v10  }
  0x37   : > { %5658 = vmatpush3.bf16.xpose.msra.mxu0 %v6302_v23 }
  0x38   : > { %5659 = vmatprep.subr.bf16.mxu0 %v6303_v24 }
  0x39   : > { %1662 = vperm.xlu1 %6286, %v784_v11  }
  0x3a   : > { %1666 = vperm.xlu0 %6285, %v785_v14  }
  0x3d   : > { %1674 = vperm.xlu1 %6286, %v787_v17  }
  0x3e   : > { %1670 = vperm.xlu0 %6285, %v786_v16  }
  0x3f   : > { %5660 = vmatpush3.bf16.xpose.msra.mxu0 %v6304_v29 }
  0x40   : > { %5661 = vmatprep.subr.bf16.mxu0 %v6305_v30 }
  0x41   : > { %1682 = vperm.xlu1 %6286, %v789_v20  }
  0x42   : > { %1678 = vperm.xlu0 %6285, %v788_v19  }
  0x45   : > { %1690 = vperm.xlu1 %6286, %v791_v22  }
  0x46   : > { %1686 = vperm.xlu0 %6285, %v790_v21  }
  0x47   : > { %5662 = vmatpush3.bf16.xpose.msra.mxu0 %v6306_v33 }
  0x49   : > { %1698 = vperm.xlu1 %6286, %v793_v26  }
  0x4a   : > { %1694 = vperm.xlu0 %6285, %v792_v25  }
  0x4e   : > { %5664 = vmatmul.mubr.bf16.vlgmr.msra.gmra.mrb[0].mxu0 %v7078_v8 }
  0x4f   : > { %5665 = vmatprep.mubr.bf16.mxu0 %v6308_v35 }
  0x56   : > { %5666 = vmatmul.mubr.bf16.gmra.mrb[4].mxu0 %v6308_v35 }
  0x57   : > { %5667 = vmatprep.mubr.bf16.mxu0 %v6309_v36 }
  0x5e   : > { %5668 = vmatmul.mubr.bf16.gmra.mrb[8].mxu0 %v6309_v36 }
  0x5f   : > { %5669 = vmatprep.mubr.bf16.mxu0 %v6310_v37 }
  0x66   : > { %5670 = vmatmul.mubr.bf16.gmra.mrb[12].mxu0 %v6310_v37 }
  0x67   : > { %5671 = vmatprep.mubr.bf16.mxu0 %v6311_v38 }
  0x6e   : > { %5672 = vmatmul.mubr.bf16.gmra.mrb[16].mxu0 %v6311_v38 }
  0x6f   : > { %5673 = vmatprep.mubr.bf16.mxu0 %v6312_v39 }
  0x76   : > { %5674 = vmatmul.mubr.bf16.gmra.mrb[20].mxu0 %v6312_v39 }
  0x77   : > { %5675 = vmatprep.mubr.bf16.mxu0 %v6313_v40 }
  0x7e   : > { %5676 = vmatmul.mubr.bf16.gmra.mrb[24].mxu0 %v6313_v40 }
  0x7f   : > { %5677 = vmatprep.mubr.bf16.mxu0 %v6314_v41 }
  0x86   : > { %5678 = vmatmul.mubr.bf16.gmra.mrb[28].mxu0 %v6314_v41 }
  0x93   : > { %v812_v53 = vpop.permute.xlu1 %811 }
  0x94   : > { %v802_v47 = vpop.permute.xlu0 %801  ;;  %v894_v61 = vadd.f32 %v7161_v48, %v812_v53  ;;  %v895_v2 = vadd.f32 %v7164_v49, %v812_v53 }
  0x95   : > { %v890_v50 = vadd.f32 %v7161_v48, %v802_v47  ;;  %v891_v51 = vadd.f32 %v7164_v49, %v802_v47 }
  0x96   : > { %vm926_vm7 = vcmp.gt.f32.partialorder %v894_v61, 0.0  ;;  %v958_v15 = vmul.f32 0.2, %v894_v61  ;;  %v959_v18 = vmul.f32 0.2, %v895_v2  ;;  %vm927_vm9 = vcmp.gt.f32.partialorder %v895_v2, 0.0 }
  0x97   : > { %v954_v56 = vmul.f32 0.2, %v890_v50  ;;  %vm922_vm0 = vcmp.gt.f32.partialorder %v890_v50, 0.0  ;;  %v955_v57 = vmul.f32 0.2, %v891_v51  ;;  %vm923_vm1 = vcmp.gt.f32.partialorder %v891_v51, 0.0  ;;  %v817_v62 = vpop.permute.xlu1 %816 }
  0x98   : > { %v807_v52 = vpop.permute.xlu0 %806  ;;  %v896_v3 = vadd.f32 %v7161_v48, %v817_v62  ;;  %v897_v7 = vadd.f32 %v7164_v49, %v817_v62  ;;  %v990_v33 = vsel %vm926_vm7, %v894_v61, %v958_v15  ;;  %v991_v38 = vsel %vm927_vm9, %v895_v2, %v959_v18 }
  0x99   : > { %v892_v54 = vadd.f32 %v7161_v48, %v807_v52  ;;  %v893_v55 = vadd.f32 %v7164_v49, %v807_v52  ;;  %v986_v1 = vsel %vm922_vm0, %v890_v50, %v954_v56  ;;  %v987_v6 = vsel %vm923_vm1, %v891_v51, %v955_v57 }
  0x9a   : > { %v960_v20 = vmul.f32 0.2, %v896_v3  ;;  %vm928_vm10 = vcmp.gt.f32.partialorder %v896_v3, 0.0  ;;  %v961_v24 = vmul.f32 0.2, %v897_v7  ;;  %vm929_vm11 = vcmp.gt.f32.partialorder %v897_v7, 0.0 }
  0x9b   : > { %v956_v58 = vmul.f32 0.2, %v892_v54  ;;  %vm924_vm2 = vcmp.gt.f32.partialorder %v892_v54, 0.0  ;;  %v957_v60 = vmul.f32 0.2, %v893_v55  ;;  %vm925_vm3 = vcmp.gt.f32.partialorder %v893_v55, 0.0  ;;  %v827_v26 = vpop.permute.xlu1 %826 }
  0x9c   : > { %v822_v21 = vpop.permute.xlu0 %821  ;;  %v900_v35 = vadd.f32 %v7161_v48, %v827_v26  ;;  %v901_v39 = vadd.f32 %v7164_v49, %v827_v26  ;;  %v992_v42 = vsel %vm928_vm10, %v896_v3, %v960_v20  ;;  %v993_v47 = vsel %vm929_vm11, %v897_v7, %v961_v24 }
  0x9d   : > { %v988_v10 = vsel %vm924_vm2, %v892_v54, %v956_v58  ;;  %v989_v13 = vsel %vm925_vm3, %v893_v55, %v957_v60  ;;  %v898_v25 = vadd.f32 %v7161_v48, %v822_v21  ;;  %v899_v34 = vadd.f32 %v7164_v49, %v822_v21 }
  0x9e   : > { %v964_v56 = vmul.f32 0.2, %v900_v35  ;;  %vm932_vm2 = vcmp.gt.f32.partialorder %v900_v35, 0.0  ;;  %vm933_vm3 = vcmp.gt.f32.partialorder %v901_v39, 0.0 }
  0x9f   : > { %vm930_vm15 = vcmp.gt.f32.partialorder %v898_v25, 0.0  ;;  %v962_v51 = vmul.f32 0.2, %v898_v25  ;;  %v963_v54 = vmul.f32 0.2, %v899_v34  ;;  %vm931_vm1 = vcmp.gt.f32.partialorder %v899_v34, 0.0  ;;  %v837_v7 = vpop.permute.xlu1 %836 }
  0xa0   : > { %v832_v60 = vpop.permute.xlu0 %831  ;;  %v904_v20 = vadd.f32 %v7161_v48, %v837_v7 }
 0x121   : > { %v639_v59 = vpop.f32.mrb[0].mxu0 }
 0x122   : > { %v7171_v63 = vmul.f32 %v639_v59, %v639_v59  ;;  %v641_v0 = vpop.f32.mrb[1].mxu0  ;;  %v965_v59 = vmul.f32 0.2, %v901_v39 }
 0x123   : > { %v7175_v4 = vmul.f32 %v641_v0, %v641_v0  ;;  %v643_v5 = vpop.f32.mrb[2].mxu0  ;;  %v994_v0 = vsel %vm930_vm15, %v898_v25, %v962_v51  ;;  %v842_v25 = vpop.permute.xlu0 %841 }
 0x124   : > { %10118 = vst [vmem:[#allocation4_spill] sm:$0xff] %v7171_v63  ;;  %vm750_vm4 = vcmp.gt.f32.partialorder %v7171_v63, 0.0  ;;  %v7179_v8 = vmul.f32 %v643_v5, %v643_v5  ;;  %v645_v9 = vpop.f32.mrb[3].mxu0  ;;  %v995_v5 = vsel %vm931_vm1, %v899_v34, %v963_v54  ;;  %v997_v18 = vsel %vm933_vm3, %v901_v39, %v965_v59  ;;  %v847_v39 = vpop.permute.xlu1 %846 }
 0x125   : > { %10119 = vst [vmem:[#allocation5_spill] sm:$0xff] %v7175_v4  ;;  %vm751_vm5 = vcmp.gt.f32.partialorder %v7175_v4, 0.0  ;;  %v7183_v11 = vmul.f32 %v645_v9, %v645_v9  ;;  %v7187_v12 = vsel %vm750_vm4, %v986_v1, -9e+15  ;;  %v902_v1 = vadd.f32 %v7161_v48, %v832_v60 }
 0x126   : > { %10120 = vst [vmem:[#allocation6_spill] sm:$0xff] %v7179_v8  ;;  %vm752_vm6 = vcmp.gt.f32.partialorder %v7179_v8, 0.0  ;;  %v7192_v14 = vsel %vm751_vm5, %v987_v6, -9e+15  ;;  %v903_v6 = vadd.f32 %v7164_v49, %v832_v60  ;;  %v908_v51 = vadd.f32 %v7161_v48, %v847_v39 }
 0x127   : > { %10121 = vst [vmem:[#allocation7_spill] sm:$0xff] %v7183_v11  ;;  %vm753_vm8 = vcmp.gt.f32.partialorder %v7183_v11, 0.0  ;;  %v1050_v16 = vmax.f32 %v7187_v12, %v7192_v14  ;;  %v7199_v17 = vsel %vm752_vm6, %v988_v10, -9e+15  ;;  %vm934_vm15 = vcmp.gt.f32.partialorder %v902_v1, 0.0 }
 0x128   : > { %v7203_v19 = vsel %vm753_vm8, %v989_v13, -9e+15  ;;  %v996_v13 = vsel %vm932_vm2, %v900_v35, %v964_v56  ;;  %vm935_vm1 = vcmp.gt.f32.partialorder %v903_v6, 0.0  ;;  %vm936_vm2 = vcmp.gt.f32.partialorder %v904_v20, 0.0 }
 0x129   : > { %1051 = vmax.xlane.f32.xlu1 %v1050_v16  ;;  %v649_v22 = vpop.f32.mrb[4].mxu0  ;;  %v1053_v23 = vmax.f32 %v7199_v17, %v7203_v19 }
 0x12a   : > { %v7208_v29 = vmul.f32 %v649_v22, %v649_v22  ;;  %v651_v30 = vpop.f32.mrb[5].mxu0  ;;  %v905_v22 = vadd.f32 %v7164_v49, %v837_v7 }
 0x12b   : > { %v7213_v36 = vmul.f32 %v651_v30, %v651_v30  ;;  %1054 = vmax.xlane.f32.xlu0 %v1053_v23  ;;  %v653_v37 = vpop.f32.mrb[6].mxu0  ;;  %v966_v30 = vmul.f32 0.2, %v902_v1 }
 0x12c   : > { %10122 = vst [vmem:[#allocation8_spill] sm:$0xff] %v7208_v29  ;;  %vm9966_vm12 = vcmp.gt.f32.partialorder %v7208_v29, 0.0  ;;  %v7218_v40 = vmul.f32 %v653_v37, %v653_v37  ;;  %v655_v41 = vpop.f32.mrb[7].mxu0  ;;  %v967_v37 = vmul.f32 0.2, %v903_v6 }
 0x12d   : > { %10123 = vst [vmem:[#allocation9_spill] sm:$0xff] %v7213_v36  ;;  %vm9965_vm13 = vcmp.gt.f32.partialorder %v7213_v36, 0.0  ;;  %v7222_v43 = vmul.f32 %v655_v41, %v655_v41  ;;  %v7226_v45 = vsel %vm9966_vm12, %v990_v33, -9e+15  ;;  %v906_v33 = vadd.f32 %v7161_v48, %v842_v25 }
 0x12e   : > { %10124 = vst [vmem:[#allocation10_spill] sm:$0xff] %v7218_v40  ;;  %vm9980_vm14 = vcmp.gt.f32.partialorder %v7218_v40, 0.0  ;;  %v7231_v50 = vsel %vm9965_vm13, %v991_v38, -9e+15  ;;  %v907_v38 = vadd.f32 %v7164_v49, %v842_v25  ;;  %v969_v56 = vmul.f32 0.2, %v905_v22 }
 0x12f   : > { %10125 = vst [vmem:[#allocation11_spill] sm:$0xff] %v7222_v43  ;;  %vm9987_vm0 = vcmp.gt.f32.partialorder %v7222_v43, 0.0  ;;  %v1056_v52 = vmax.f32 %v7226_v45, %v7231_v50  ;;  %v7238_v53 = vsel %vm9980_vm14, %v992_v42, -9e+15  ;;  %v998_v59 = vsel %vm934_vm15, %v902_v1, %v966_v30 }
 0x130   : > { %v7242_v55 = vsel %vm9987_vm0, %v993_v47, -9e+15  ;;  %v968_v47 = vmul.f32 0.2, %v904_v20 }
 0x131   : > { %10126 = vst [vmem:[#allocation12_spill] sm:$0xff] %v7242_v55  ;;  %1057 = vmax.xlane.f32.xlu1 %v1056_v52  ;;  %v659_v57 = vpop.f32.mrb[8].mxu0  ;;  %v1059_v58 = vmax.f32 %v7238_v53, %v7242_v55 }
 0x132   : > { %v7246_v61 = vmul.f32 %v659_v57, %v659_v57  ;;  %v661_v62 = vpop.f32.mrb[9].mxu0  ;;  %v1000_v7 = vsel %vm936_vm2, %v904_v20, %v968_v47  ;;  %vm940_vm2 = vcmp.gt.f32.partialorder %v908_v51, 0.0 }
 0x133   : > { %v7250_v2 = vmul.f32 %v661_v62, %v661_v62  ;;  %1060 = vmax.xlane.f32.xlu0 %v1059_v58  ;;  %v663_v3 = vpop.f32.mrb[10].mxu0  ;;  %v999_v62 = vsel %vm935_vm1, %v903_v6, %v967_v37  ;;  %vm938_vm1 = vcmp.gt.f32.partialorder %v906_v33, 0.0 }
 0x134   : > { %10127 = vst [vmem:[#allocation13_spill] sm:$0xff] %v7246_v61  ;;  %vm9931_vm7 = vcmp.gt.f32.partialorder %v7246_v61, 0.0  ;;  %v7255_v9 = vmul.f32 %v663_v3, %v663_v3  ;;  %v665_v10 = vpop.f32.mrb[11].mxu0  ;;  %v909_v3 = vadd.f32 %v7164_v49, %v847_v39 }
 0x135   : > { %10128 = vst [vmem:[#allocation14_spill] sm:$0xff] %v7250_v2  ;;  %vm9920_vm9 = vcmp.gt.f32.partialorder %v7250_v2, 0.0  ;;  %v7259_v15 = vmul.f32 %v665_v10, %v665_v10  ;;  %v7263_v16 = vsel %vm9931_vm7, %v994_v0, -9e+15 }
 0x136   : > { %10129 = vst [vmem:[#allocation15_spill] sm:$0xff] %v7255_v9  ;;  %10131 = vst [vmem:[#allocation17_spill] sm:$0xff] %v7263_v16  ;;  %vm9919_vm10 = vcmp.gt.f32.partialorder %v7255_v9, 0.0  ;;  %v7269_v21 = vsel %vm9920_vm9, %v995_v5, -9e+15 }
 0x137   : > { %10130 = vst [vmem:[#allocation16_spill] sm:$0xff] %v7259_v15  ;;  %10132 = vst [vmem:[#allocation18_spill] sm:$0xff] %v7269_v21  ;;  %vm9918_vm11 = vcmp.gt.f32.partialorder %v7259_v15, 0.0  ;;  %v1062_v23 = vmax.f32 %v7263_v16, %v7269_v21  ;;  %v7277_v24 = vsel %vm9919_vm10, %v996_v13, -9e+15  ;;  %v852_v13 = vpop.permute.xlu0 %851 }
 0x138   : > { %10133 = vst [vmem:[#allocation19_spill] sm:$0xff] %v7277_v24  ;;  %v7281_v26 = vsel %vm9918_vm11, %v997_v18, -9e+15  ;;  %vm937_vm11 = vcmp.gt.f32.partialorder %v905_v22, 0.0  ;;  %v910_v25 = vadd.f32 %v7161_v48, %v852_v13 }
 0x139   : > { %10134 = vst [vmem:[#allocation20_spill] sm:$0xff] %v7281_v26  ;;  %1063 = vmax.xlane.f32.xlu1 %v1062_v23  ;;  %v669_v34 = vpop.f32.mrb[12].mxu0  ;;  %v1065_v35 = vmax.f32 %v7277_v24, %v7281_v26  ;;  %v1001_v10 = vsel %vm937_vm11, %v905_v22, %v969_v56  ;;  %v970_v23 = vmul.f32 0.2, %v906_v33  ;;  %v911_v22 = vadd.f32 %v7164_v49, %v852_v13 }
 0x13a   : > { %v7287_v41 = vmul.f32 %v669_v34, %v669_v34  ;;  %v671_v42 = vpop.f32.mrb[13].mxu0  ;;  %v971_v34 = vmul.f32 0.2, %v907_v38  ;;  %vm939_vm11 = vcmp.gt.f32.partialorder %v907_v38, 0.0 }
 0x13b   : > { %v7290_v52 = vmul.f32 %v671_v42, %v671_v42  ;;  %1066 = vmax.xlane.f32.xlu0 %v1065_v35  ;;  %v673_v54 = vpop.f32.mrb[14].mxu0  ;;  %v857_v35 = vpop.permute.xlu1 %856  ;;  %v972_v42 = vmul.f32 0.2, %v908_v51 }
 0x13c   : > { %10135 = vst [vmem:[#allocation21_spill] sm:$0xff] %v7287_v41  ;;  %vm9924_vm3 = vcmp.gt.f32.partialorder %v7287_v41, 0.0  ;;  %v7293_v57 = vmul.f32 %v673_v54, %v673_v54  ;;  %v675_v58 = vpop.f32.mrb[15].mxu0  ;;  %v912_v47 = vadd.f32 %v7161_v48, %v857_v35 }
 0x13d   : > { %10136 = vst [vmem:[#allocation22_spill] sm:$0xff] %v7290_v52  ;;  %vm9923_vm10 = vcmp.gt.f32.partialorder %v7290_v52, 0.0  ;;  %v7297_v60 = vmul.f32 %v675_v58, %v675_v58  ;;  %v7301_v0 = vsel %vm9924_vm3, %v998_v59, -9e+15  ;;  %v973_v58 = vmul.f32 0.2, %v909_v3 }
 0x13e   : > { %10137 = vst [vmem:[#allocation23_spill] sm:$0xff] %v7293_v57  ;;  %10139 = vst [vmem:[#allocation25_spill] sm:$0xff] %v7301_v0  ;;  %vm9922_vm9 = vcmp.gt.f32.partialorder %v7293_v57, 0.0  ;;  %v7307_v5 = vsel %vm9923_vm10, %v999_v62, -9e+15 }
 0x13f   : > { %10138 = vst [vmem:[#allocation24_spill] sm:$0xff] %v7297_v60  ;;  %10140 = vst [vmem:[#allocation26_spill] sm:$0xff] %v7307_v5  ;;  %vm9921_vm15 = vcmp.gt.f32.partialorder %v7297_v60, 0.0  ;;  %v1068_v1 = vmax.f32 %v7301_v0, %v7307_v5  ;;  %v7314_v6 = vsel %vm9922_vm9, %v1000_v7, -9e+15  ;;  %v1002_v7 = vsel %vm938_vm1, %v906_v33, %v970_v23 }
 0x140   : > { %10141 = vst [vmem:[#allocation27_spill] sm:$0xff] %v7314_v6  ;;  %v7318_v18 = vsel %vm9921_vm15, %v1001_v10, -9e+15  ;;  %vm941_vm9 = vcmp.gt.f32.partialorder %v909_v3, 0.0  ;;  %v1003_v10 = vsel %vm939_vm11, %v907_v38, %v971_v34  ;;  %vm942_vm11 = vcmp.gt.f32.partialorder %v910_v25, 0.0 }
 0x141   : > { %10142 = vst [vmem:[#allocation28_spill] sm:$0xff] %v7318_v18  ;;  %1069 = vmax.xlane.f32.xlu1 %v1068_v1  ;;  %v679_v20 = vpop.f32.mrb[16].mxu0  ;;  %v1071_v30 = vmax.f32 %v7314_v6, %v7318_v18  ;;  %v1005_v23 = vsel %vm941_vm9, %v909_v3, %v973_v58  ;;  %vm943_vm9 = vcmp.gt.f32.partialorder %v911_v22, 0.0  ;;  %v976_v3 = vmul.f32 0.2, %v912_v47 }
 0x142   : > { %v7324_v37 = vmul.f32 %v679_v20, %v679_v20  ;;  %v681_v39 = vpop.f32.mrb[17].mxu0  ;;  %v913_v20 = vadd.f32 %v7164_v49, %v857_v35  ;;  %v974_v35 = vmul.f32 0.2, %v910_v25 }
 0x143   : > { %v7327_v54 = vmul.f32 %v681_v39, %v681_v39  ;;  %1072 = vmax.xlane.f32.xlu0 %v1071_v30  ;;  %v683_v56 = vpop.f32.mrb[18].mxu0  ;;  %v1004_v39 = vsel %vm940_vm2, %v908_v51, %v972_v42  ;;  %v975_v42 = vmul.f32 0.2, %v911_v22  ;;  %vm944_vm2 = vcmp.gt.f32.partialorder %v912_v47, 0.0 }
 0x144   : > { %10143 = vst [vmem:[#allocation29_spill] sm:$0xff] %v7324_v37  ;;  %vm9927_vm15 = vcmp.gt.f32.partialorder %v7324_v37, 0.0  ;;  %v7330_v59 = vmul.f32 %v683_v56, %v683_v56  ;;  %v685_v62 = vpop.f32.mrb[19].mxu0  ;;  %v1006_v18 = vsel %vm942_vm11, %v910_v25, %v974_v35 }
 0x145   : > { %10144 = vst [vmem:[#allocation30_spill] sm:$0xff] %v7327_v54  ;;  %vm9925_vm10 = vcmp.gt.f32.partialorder %v7327_v54, 0.0  ;;  %v7334_v1 = vmul.f32 %v685_v62, %v685_v62  ;;  %v7338_v13 = vsel %vm9927_vm15, %v1002_v7, -9e+15  ;;  %vm945_vm15 = vcmp.gt.f32.partialorder %v913_v20, 0.0 }
 0x146   : > { %10145 = vst [vmem:[#allocation31_spill] sm:$0xff] %v7330_v59  ;;  %10147 = vst [vmem:[#allocation33_spill] sm:$0xff] %v7338_v13  ;;  %vm9930_vm3 = vcmp.gt.f32.partialorder %v7330_v59, 0.0  ;;  %v7344_v30 = vsel %vm9925_vm10, %v1003_v10, -9e+15 }
 0x147   : > { %10146 = vst [vmem:[#allocation32_spill] sm:$0xff] %v7334_v1  ;;  %10148 = vst [vmem:[#allocation34_spill] sm:$0xff] %v7344_v30  ;;  %vm9928_vm1 = vcmp.gt.f32.partialorder %v7334_v1, 0.0  ;;  %v1074_v33 = vmax.f32 %v7338_v13, %v7344_v30  ;;  %v7351_v38 = vsel %vm9930_vm3, %v1004_v39, -9e+15 }
 0x148   : > { %10149 = vst [vmem:[#allocation35_spill] sm:$0xff] %v7351_v38  ;;  %v7355_v34 = vsel %vm9928_vm1, %v1005_v23, -9e+15  ;;  %v977_v39 = vmul.f32 0.2, %v913_v20 }
 0x149   : > { %10150 = vst [vmem:[#allocation36_spill] sm:$0xff] %v7355_v34  ;;  %1075 = vmax.xlane.f32.xlu1 %v1074_v33  ;;  %v689_v56 = vpop.f32.mrb[20].mxu0  ;;  %v1077_v51 = vmax.f32 %v7351_v38, %v7355_v34  ;;  %v1007_v34 = vsel %vm943_vm9, %v911_v22, %v975_v42 }
 0x14a   : > { %v7359_v62 = vmul.f32 %v689_v56, %v689_v56  ;;  %v691_v7 = vpop.f32.mrb[21].mxu0  ;;  %v1009_v35 = vsel %vm945_vm15, %v913_v20, %v977_v39 }
 0x14b   : > { %v7361_v58 = vmul.f32 %v691_v7, %v691_v7  ;;  %1078 = vmax.xlane.f32.xlu0 %v1077_v51  ;;  %v693_v10 = vpop.f32.mrb[22].mxu0 }
 0x14c   : > { %10151 = vst [vmem:[#allocation37_spill] sm:$0xff] %v7359_v62  ;;  %vm9959_vm10 = vcmp.gt.f32.partialorder %v7359_v62, 0.0  ;;  %v7364_v33 = vmul.f32 %v693_v10, %v693_v10  ;;  %v695_v23 = vpop.f32.mrb[23].mxu0  ;;  %v1008_v10 = vsel %vm944_vm2, %v912_v47, %v976_v3 }
 0x14d   : > { %10152 = vst [vmem:[#allocation38_spill] sm:$0xff] %v7361_v58  ;;  %vm9958_vm1 = vcmp.gt.f32.partialorder %v7361_v58, 0.0  ;;  %v7367_v56 = vmul.f32 %v695_v23, %v695_v23  ;;  %v7371_v7 = vsel %vm9959_vm10, %v1006_v18, -9e+15 }
 0x14e   : > { %10153 = vst [vmem:[#allocation39_spill] sm:$0xff] %v7364_v33  ;;  %10155 = vst [vmem:[#allocation41_spill] sm:$0xff] %v7371_v7  ;;  %vm9964_vm3 = vcmp.gt.f32.partialorder %v7364_v33, 0.0  ;;  %v7376_v51 = vsel %vm9958_vm1, %v1007_v34, -9e+15 }
 0x14f   : > { %10154 = vst [vmem:[#allocation40_spill] sm:$0xff] %v7367_v56  ;;  %10156 = vst [vmem:[#allocation42_spill] sm:$0xff] %v7376_v51  ;;  %vm9963_vm7 = vcmp.gt.f32.partialorder %v7367_v56, 0.0  ;;  %v1080_v25 = vmax.f32 %v7371_v7, %v7376_v51  ;;  %v7383_v22 = vsel %vm9964_vm3, %v1008_v10, -9e+15 }
 0x150   : > { %10157 = vst [vmem:[#allocation43_spill] sm:$0xff] %v7383_v22  ;;  %v7387_v18 = vsel %vm9963_vm7, %v1009_v35, -9e+15  ;;  %v862_v35 = vpop.permute.xlu0 %861 }
 0x151   : > { %10158 = vst [vmem:[#allocation44_spill] sm:$0xff] %v7387_v18  ;;  %1081 = vmax.xlane.f32.xlu1 %v1080_v25  ;;  %v699_v42 = vpop.f32.mrb[24].mxu0  ;;  %v1083_v34 = vmax.f32 %v7383_v22, %v7387_v18  ;;  %v6981_v25 = vmov 2   ;;  %v914_v22 = vadd.f32 %v7161_v48, %v862_v35  ;;  %v915_v51 = vadd.f32 %v7164_v49, %v862_v35 }
 0x152   : > { %v701_v47 = vpop.f32.mrb[25].mxu0  ;;  %v7428_v55 = vmul.f32 %v699_v42, %v699_v42 }
 0x153   : > { %1084 = vmax.xlane.f32.xlu0 %v1083_v34  ;;  %v703_v3 = vpop.f32.mrb[26].mxu0  ;;  %v867_v34 = vpop.permute.xlu1 %866  ;;  %v979_v58 = vmul.f32 0.2, %v915_v51  ;;  %vm946_vm15 = vcmp.gt.f32.partialorder %v914_v22, 0.0  ;;  %vm947_vm11 = vcmp.gt.f32.partialorder %v915_v51, 0.0  ;;  %v7430_v60 = vmul.f32 %v701_v47, %v701_v47 }
 0x154   : > { %v705_v23 = vpop.f32.mrb[27].mxu0  ;;  %v872_v18 = vpop.permute.xlu0 %871  ;;  %10159 = vst [vmem:[#allocation45_spill] sm:$0xff] %v7428_v55 }
 0x155   : > { %v918_v62 = vadd.f32 %v7161_v48, %v872_v18  ;;  %v919_v35 = vadd.f32 %v7164_v49, %v872_v18  ;;  %v1011_v18 = vsel %vm947_vm11, %v915_v51, %v979_v58  ;;  %10160 = vst [vmem:[#allocation46_spill] sm:$0xff] %v7430_v60  ;;  %vm9967_vm7 = vcmp.gt.f32.partialorder %v7430_v60, 0.0 }
 0x157   : > { %v877_v7 = vpop.permute.xlu1 %876  ;;  %v982_v0 = vmul.f32 0.2, %v918_v62  ;;  %v983_v21 = vmul.f32 0.2, %v919_v35  ;;  %vm950_vm1 = vcmp.gt.f32.partialorder %v918_v62, 0.0  ;;  %vm951_vm10 = vcmp.gt.f32.partialorder %v919_v35, 0.0 }
 0x158   : > { %v1655_v30 = vpop.permute.xlu0 %1654  ;;  %v920_v13 = vadd.f32 %v7161_v48, %v877_v7 }
 0x159   : > { %v7391_v38 = vpop.f32.mrb[28].mxu0  ;;  %v1015_v42 = vsel %vm951_vm10, %v919_v35, %v983_v21  ;;  %v7475_v35 = vsel %vm9967_vm7, %v1011_v18, -9e+15 }
 0x15a   : > { %v7393_v20 = vpop.f32.mrb[29].mxu0 }
 0x15b   : > { %v7395_v39 = vpop.f32.mrb[30].mxu0  ;;  %v1659_v26 = vpop.permute.xlu1 %1658 }
 0x15c   : > { %v7397_v10 = vpop.f32.mrb[31].mxu0 }
 0x162   : > { %1706 = vperm.xlu1 %6286, %v7124_v28   ;;  %v5419_v28 = vld [vmem:[%s9911_s4 + $0x1] ss:$4 sm:$0x3] }
 0x163   : > { %v7411_v6 = vrot.slane %v5419_v28, %v7153_v44 }
 0x165   : > { %v1730_v37 = vadd.f32 %v7411_v6, %v1659_v26 }
 0x166   : > { %1714 = vperm.xlu1 %6286, %v7137_v32   ;;  %v916_v32 = vadd.f32 %v7161_v48, %v867_v34  ;;  %v1667_v48 = vpop.permute.xlu0 %1666 }
 0x167   : > { %v7434_v58 = vadd.f32 %v7411_v6, %v1667_v48 }
 0x168   : > { %v980_v24 = vmul.f32 0.2, %v916_v32  ;;  %vm948_vm9 = vcmp.gt.f32.partialorder %v916_v32, 0.0 }
 0x169   : > { %1702 = vperm.xlu0 %6285, %v7121_v27   ;;  %v917_v27 = vadd.f32 %v7164_v49, %v867_v34  ;;  %v921_v34 = vadd.f32 %v7164_v49, %v877_v7  ;;  %v984_v49 = vmul.f32 0.2, %v920_v13  ;;  %v1663_v7 = vpop.permute.xlu1 %1662  ;;  %v1798_v60 = vmul.f32 0.2, %v7434_v58 }
 0x16a   : > { %6287 = vset.pattern.permute.xlu1 %v6981_v25  ;;  %v1012_v16 = vsel %vm948_vm9, %v916_v32, %v980_v24  ;;  %v7439_v24 = vmul.f32 %v703_v3, %v703_v3  ;;  %v1014_v32 = vsel %vm950_vm1, %v918_v62, %v982_v0  ;;  %v7444_v47 = vadd.f32 %v7411_v6, %v1663_v7  ;;  %v1671_v21 = vpop.permute.xlu0 %1670 }
 0x16b   : > { %vm949_vm2 = vcmp.gt.f32.partialorder %v917_v27, 0.0  ;;  %v981_v44 = vmul.f32 0.2, %v917_v27  ;;  %vm953_vm11 = vcmp.gt.f32.partialorder %v921_v34, 0.0  ;;  %v985_v51 = vmul.f32 0.2, %v921_v34 }
 0x16c   : > { %10161 = vst [vmem:[#allocation47_spill] sm:$0xff] %v7439_v24  ;;  %vm1762_vm9 = vcmp.gt.f32.partialorder %v1730_v37, 0.0  ;;  %v7453_v3 = vmul.f32 %v7391_v38, %v7391_v38  ;;  %v7457_v0 = vmul.f32 %v7393_v20, %v7393_v20  ;;  %vm10104_vm1 = vcmp.gt.f32.partialorder %v7439_v24, 0.0 }
 0x16d   : > { %1710 = vperm.xlu0 %6285, %v7133_v31   ;;  %v7414_v31 = vrot.slane %v5419_v28, %v7158_v46  ;;  %v7421_v28 = vadd.f32 %v7411_v6, %v1655_v30  ;;  %v1017_v62 = vsel %vm953_vm11, %v921_v34, %v985_v51  ;;  %v7467_v38 = vmul.f32 %v7397_v10, %v7397_v10  ;;  %v7502_v51 = vpop.permute.xlu1 %1674 }
 0x16e   : > { %10163 = vst [vmem:[#allocation49_spill] sm:$0xff] %v7453_v3  ;;  %10164 = vst [vmem:[#allocation50_spill] sm:$0xff] %v7457_v0  ;;  %v7480_v34 = vadd.f32 %v7411_v6, %v1671_v21  ;;  %vm10113_vm13 = vcmp.gt.f32.partialorder %v7453_v3, 0.0  ;;  %vm10112_vm12 = vcmp.gt.f32.partialorder %v7457_v0, 0.0  ;;  %v7490_v10 = vsel %vm10104_vm1, %v1012_v16, -9e+15 }
 0x16f   : > { %v7424_v46 = vadd.f32 %v7414_v31, %v1655_v30  ;;  %v1731_v5 = vadd.f32 %v7414_v31, %v1659_v26  ;;  %v1013_v30 = vsel %vm949_vm2, %v917_v27, %v981_v44  ;;  %v7437_v26 = vadd.f32 %v7414_v31, %v1667_v48  ;;  %10166 = vst [vmem:[#allocation52_spill] sm:$0xff] %v7467_v38  ;;  %v10240_v3 = vld [vmem:[#allocation41_spill] sm:$0xff] }
 0x170   : > { %v7447_v44 = vadd.f32 %v7414_v31, %v1663_v7  ;;  %vm9968_vm2 = vcmp.gt.f32.partialorder %v7428_v55, 0.0  ;;  %vm1760_vm11 = vcmp.gt.f32.partialorder %v7421_v28, 0.0  ;;  %v7506_v16 = vsel %vm10113_vm13, %v1014_v32, -9e+15 }
 0x171   : > { %6288 = vset.pattern.permute.xlu0 %v6981_v25  ;;  %v978_v25 = vmul.f32 0.2, %v914_v22  ;;  %vm1763_vm10 = vcmp.gt.f32.partialorder %v1731_v5, 0.0  ;;  %vm1761_vm3 = vcmp.gt.f32.partialorder %v7424_v46, 0.0  ;;  %v1793_v7 = vmul.f32 0.2, %v7424_v46 }
 0x172   : > { %v1799_v32 = vmul.f32 0.2, %v7437_v26 }
 0x173   : > { %v1010_v54 = vsel %vm946_vm15, %v914_v22, %v978_v25  ;;  %vm952_vm15 = vcmp.gt.f32.partialorder %v920_v13, 0.0  ;;  %v7441_v22 = vmul.f32 %v705_v23, %v705_v23  ;;  %v1794_v23 = vmul.f32 0.2, %v1730_v37 }
 0x174   : > { %v1016_v27 = vsel %vm952_vm15, %v920_v13, %v984_v49  ;;  %v1795_v25 = vmul.f32 0.2, %v1731_v5  ;;  %v7463_v13 = vmul.f32 %v7395_v39, %v7395_v39  ;;  %v7471_v20 = vsel %vm9968_vm2, %v1010_v54, -9e+15 }
 0x175   : > { %10162 = vst [vmem:[#allocation48_spill] sm:$0xff] %v7441_v22  ;;  %vm9969_vm15 = vcmp.gt.f32.partialorder %v7441_v22, 0.0  ;;  %v1792_v39 = vmul.f32 0.2, %v7421_v28  ;;  %v7486_v54 = vadd.f32 %v7414_v31, %v1671_v21  ;;  %v1826_v48 = vsel %vm1762_vm9, %v1730_v37, %v1794_v23  ;;  %v1679_v21 = vpop.permute.xlu0 %1678 }
 0x176   : > { %10165 = vst [vmem:[#allocation51_spill] sm:$0xff] %v7463_v13  ;;  %v7494_v18 = vsel %vm9969_vm15, %v1013_v30, -9e+15  ;;  %vm10102_vm7 = vcmp.gt.f32.partialorder %v7463_v13, 0.0  ;;  %vm10101_vm2 = vcmp.gt.f32.partialorder %v7467_v38, 0.0  ;;  %v1086_v49 = vmax.f32 %v7471_v20, %v7475_v35  ;;  %v7539_v38 = vpop.permute.xlu1 %1682 }
 0x177   : > { %v7510_v30 = vsel %vm10112_vm12, %v1015_v42, -9e+15  ;;  %v1827_v37 = vsel %vm1763_vm10, %v1731_v5, %v1795_v25  ;;  %vm1766_vm9 = vcmp.gt.f32.partialorder %v7434_v58, 0.0  ;;  %v1089_v23 = vmax.f32 %v7490_v10, %v7494_v18 }
 0x178   : > { %vm1767_vm15 = vcmp.gt.f32.partialorder %v7437_v26, 0.0  ;;  %v7521_v55 = vsel %vm10102_vm7, %v1016_v27, -9e+15  ;;  %v7525_v5 = vsel %vm10101_vm2, %v1017_v62, -9e+15  ;;  %v1824_v42 = vsel %vm1760_vm11, %v7421_v28, %v1792_v39 }
 0x179   : > { %v1796_v25 = vmul.f32 0.2, %v7444_v47  ;;  %v1825_v13 = vsel %vm1761_vm3, %v7424_v46, %v1793_v7  ;;  %vm1764_vm10 = vcmp.gt.f32.partialorder %v7444_v47, 0.0  ;;  %v1797_v27 = vmul.f32 0.2, %v7447_v44 }
 0x17a   : > { %v1740_v62 = vadd.f32 %v7411_v6, %v1679_v21  ;;  %v7543_v28 = vsel %vm752_vm6, %v1826_v48, -9e+15  ;;  %v7547_v39 = vsel %vm753_vm8, %v1827_v37, -9e+15  ;;  %vm1765_vm11 = vcmp.gt.f32.partialorder %v7447_v44, 0.0 }
 0x17b   : > { %v1741_v46 = vadd.f32 %v7414_v31, %v1679_v21  ;;  %v1095_v7 = vmax.f32 %v7521_v55, %v7525_v5  ;;  %v1831_v48 = vsel %vm1767_vm15, %v7437_v26, %v1799_v32  ;;  %v7561_v37 = vsel %vm750_vm4, %v1824_v42, -9e+15  ;;  %v1691_v32 = vpop.permute.xlu1 %1690 }
 0x17c   : > { %v7565_v11 = vsel %vm751_vm5, %v1825_v13, -9e+15  ;;  %v1828_v21 = vsel %vm1764_vm10, %v7444_v47, %v1796_v25  ;;  %vm1768_vm3 = vcmp.gt.f32.partialorder %v7480_v34, 0.0  ;;  %v1801_v26 = vmul.f32 0.2, %v7486_v54 }
 0x17d   : > { %v7580_v47 = vsel %vm9987_vm0, %v1831_v48, -9e+15  ;;  %vm1769_vm15 = vcmp.gt.f32.partialorder %v7486_v54, 0.0  ;;  %v1888_v13 = vmax.f32 %v7561_v37, %v7565_v11  ;;  %vm1773_vm10 = vcmp.gt.f32.partialorder %v1741_v46, 0.0 }
 0x17e   : > { %v1746_v48 = vadd.f32 %v7411_v6, %v1691_v32  ;;  %v1833_v40 = vsel %vm1769_vm15, %v7486_v54, %v1801_v26  ;;  %vm10177_vm0 = vcmp.gt.f32.partialorder %v7330_v59, 0.0 }
 0x180   : > { %vm1778_vm15 = vcmp.gt.f32.partialorder %v1746_v48, 0.0 }
 0x18a   : > { %1087 = vmax.xlane.f32.xlu1 %v1086_v49  ;;  %v1092_v49 = vmax.f32 %v7506_v16, %v7510_v30 }
 0x18c   : > { %1090 = vmax.xlane.f32.xlu0 %v1089_v23  ;;  %v1830_v23 = vsel %vm1766_vm9, %v7434_v58, %v1798_v60  ;;  %v1891_v60 = vmax.f32 %v7543_v28, %v7547_v39  ;;  %v1829_v58 = vsel %vm1765_vm11, %v7447_v44, %v1797_v27  ;;  %vm1772_vm9 = vcmp.gt.f32.partialorder %v1740_v62, 0.0 }
 0x18d   : > { %v7576_v42 = vsel %vm9980_vm14, %v1830_v23, -9e+15  ;;  %v1804_v44 = vmul.f32 0.2, %v1740_v62  ;;  %vm10167_vm11 = vcmp.gt.f32.partialorder %v7208_v29, 0.0  ;;  %vm10168_vm14 = vcmp.gt.f32.partialorder %v7213_v36, 0.0  ;;  %v1699_v29 = vpop.permute.xlu1 %1698 }
 0x18e   : > { %1093 = vmax.xlane.f32.xlu1 %v1092_v49  ;;  %v1800_v49 = vmul.f32 0.2, %v7480_v34  ;;  %v7587_v25 = vsel %vm10167_vm11, %v1828_v21, -9e+15  ;;  %v7591_v27 = vsel %vm10168_vm14, %v1829_v58, -9e+15  ;;  %v1897_v43 = vmax.f32 %v7576_v42, %v7580_v47 }
 0x18f   : > { %v1805_v23 = vmul.f32 0.2, %v1741_v46  ;;  %v1894_v21 = vmax.f32 %v7587_v25, %v7591_v27  ;;  %vm10169_vm14 = vcmp.gt.f32.partialorder %v7246_v61, 0.0  ;;  %v1751_v54 = vadd.f32 %v7414_v31, %v1699_v29 }
 0x190   : > { %1096 = vmax.xlane.f32.xlu0 %v1095_v7  ;;  %v1832_v7 = vsel %vm1768_vm3, %v7480_v34, %v1800_v49  ;;  %vm10171_vm3 = vcmp.gt.f32.partialorder %v7250_v2, 0.0  ;;  %v1836_v49 = vsel %vm1772_vm9, %v1740_v62, %v1804_v44  ;;  %vm10175_vm9 = vcmp.gt.f32.partialorder %v7290_v52, 0.0 }
 0x191   : > { %v7603_v58 = vsel %vm10169_vm14, %v1832_v7, -9e+15  ;;  %v7607_v34 = vsel %vm10171_vm3, %v1833_v40, -9e+15  ;;  %vm10173_vm14 = vcmp.gt.f32.partialorder %v7287_v41, 0.0  ;;  %vm1783_vm3 = vcmp.gt.f32.partialorder %v1751_v54, 0.0 }
 0x192   : > { %1892 = vmax.xlane.f32.xlu1 %v1891_v60  ;;  %v1747_v60 = vadd.f32 %v7414_v31, %v1691_v32  ;;  %10170 = vst [vmem:[#allocation53_spill] sm:$0xff] %v7603_v58  ;;  %10172 = vst [vmem:[#allocation54_spill] sm:$0xff] %v7607_v34  ;;  %v1837_v32 = vsel %vm1773_vm10, %v1741_v46, %v1805_v23  ;;  %v1900_v7 = vmax.f32 %v7603_v58, %v7607_v34 }
 0x193   : > { %v7617_v40 = vsel %vm10173_vm14, %v1836_v49, -9e+15  ;;  %v7621_v62 = vsel %vm10175_vm9, %v1837_v32, -9e+15  ;;  %v1815_v23 = vmul.f32 0.2, %v1751_v54 }
 0x194   : > { %1889 = vmax.xlane.f32.xlu0 %v1888_v13  ;;  %v1750_v13 = vadd.f32 %v7411_v6, %v1699_v29  ;;  %v1811_v26 = vmul.f32 0.2, %v1747_v60  ;;  %vm1779_vm11 = vcmp.gt.f32.partialorder %v1747_v60, 0.0  ;;  %10174 = vst [vmem:[#allocation55_spill] sm:$0xff] %v7617_v40  ;;  %10176 = vst [vmem:[#allocation56_spill] sm:$0xff] %v7621_v62  ;;  %vm10179_vm14 = vcmp.gt.f32.partialorder %v7334_v1, 0.0 }
 0x195   : > { %v10209_v1 = vld [vmem:[#allocation19_spill] sm:$0xff] }
 0x196   : > { %1898 = vmax.xlane.f32.xlu1 %v1897_v43  ;;  %v1810_v43 = vmul.f32 0.2, %v1746_v48  ;;  %v1843_v44 = vsel %vm1779_vm11, %v1747_v60, %v1811_v26  ;;  %v1814_v29 = vmul.f32 0.2, %v1750_v13  ;;  %vm1782_vm10 = vcmp.gt.f32.partialorder %v1750_v13, 0.0 }
 0x197   : > { %v7631_v32 = vsel %vm10179_vm14, %v1843_v44, -9e+15  ;;  %v1847_v60 = vsel %vm1783_vm3, %v1751_v54, %v1815_v23  ;;  %v6940_v54 = vld [vmem:[%s7088_s19 + $0x10] sm:$0xff]  ;;  %v6941_v44 = vld [vmem:[%s7088_s19 + $0x18] sm:$0xff]  ;;  %vm10185_vm14 = vcmp.gt.f32.partialorder %v7255_v9, 0.0 }
 0x198   : > { %1895 = vmax.xlane.f32.xlu0 %v1894_v21  ;;  %v1842_v46 = vsel %vm1778_vm15, %v1746_v48, %v1810_v43  ;;  %v1906_v21 = vmax.f32 %v7617_v40, %v7621_v62  ;;  %10180 = vst [vmem:[#allocation58_spill] sm:$0xff] %v7631_v32  ;;  %v1846_v48 = vsel %vm1782_vm10, %v1750_v13, %v1814_v29  ;;  %vm10181_vm15 = vcmp.gt.f32.partialorder %v7364_v33, 0.0  ;;  %v6939_v13 = vld [vmem:[%s7088_s19 + $0x8] sm:$0xff]  ;;  %v6942_v29 = vld [vmem:[%s7088_s19 + $0x30] sm:$0xff]  ;;  %v6943_v23 = vld [vmem:[%s7088_s19 + $0x38] sm:$0xff] }
 0x199   : > { %v7627_v49 = vsel %vm10177_vm0, %v1842_v46, -9e+15  ;;  %v7637_v26 = vsel %vm10181_vm15, %v1846_v48, -9e+15  ;;  %vm10183_vm0 = vcmp.gt.f32.partialorder %v7367_v56, 0.0  ;;  %v6945_v48 = vld [vmem:[%s7088_s19 + $0x20] sm:$0xff] }
 0x19a   : > { %10178 = vst [vmem:[#allocation57_spill] sm:$0xff] %v7627_v49  ;;  %v1915_v43 = vmax.f32 %v7627_v49, %v7631_v32  ;;  %10182 = vst [vmem:[#allocation59_spill] sm:$0xff] %v7637_v26  ;;  %vm10187_vm15 = vcmp.gt.f32.partialorder %v7259_v15, 0.0 }
 0x19c   : > { %1901 = vmax.xlane.f32.xlu0 %v1900_v7  ;;  %v7641_v7 = vsel %vm10183_vm0, %v1847_v60, -9e+15  ;;  %v1687_v60 = vpop.permute.xlu0 %1686  ;;  %vm10189_vm0 = vcmp.gt.f32.partialorder %v7293_v57, 0.0 }
 0x19d   : > { %10184 = vst [vmem:[#allocation60_spill] sm:$0xff] %v7641_v7  ;;  %v1921_v46 = vmax.f32 %v7637_v26, %v7641_v7  ;;  %v6948_v26 = vld [vmem:[%s7088_s19 + $0x48] sm:$0xff] }
 0x1a0   : > { %1907 = vmax.xlane.f32.xlu0 %v1906_v21  ;;  %v6944_v21 = vld [vmem:[%s7088_s19] sm:$0xff]  ;;  %v7653_v7 = vpop.permute.xlu0 %1694 }
 0x1a4   : > { %1916 = vmax.xlane.f32.xlu0 %v1915_v43  ;;  %v6946_v43 = vld [vmem:[%s7088_s19 + $0x28] sm:$0xff] }
 0x1a7   : > { %2786 = vperm.xlu1 %6287, %v6939_v13   ;;  %v1738_v13 = vadd.f32 %v7411_v6, %v7502_v51 }
 0x1a8   : > { %1922 = vmax.xlane.f32.xlu0 %v1921_v46 }
 0x1a9   : > { %v1802_v32 = vmul.f32 0.2, %v1738_v13  ;;  %vm1770_vm11 = vcmp.gt.f32.partialorder %v1738_v13, 0.0 }
 0x1ab   : > { %2790 = vperm.xlu1 %6287, %v6940_v54   ;;  %v1739_v54 = vadd.f32 %v7414_v31, %v7502_v51  ;;  %v1834_v40 = vsel %vm1770_vm11, %v1738_v13, %v1802_v32 }
 0x1ad   : > { %v1803_v49 = vmul.f32 0.2, %v1739_v54  ;;  %vm1771_vm9 = vcmp.gt.f32.partialorder %v1739_v54, 0.0 }
 0x1af   : > { %2794 = vperm.xlu1 %6287, %v6941_v44   ;;  %v6947_v44 = vld [vmem:[%s7088_s19 + $0x40] sm:$0xff]  ;;  %v1835_v34 = vsel %vm1771_vm9, %v1739_v54, %v1803_v49 }
 0x1b3   : > { %2806 = vperm.xlu1 %6287, %v6942_v29  }
 0x1b6   : > { %v1052_v46 = vpop.xlane.xlu1 %1051 }
 0x1b7   : > { %2810 = vperm.xlu1 %6287, %v6943_v23   ;;  %v1098_v29 = vsub.f32 %v7187_v12, %v1052_v46  ;;  %v1099_v23 = vsub.f32 %v7192_v14, %v1052_v46  ;;  %v6949_v46 = vld [vmem:[%s7088_s19 + $0x58] sm:$0xff] }
 0x1b9   : > { %v1130_v62 = vmul.f32 1.442695, %v1098_v29  ;;  %v1132_v12 = vmul.f32 1.442695, %v1099_v23 }
 0x1bb   : > { %6427 = vpow2.f32 %v1130_v62  ;;  %v7679_v62 = vsel %vm10187_vm15, %v1835_v34, -9e+15 }
 0x1bc   : > { %6429 = vpow2.f32 %v1132_v12  ;;  %10188 = vst [vmem:[#allocation62_spill] sm:$0xff] %v7679_v62  ;;  %v6951_v12 = vld [vmem:[%s7088_s19 + $0x70] sm:$0xff] }
 0x1be   : > { %2782 = vperm.xlu0 %6288, %v6944_v21   ;;  %v1055_v21 = vpop.xlane.xlu0 %1054  ;;  %v1058_v14 = vpop.xlane.xlu1 %1057 }
 0x1bf   : > { %v1100_v51 = vsub.f32 %v7199_v17, %v1055_v21  ;;  %v6950_v17 = vld [vmem:[%s7088_s19 + $0x68] sm:$0xff]  ;;  %v1102_v49 = vsub.f32 %v7226_v45, %v1058_v14  ;;  %v1103_v54 = vsub.f32 %v7231_v50, %v1058_v14  ;;  %v10191_v45 = vld [vmem:[#allocation24_spill] sm:$0xff]  ;;  %v1744_v50 = vadd.f32 %v7411_v6, %v1687_v60 }
 0x1c0   : > { %vm10192_vm11 = vcmp.gt.f32.partialorder %v10191_v45, 0.0 }
 0x1c1   : > { %v1140_v14 = vmul.f32 1.442695, %v1103_v54  ;;  %vm1776_vm9 = vcmp.gt.f32.partialorder %v1744_v50, 0.0 }
 0x1c2   : > { %2798 = vperm.xlu0 %6288, %v6945_v48   ;;  %v1742_v48 = vadd.f32 %v7411_v6, %v7539_v38  ;;  %v1061_v29 = vpop.xlane.xlu0 %1060 }
 0x1c4   : > { %v1806_v58 = vmul.f32 0.2, %v1742_v48  ;;  %vm1774_vm10 = vcmp.gt.f32.partialorder %v1742_v48, 0.0 }
 0x1c6   : > { %2802 = vperm.xlu0 %6288, %v6946_v43   ;;  %v1743_v43 = vadd.f32 %v7414_v31, %v7539_v38  ;;  %v1134_v38 = vmul.f32 1.442695, %v1100_v51  ;;  %v7670_v33 = vpop.xlane.xlu1 %1063  ;;  %v1838_v32 = vsel %vm1774_vm10, %v1742_v48, %v1806_v58  ;;  %v1104_v51 = vsub.f32 %v7238_v53, %v1061_v29 }
 0x1c7   : > { %v7693_v34 = vsel %vm10189_vm0, %v1838_v32, -9e+15  ;;  %v1745_v58 = vadd.f32 %v7414_v31, %v1687_v60  ;;  %v1138_v48 = vmul.f32 1.442695, %v1102_v49  ;;  %v1808_v60 = vmul.f32 0.2, %v1744_v50 }
 0x1c8   : > { %vm1775_vm3 = vcmp.gt.f32.partialorder %v1743_v43, 0.0  ;;  %6431 = vpow2.f32 %v1134_v38  ;;  %v7683_v23 = vpop.xlane.xlu0 %1066  ;;  %10190 = vst [vmem:[#allocation63_spill] sm:$0xff] %v7693_v34  ;;  %v7706_v38 = vpop.eup %6427  ;;  %v1142_v32 = vmul.f32 1.442695, %v1104_v51  ;;  %v10199_v51 = vld [vmem:[#allocation17_spill] sm:$0xff] }
 0x1c9   : > { %v1809_v49 = vmul.f32 0.2, %v1745_v58  ;;  %vm1777_vm10 = vcmp.gt.f32.partialorder %v1745_v58, 0.0 }
 0x1ca   : > { %2814 = vperm.xlu0 %6288, %v6947_v44   ;;  %v1101_v44 = vsub.f32 %v7203_v19, %v1055_v21  ;;  %v7675_v19 = vsel %vm10185_vm14, %v1834_v40, -9e+15 }
 0x1cb   : > { %10186 = vst [vmem:[#allocation61_spill] sm:$0xff] %v7675_v19  ;;  %v1903_v40 = vmax.f32 %v7675_v19, %v7679_v62  ;;  %v1749_v19 = vadd.f32 %v7414_v31, %v7653_v7 }
 0x1cc   : > { %v1136_v56 = vmul.f32 1.442695, %v1101_v44 }
 0x1cd   : > { %vm1781_vm0 = vcmp.gt.f32.partialorder %v1749_v19, 0.0 }
 0x1ce   : > { %2818 = vperm.xlu0 %6288, %v6948_v26   ;;  %v1807_v26 = vmul.f32 0.2, %v1743_v43  ;;  %6433 = vpow2.f32 %v1136_v56  ;;  %v7685_v21 = vpop.xlane.xlu1 %1069 }
 0x1cf   : > { %6435 = vpow2.f32 %v1138_v48  ;;  %v1106_v48 = vsub.f32 %v10199_v51, %v7670_v33  ;;  %v10206_v51 = vld [vmem:[#allocation30_spill] sm:$0xff] }
 0x1d0   : > { %v1839_v13 = vsel %vm1775_vm3, %v1743_v43, %v1807_v26  ;;  %v10194_v43 = vld [vmem:[#allocation12_spill] sm:$0xff]  ;;  %v7702_v53 = vpop.xlane.xlu0 %1072  ;;  %6437 = vpow2.f32 %v1140_v14  ;;  %v1841_v14 = vsel %vm1777_vm10, %v1745_v58, %v1809_v49  ;;  %vm10207_vm14 = vcmp.gt.f32.partialorder %v10206_v51, 0.0 }
 0x1d1   : > { %v7697_v56 = vsel %vm10192_vm11, %v1839_v13, -9e+15  ;;  %v1105_v44 = vsub.f32 %v10194_v43, %v1061_v29  ;;  %10195 = vst [vmem:[#allocation12_spill] sm:$0xff] %v7706_v38  ;;  %6439 = vpow2.f32 %v1142_v32  ;;  %v6316_v32 = vld [vmem:[%s9909_s2] ss:$16 sps:$4 sm:$0xff]  }
 0x1d2   : > { %2826 = vperm.xlu0 %6288, %v6949_v46   ;;  %10193 = vst [vmem:[#allocation64_spill] sm:$0xff] %v7697_v56  ;;  %v1909_v26 = vmax.f32 %v7693_v34, %v7697_v56  ;;  %v10200_v56 = vld [vmem:[#allocation18_spill] sm:$0xff] }
 0x1d3   : > { %v1144_v13 = vmul.f32 1.442695, %v1105_v44  ;;  %v1840_v44 = vsel %vm1776_vm9, %v1744_v50, %v1808_v60  ;;  %v1107_v34 = vsub.f32 %v10200_v56, %v7670_v33  ;;  %v10202_v60 = vld [vmem:[#allocation26_spill] sm:$0xff]  ;;  %v10203_v56 = vld [vmem:[#allocation29_spill] sm:$0xff] }
 0x1d4   : > { %v1111_v49 = vsub.f32 %v10202_v60, %v7685_v21  ;;  %vm10204_vm3 = vcmp.gt.f32.partialorder %v10203_v56, 0.0 }
 0x1d5   : > { %6441 = vpow2.f32 %v1144_v13  ;;  %v10201_v13 = vld [vmem:[#allocation25_spill] sm:$0xff] }
 0x1d6   : > { %2834 = vperm.xlu0 %6288, %v6950_v17   ;;  %v7704_v46 = vpop.xlane.xlu1 %1075  ;;  %v7710_v17 = vpop.eup %6429  ;;  %v1110_v50 = vsub.f32 %v10201_v13, %v7685_v21  ;;  %v1146_v13 = vmul.f32 1.442695, %v1106_v48  ;;  %v10210_v21 = vld [vmem:[#allocation20_spill] sm:$0xff] }
 0x1d7   : > { %10196 = vst [vmem:[#allocation65_spill] sm:$0xff] %v7710_v17  ;;  %v1109_v60 = vsub.f32 %v10210_v21, %v7683_v23 }
 0x1d8   : > { %v7712_v29 = vpop.xlane.xlu0 %1078  ;;  %6443 = vpow2.f32 %v1146_v13 }
 0x1da   : > { %2838 = vperm.xlu0 %6288, %v6951_v12   ;;  %v1194_v12 = vadd.f32 %v7710_v17, %v7706_v38  ;;  %v6315_v38 = vld [vmem:[%s9909_s2 + $0x100] ss:$16 sps:$4 sm:$0xff]   ;;  %v7748_v17 = vsel %vm10207_vm14, %v1841_v14, -9e+15  ;;  %vm10224_vm14 = vcmp.gt.f32.partialorder %v7441_v22, 0.0 }
 0x1db   : > { %1904 = vmax.xlane.f32.xlu1 %v1903_v40  ;;  %v7716_v40 = vpop.eup %6431  ;;  %10208 = vst [vmem:[#allocation18_spill] sm:$0xff] %v7748_v17  ;;  %5679 = vmatprep.subr.bf16.mxu1 %v6315_v38  ;;  %v1154_v38 = vmul.f32 1.442695, %v1110_v50  ;;  %v10214_v50 = vld [vmem:[#allocation33_spill] sm:$0xff] }
 0x1dc   : > { %10197 = vst [vmem:[#allocation66_spill] sm:$0xff] %v7716_v40  ;;  %v7720_v43 = vpop.eup %6433  ;;  %5680 = vmatpush3.bf16.msra.mxu1 %v6316_v32  ;;  %v1152_v32 = vmul.f32 1.442695, %v1109_v60  ;;  %v1114_v56 = vsub.f32 %v10214_v50, %v7704_v46 }
 0x1dd   : > { %10198 = vst [vmem:[#allocation67_spill] sm:$0xff] %v7720_v43  ;;  %v1197_v58 = vadd.f32 %v7720_v43, %v7716_v40  ;;  %v1108_v40 = vsub.f32 %v10209_v1, %v7683_v23  ;;  %v1148_v43 = vmul.f32 1.442695, %v1107_v34  ;;  %v7758_v14 = vpop.eup %6435  ;;  %v1156_v34 = vmul.f32 1.442695, %v1111_v49 }
 0x1de   : > { %v7714_v54 = vpop.xlane.xlu1 %1081  ;;  %10211 = vst [vmem:[#allocation25_spill] sm:$0xff] %v7758_v14  ;;  %v7764_v48 = vpop.eup %6437  ;;  %v10322_v24 = vld [vmem:[#allocation65_spill] sm:$0xff] }
 0x1df   : > { %1910 = vmax.xlane.f32.xlu1 %v1909_v26  ;;  %v1748_v26 = vadd.f32 %v7411_v6, %v7653_v7  ;;  %10212 = vst [vmem:[#allocation26_spill] sm:$0xff] %v7764_v48  ;;  %v1150_v23 = vmul.f32 1.442695, %v1108_v40  ;;  %v7766_v21 = vpop.eup %6439  ;;  %6445 = vpow2.f32 %v1148_v43  ;;  %v1200_v49 = vadd.f32 %v7764_v48, %v7758_v14  ;;  %v10247_v14 = vld [vmem:[#allocation3_spill] sm:$0xff] }
 0x1e0   : > { %v7728_v62 = vpop.xlane.xlu0 %1084  ;;  %10213 = vst [vmem:[#allocation19_spill] sm:$0xff] %v7766_v21  ;;  %v7771_v45 = vpop.eup %6441  ;;  %6447 = vpow2.f32 %v1154_v38 }
 0x1e1   : > { %vm1780_vm15 = vcmp.gt.f32.partialorder %v1748_v26, 0.0  ;;  %10215 = vst [vmem:[#allocation20_spill] sm:$0xff] %v7771_v45  ;;  %6449 = vpow2.f32 %v1156_v34  ;;  %v1203_v38 = vadd.f32 %v7771_v45, %v7766_v21  ;;  %v6318_v34 = vld [vmem:[%s9909_s2 + $0x20] ss:$16 sps:$4 sm:$0xff]  }
 0x1e2   : > { %v1707_v33 = vpop.permute.xlu1 %1706  ;;  %6451 = vpow2.f32 %v1150_v23  ;;  %v10246_v21 = vld [vmem:[#allocation2_spill] sm:$0xff] }
 0x1e3   : > { %1195 = vadd.xlane.f32.xlu1 %v1194_v12  ;;  %v7744_v12 = vsel %vm10204_vm3, %v1840_v44, -9e+15  ;;  %v1812_v44 = vmul.f32 0.2, %v1748_v26  ;;  %v1754_v51 = vadd.f32 %v7411_v6, %v1707_v33  ;;  %v1755_v7 = vadd.f32 %v7414_v31, %v1707_v33 }
 0x1e4   : > { %10205 = vst [vmem:[#allocation17_spill] sm:$0xff] %v7744_v12  ;;  %v1912_v1 = vmax.f32 %v7744_v12, %v7748_v17  ;;  %6453 = vpow2.f32 %v1152_v32  ;;  %v10220_v32 = vld [vmem:[#allocation38_spill] sm:$0xff] }
 0x1e5   : > { %v1844_v33 = vsel %vm1780_vm15, %v1748_v26, %v1812_v44  ;;  %v1818_v13 = vmul.f32 0.2, %v1754_v51  ;;  %v1819_v40 = vmul.f32 0.2, %v1755_v7  ;;  %vm1786_vm11 = vcmp.gt.f32.partialorder %v1754_v51, 0.0  ;;  %v10217_v26 = vld [vmem:[#allocation37_spill] sm:$0xff] }
 0x1e6   : > { %vm1787_vm9 = vcmp.gt.f32.partialorder %v1755_v7, 0.0  ;;  %vm10218_vm10 = vcmp.gt.f32.partialorder %v10217_v26, 0.0  ;;  %v1162_v44 = vmul.f32 1.442695, %v1114_v56  ;;  %vm10221_vm3 = vcmp.gt.f32.partialorder %v10220_v32, 0.0 }
 0x1e7   : > { %1198 = vadd.xlane.f32.xlu1 %v1197_v58  ;;  %v1813_v58 = vmul.f32 0.2, %v1749_v19  ;;  %v7780_v60 = vsel %vm10218_vm10, %v1844_v33, -9e+15  ;;  %v1851_v50 = vsel %vm1787_vm9, %v1755_v7, %v1819_v40  ;;  %v7813_v7 = vpop.eup %6443 }
 0x1e8   : > { %v7756_v59 = vpop.permute.xlu0 %1702  ;;  %10219 = vst [vmem:[#allocation33_spill] sm:$0xff] %v7780_v60  ;;  %10226 = vst [vmem:[#allocation70_spill] sm:$0xff] %v7813_v7  ;;  %6455 = vpow2.f32 %v1162_v44  ;;  %v6322_v44 = vld [vmem:[%s9909_s2 + $0x60] ss:$16 sps:$4 sm:$0xff]  }
 0x1e9   : > { %v1845_v43 = vsel %vm1781_vm0, %v1749_v19, %v1813_v58  ;;  %v1850_v58 = vsel %vm1786_vm11, %v1754_v51, %v1818_v13  ;;  %v6321_v51 = vld [vmem:[%s9909_s2 + $0x160] ss:$16 sps:$4 sm:$0xff]  }
 0x1ea   : > { %v7794_v56 = vsel %vm10221_vm3, %v1845_v43, -9e+15 }
 0x1eb   : > { %1913 = vmax.xlane.f32.xlu1 %v1912_v1  ;;  %v10216_v1 = vld [vmem:[#allocation34_spill] sm:$0xff]  ;;  %v1918_v13 = vmax.f32 %v7780_v60, %v7794_v56 }
 0x1ec   : > { %v1115_v17 = vsub.f32 %v10216_v1, %v7704_v46  ;;  %v1711_v12 = vpop.permute.xlu0 %1710  ;;  %v6317_v46 = vld [vmem:[%s9909_s2 + $0x120] ss:$16 sps:$4 sm:$0xff]   ;;  %10222 = vst [vmem:[#allocation34_spill] sm:$0xff] %v7794_v56 }
 0x1ed   : > { %v1756_v23 = vadd.f32 %v7411_v6, %v1711_v12  ;;  %v1757_v19 = vadd.f32 %v7414_v31, %v1711_v12  ;;  %5681 = vmatprep.subr.bf16.mxu1 %v6317_v46  ;;  %v6320_v1 = vld [vmem:[%s9909_s2 + $0x40] ss:$16 sps:$4 sm:$0xff]   ;;  %v7804_v12 = vsel %vm10104_vm1, %v1850_v58, -9e+15 }
 0x1ee   : > { %v1164_v33 = vmul.f32 1.442695, %v1115_v17  ;;  %5682 = vmatpush3.bf16.msra.mxu1 %v6318_v34  ;;  %10223 = vst [vmem:[#allocation68_spill] sm:$0xff] %v7804_v12  ;;  %v7808_v17 = vsel %vm10224_vm14, %v1851_v50, -9e+15 }
 0x1ef   : > { %1201 = vadd.xlane.f32.xlu1 %v1200_v49  ;;  %v6319_v49 = vld [vmem:[%s9909_s2 + $0x140] ss:$16 sps:$4 sm:$0xff]   ;;  %10225 = vst [vmem:[#allocation69_spill] sm:$0xff] %v7808_v17  ;;  %v1820_v40 = vmul.f32 0.2, %v1756_v23  ;;  %vm1788_vm15 = vcmp.gt.f32.partialorder %v1756_v23, 0.0  ;;  %v1927_v34 = vmax.f32 %v7804_v12, %v7808_v17 }
 0x1f0   : > { %5683 = vmatprep.subr.bf16.mxu1 %v6319_v49  ;;  %v1821_v43 = vmul.f32 0.2, %v1757_v19  ;;  %6457 = vpow2.f32 %v1164_v33  ;;  %vm1789_vm0 = vcmp.gt.f32.partialorder %v1757_v19, 0.0  ;;  %v6323_v50 = vld [vmem:[%s9909_s2 + $0x180] ss:$16 sps:$4 sm:$0xff]  }
 0x1f2   : > { %5684 = vmatpush3.bf16.msra.mxu1 %v6320_v1  ;;  %v1853_v56 = vsel %vm1789_vm0, %v1757_v19, %v1821_v43  ;;  %v6325_v19 = vld [vmem:[%s9909_s2 + $0x1a0] ss:$16 sps:$4 sm:$0xff]  }
 0x1f3   : > { %1204 = vadd.xlane.f32.xlu1 %v1203_v38  ;;  %v7817_v38 = vpop.eup %6445  ;;  %5685 = vmatprep.subr.bf16.mxu1 %v6321_v51  ;;  %v6324_v51 = vld [vmem:[%s9909_s2 + $0x80] ss:$16 sps:$4 sm:$0xff]  }
 0x1f4   : > { %10227 = vst [vmem:[#allocation71_spill] sm:$0xff] %v7817_v38  ;;  %v7819_v46 = vpop.eup %6447  ;;  %v1206_v49 = vadd.f32 %v7817_v38, %v7813_v7 }
 0x1f5   : > { %10228 = vst [vmem:[#allocation72_spill] sm:$0xff] %v7819_v46  ;;  %v7826_v58 = vpop.eup %6449 }
 0x1f6   : > { %10229 = vst [vmem:[#allocation73_spill] sm:$0xff] %v7826_v58  ;;  %v7831_v33 = vpop.eup %6451  ;;  %v1212_v32 = vadd.f32 %v7826_v58, %v7819_v46  ;;  %5686 = vmatpush3.bf16.msra.mxu1 %v6322_v44  ;;  %v6327_v44 = vld [vmem:[%s9909_s2 + $0x1c0] ss:$16 sps:$4 sm:$0xff]  }
 0x1f7   : > { %1919 = vmax.xlane.f32.xlu1 %v1918_v13  ;;  %10230 = vst [vmem:[#allocation74_spill] sm:$0xff] %v7831_v33  ;;  %v1852_v13 = vsel %vm1788_vm15, %v1756_v23, %v1820_v40  ;;  %v7835_v1 = vpop.eup %6453  ;;  %5687 = vmatprep.subr.bf16.mxu1 %v6323_v50 }
 0x1f8   : > { %10231 = vst [vmem:[#allocation75_spill] sm:$0xff] %v7835_v1  ;;  %v7844_v26 = vsel %vm10113_vm13, %v1852_v13, -9e+15  ;;  %v1209_v23 = vadd.f32 %v7835_v1, %v7831_v33  ;;  %v7855_v40 = vpop.eup %6455  ;;  %v6329_v13 = vld [vmem:[%s9909_s2 + $0x1e0] ss:$16 sps:$4 sm:$0xff]   ;;  %v1118_v33 = vsub.f32 %v10240_v3, %v7714_v54  ;;  %v1753_v3 = vadd.f32 %v7414_v31, %v7756_v59 }
 0x1f9   : > { %1928 = vmax.xlane.f32.xlu0 %v1927_v34  ;;  %10232 = vst [vmem:[#allocation76_spill] sm:$0xff] %v7844_v26  ;;  %v7848_v34 = vsel %vm10112_vm12, %v1853_v56, -9e+15  ;;  %10234 = vst [vmem:[#allocation78_spill] sm:$0xff] %v7855_v40  ;;  %v6326_v56 = vld [vmem:[%s9909_s2 + $0xa0] ss:$16 sps:$4 sm:$0xff]  }
 0x1fa   : > { %10233 = vst [vmem:[#allocation77_spill] sm:$0xff] %v7848_v34  ;;  %v1930_v43 = vmax.f32 %v7844_v26, %v7848_v34  ;;  %5688 = vmatpush3.bf16.msra.mxu1 %v6324_v51  ;;  %v6330_v51 = vld [vmem:[%s9909_s2 + $0xe0] ss:$16 sps:$4 sm:$0xff]   ;;  %vm1785_vm9 = vcmp.gt.f32.partialorder %v1753_v3, 0.0 }
 0x1fb   : > { %1207 = vadd.xlane.f32.xlu1 %v1206_v49  ;;  %5689 = vmatprep.subr.bf16.mxu1 %v6325_v19  ;;  %v6328_v49 = vld [vmem:[%s9909_s2 + $0xc0] ss:$16 sps:$4 sm:$0xff]  }
 0x1fc   : > { %v6953_v19 = vld [vmem:[%s7088_s19 + $0x60] sm:$0xff] }
 0x1fd   : > { %1213 = vadd.xlane.f32.xlu0 %v1212_v32  ;;  %v7862_v32 = vpop.eup %6457 }
 0x1fe   : > { %10235 = vst [vmem:[#allocation79_spill] sm:$0xff] %v7862_v32  ;;  %v1218_v50 = vadd.f32 %v7862_v32, %v7855_v40  ;;  %5690 = vmatpush3.bf16.msra.mxu1 %v6326_v56  ;;  %v6954_v56 = vld [vmem:[%s7088_s19 + $0x78] sm:$0xff] }
 0x1ff   : > { %1210 = vadd.xlane.f32.xlu1 %v1209_v23  ;;  %5691 = vmatprep.subr.bf16.mxu1 %v6327_v44  ;;  %v6952_v23 = vld [vmem:[%s7088_s19 + $0x50] sm:$0xff] }
 0x201   : > { %1931 = vmax.xlane.f32.xlu0 %v1930_v43  ;;  %v1715_v43 = vpop.permute.xlu1 %1714 }
 0x202   : > { %5692 = vmatpush3.bf16.msra.mxu1 %v6328_v49  ;;  %v10236_v49 = vld [vmem:[#allocation27_spill] sm:$0xff] }
 0x203   : > { %5693 = vmatprep.subr.bf16.mxu1 %v6329_v13  ;;  %v1112_v46 = vsub.f32 %v10236_v49, %v7702_v53  ;;  %v10241_v49 = vld [vmem:[#allocation42_spill] sm:$0xff] }
 0x204   : > { %v1119_v7 = vsub.f32 %v10241_v49, %v7714_v54  ;;  %v1758_v54 = vadd.f32 %v7411_v6, %v1715_v43 }
 0x205   : > { %1219 = vadd.xlane.f32.xlu0 %v1218_v50  ;;  %v1158_v0 = vmul.f32 1.442695, %v1112_v46  ;;  %v1752_v46 = vadd.f32 %v7411_v6, %v7756_v59  ;;  %v5468_v59 = vld [vmem:[%s9911_s4 + $0x2] ss:$4 sm:$0x3] }
 0x206   : > { %5694 = vmatpush3.bf16.msra.mxu1 %v6330_v51  ;;  %v10237_v51 = vld [vmem:[#allocation28_spill] sm:$0xff]  ;;  %vm1790_vm10 = vcmp.gt.f32.partialorder %v1758_v54, 0.0  ;;  %v7942_v45 = vrot.slane %v5468_v59, %v10247_v14 }
 0x207   : > { %6459 = vpow2.f32 %v1158_v0  ;;  %v10242_v0 = vld [vmem:[#allocation43_spill] sm:$0xff]  ;;  %vm1784_vm11 = vcmp.gt.f32.partialorder %v1752_v46, 0.0 }
 0x210   : > { %2822 = vperm.xlu1 %6287, %v6952_v23   ;;  %v1113_v23 = vsub.f32 %v10237_v51, %v7702_v53 }
 0x212   : > { %v1160_v1 = vmul.f32 1.442695, %v1113_v23 }
 0x214   : > { %2830 = vperm.xlu1 %6287, %v6953_v19   ;;  %v10238_v19 = vld [vmem:[#allocation35_spill] sm:$0xff]  ;;  %6461 = vpow2.f32 %v1160_v1  ;;  %v1816_v1 = vmul.f32 0.2, %v1752_v46 }
 0x215   : > { %v1116_v58 = vsub.f32 %v10238_v19, %v7712_v29  ;;  %v1170_v19 = vmul.f32 1.442695, %v1118_v33 }
 0x217   : > { %v7883_v40 = vpop.xlane.xlu1 %1087  ;;  %v1166_v38 = vmul.f32 1.442695, %v1116_v58  ;;  %v1759_v58 = vadd.f32 %v7414_v31, %v1715_v43  ;;  %v1822_v31 = vmul.f32 0.2, %v1758_v54 }
 0x218   : > { %2842 = vperm.xlu1 %6287, %v6954_v56   ;;  %v10239_v56 = vld [vmem:[#allocation36_spill] sm:$0xff]  ;;  %v1122_v6 = vsub.f32 %v7471_v20, %v7883_v40 }
 0x219   : > { %v7881_v44 = vpop.xlane.xlu0 %1090  ;;  %v1117_v34 = vsub.f32 %v10239_v56, %v7712_v29  ;;  %v1172_v29 = vmul.f32 1.442695, %v1119_v7  ;;  %6463 = vpow2.f32 %v1166_v38  ;;  %v1120_v7 = vsub.f32 %v10242_v0, %v7728_v62  ;;  %v10243_v38 = vld [vmem:[#allocation44_spill] sm:$0xff] }
 0x21a   : > { %v1121_v33 = vsub.f32 %v10243_v38, %v7728_v62  ;;  %v1817_v56 = vmul.f32 0.2, %v1753_v3  ;;  %v1823_v43 = vmul.f32 0.2, %v1759_v58  ;;  %vm1791_vm3 = vcmp.gt.f32.partialorder %v1759_v58, 0.0 }
 0x21b   : > { %v7891_v13 = vpop.xlane.xlu1 %1093  ;;  %v1168_v53 = vmul.f32 1.442695, %v1117_v34  ;;  %v1174_v49 = vmul.f32 1.442695, %v1120_v7  ;;  %v1848_v38 = vsel %vm1784_vm11, %v1752_v46, %v1816_v1  ;;  %v1124_v20 = vsub.f32 %v7490_v10, %v7881_v44  ;;  %v10250_v1 = vld [vmem:[#allocation45_spill] sm:$0xff] }
 0x21c   : > { %v1176_v62 = vmul.f32 1.442695, %v1121_v33  ;;  %v1849_v17 = vsel %vm1785_vm9, %v1753_v3, %v1817_v56  ;;  %v7939_v7 = vrot.slane %v5468_v59, %v10246_v21  ;;  %v1178_v33 = vmul.f32 1.442695, %v1122_v6  ;;  %v10252_v59 = vld [vmem:[#allocation46_spill] sm:$0xff] }
 0x21d   : > { %v7885_v32 = vpop.xlane.xlu0 %1096  ;;  %6465 = vpow2.f32 %v1168_v53  ;;  %v1855_v46 = vsel %vm1791_vm3, %v1759_v58, %v1823_v43  ;;  %v1126_v10 = vsub.f32 %v7506_v16, %v7891_v13  ;;  %vm10251_vm14 = vcmp.gt.f32.partialorder %v10250_v1, 0.0 }
 0x21e   : > { %6467 = vpow2.f32 %v1170_v19  ;;  %v7930_v19 = vpop.eup %6459  ;;  %v7954_v56 = vsel %vm10251_vm14, %v1848_v38, -9e+15  ;;  %vm10253_vm15 = vcmp.gt.f32.partialorder %v10252_v59, 0.0 }
 0x21f   : > { %v7905_v60 = vpop.xlane.xlu1 %1892  ;;  %6469 = vpow2.f32 %v1172_v29  ;;  %10244 = vst [vmem:[#allocation27_spill] sm:$0xff] %v7930_v19  ;;  %v1123_v29 = vsub.f32 %v7475_v35, %v7883_v40  ;;  %v7934_v12 = vpop.eup %6461  ;;  %v1125_v35 = vsub.f32 %v7494_v18, %v7881_v44  ;;  %v1854_v40 = vsel %vm1790_vm10, %v1758_v54, %v1822_v31 }
 0x220   : > { %10245 = vst [vmem:[#allocation28_spill] sm:$0xff] %v7934_v12  ;;  %6471 = vpow2.f32 %v1174_v49  ;;  %v7958_v14 = vsel %vm10253_vm15, %v1849_v17, -9e+15  ;;  %v1182_v54 = vmul.f32 1.442695, %v1124_v20  ;;  %v1127_v20 = vsub.f32 %v7510_v30, %v7891_v13 }
 0x221   : > { %v7887_v50 = vpop.xlane.xlu0 %1889  ;;  %10254 = vst [vmem:[#allocation41_spill] sm:$0xff] %v7958_v14  ;;  %6473 = vpow2.f32 %v1176_v62  ;;  %v1180_v18 = vmul.f32 1.442695, %v1123_v29  ;;  %v7968_v16 = vsel %vm10102_vm7, %v1854_v40, -9e+15  ;;  %v1924_v62 = vmax.f32 %v7954_v56, %v7958_v14 }
 0x222   : > { %10258 = vst [vmem:[#allocation44_spill] sm:$0xff] %v7968_v16  ;;  %v7972_v49 = vsel %vm10101_vm2, %v1855_v46, -9e+15  ;;  %6475 = vpow2.f32 %v1178_v33  ;;  %v1184_v17 = vmul.f32 1.442695, %v1125_v35  ;;  %v1215_v29 = vadd.f32 %v7934_v12, %v7930_v19 }
 0x223   : > { %v7917_v34 = vpop.xlane.xlu1 %1898  ;;  %v7944_v48 = vpop.eup %6463  ;;  %10260 = vst [vmem:[#allocation80_spill] sm:$0xff] %v7972_v49  ;;  %v1186_v21 = vmul.f32 1.442695, %v1126_v10  ;;  %6477 = vpow2.f32 %v1180_v18  ;;  %v1933_v33 = vmax.f32 %v7968_v16, %v7972_v49  ;;  %v1128_v30 = vsub.f32 %v7521_v55, %v7885_v32 }
 0x224   : > { %10248 = vst [vmem:[#allocation35_spill] sm:$0xff] %v7944_v48  ;;  %6479 = vpow2.f32 %v1182_v54  ;;  %v1129_v13 = vsub.f32 %v7525_v5, %v7885_v32 }
 0x225   : > { %v7899_v26 = vpop.xlane.xlu0 %1895  ;;  %6481 = vpow2.f32 %v1184_v17  ;;  %v1190_v19 = vmul.f32 1.442695, %v1128_v30 }
 0x226   : > { %6483 = vpow2.f32 %v1186_v21 }
 0x227   : > { %v2787_v0 = vpop.permute.xlu1 %2786  ;;  %v7948_v3 = vpop.eup %6465 }
 0x228   : > { %10249 = vst [vmem:[#allocation36_spill] sm:$0xff] %v7948_v3  ;;  %v7960_v6 = vpop.eup %6467  ;;  %v2858_v40 = vadd.f32 %v7939_v7, %v2787_v0  ;;  %v2859_v31 = vadd.f32 %v7942_v45, %v2787_v0  ;;  %v1221_v35 = vadd.f32 %v7948_v3, %v7944_v48 }
 0x229   : > { %v7907_v51 = vpop.xlane.xlu0 %1901  ;;  %10255 = vst [vmem:[#allocation42_spill] sm:$0xff] %v7960_v6  ;;  %v7962_v44 = vpop.eup %6469  ;;  %v10360_v43 = vld [vmem:[#allocation44_spill] sm:$0xff] }
 0x22a   : > { %10256 = vst [vmem:[#allocation43_spill] sm:$0xff] %v7962_v44  ;;  %v7988_v46 = vadd.f32 %v7962_v44, %v7960_v6  ;;  %v1188_v6 = vmul.f32 1.442695, %v1127_v20  ;;  %v2922_v44 = vmul.f32 0.2, %v2858_v40  ;;  %v7998_v32 = vpop.eup %6471  ;;  %vm2890_vm9 = vcmp.gt.f32.partialorder %v2858_v40, 0.0 }
 0x22b   : > { %v2791_v38 = vpop.permute.xlu1 %2790  ;;  %v2923_v54 = vmul.f32 0.2, %v2859_v31  ;;  %10261 = vst [vmem:[#allocation81_spill] sm:$0xff] %v7998_v32  ;;  %vm2891_vm10 = vcmp.gt.f32.partialorder %v2859_v31, 0.0  ;;  %v8000_v17 = vpop.eup %6473 }
 0x22c   : > { %v2860_v0 = vadd.f32 %v7939_v7, %v2791_v38  ;;  %v2861_v18 = vadd.f32 %v7942_v45, %v2791_v38  ;;  %v8011_v30 = vpop.eup %6475  ;;  %6485 = vpow2.f32 %v1188_v6  ;;  %v1939_v6 = vsub.f32 %v7547_v39, %v7905_v60 }
 0x22d   : > { %v7913_v23 = vpop.xlane.xlu0 %1907  ;;  %v8022_v4 = vpop.eup %6477  ;;  %6487 = vpow2.f32 %v1190_v19  ;;  %v1937_v39 = vsub.f32 %v7565_v11, %v7887_v50 }
 0x22e   : > { %vm2892_vm3 = vcmp.gt.f32.partialorder %v2860_v0, 0.0  ;;  %v2924_v21 = vmul.f32 0.2, %v2860_v0  ;;  %v2925_v20 = vmul.f32 0.2, %v2861_v18  ;;  %vm2893_vm14 = vcmp.gt.f32.partialorder %v2861_v18, 0.0 }
 0x22f   : > { %v2795_v3 = vpop.permute.xlu1 %2794 }
 0x230   : > { %v2862_v12 = vadd.f32 %v7939_v7, %v2795_v3  ;;  %v2863_v14 = vadd.f32 %v7942_v45, %v2795_v3  ;;  %v2956_v63 = vsel %vm2892_vm3, %v2860_v0, %v2924_v21  ;;  %v1936_v0 = vsub.f32 %v7561_v37, %v7887_v50 }
 0x231   : > { %v7928_v53 = vpop.xlane.xlu0 %1916 }
 0x232   : > { %vm2894_vm15 = vcmp.gt.f32.partialorder %v2862_v12, 0.0 }
 0x233   : > { %v2807_v37 = vpop.permute.xlu1 %2806 }
 0x235   : > { %v7964_v58 = vpop.xlane.xlu0 %1922 }
 0x23c   : > { %1925 = vmax.xlane.f32.xlu1 %v1924_v62 }
 0x23d   : > { %v2783_v10 = vpop.permute.xlu0 %2782 }
 0x23e   : > { %v2856_v62 = vadd.f32 %v7939_v7, %v2783_v10  ;;  %v2857_v48 = vadd.f32 %v7942_v45, %v2783_v10 }
 0x240   : > { %1216 = vadd.xlane.f32.xlu1 %v1215_v29  ;;  %vm2888_vm0 = vcmp.gt.f32.partialorder %v2856_v62, 0.0  ;;  %vm2889_vm11 = vcmp.gt.f32.partialorder %v2857_v48, 0.0  ;;  %v2920_v55 = vmul.f32 0.2, %v2856_v62  ;;  %v2921_v5 = vmul.f32 0.2, %v2857_v48 }
 0x241   : > { %v2799_v49 = vpop.permute.xlu0 %2798 }
 0x242   : > { %v2952_v38 = vsel %vm2888_vm0, %v2856_v62, %v2920_v55  ;;  %v2953_v10 = vsel %vm2889_vm11, %v2857_v48, %v2921_v5  ;;  %v2954_v62 = vsel %vm2890_vm9, %v2858_v40, %v2922_v44  ;;  %v2955_v55 = vsel %vm2891_vm10, %v2859_v31, %v2923_v54  ;;  %v8028_v31 = vpop.eup %6479 }
 0x243   : > { %v8005_v29 = vsel %vm750_vm4, %v2952_v38, -9e+15  ;;  %v8009_v16 = vsel %vm751_vm5, %v2953_v10, -9e+15  ;;  %v1192_v5 = vmul.f32 1.442695, %v1129_v13  ;;  %v1938_v38 = vsub.f32 %v7543_v28, %v7905_v60 }
 0x244   : > { %1934 = vmax.xlane.f32.xlu1 %v1933_v33  ;;  %v3016_v48 = vmax.f32 %v8005_v29, %v8009_v16  ;;  %v1227_v10 = vadd.f32 %v8000_v17, %v7998_v32  ;;  %v2864_v3 = vadd.f32 %v7939_v7, %v2799_v49  ;;  %v2865_v33 = vadd.f32 %v7942_v45, %v2799_v49  ;;  %v8040_v49 = vpop.eup %6481 }
 0x245   : > { %v2957_v44 = vsel %vm2893_vm14, %v2861_v18, %v2925_v20  ;;  %10262 = vst [vmem:[#allocation82_spill] sm:$0xff] %v8028_v31  ;;  %v2926_v28 = vmul.f32 0.2, %v2862_v12  ;;  %v8034_v40 = vsel %vm752_vm6, %v2954_v62, -9e+15  ;;  %10264 = vst [vmem:[#allocation83_spill] sm:$0xff] %v8040_v49  ;;  %v8044_v21 = vpop.eup %6483  ;;  %v2803_v60 = vpop.permute.xlu0 %2802  ;;  %6489 = vpow2.f32 %v1192_v5 }
 0x246   : > { %3017 = vmax.xlane.f32.xlu0 %v3016_v48  ;;  %v8038_v54 = vsel %vm753_vm8, %v2955_v55, -9e+15  ;;  %v2927_v18 = vmul.f32 0.2, %v2863_v14  ;;  %10265 = vst [vmem:[#allocation84_spill] sm:$0xff] %v8044_v21  ;;  %vm2895_vm0 = vcmp.gt.f32.partialorder %v2863_v14, 0.0  ;;  %v1942_v5 = vsub.f32 %v7576_v42, %v7917_v34 }
 0x247   : > { %v10266_v20 = vld [vmem:[#allocation8_spill] sm:$0xff]  ;;  %vm10268_vm9 = vcmp.gt.f32.partialorder %v7213_v36, 0.0  ;;  %v8056_v62 = vmul.f32 1.442695, %v1938_v38  ;;  %v2928_v55 = vmul.f32 0.2, %v2864_v3  ;;  %v2958_v50 = vsel %vm2894_vm15, %v2862_v12, %v2926_v28 }
 0x248   : > { %1222 = vadd.xlane.f32.xlu1 %v1221_v35  ;;  %vm10267_vm11 = vcmp.gt.f32.partialorder %v10266_v20, 0.0  ;;  %v8054_v19 = vsel %vm10268_vm9, %v2957_v44, -9e+15  ;;  %v3019_v35 = vmax.f32 %v8034_v40, %v8038_v54  ;;  %v2929_v11 = vmul.f32 0.2, %v2865_v33  ;;  %v10272_v42 = vld [vmem:[#allocation11_spill] sm:$0xff] }
 0x249   : > { %v8050_v48 = vsel %vm10267_vm11, %v2956_v63, -9e+15  ;;  %vm2896_vm10 = vcmp.gt.f32.partialorder %v2864_v3, 0.0  ;;  %vm2897_vm3 = vcmp.gt.f32.partialorder %v2865_v33, 0.0  ;;  %v2866_v63 = vadd.f32 %v7939_v7, %v2803_v60 }
 0x24a   : > { %1225 = vadd.xlane.f32.xlu0 %v7988_v46  ;;  %v2867_v44 = vadd.f32 %v7942_v45, %v2803_v60  ;;  %v3022_v38 = vmax.f32 %v8050_v48, %v8054_v19  ;;  %v2959_v46 = vsel %vm2895_vm0, %v2863_v14, %v2927_v18  ;;  %v1974_v36 = vmul.f32 1.442695, %v1939_v6  ;;  %v8071_v60 = vpop.eup %6485  ;;  %v10270_v6 = vld [vmem:[#allocation10_spill] sm:$0xff] }
 0x24b   : > { %v1968_v20 = vmul.f32 1.442695, %v1936_v0  ;;  %v1970_v13 = vmul.f32 1.442695, %v1937_v39  ;;  %v2868_v12 = vadd.f32 %v7939_v7, %v2807_v37  ;;  %v2869_v28 = vadd.f32 %v7942_v45, %v2807_v37  ;;  %10269 = vst [vmem:[#allocation85_spill] sm:$0xff] %v8071_v60 }
 0x24c   : > { %3020 = vmax.xlane.f32.xlu1 %v3019_v35  ;;  %v2960_v8 = vsel %vm2896_vm10, %v2864_v3, %v2928_v55  ;;  %v2961_v32 = vsel %vm2897_vm3, %v2865_v33, %v2929_v11  ;;  %v1943_v35 = vsub.f32 %v7580_v47, %v7917_v34  ;;  %v1940_v14 = vsub.f32 %v7587_v25, %v7899_v26  ;;  %v2811_v33 = vpop.permute.xlu1 %2810  ;;  %v8097_v55 = vpop.eup %6487 }
 0x24d   : > { %vm10271_vm14 = vcmp.gt.f32.partialorder %v10270_v6, 0.0  ;;  %vm10273_vm15 = vcmp.gt.f32.partialorder %v10272_v42, 0.0  ;;  %v1941_v3 = vsub.f32 %v7591_v27, %v7899_v26  ;;  %v2930_v39 = vmul.f32 0.2, %v2866_v63  ;;  %10276 = vst [vmem:[#allocation86_spill] sm:$0xff] %v8097_v55 }
 0x24e   : > { %3023 = vmax.xlane.f32.xlu0 %v3022_v38  ;;  %v8079_v0 = vsel %vm10271_vm14, %v2958_v50, -9e+15  ;;  %v8083_v18 = vsel %vm10273_vm15, %v2959_v46, -9e+15  ;;  %v2931_v37 = vmul.f32 0.2, %v2867_v44  ;;  %v1230_v47 = vadd.f32 %v8022_v4, %v8011_v30  ;;  %v2815_v50 = vpop.permute.xlu0 %2814 }
 0x24f   : > { %vm2898_vm0 = vcmp.gt.f32.partialorder %v2866_v63, 0.0  ;;  %vm2899_vm11 = vcmp.gt.f32.partialorder %v2867_v44, 0.0  ;;  %vm10274_vm9 = vcmp.gt.f32.partialorder %v7246_v61, 0.0  ;;  %vm10275_vm10 = vcmp.gt.f32.partialorder %v7250_v2, 0.0  ;;  %v8107_v46 = vpop.eup %6489 }
 0x250   : > { %1228 = vadd.xlane.f32.xlu1 %v1227_v10  ;;  %v8091_v25 = vsel %vm10274_vm9, %v2960_v8, -9e+15  ;;  %v8095_v34 = vsel %vm10275_vm10, %v2961_v32, -9e+15  ;;  %6491 = vpow2.f32 %v1968_v20  ;;  %v3025_v27 = vmax.f32 %v8079_v0, %v8083_v18  ;;  %10277 = vst [vmem:[#allocation87_spill] sm:$0xff] %v8107_v46 }
 0x251   : > { %v2932_v26 = vmul.f32 0.2, %v2868_v12  ;;  %v2933_v10 = vmul.f32 0.2, %v2869_v28  ;;  %6493 = vpow2.f32 %v1970_v13  ;;  %v2870_v11 = vadd.f32 %v7939_v7, %v2811_v33 }
 0x252   : > { %1231 = vadd.xlane.f32.xlu0 %v1230_v47  ;;  %vm2900_vm3 = vcmp.gt.f32.partialorder %v2868_v12, 0.0  ;;  %vm2901_vm14 = vcmp.gt.f32.partialorder %v2869_v28, 0.0  ;;  %v2871_v8 = vadd.f32 %v7942_v45, %v2811_v33  ;;  %v3028_v32 = vmax.f32 %v8091_v25, %v8095_v34 }
 0x253   : > { %v2962_v20 = vsel %vm2898_vm0, %v2866_v63, %v2930_v39  ;;  %v2963_v38 = vsel %vm2899_vm11, %v2867_v44, %v2931_v37  ;;  %v1980_v47 = vmul.f32 1.442695, %v1942_v5  ;;  %v1976_v42 = vmul.f32 1.442695, %v1940_v14 }
 0x254   : > { %3026 = vmax.xlane.f32.xlu1 %v3025_v27  ;;  %v1978_v13 = vmul.f32 1.442695, %v1941_v3  ;;  %v1233_v6 = vadd.f32 %v8040_v49, %v8028_v31  ;;  %v2872_v2 = vadd.f32 %v7939_v7, %v2815_v50  ;;  %v2873_v33 = vadd.f32 %v7942_v45, %v2815_v50  ;;  %v10350_v49 = vld [vmem:[#allocation74_spill] sm:$0xff] }
 0x255   : > { %v2964_v27 = vsel %vm2900_vm3, %v2868_v12, %v2932_v26  ;;  %v2965_v61 = vsel %vm2901_vm14, %v2869_v28, %v2933_v10  ;;  %6495 = vpow2.f32 %v8056_v62  ;;  %v2934_v63 = vmul.f32 0.2, %v2870_v11  ;;  %v2819_v12 = vpop.permute.xlu0 %2818 }
 0x256   : > { %3029 = vmax.xlane.f32.xlu0 %v3028_v32  ;;  %vm10278_vm15 = vcmp.gt.f32.partialorder %v7255_v9, 0.0  ;;  %vm10279_vm0 = vcmp.gt.f32.partialorder %v7259_v15, 0.0  ;;  %v1982_v14 = vmul.f32 1.442695, %v1943_v35  ;;  %vm2902_vm11 = vcmp.gt.f32.partialorder %v2870_v11, 0.0 }
 0x257   : > { %v8116_v44 = vsel %vm10278_vm15, %v2962_v20, -9e+15  ;;  %v8120_v5 = vsel %vm10279_vm0, %v2963_v38, -9e+15  ;;  %v2935_v3 = vmul.f32 0.2, %v2871_v8  ;;  %v1236_v39 = vadd.f32 %v8071_v60, %v8044_v21 }
 0x258   : > { %1234 = vadd.xlane.f32.xlu1 %v1233_v6  ;;  %6497 = vpow2.f32 %v1974_v36  ;;  %vm2903_vm9 = vcmp.gt.f32.partialorder %v2871_v8, 0.0  ;;  %vm10280_vm10 = vcmp.gt.f32.partialorder %v7287_v41, 0.0  ;;  %vm10281_vm3 = vcmp.gt.f32.partialorder %v7290_v52, 0.0 }
 0x259   : > { %v8126_v62 = vsel %vm10280_vm10, %v2964_v27, -9e+15  ;;  %v8130_v28 = vsel %vm10281_vm3, %v2965_v61, -9e+15  ;;  %6499 = vpow2.f32 %v1976_v42  ;;  %v2936_v37 = vmul.f32 0.2, %v2872_v2 }
 0x25a   : > { %v2937_v35 = vmul.f32 0.2, %v2873_v33  ;;  %1237 = vadd.xlane.f32.xlu0 %v1236_v39  ;;  %v3031_v6 = vmax.f32 %v8116_v44, %v8120_v5  ;;  %6501 = vpow2.f32 %v1978_v13  ;;  %vm2904_vm14 = vcmp.gt.f32.partialorder %v2872_v2, 0.0  ;;  %v8135_v26 = vpop.eup %6491  ;;  %v10285_v27 = vld [vmem:[#allocation24_spill] sm:$0xff] }
 0x25b   : > { %vm2905_vm15 = vcmp.gt.f32.partialorder %v2873_v33, 0.0  ;;  %v2966_v36 = vsel %vm2902_vm11, %v2870_v11, %v2934_v63  ;;  %10282 = vst [vmem:[#allocation88_spill] sm:$0xff] %v8135_v26  ;;  %v2874_v10 = vadd.f32 %v7939_v7, %v2819_v12  ;;  %v2875_v50 = vadd.f32 %v7942_v45, %v2819_v12  ;;  %v8142_v32 = vpop.eup %6493 }
 0x25c   : > { %3032 = vmax.xlane.f32.xlu1 %v3031_v6  ;;  %v3034_v61 = vmax.f32 %v8126_v62, %v8130_v28  ;;  %v2967_v42 = vsel %vm2903_vm9, %v2871_v8, %v2935_v3  ;;  %10283 = vst [vmem:[#allocation89_spill] sm:$0xff] %v8142_v32  ;;  %v1239_v20 = vadd.f32 %v8107_v46, %v8097_v55  ;;  %6503 = vpow2.f32 %v1980_v47  ;;  %v2827_v3 = vpop.permute.xlu0 %2826  ;;  %v10343_v55 = vld [vmem:[#allocation37_spill] sm:$0xff] }
 0x25d   : > { %v2968_v38 = vsel %vm2904_vm14, %v2872_v2, %v2936_v37  ;;  %v2969_v11 = vsel %vm2905_vm15, %v2873_v33, %v2937_v35  ;;  %vm10284_vm0 = vcmp.gt.f32.partialorder %v7293_v57, 0.0  ;;  %vm10286_vm11 = vcmp.gt.f32.partialorder %v10285_v27, 0.0  ;;  %v10288_v2 = vld [vmem:[#allocation29_spill] sm:$0xff]  ;;  %v10290_v33 = vld [vmem:[#allocation30_spill] sm:$0xff]  ;;  %v10295_v57 = vld [vmem:[#allocation31_spill] sm:$0xff] }
 0x25e   : > { %3035 = vmax.xlane.f32.xlu0 %v3034_v61  ;;  %v8148_v13 = vsel %vm10284_vm0, %v2966_v36, -9e+15  ;;  %v8152_v63 = vsel %vm10286_vm11, %v2967_v42, -9e+15  ;;  %6505 = vpow2.f32 %v1982_v14  ;;  %v2938_v39 = vmul.f32 0.2, %v2874_v10 }
 0x25f   : > { %v2939_v8 = vmul.f32 0.2, %v2875_v50  ;;  %v2032_v12 = vadd.f32 %v8142_v32, %v8135_v26  ;;  %v8156_v6 = vpop.eup %6495  ;;  %vm2906_vm9 = vcmp.gt.f32.partialorder %v2874_v10, 0.0  ;;  %vm2907_vm10 = vcmp.gt.f32.partialorder %v2875_v50, 0.0 }
 0x260   : > { %1240 = vadd.xlane.f32.xlu1 %v1239_v20  ;;  %10287 = vst [vmem:[#allocation90_spill] sm:$0xff] %v8156_v6  ;;  %vm10289_vm3 = vcmp.gt.f32.partialorder %v10288_v2, 0.0  ;;  %vm10291_vm14 = vcmp.gt.f32.partialorder %v10290_v33, 0.0  ;;  %v3037_v14 = vmax.f32 %v8148_v13, %v8152_v63  ;;  %v2878_v36 = vadd.f32 %v7939_v7, %v2827_v3  ;;  %v10298_v2 = vld [vmem:[#allocation32_spill] sm:$0xff] }
 0x261   : > { %v8160_v47 = vsel %vm10289_vm3, %v2968_v38, -9e+15  ;;  %v8164_v37 = vsel %vm10291_vm14, %v2969_v11, -9e+15  ;;  %v2879_v42 = vadd.f32 %v7942_v45, %v2827_v3  ;;  %v2970_v38 = vsel %vm2906_vm9, %v2874_v10, %v2938_v39  ;;  %v10302_v39 = vld [vmem:[#allocation61_spill] sm:$0xff] }
 0x262   : > { %2033 = vadd.xlane.f32.xlu0 %v2032_v12  ;;  %v8168_v35 = vpop.eup %6497  ;;  %v3040_v20 = vmax.f32 %v8160_v47, %v8164_v37  ;;  %v2971_v27 = vsel %vm2907_vm10, %v2875_v50, %v2939_v8  ;;  %vm10296_vm15 = vcmp.gt.f32.partialorder %v10295_v57, 0.0  ;;  %vm10299_vm0 = vcmp.gt.f32.partialorder %v10298_v2, 0.0  ;;  %v2835_v2 = vpop.permute.xlu0 %2834 }
 0x263   : > { %10292 = vst [vmem:[#allocation91_spill] sm:$0xff] %v8168_v35  ;;  %v8171_v61 = vpop.eup %6499  ;;  %v2035_v12 = vadd.f32 %v8168_v35, %v8156_v6  ;;  %v8182_v33 = vsel %vm10296_vm15, %v2970_v38, -9e+15  ;;  %v8186_v15 = vsel %vm10299_vm0, %v2971_v27, -9e+15  ;;  %vm2910_vm11 = vcmp.gt.f32.partialorder %v2878_v36, 0.0 }
 0x264   : > { %10293 = vst [vmem:[#allocation92_spill] sm:$0xff] %v8171_v61  ;;  %3038 = vmax.xlane.f32.xlu1 %v3037_v14  ;;  %v8176_v11 = vpop.eup %6501  ;;  %10297 = vst [vmem:[#allocation94_spill] sm:$0xff] %v8182_v33  ;;  %v2942_v3 = vmul.f32 0.2, %v2878_v36  ;;  %v2943_v14 = vmul.f32 0.2, %v2879_v42  ;;  %v3043_v27 = vmax.f32 %v8182_v33, %v8186_v15  ;;  %v2882_v32 = vadd.f32 %v7939_v7, %v2835_v2 }
 0x265   : > { %10294 = vst [vmem:[#allocation93_spill] sm:$0xff] %v8176_v11  ;;  %10300 = vst [vmem:[#allocation95_spill] sm:$0xff] %v8186_v15  ;;  %v2038_v10 = vadd.f32 %v8176_v11, %v8171_v61  ;;  %vm2911_vm9 = vcmp.gt.f32.partialorder %v2879_v42, 0.0  ;;  %v2883_v26 = vadd.f32 %v7942_v45, %v2835_v2  ;;  %vm10316_vm0 = vcmp.gt.f32.partialorder %v7441_v22, 0.0 }
 0x266   : > { %3041 = vmax.xlane.f32.xlu0 %v3040_v20  ;;  %v8190_v50 = vpop.eup %6503  ;;  %v10303_v20 = vld [vmem:[#allocation62_spill] sm:$0xff]  ;;  %v2974_v11 = vsel %vm2910_vm11, %v2878_v36, %v2942_v3  ;;  %v2975_v35 = vsel %vm2911_vm9, %v2879_v42, %v2943_v14  ;;  %v10310_v36 = vld [vmem:[#allocation40_spill] sm:$0xff]  ;;  %vm2914_vm14 = vcmp.gt.f32.partialorder %v2882_v32, 0.0 }
 0x267   : > { %10301 = vst [vmem:[#allocation96_spill] sm:$0xff] %v8190_v50  ;;  %vm10311_vm3 = vcmp.gt.f32.partialorder %v10310_v36, 0.0  ;;  %v2947_v14 = vmul.f32 0.2, %v2883_v26  ;;  %vm2915_vm15 = vcmp.gt.f32.partialorder %v2883_v26, 0.0 }
 0x268   : > { %v1905_v9 = vpop.xlane.xlu1 %1904  ;;  %2036 = vadd.xlane.f32.xlu1 %v2035_v12  ;;  %v8194_v57 = vpop.eup %6505  ;;  %v6331_v12 = vld [vmem:[%s9909_s2 + $0x104] ss:$16 sps:$4 sm:$0xff]  }
 0x269   : > { %v1946_v8 = vsub.f32 %v10302_v39, %v1905_v9  ;;  %v1947_v38 = vsub.f32 %v10303_v20, %v1905_v9  ;;  %10304 = vst [vmem:[#allocation61_spill] sm:$0xff] %v8194_v57  ;;  %5743 = vmatprep.subr.bf16.mxu1 %v6331_v12  ;;  %v10305_v9 = vld [vmem:[#allocation63_spill] sm:$0xff]  ;;  %v10306_v20 = vld [vmem:[#allocation64_spill] sm:$0xff]  ;;  %v2041_v6 = vadd.f32 %v8194_v57, %v8190_v50 }
 0x26a   : > { %2039 = vadd.xlane.f32.xlu0 %v2038_v10  ;;  %v2979_v12 = vsel %vm2915_vm15, %v2883_v26, %v2947_v14 }
 0x26b   : > { %v1988_v52 = vmul.f32 1.442695, %v1946_v8  ;;  %v1990_v41 = vmul.f32 1.442695, %v1947_v38  ;;  %v10307_v38 = vld [vmem:[#allocation39_spill] sm:$0xff] }
 0x26c   : > { %v1911_v61 = vpop.xlane.xlu1 %1910  ;;  %3044 = vmax.xlane.f32.xlu1 %v3043_v27  ;;  %vm10308_vm10 = vcmp.gt.f32.partialorder %v10307_v38, 0.0  ;;  %v10324_v38 = vld [vmem:[#allocation12_spill] sm:$0xff] }
 0x26d   : > { %6507 = vpow2.f32 %v1988_v52  ;;  %v1950_v39 = vsub.f32 %v10305_v9, %v1911_v61  ;;  %v1951_v10 = vsub.f32 %v10306_v20, %v1911_v61  ;;  %v8209_v27 = vsel %vm10308_vm10, %v2974_v11, -9e+15 }
 0x26e   : > { %6509 = vpow2.f32 %v1990_v41  ;;  %10309 = vst [vmem:[#allocation62_spill] sm:$0xff] %v8209_v27  ;;  %v8213_v52 = vsel %vm10311_vm3, %v2975_v35, -9e+15  ;;  %v2946_v61 = vmul.f32 0.2, %v2882_v32  ;;  %vm10344_vm10 = vcmp.gt.f32.partialorder %v10343_v55, 0.0 }
 0x26f   : > { %v1996_v8 = vmul.f32 1.442695, %v1950_v39  ;;  %10312 = vst [vmem:[#allocation63_spill] sm:$0xff] %v8213_v52  ;;  %v1998_v42 = vmul.f32 1.442695, %v1951_v10  ;;  %v3049_v41 = vmax.f32 %v8209_v27, %v8213_v52  ;;  %v10342_v52 = vld [vmem:[#allocation33_spill] sm:$0xff] }
 0x270   : > { %v1196_v3 = vpop.xlane.xlu1 %1195  ;;  %2042 = vadd.xlane.f32.xlu1 %v2041_v6  ;;  %v2978_v35 = vsel %vm2914_vm14, %v2882_v32, %v2946_v61  ;;  %v8231_v10 = vsel %vm10316_vm0, %v2979_v12, -9e+15 }
 0x271   : > { %6511 = vpow2.f32 %v1996_v8  ;;  %v8227_v20 = vsel %vm10104_vm1, %v2978_v35, -9e+15  ;;  %10317 = vst [vmem:[#allocation99_spill] sm:$0xff] %v8231_v10  ;;  %v10318_v8 = vld [vmem:[#allocation53_spill] sm:$0xff] }
 0x272   : > { %6513 = vrcp.f32 %v1196_v3  ;;  %10315 = vst [vmem:[#allocation98_spill] sm:$0xff] %v8227_v20  ;;  %v3055_v14 = vmax.f32 %v8227_v20, %v8231_v10 }
 0x273   : > { %6515 = vpow2.f32 %v1998_v42  ;;  %v1944_v42 = vsub.f32 %v10318_v8, %v7907_v51 }
 0x274   : > { %v1199_v2 = vpop.xlane.xlu1 %1198  ;;  %3050 = vmax.xlane.f32.xlu1 %v3049_v41  ;;  %v10320_v41 = vld [vmem:[#allocation54_spill] sm:$0xff] }
 0x275   : > { %6517 = vrcp.f32 %v1199_v2  ;;  %v1945_v61 = vsub.f32 %v10320_v41, %v7907_v51  ;;  %v1984_v22 = vmul.f32 1.442695, %v1944_v42  ;;  %v10326_v41 = vld [vmem:[#allocation55_spill] sm:$0xff] }
 0x276   : > { %v1948_v10 = vsub.f32 %v10326_v41, %v7913_v23  ;;  %v10331_v41 = vld [vmem:[#allocation60_spill] sm:$0xff] }
 0x277   : > { %v8217_v11 = vpop.eup %6507  ;;  %v1986_v57 = vmul.f32 1.442695, %v1945_v61  ;;  %v10329_v61 = vld [vmem:[#allocation58_spill] sm:$0xff] }
 0x278   : > { %10313 = vst [vmem:[#allocation64_spill] sm:$0xff] %v8217_v11  ;;  %v8219_v9 = vpop.eup %6509  ;;  %v8221_v6 = vpop.xlane.xlu1 %1913 }
 0x279   : > { %10314 = vst [vmem:[#allocation97_spill] sm:$0xff] %v8219_v9  ;;  %v2047_v39 = vadd.f32 %v8219_v9, %v8217_v11  ;;  %v10325_v9 = vld [vmem:[#allocation66_spill] sm:$0xff] }
 0x27b   : > { %2048 = vadd.xlane.f32.xlu1 %v2047_v39  ;;  %v8235_v26 = vpop.eup %6511  ;;  %v10323_v39 = vld [vmem:[#allocation67_spill] sm:$0xff] }
 0x27c   : > { %10319 = vst [vmem:[#allocation53_spill] sm:$0xff] %v8235_v26  ;;  %v1202_v32 = vpop.xlane.xlu1 %1201  ;;  %v6514_v3 = vpop.eup %6513 }
 0x27d   : > { %v8241_v2 = vpop.eup %6515  ;;  %6519 = vrcp.f32 %v1202_v32  ;;  %v1244_v8 = vmul.f32 %v6514_v3, %v10322_v24  ;;  %v1243_v11 = vmul.f32 %v6514_v3, %v10324_v38  ;;  %v6332_v24 = vld [vmem:[%s9909_s2 + $0x4] ss:$16 sps:$4 sm:$0xff]  }
 0x27e   : > { %10321 = vst [vmem:[#allocation54_spill] sm:$0xff] %v8241_v2  ;;  %v2053_v51 = vadd.f32 %v8241_v2, %v8235_v26  ;;  %v6333_v38 = vld [vmem:[%s9909_s2 + $0x124] ss:$16 sps:$4 sm:$0xff]   ;;  %v2839_v26 = vpop.permute.xlu0 %2838 }
 0x27f   : > { %v6518_v35 = vpop.eup %6517  ;;  %3056 = vmax.xlane.f32.xlu1 %v3055_v14  ;;  %v10327_v14 = vld [vmem:[#allocation56_spill] sm:$0xff] }
 0x280   : > { %v1205_v12 = vpop.xlane.xlu1 %1204  ;;  %v1247_v36 = vmul.f32 %v6518_v35, %v10323_v39  ;;  %v1246_v50 = vmul.f32 %v6518_v35, %v10325_v9  ;;  %v1949_v39 = vsub.f32 %v10327_v14, %v7913_v23  ;;  %v6334_v23 = vld [vmem:[%s9909_s2 + $0x24] ss:$16 sps:$4 sm:$0xff]   ;;  %v1955_v35 = vsub.f32 %v10329_v61, %v7928_v53  ;;  %v10334_v61 = vld [vmem:[#allocation25_spill] sm:$0xff] }
 0x281   : > { %6521 = vrcp.f32 %v1205_v12  ;;  %v6337_v14 = vld [vmem:[%s9909_s2 + $0x164] ss:$16 sps:$4 sm:$0xff]  }
 0x282   : > { %v1291_v42 = vpack.c.bf16 %v1247_v36, %v1244_v8  ;;  %v1290_v32 = vpack.c.bf16 %v1246_v50, %v1243_v11  ;;  %6523 = vpow2.f32 %v1984_v22  ;;  %v1992_v36 = vmul.f32 1.442695, %v1948_v10  ;;  %v10328_v50 = vld [vmem:[#allocation57_spill] sm:$0xff]  ;;  %v6335_v22 = vld [vmem:[%s9909_s2 + $0x144] ss:$16 sps:$4 sm:$0xff]   ;;  %v10330_v10 = vld [vmem:[#allocation59_spill] sm:$0xff] }
 0x283   : > { %2054 = vadd.xlane.f32.xlu1 %v2053_v51  ;;  %6525 = vpow2.f32 %v1986_v57  ;;  %v1954_v11 = vsub.f32 %v10328_v50, %v7928_v53  ;;  %v1994_v3 = vmul.f32 1.442695, %v1949_v39  ;;  %v1958_v8 = vsub.f32 %v10330_v10, %v7964_v58  ;;  %v6336_v53 = vld [vmem:[%s9909_s2 + $0x44] ss:$16 sps:$4 sm:$0xff]  }
 0x284   : > { %1466 = vmatprep.mubr.bf16.mxu1 %v1291_v42  ;;  %v8259_v9 = vpop.xlane.xlu1 %1919  ;;  %6527 = vpow2.f32 %v1992_v36  ;;  %v1959_v42 = vsub.f32 %v10331_v41, %v7964_v58  ;;  %v10333_v50 = vld [vmem:[#allocation20_spill] sm:$0xff] }
 0x285   : > { %1467 = vmatmul.mubr.bf16.vlgmr.msra.gmra.mrb[0].mxu1 %v1290_v32  ;;  %v2004_v51 = vmul.f32 1.442695, %v1954_v11  ;;  %6529 = vpow2.f32 %v1994_v3  ;;  %v2012_v41 = vmul.f32 1.442695, %v1958_v8  ;;  %v1956_v27 = vsub.f32 %v10342_v52, %v8259_v9 }
 0x286   : > { %5744 = vmatpush3.bf16.msra.mxu1 %v6332_v24  ;;  %v2006_v24 = vmul.f32 1.442695, %v1955_v35  ;;  %v2014_v3 = vmul.f32 1.442695, %v1959_v42 }
 0x287   : > { %5745 = vmatprep.subr.bf16.mxu1 %v6333_v38  ;;  %v6520_v12 = vpop.eup %6519  ;;  %v10332_v38 = vld [vmem:[#allocation26_spill] sm:$0xff] }
 0x288   : > { %v1208_v57 = vpop.xlane.xlu1 %1207  ;;  %v1250_v36 = vmul.f32 %v6520_v12, %v10332_v38  ;;  %v1249_v58 = vmul.f32 %v6520_v12, %v10334_v61  ;;  %v6338_v38 = vld [vmem:[%s9909_s2 + $0x64] ss:$16 sps:$4 sm:$0xff]  }
 0x289   : > { %6531 = vrcp.f32 %v1208_v57  ;;  %v6339_v12 = vld [vmem:[%s9909_s2 + $0x184] ss:$16 sps:$4 sm:$0xff]   ;;  %v8296_v57 = vadd.f32 %v7939_v7, %v2839_v26 }
 0x28a   : > { %5746 = vmatpush3.bf16.msra.mxu1 %v6334_v23  ;;  %v10335_v23 = vld [vmem:[#allocation19_spill] sm:$0xff]  ;;  %6533 = vpow2.f32 %v2004_v51  ;;  %v10338_v51 = vld [vmem:[#allocation17_spill] sm:$0xff] }
 0x28b   : > { %v6522_v32 = vpop.eup %6521  ;;  %5747 = vmatprep.subr.bf16.mxu1 %v6335_v22  ;;  %v1952_v42 = vsub.f32 %v10338_v51, %v8221_v6 }
 0x28c   : > { %v1211_v39 = vpop.xlane.xlu1 %1210  ;;  %v1253_v11 = vmul.f32 %v6522_v32, %v10333_v50  ;;  %v1252_v10 = vmul.f32 %v6522_v32, %v10335_v23  ;;  %v8285_v2 = vpop.eup %6523  ;;  %v10339_v23 = vld [vmem:[#allocation68_spill] sm:$0xff] }
 0x28d   : > { %10336 = vst [vmem:[#allocation65_spill] sm:$0xff] %v8285_v2  ;;  %v8290_v20 = vpop.eup %6525  ;;  %6535 = vrcp.f32 %v1211_v39 }
 0x28e   : > { %v1293_v35 = vpack.c.bf16 %v1253_v11, %v1250_v36  ;;  %v1292_v22 = vpack.c.bf16 %v1252_v10, %v1249_v58  ;;  %5748 = vmatpush3.bf16.msra.mxu1 %v6336_v53  ;;  %10337 = vst [vmem:[#allocation67_spill] sm:$0xff] %v8290_v20  ;;  %6537 = vpow2.f32 %v2006_v24  ;;  %v1929_v53 = vpop.xlane.xlu0 %1928  ;;  %v6340_v24 = vld [vmem:[%s9909_s2 + $0x84] ss:$16 sps:$4 sm:$0xff]   ;;  %v8310_v36 = vadd.f32 %v7942_v45, %v2839_v26  ;;  %v8315_v61 = vpop.eup %6527 }
 0x28f   : > { %5749 = vmatprep.subr.bf16.mxu1 %v6337_v14  ;;  %6539 = vpow2.f32 %v2012_v41  ;;  %v8304_v14 = vadd.f32 %v8290_v20, %v8285_v2  ;;  %v6341_v11 = vld [vmem:[%s9909_s2 + $0x1a4] ss:$16 sps:$4 sm:$0xff]   ;;  %v8318_v58 = vmul.f32 0.2, %v8296_v57  ;;  %v1962_v10 = vsub.f32 %v10339_v23, %v1929_v53  ;;  %v10340_v41 = vld [vmem:[#allocation69_spill] sm:$0xff] }
 0x290   : > { %1474 = vmatprep.mubr.bf16.mxu1 %v1293_v35  ;;  %v2823_v8 = vpop.permute.xlu1 %2822  ;;  %6541 = vpow2.f32 %v2014_v3  ;;  %v1963_v3 = vsub.f32 %v10340_v41, %v1929_v53  ;;  %v10341_v2 = vld [vmem:[#allocation18_spill] sm:$0xff] }
 0x291   : > { %v2876_v32 = vadd.f32 %v7939_v7, %v2823_v8  ;;  %v2877_v39 = vadd.f32 %v7942_v45, %v2823_v8  ;;  %1475 = vmatmul.mubr.bf16.gmra.mrb[4].mxu1 %v1292_v22  ;;  %v8322_v22 = vpop.eup %6529  ;;  %v1953_v20 = vsub.f32 %v10341_v2, %v8221_v6 }
 0x292   : > { %5750 = vmatpush3.bf16.msra.mxu1 %v6338_v38  ;;  %v2000_v38 = vmul.f32 1.442695, %v1952_v42  ;;  %v6342_v42 = vld [vmem:[%s9909_s2 + $0xa4] ss:$16 sps:$4 sm:$0xff]   ;;  %v2022_v41 = vmul.f32 1.442695, %v1963_v3 }
 0x293   : > { %vm2908_vm11 = vcmp.gt.f32.partialorder %v2876_v32, 0.0  ;;  %vm2909_vm9 = vcmp.gt.f32.partialorder %v2877_v39, 0.0  ;;  %v2940_v50 = vmul.f32 0.2, %v2876_v32  ;;  %5751 = vmatprep.subr.bf16.mxu1 %v6339_v12  ;;  %v2941_v35 = vmul.f32 0.2, %v2877_v39 }
 0x294   : > { %v2831_v26 = vpop.permute.xlu1 %2830 }
 0x295   : > { %v2880_v12 = vadd.f32 %v7939_v7, %v2831_v26  ;;  %v2881_v8 = vadd.f32 %v7942_v45, %v2831_v26  ;;  %v2972_v51 = vsel %vm2908_vm11, %v2876_v32, %v2940_v50  ;;  %v2973_v23 = vsel %vm2909_vm9, %v2877_v39, %v2941_v35  ;;  %v6343_v32 = vld [vmem:[%s9909_s2 + $0x1c4] ss:$16 sps:$4 sm:$0xff]   ;;  %v6532_v50 = vpop.eup %6531 }
 0x296   : > { %v8333_v53 = vsel %vm10344_vm10, %v2972_v51, -9e+15  ;;  %5752 = vmatpush3.bf16.msra.mxu1 %v6340_v24  ;;  %v8341_v2 = vpop.eup %6533  ;;  %v2020_v39 = vmul.f32 1.442695, %v1962_v10  ;;  %v10345_v24 = vld [vmem:[#allocation38_spill] sm:$0xff]  ;;  %v10347_v51 = vld [vmem:[#allocation71_spill] sm:$0xff] }
 0x297   : > { %vm2912_vm3 = vcmp.gt.f32.partialorder %v2880_v12, 0.0  ;;  %vm2913_vm14 = vcmp.gt.f32.partialorder %v2881_v8, 0.0  ;;  %v2944_v6 = vmul.f32 0.2, %v2880_v12  ;;  %v2945_v52 = vmul.f32 0.2, %v2881_v8  ;;  %5753 = vmatprep.subr.bf16.mxu1 %v6341_v11  ;;  %v6536_v21 = vpop.eup %6535 }
 0x298   : > { %v2843_v35 = vpop.permute.xlu1 %2842  ;;  %vm10346_vm15 = vcmp.gt.f32.partialorder %v10345_v24, 0.0  ;;  %v1256_v55 = vmul.f32 %v6532_v50, %v10347_v51  ;;  %v10348_v11 = vld [vmem:[#allocation70_spill] sm:$0xff]  ;;  %v8353_v31 = vpop.eup %6537  ;;  %v10349_v10 = vld [vmem:[#allocation75_spill] sm:$0xff]  ;;  %v1258_v24 = vmul.f32 %v6536_v21, %v10350_v49  ;;  %v2002_v49 = vmul.f32 1.442695, %v1953_v20 }
 0x299   : > { %v8345_v26 = vsel %vm10346_vm15, %v2973_v23, -9e+15  ;;  %v2886_v46 = vadd.f32 %v7939_v7, %v2843_v35  ;;  %v2887_v60 = vadd.f32 %v7942_v45, %v2843_v35  ;;  %v1255_v33 = vmul.f32 %v6532_v50, %v10348_v11  ;;  %v6344_v45 = vld [vmem:[%s9909_s2 + $0xc4] ss:$16 sps:$4 sm:$0xff]   ;;  %v8362_v7 = vpop.eup %6539 }
 0x29a   : > { %v3046_v15 = vmax.f32 %v8333_v53, %v8345_v26  ;;  %v1259_v3 = vmul.f32 %v6536_v21, %v10349_v10  ;;  %v2976_v23 = vsel %vm2912_vm3, %v2880_v12, %v2944_v6  ;;  %v2977_v51 = vsel %vm2913_vm14, %v2881_v8, %v2945_v52  ;;  %5754 = vmatpush3.bf16.msra.mxu1 %v6342_v42  ;;  %v8364_v11 = vpop.eup %6541  ;;  %v10351_v21 = vld [vmem:[#allocation34_spill] sm:$0xff] }
 0x29b   : > { %vm2918_vm0 = vcmp.gt.f32.partialorder %v2886_v46, 0.0  ;;  %vm2919_vm11 = vcmp.gt.f32.partialorder %v2887_v60, 0.0  ;;  %v2950_v50 = vmul.f32 0.2, %v2886_v46  ;;  %v2951_v35 = vmul.f32 0.2, %v2887_v60  ;;  %5755 = vmatprep.subr.bf16.mxu1 %v6343_v32 }
 0x29c   : > { %3047 = vmax.xlane.f32.xlu0 %v3046_v15  ;;  %v1957_v12 = vsub.f32 %v10351_v21, %v8259_v9  ;;  %v1295_v8 = vpack.c.bf16 %v1259_v3, %v1256_v55  ;;  %v1294_v42 = vpack.c.bf16 %v1258_v24, %v1255_v33  ;;  %v6345_v6 = vld [vmem:[%s9909_s2 + $0x1e4] ss:$16 sps:$4 sm:$0xff]   ;;  %6543 = vpow2.f32 %v2020_v39 }
 0x29d   : > { %vm10352_vm9 = vcmp.gt.f32.partialorder %v10250_v1, 0.0  ;;  %v2982_v10 = vsel %vm2918_vm0, %v2886_v46, %v2950_v50  ;;  %v2983_v15 = vsel %vm2919_vm11, %v2887_v60, %v2951_v35  ;;  %v6346_v20 = vld [vmem:[%s9909_s2 + $0xe4] ss:$16 sps:$4 sm:$0xff]   ;;  %6545 = vpow2.f32 %v2022_v41 }
 0x29e   : > { %v8373_v52 = vsel %vm10352_vm9, %v2976_v23, -9e+15  ;;  %1482 = vmatprep.mubr.bf16.mxu1 %v1295_v8  ;;  %vm10353_vm10 = vcmp.gt.f32.partialorder %v10252_v59, 0.0  ;;  %v8384_v9 = vsel %vm10102_vm7, %v2982_v10, -9e+15  ;;  %5756 = vmatpush3.bf16.msra.mxu1 %v6344_v45  ;;  %6547 = vpow2.f32 %v2000_v38 }
 0x29f   : > { %v8380_v55 = vsel %vm10353_vm10, %v2977_v51, -9e+15  ;;  %v8388_v32 = vsel %vm10101_vm2, %v2983_v15, -9e+15  ;;  %v2949_v60 = vmul.f32 0.2, %v8310_v36  ;;  %1483 = vmatmul.mubr.bf16.gmra.mrb[8].mxu1 %v1294_v42  ;;  %6549 = vpow2.f32 %v2002_v49  ;;  %5757 = vmatprep.subr.bf16.mxu1 %v6345_v6  ;;  %v1214_v15 = vpop.xlane.xlu0 %1213 }
 0x2a0   : > { %v2008_v46 = vmul.f32 1.442695, %v1956_v27  ;;  %2045 = vadd.xlane.f32.xlu0 %v8304_v14  ;;  %v3061_v39 = vmax.f32 %v8384_v9, %v8388_v32  ;;  %vm2916_vm3 = vcmp.gt.f32.partialorder %v8296_v57, 0.0  ;;  %vm2917_vm14 = vcmp.gt.f32.partialorder %v8310_v36, 0.0 }
 0x2a1   : > { %v2010_v41 = vmul.f32 1.442695, %v1957_v12  ;;  %v3052_v24 = vmax.f32 %v8373_v52, %v8380_v55  ;;  %v2059_v27 = vadd.f32 %v8353_v31, %v8341_v2  ;;  %v2980_v14 = vsel %vm2916_vm3, %v8296_v57, %v8318_v58 }
 0x2a2   : > { %3062 = vmax.xlane.f32.xlu1 %v3061_v39  ;;  %5758 = vmatpush3.bf16.msra.mxu1 %v6346_v20  ;;  %6551 = vpow2.f32 %v2008_v46  ;;  %v2981_v38 = vsel %vm2917_vm14, %v8310_v36, %v2949_v60  ;;  %v2050_v3 = vadd.f32 %v8322_v22, %v8315_v61  ;;  %v8407_v51 = vsel %vm10113_vm13, %v2980_v14, -9e+15  ;;  %v10357_v60 = vld [vmem:[#allocation76_spill] sm:$0xff]  ;;  %v10358_v39 = vld [vmem:[#allocation77_spill] sm:$0xff] }
 0x2a3   : > { %6553 = vpow2.f32 %v2010_v41  ;;  %v8411_v50 = vsel %vm10112_vm12, %v2981_v38, -9e+15  ;;  %v2065_v57 = vadd.f32 %v8364_v11, %v8362_v7  ;;  %v1932_v20 = vpop.xlane.xlu0 %1931  ;;  %v10359_v38 = vld [vmem:[#allocation41_spill] sm:$0xff]  ;;  %v6982_v33 = vmov 3  }
 0x2a4   : > { %3053 = vmax.xlane.f32.xlu0 %v3052_v24  ;;  %v3058_v49 = vmax.f32 %v8407_v51, %v8411_v50  ;;  %v1964_v46 = vsub.f32 %v10357_v60, %v1932_v20  ;;  %v1965_v41 = vsub.f32 %v10358_v39, %v1932_v20  ;;  %6555 = vrcp.f32 %v1214_v15  ;;  %6290 = vset.pattern.permute.xlu1 %v6982_v33 }
 0x2a5   : > { %6289 = vset.pattern.permute.xlu0 %v6982_v33 }
 0x2a6   : > { %2060 = vadd.xlane.f32.xlu1 %v2059_v27  ;;  %v8413_v35 = vpop.eup %6543  ;;  %v2024_v24 = vmul.f32 1.442695, %v1964_v46  ;;  %v10361_v46 = vld [vmem:[#allocation80_spill] sm:$0xff] }
 0x2a7   : > { %v8417_v36 = vpop.eup %6545 }
 0x2a8   : > { %2051 = vadd.xlane.f32.xlu0 %v2050_v3  ;;  %v8419_v58 = vpop.eup %6547  ;;  %v2071_v12 = vadd.f32 %v8417_v36, %v8413_v35  ;;  %6557 = vpow2.f32 %v2024_v24 }
 0x2a9   : > { %v8423_v21 = vpop.eup %6549 }
 0x2aa   : > { %2066 = vadd.xlane.f32.xlu1 %v2065_v57  ;;  %v2056_v42 = vadd.f32 %v8423_v21, %v8419_v58 }
 0x2ac   : > { %3059 = vmax.xlane.f32.xlu0 %v3058_v49  ;;  %v8427_v8 = vpop.eup %6551 }
 0x2ad   : > { %v8431_v6 = vpop.eup %6553 }
 0x2ae   : > { %2072 = vadd.xlane.f32.xlu1 %v2071_v12  ;;  %v2062_v10 = vadd.f32 %v8431_v6, %v8427_v8  ;;  %v2026_v12 = vmul.f32 1.442695, %v1965_v41 }
 0x2b0   : > { %2057 = vadd.xlane.f32.xlu0 %v2056_v42 }
 0x2b4   : > { %2063 = vadd.xlane.f32.xlu0 %v2062_v10  ;;  %v1220_v10 = vpop.xlane.xlu0 %1219 }
 0x2c9   : > { %v1926_v27 = vpop.xlane.xlu1 %1925 }
 0x2ca   : > { %v1960_v14 = vsub.f32 %v7954_v56, %v1926_v27  ;;  %v1961_v3 = vsub.f32 %v10359_v38, %v1926_v27  ;;  %v6556_v38 = vpop.eup %6555 }
 0x2cc   : > { %v2016_v57 = vmul.f32 1.442695, %v1960_v14  ;;  %v2018_v49 = vmul.f32 1.442695, %v1961_v3 }
 0x2cd   : > { %v1217_v42 = vpop.xlane.xlu1 %1216 }
 0x2ce   : > { %6559 = vpow2.f32 %v2016_v57 }
 0x2cf   : > { %6561 = vpow2.f32 %v2018_v49  ;;  %v8443_v49 = vpop.eup %6557 }
 0x2d0   : > { %6563 = vrcp.f32 %v1217_v42 }
 0x2d1   : > { %6565 = vpow2.f32 %v2026_v12  ;;  %v1935_v60 = vpop.xlane.xlu1 %1934 }
 0x2d2   : > { %v1966_v20 = vsub.f32 %v10360_v43, %v1935_v60  ;;  %v1967_v39 = vsub.f32 %v10361_v46, %v1935_v60  ;;  %6567 = vrcp.f32 %v1220_v10 }
 0x2d3   : > { %v3018_v56 = vpop.xlane.xlu0 %3017 }
 0x2d4   : > { %v2028_v15 = vmul.f32 1.442695, %v1966_v20  ;;  %v2030_v27 = vmul.f32 1.442695, %v1967_v39  ;;  %v3064_v24 = vsub.f32 %v8005_v29, %v3018_v56  ;;  %v3065_v41 = vsub.f32 %v8009_v16, %v3018_v56  ;;  %v10362_v39 = vld [vmem:[#allocation73_spill] sm:$0xff] }
 0x2d5   : > { %v1223_v14 = vpop.xlane.xlu1 %1222  ;;  %v1262_v56 = vmul.f32 %v6556_v38, %v10362_v39 }
 0x2d6   : > { %6569 = vpow2.f32 %v2028_v15  ;;  %v3096_v3 = vmul.f32 1.442695, %v3064_v24  ;;  %v3098_v57 = vmul.f32 1.442695, %v3065_v41  ;;  %v10363_v15 = vld [vmem:[#allocation28_spill] sm:$0xff] }
 0x2d7   : > { %6571 = vpow2.f32 %v2030_v27  ;;  %v1226_v43 = vpop.xlane.xlu0 %1225  ;;  %v10364_v24 = vld [vmem:[#allocation72_spill] sm:$0xff] }
 0x2d8   : > { %v8445_v12 = vpop.eup %6559  ;;  %6573 = vpow2.f32 %v3096_v3  ;;  %v1261_v41 = vmul.f32 %v6556_v38, %v10364_v24  ;;  %v10365_v3 = vld [vmem:[#allocation27_spill] sm:$0xff] }
 0x2d9   : > { %v8447_v33 = vpop.eup %6561  ;;  %6575 = vpow2.f32 %v3098_v57  ;;  %v3021_v42 = vpop.xlane.xlu1 %3020 }
 0x2da   : > { %v6564_v29 = vpop.eup %6563  ;;  %6577 = vrcp.f32 %v1223_v14  ;;  %v3066_v16 = vsub.f32 %v8034_v40, %v3021_v42  ;;  %v3067_v10 = vsub.f32 %v8038_v54, %v3021_v42  ;;  %v2068_v60 = vadd.f32 %v8447_v33, %v8445_v12 }
 0x2db   : > { %v8453_v20 = vpop.eup %6565  ;;  %v3024_v46 = vpop.xlane.xlu0 %3023  ;;  %v1265_v27 = vmul.f32 %v6564_v29, %v10363_v15  ;;  %v1264_v57 = vmul.f32 %v6564_v29, %v10365_v3  ;;  %6579 = vrcp.f32 %v1226_v43 }
 0x2dc   : > { %v3100_v45 = vmul.f32 1.442695, %v3066_v16  ;;  %v3102_v14 = vmul.f32 1.442695, %v3067_v10  ;;  %2069 = vadd.xlane.f32.xlu0 %v2068_v60  ;;  %v3068_v40 = vsub.f32 %v8050_v48, %v3024_v46  ;;  %v3069_v54 = vsub.f32 %v8054_v19, %v3024_v46  ;;  %v6568_v38 = vpop.eup %6567 }
 0x2dd   : > { %v1229_v42 = vpop.xlane.xlu1 %1228  ;;  %v1297_v23 = vpack.c.bf16 %v1265_v27, %v1262_v56  ;;  %v1296_v59 = vpack.c.bf16 %v1264_v57, %v1261_v41  ;;  %v2074_v15 = vadd.f32 %v8453_v20, %v8443_v49  ;;  %v10367_v56 = vld [vmem:[#allocation78_spill] sm:$0xff] }
 0x2de   : > { %6581 = vpow2.f32 %v3100_v45  ;;  %v3104_v1 = vmul.f32 1.442695, %v3068_v40  ;;  %v3106_v39 = vmul.f32 1.442695, %v3069_v54  ;;  %v1267_v27 = vmul.f32 %v6568_v38, %v10367_v56 }
 0x2df   : > { %6583 = vpow2.f32 %v3102_v14  ;;  %1490 = vmatprep.mubr.bf16.mxu1 %v1297_v23  ;;  %v1232_v29 = vpop.xlane.xlu0 %1231  ;;  %v10368_v14 = vld [vmem:[#allocation36_spill] sm:$0xff] }
 0x2e0   : > { %v8463_v16 = vpop.eup %6569  ;;  %6585 = vpow2.f32 %v3104_v1  ;;  %1491 = vmatmul.mubr.bf16.gmra.mrb[12].mxu1 %v1296_v59  ;;  %2075 = vadd.xlane.f32.xlu0 %v2074_v15  ;;  %v10366_v1 = vld [vmem:[#allocation79_spill] sm:$0xff] }
 0x2e1   : > { %v8465_v48 = vpop.eup %6571  ;;  %6587 = vpow2.f32 %v3106_v39  ;;  %v3027_v19 = vpop.xlane.xlu1 %3026  ;;  %v1268_v59 = vmul.f32 %v6568_v38, %v10366_v1 }
 0x2e2   : > { %v8467_v43 = vpop.eup %6573  ;;  %6589 = vrcp.f32 %v1229_v42  ;;  %v3070_v45 = vsub.f32 %v8079_v0, %v3027_v19  ;;  %v3071_v10 = vsub.f32 %v8083_v18, %v3027_v19  ;;  %v2077_v23 = vadd.f32 %v8465_v48, %v8463_v16  ;;  %v10369_v42 = vld [vmem:[#allocation35_spill] sm:$0xff] }
 0x2e3   : > { %v8473_v60 = vpop.eup %6575  ;;  %v3030_v46 = vpop.xlane.xlu0 %3029  ;;  %6591 = vrcp.f32 %v1232_v29 }
 0x2e4   : > { %v6578_v24 = vpop.eup %6577  ;;  %v3108_v41 = vmul.f32 1.442695, %v3070_v45  ;;  %v3110_v3 = vmul.f32 1.442695, %v3071_v10  ;;  %2078 = vadd.xlane.f32.xlu1 %v2077_v23  ;;  %v3072_v57 = vsub.f32 %v8091_v25, %v3030_v46  ;;  %v3073_v0 = vsub.f32 %v8095_v34, %v3030_v46 }
 0x2e5   : > { %v1235_v18 = vpop.xlane.xlu1 %1234  ;;  %v1271_v40 = vmul.f32 %v6578_v24, %v10368_v14  ;;  %v3160_v54 = vadd.f32 %v8473_v60, %v8467_v43  ;;  %v1270_v39 = vmul.f32 %v6578_v24, %v10369_v42  ;;  %v6580_v19 = vpop.eup %6579 }
 0x2e6   : > { %6593 = vpow2.f32 %v3108_v41  ;;  %v3112_v15 = vmul.f32 1.442695, %v3072_v57  ;;  %v3114_v38 = vmul.f32 1.442695, %v3073_v0  ;;  %v10370_v41 = vld [vmem:[#allocation43_spill] sm:$0xff]  ;;  %v10371_v57 = vld [vmem:[#allocation42_spill] sm:$0xff] }
 0x2e7   : > { %6595 = vpow2.f32 %v3110_v3  ;;  %v1299_v45 = vpack.c.bf16 %v1271_v40, %v1268_v59  ;;  %3161 = vadd.xlane.f32.xlu0 %v3160_v54  ;;  %v1298_v10 = vpack.c.bf16 %v1270_v39, %v1267_v27  ;;  %v1238_v25 = vpop.xlane.xlu0 %1237  ;;  %v1274_v3 = vmul.f32 %v6580_v19, %v10370_v41 }
 0x2e8   : > { %v8483_v23 = vpop.eup %6581  ;;  %6597 = vpow2.f32 %v3112_v15  ;;  %v1273_v0 = vmul.f32 %v6580_v19, %v10371_v57  ;;  %v10372_v15 = vld [vmem:[#allocation81_spill] sm:$0xff] }
 0x2e9   : > { %v8485_v34 = vpop.eup %6583  ;;  %6599 = vpow2.f32 %v3114_v38  ;;  %1498 = vmatprep.mubr.bf16.mxu1 %v1299_v45  ;;  %v3033_v29 = vpop.xlane.xlu1 %3032 }
 0x2ea   : > { %v8487_v46 = vpop.eup %6585  ;;  %6601 = vrcp.f32 %v1235_v18  ;;  %1499 = vmatmul.mubr.bf16.gmra.mrb[16].mxu1 %v1298_v10  ;;  %v3074_v1 = vsub.f32 %v8116_v44, %v3033_v29  ;;  %v3075_v56 = vsub.f32 %v8120_v5, %v3033_v29  ;;  %v3163_v59 = vadd.f32 %v8485_v34, %v8483_v23 }
 0x2eb   : > { %v8493_v27 = vpop.eup %6587  ;;  %v3036_v24 = vpop.xlane.xlu0 %3035  ;;  %6603 = vrcp.f32 %v1238_v25 }
 0x2ec   : > { %v6590_v14 = vpop.eup %6589  ;;  %v3116_v40 = vmul.f32 1.442695, %v3074_v1  ;;  %v3118_v54 = vmul.f32 1.442695, %v3075_v56  ;;  %3164 = vadd.xlane.f32.xlu1 %v3163_v59  ;;  %v3076_v18 = vsub.f32 %v8126_v62, %v3036_v24  ;;  %v3077_v44 = vsub.f32 %v8130_v28, %v3036_v24 }
 0x2ed   : > { %v1241_v5 = vpop.xlane.xlu1 %1240  ;;  %v1277_v42 = vmul.f32 %v6590_v14, %v8000_v17  ;;  %v3166_v39 = vadd.f32 %v8493_v27, %v8487_v46  ;;  %v1276_v38 = vmul.f32 %v6590_v14, %v10372_v15  ;;  %v6592_v10 = vpop.eup %6591 }
 0x2ee   : > { %6605 = vpow2.f32 %v3116_v40  ;;  %v3120_v45 = vmul.f32 1.442695, %v3076_v18  ;;  %v3122_v19 = vmul.f32 1.442695, %v3077_v44  ;;  %v1279_v14 = vmul.f32 %v6592_v10, %v8011_v30  ;;  %v10374_v30 = vld [vmem:[#allocation82_spill] sm:$0xff] }
 0x2ef   : > { %6607 = vpow2.f32 %v3118_v54  ;;  %v1301_v29 = vpack.c.bf16 %v1277_v42, %v1274_v3  ;;  %3167 = vadd.xlane.f32.xlu0 %v3166_v39  ;;  %v1300_v1 = vpack.c.bf16 %v1276_v38, %v1273_v0  ;;  %v2034_v62 = vpop.xlane.xlu0 %2033  ;;  %v1280_v0 = vmul.f32 %v6592_v10, %v8022_v4  ;;  %v10373_v42 = vld [vmem:[#allocation83_spill] sm:$0xff] }
 0x2f0   : > { %v8503_v56 = vpop.eup %6593  ;;  %6609 = vpow2.f32 %v3120_v45 }
 0x2f1   : > { %v8505_v28 = vpop.eup %6595  ;;  %6611 = vpow2.f32 %v3122_v19  ;;  %1506 = vmatprep.mubr.bf16.mxu1 %v1301_v29  ;;  %v3039_v17 = vpop.xlane.xlu1 %3038 }
 0x2f2   : > { %v8507_v25 = vpop.eup %6597  ;;  %6613 = vrcp.f32 %v1241_v5  ;;  %1507 = vmatmul.mubr.bf16.gmra.mrb[20].mxu1 %v1300_v1  ;;  %v3078_v59 = vsub.f32 %v8148_v13, %v3039_v17  ;;  %v3079_v24 = vsub.f32 %v8152_v63, %v3039_v17  ;;  %v3169_v41 = vadd.f32 %v8505_v28, %v8503_v56  ;;  %v6347_v63 = vld [vmem:[%s9909_s2 + $0x108] ss:$16 sps:$4 sm:$0xff]  }
 0x2f3   : > { %v8513_v3 = vpop.eup %6599  ;;  %v3042_v57 = vpop.xlane.xlu0 %3041  ;;  %6615 = vrcp.f32 %v2034_v62  ;;  %5839 = vmatprep.subr.bf16.mxu1 %v6347_v63 }
 0x2f4   : > { %v6602_v40 = vpop.eup %6601  ;;  %v3124_v54 = vmul.f32 1.442695, %v3078_v59  ;;  %v3126_v18 = vmul.f32 1.442695, %v3079_v24  ;;  %3170 = vadd.xlane.f32.xlu1 %v3169_v41  ;;  %v3080_v44 = vsub.f32 %v8160_v47, %v3042_v57  ;;  %v3081_v13 = vsub.f32 %v8164_v37, %v3042_v57  ;;  %v10375_v59 = vld [vmem:[#allocation94_spill] sm:$0xff]  ;;  %v10376_v41 = vld [vmem:[#allocation95_spill] sm:$0xff] }
 0x2f5   : > { %v2037_v5 = vpop.xlane.xlu1 %2036  ;;  %v1283_v39 = vmul.f32 %v6602_v40, %v10373_v42  ;;  %v3172_v4 = vadd.f32 %v8513_v3, %v8507_v25  ;;  %v1282_v15 = vmul.f32 %v6602_v40, %v10374_v30  ;;  %v6604_v47 = vpop.eup %6603  ;;  %v10378_v42 = vld [vmem:[#allocation87_spill] sm:$0xff] }
 0x2f6   : > { %6617 = vpow2.f32 %v3124_v54  ;;  %v3128_v38 = vmul.f32 1.442695, %v3080_v44  ;;  %v3130_v45 = vmul.f32 1.442695, %v3081_v13  ;;  %v10377_v44 = vld [vmem:[#allocation85_spill] sm:$0xff] }
 0x2f7   : > { %6619 = vpow2.f32 %v3126_v18  ;;  %v1303_v37 = vpack.c.bf16 %v1283_v39, %v1280_v0  ;;  %3173 = vadd.xlane.f32.xlu0 %v3172_v4  ;;  %v1302_v19 = vpack.c.bf16 %v1282_v15, %v1279_v14  ;;  %v2040_v17 = vpop.xlane.xlu0 %2039  ;;  %v1286_v13 = vmul.f32 %v6604_v47, %v10377_v44  ;;  %v10379_v4 = vld [vmem:[#allocation84_spill] sm:$0xff]  ;;  %v10380_v15 = vld [vmem:[#allocation86_spill] sm:$0xff] }
 0x2f8   : > { %v8526_v10 = vpop.eup %6605  ;;  %6621 = vpow2.f32 %v3128_v38  ;;  %v1285_v30 = vmul.f32 %v6604_v47, %v10379_v4 }
 0x2f9   : > { %v8528_v29 = vpop.eup %6607  ;;  %6623 = vpow2.f32 %v3130_v45  ;;  %1514 = vmatprep.mubr.bf16.mxu1 %v1303_v37  ;;  %v3045_v1 = vpop.xlane.xlu1 %3044 }
 0x2fa   : > { %v8530_v62 = vpop.eup %6609  ;;  %6625 = vrcp.f32 %v2037_v5  ;;  %1515 = vmatmul.mubr.bf16.gmra.mrb[24].mxu1 %v1302_v19  ;;  %v3082_v24 = vsub.f32 %v10375_v59, %v3045_v1  ;;  %v3083_v57 = vsub.f32 %v10376_v41, %v3045_v1  ;;  %v3175_v0 = vadd.f32 %v8528_v29, %v8526_v10  ;;  %v10382_v41 = vld [vmem:[#allocation62_spill] sm:$0xff] }
 0x2fb   : > { %v8536_v14 = vpop.eup %6611  ;;  %6627 = vrcp.f32 %v2040_v17 }
 0x2fc   : > { %v6614_v40 = vpop.eup %6613  ;;  %v3132_v54 = vmul.f32 1.442695, %v3082_v24  ;;  %v3134_v18 = vmul.f32 1.442695, %v3083_v57  ;;  %3176 = vadd.xlane.f32.xlu1 %v3175_v0  ;;  %v3178_v63 = vadd.f32 %v8536_v14, %v8530_v62  ;;  %v10383_v57 = vld [vmem:[#allocation63_spill] sm:$0xff] }
 0x2fd   : > { %v2043_v5 = vpop.xlane.xlu1 %2042  ;;  %v1289_v39 = vmul.f32 %v6614_v40, %v10378_v42  ;;  %v1288_v38 = vmul.f32 %v6614_v40, %v10380_v15  ;;  %v6616_v45 = vpop.eup %6615 }
 0x2fe   : > { %6629 = vpow2.f32 %v3132_v54  ;;  %3179 = vadd.xlane.f32.xlu0 %v3178_v63 }
 0x2ff   : > { %6631 = vpow2.f32 %v3134_v18  ;;  %v1305_v37 = vpack.c.bf16 %v1289_v39, %v1286_v13  ;;  %v1304_v19 = vpack.c.bf16 %v1288_v38, %v1285_v30  ;;  %v10385_v39 = vld [vmem:[#allocation90_spill] sm:$0xff]  ;;  %v10386_v30 = vld [vmem:[#allocation89_spill] sm:$0xff]  ;;  %v10387_v38 = vld [vmem:[#allocation91_spill] sm:$0xff] }
 0x300   : > { %v8544_v1 = vpop.eup %6617  ;;  %6633 = vrcp.f32 %v2043_v5  ;;  %v10384_v5 = vld [vmem:[#allocation88_spill] sm:$0xff]  ;;  %v2082_v15 = vmul.f32 %v6616_v45, %v10386_v30  ;;  %v6350_v30 = vld [vmem:[%s9909_s2 + $0x28] ss:$16 sps:$4 sm:$0xff]  }
 0x301   : > { %v8546_v59 = vpop.eup %6619  ;;  %1522 = vmatprep.mubr.bf16.mxu1 %v1305_v37  ;;  %v3051_v17 = vpop.xlane.xlu1 %3050  ;;  %v2081_v42 = vmul.f32 %v6616_v45, %v10384_v5  ;;  %v6349_v45 = vld [vmem:[%s9909_s2 + $0x128] ss:$16 sps:$4 sm:$0xff]  }
 0x302   : > { %v8548_v24 = vpop.eup %6621  ;;  %1523 = vmatmul.mubr.bf16.gmra.mrb[28].mxu1 %v1304_v19  ;;  %v3086_v47 = vsub.f32 %v10382_v41, %v3051_v17  ;;  %v3087_v0 = vsub.f32 %v10383_v57, %v3051_v17  ;;  %v3181_v40 = vadd.f32 %v8546_v59, %v8544_v1  ;;  %v10390_v5 = vld [vmem:[#allocation61_spill] sm:$0xff] }
 0x303   : > { %10381 = vst [vmem:[#allocation12_spill] sm:$0xff] %v8548_v24  ;;  %v8554_v54 = vpop.eup %6623 }
 0x304   : > { %v6626_v18 = vpop.eup %6625  ;;  %v3140_v44 = vmul.f32 1.442695, %v3086_v47  ;;  %v3142_v13 = vmul.f32 1.442695, %v3087_v0  ;;  %3182 = vadd.xlane.f32.xlu1 %v3181_v40  ;;  %v3184_v63 = vadd.f32 %v8554_v54, %v8548_v24  ;;  %v6348_v47 = vld [vmem:[%s9909_s2 + $0x8] ss:$16 sps:$4 sm:$0xff]  }
 0x305   : > { %v2084_v4 = vmul.f32 %v6626_v18, %v10385_v39  ;;  %v2085_v37 = vmul.f32 %v6626_v18, %v10387_v38  ;;  %v6628_v19 = vpop.eup %6627  ;;  %v10391_v39 = vld [vmem:[#allocation96_spill] sm:$0xff] }
 0x306   : > { %6635 = vpow2.f32 %v3140_v44  ;;  %3185 = vadd.xlane.f32.xlu0 %v3184_v63  ;;  %v10392_v38 = vld [vmem:[#allocation92_spill] sm:$0xff] }
 0x307   : > { %6637 = vpow2.f32 %v3142_v13  ;;  %v2129_v17 = vpack.c.bf16 %v2085_v37, %v2082_v15  ;;  %v2128_v41 = vpack.c.bf16 %v2084_v4, %v2081_v42  ;;  %v10389_v13 = vld [vmem:[#allocation93_spill] sm:$0xff]  ;;  %v2087_v37 = vmul.f32 %v6628_v19, %v10392_v38 }
 0x308   : > { %v8565_v57 = vpop.eup %6629  ;;  %v8567_v0 = vpop.xlane.xlu1 %2048  ;;  %v2088_v63 = vmul.f32 %v6628_v19, %v10389_v13 }
 0x309   : > { %10388 = vst [vmem:[#allocation66_spill] sm:$0xff] %v8565_v57  ;;  %v8572_v40 = vpop.eup %6631  ;;  %2304 = vmatprep.mubr.bf16.mxu1 %v2129_v17  ;;  %v6351_v17 = vld [vmem:[%s9909_s2 + $0x148] ss:$16 sps:$4 sm:$0xff]  }
 0x30a   : > { %v6634_v18 = vpop.eup %6633  ;;  %2305 = vmatmul.mubr.bf16.vlgmr.msra.gmra.mrb[32].mxu1 %v2128_v41  ;;  %v3187_v44 = vadd.f32 %v8572_v40, %v8565_v57  ;;  %v10393_v41 = vld [vmem:[#allocation98_spill] sm:$0xff]  ;;  %v10394_v57 = vld [vmem:[#allocation99_spill] sm:$0xff] }
 0x30b   : > { %v2091_v42 = vmul.f32 %v6634_v18, %v10390_v5  ;;  %v2090_v4 = vmul.f32 %v6634_v18, %v10391_v39  ;;  %5840 = vmatpush3.bf16.msra.mxu1 %v6348_v47 }
 0x30c   : > { %v3057_v15 = vpop.xlane.xlu1 %3056  ;;  %3188 = vadd.xlane.f32.xlu1 %v3187_v44  ;;  %5841 = vmatprep.subr.bf16.mxu1 %v6349_v45  ;;  %v6352_v44 = vld [vmem:[%s9909_s2 + $0x48] ss:$16 sps:$4 sm:$0xff]  }
 0x30d   : > { %v3090_v13 = vsub.f32 %v10393_v41, %v3057_v15  ;;  %v3091_v5 = vsub.f32 %v10394_v57, %v3057_v15  ;;  %v2131_v24 = vpack.c.bf16 %v2091_v42, %v2088_v63  ;;  %v2130_v18 = vpack.c.bf16 %v2090_v4, %v2087_v37  ;;  %v6353_v45 = vld [vmem:[%s9909_s2 + $0x168] ss:$16 sps:$4 sm:$0xff]  }
 0x30e   : > { %v6354_v57 = vld [vmem:[%s9909_s2 + $0x68] ss:$16 sps:$4 sm:$0xff]  }
 0x30f   : > { %v3148_v47 = vmul.f32 1.442695, %v3090_v13  ;;  %v3150_v39 = vmul.f32 1.442695, %v3091_v5  ;;  %2312 = vmatprep.mubr.bf16.mxu1 %v2131_v24  ;;  %5842 = vmatpush3.bf16.msra.mxu1 %v6350_v30  ;;  %v6355_v63 = vld [vmem:[%s9909_s2 + $0x188] ss:$16 sps:$4 sm:$0xff]  }
 0x310   : > { %v8591_v19 = vpop.eup %6635  ;;  %5843 = vmatprep.subr.bf16.mxu1 %v6351_v17  ;;  %v6356_v42 = vld [vmem:[%s9909_s2 + $0x88] ss:$16 sps:$4 sm:$0xff]  }
 0x311   : > { %v8596_v38 = vpop.eup %6637  ;;  %6639 = vpow2.f32 %v3148_v47  ;;  %v6357_v4 = vld [vmem:[%s9909_s2 + $0x1a8] ss:$16 sps:$4 sm:$0xff]  }
 0x312   : > { %6641 = vpow2.f32 %v3150_v39  ;;  %2313 = vmatmul.mubr.bf16.gmra.mrb[36].mxu1 %v2130_v18  ;;  %v3193_v24 = vadd.f32 %v8596_v38, %v8591_v19  ;;  %v6358_v15 = vld [vmem:[%s9909_s2 + $0xa8] ss:$16 sps:$4 sm:$0xff]  }
 0x313   : > { %5844 = vmatpush3.bf16.msra.mxu1 %v6352_v44  ;;  %v6359_v17 = vld [vmem:[%s9909_s2 + $0x1c8] ss:$16 sps:$4 sm:$0xff]   ;;  %6643 = vrcp.f32 %v8567_v0 }
 0x314   : > { %3194 = vadd.xlane.f32.xlu1 %v3193_v24  ;;  %5845 = vmatprep.subr.bf16.mxu1 %v6353_v45  ;;  %v6360_v13 = vld [vmem:[%s9909_s2 + $0xc8] ss:$16 sps:$4 sm:$0xff]   ;;  %v2055_v45 = vpop.xlane.xlu1 %2054 }
 0x315   : > { %v6361_v5 = vld [vmem:[%s9909_s2 + $0x1e8] ss:$16 sps:$4 sm:$0xff]  }
 0x316   : > { %v6362_v18 = vld [vmem:[%s9909_s2 + $0xe8] ss:$16 sps:$4 sm:$0xff]  }
 0x317   : > { %5846 = vmatpush3.bf16.msra.mxu1 %v6354_v57 }
 0x318   : > { %5847 = vmatprep.subr.bf16.mxu1 %v6355_v63 }
 0x31b   : > { %v8612_v30 = vpop.eup %6639  ;;  %5848 = vmatpush3.bf16.msra.mxu1 %v6356_v42 }
 0x31c   : > { %10395 = vst [vmem:[#allocation55_spill] sm:$0xff] %v8612_v30  ;;  %v8617_v37 = vpop.eup %6641  ;;  %5849 = vmatprep.subr.bf16.mxu1 %v6357_v4 }
 0x31d   : > { %v3199_v41 = vadd.f32 %v8617_v37, %v8612_v30 }
 0x31f   : > { %3200 = vadd.xlane.f32.xlu1 %v3199_v41  ;;  %5850 = vmatpush3.bf16.msra.mxu1 %v6358_v15 }
 0x320   : > { %5851 = vmatprep.subr.bf16.mxu1 %v6359_v17 }
 0x323   : > { %5852 = vmatpush3.bf16.msra.mxu1 %v6360_v13 }
 0x324   : > { %5853 = vmatprep.subr.bf16.mxu1 %v6361_v5 }
 0x327   : > { %5854 = vmatpush3.bf16.msra.mxu1 %v6362_v18 }
 0x329   : > { %v3048_v47 = vpop.xlane.xlu0 %3047 }
 0x32a   : > { %v3084_v39 = vsub.f32 %v8333_v53, %v3048_v47  ;;  %v3085_v44 = vsub.f32 %v8345_v26, %v3048_v47 }
 0x32c   : > { %v3136_v24 = vmul.f32 1.442695, %v3084_v39  ;;  %v3138_v57 = vmul.f32 1.442695, %v3085_v44  ;;  %v6644_v39 = vpop.eup %6643 }
 0x32d   : > { %v2046_v63 = vpop.xlane.xlu0 %2045 }
 0x32e   : > { %6645 = vpow2.f32 %v3136_v24 }
 0x32f   : > { %6647 = vpow2.f32 %v3138_v57  ;;  %v3063_v42 = vpop.xlane.xlu1 %3062 }
 0x330   : > { %6649 = vrcp.f32 %v2046_v63  ;;  %v3094_v4 = vsub.f32 %v8384_v9, %v3063_v42  ;;  %v3095_v15 = vsub.f32 %v8388_v32, %v3063_v42  ;;  %v10396_v63 = vld [vmem:[#allocation67_spill] sm:$0xff] }
 0x331   : > { %v3054_v17 = vpop.xlane.xlu0 %3053  ;;  %6651 = vrcp.f32 %v2055_v45 }
 0x332   : > { %v3156_v41 = vmul.f32 1.442695, %v3094_v4  ;;  %v3158_v13 = vmul.f32 1.442695, %v3095_v15  ;;  %v3088_v53 = vsub.f32 %v8373_v52, %v3054_v17  ;;  %v3089_v26 = vsub.f32 %v8380_v55, %v3054_v17  ;;  %v10397_v4 = vld [vmem:[#allocation97_spill] sm:$0xff] }
 0x333   : > { %v2061_v18 = vpop.xlane.xlu1 %2060  ;;  %v2097_v15 = vmul.f32 %v6644_v39, %v10397_v4  ;;  %v10398_v17 = vld [vmem:[#allocation65_spill] sm:$0xff] }
 0x334   : > { %6653 = vpow2.f32 %v3156_v41  ;;  %v3144_v5 = vmul.f32 1.442695, %v3088_v53  ;;  %v3146_v0 = vmul.f32 1.442695, %v3089_v26 }
 0x335   : > { %6655 = vpow2.f32 %v3158_v13  ;;  %v2052_v47 = vpop.xlane.xlu0 %2051  ;;  %v10399_v13 = vld [vmem:[#allocation64_spill] sm:$0xff] }
 0x336   : > { %6657 = vpow2.f32 %v3144_v5  ;;  %v2096_v53 = vmul.f32 %v6644_v39, %v10399_v13 }
 0x337   : > { %6659 = vpow2.f32 %v3146_v0  ;;  %v2067_v52 = vpop.xlane.xlu1 %2066 }
 0x338   : > { %v8640_v9 = vpop.eup %6645  ;;  %6661 = vrcp.f32 %v2052_v47 }
 0x339   : > { %v8642_v32 = vpop.eup %6647  ;;  %v3060_v44 = vpop.xlane.xlu0 %3059  ;;  %6663 = vrcp.f32 %v2061_v18 }
 0x33a   : > { %v6650_v24 = vpop.eup %6649  ;;  %v3092_v55 = vsub.f32 %v8407_v51, %v3060_v44  ;;  %v3093_v45 = vsub.f32 %v8411_v50, %v3060_v44  ;;  %v3190_v57 = vadd.f32 %v8642_v32, %v8640_v9  ;;  %6665 = vrcp.f32 %v2067_v52 }
 0x33b   : > { %v2094_v42 = vmul.f32 %v6650_v24, %v10396_v63  ;;  %v2093_v41 = vmul.f32 %v6650_v24, %v10398_v17  ;;  %v6652_v0 = vpop.eup %6651 }
 0x33c   : > { %v3152_v26 = vmul.f32 1.442695, %v3092_v55  ;;  %v3154_v5 = vmul.f32 1.442695, %v3093_v45  ;;  %3191 = vadd.xlane.f32.xlu0 %v3190_v57  ;;  %v10400_v57 = vld [vmem:[#allocation54_spill] sm:$0xff] }
 0x33d   : > { %v2133_v51 = vpack.c.bf16 %v2097_v15, %v2094_v42  ;;  %v2058_v47 = vpop.xlane.xlu0 %2057  ;;  %v2132_v50 = vpack.c.bf16 %v2096_v53, %v2093_v41  ;;  %v2103_v42 = vmul.f32 %v6652_v0, %v10400_v57  ;;  %v10401_v15 = vld [vmem:[#allocation53_spill] sm:$0xff] }
 0x33e   : > { %v8652_v44 = vpop.eup %6653  ;;  %6667 = vpow2.f32 %v3152_v26  ;;  %v2102_v17 = vmul.f32 %v6652_v0, %v10401_v15 }
 0x33f   : > { %v8654_v30 = vpop.eup %6655  ;;  %6669 = vpow2.f32 %v3154_v5  ;;  %2320 = vmatprep.mubr.bf16.mxu1 %v2133_v51 }
 0x340   : > { %v8656_v63 = vpop.eup %6657  ;;  %6671 = vrcp.f32 %v2058_v47  ;;  %2321 = vmatmul.mubr.bf16.gmra.mrb[40].mxu1 %v2132_v50  ;;  %v3205_v18 = vadd.f32 %v8654_v30, %v8652_v44 }
 0x341   : > { %v8660_v39 = vpop.eup %6659  ;;  %v2064_v24 = vpop.xlane.xlu0 %2063 }
 0x342   : > { %6673 = vrcp.f32 %v2064_v24  ;;  %3206 = vadd.xlane.f32.xlu1 %v3205_v18  ;;  %v3196_v52 = vadd.f32 %v8660_v39, %v8656_v63  ;;  %v6662_v55 = vpop.eup %6661 }
 0x343   : > { %v2100_v45 = vmul.f32 %v6662_v55, %v8322_v22  ;;  %v2099_v4 = vmul.f32 %v6662_v55, %v8315_v61  ;;  %v6664_v41 = vpop.eup %6663 }
 0x344   : > { %3197 = vadd.xlane.f32.xlu0 %v3196_v52  ;;  %v6666_v26 = vpop.eup %6665  ;;  %v2109_v61 = vmul.f32 %v6664_v41, %v8353_v31  ;;  %v2108_v18 = vmul.f32 %v6664_v41, %v8341_v2 }
 0x345   : > { %v2135_v13 = vpack.c.bf16 %v2103_v42, %v2100_v45  ;;  %v2134_v53 = vpack.c.bf16 %v2102_v17, %v2099_v4  ;;  %v2115_v57 = vmul.f32 %v6666_v26, %v8364_v11  ;;  %v2114_v2 = vmul.f32 %v6666_v26, %v8362_v7  ;;  %v6956_v4 = vld [vmem:[%s7088_s19 + $0x10] sm:$0xff]  ;;  %v6957_v17 = vld [vmem:[%s7088_s19 + $0x18] sm:$0xff]  ;;  %v6958_v7 = vld [vmem:[%s7088_s19 + $0x20] sm:$0xff] }
 0x347   : > { %2328 = vmatprep.mubr.bf16.mxu1 %v2135_v13 }
 0x348   : > { %v8668_v5 = vpop.eup %6667  ;;  %2329 = vmatmul.mubr.bf16.gmra.mrb[44].mxu1 %v2134_v53 }
 0x349   : > { %v8670_v51 = vpop.eup %6669 }
 0x34a   : > { %v6672_v47 = vpop.eup %6671  ;;  %v3202_v22 = vadd.f32 %v8670_v51, %v8668_v5 }
 0x34b   : > { %v2106_v50 = vmul.f32 %v6672_v47, %v8423_v21  ;;  %v2105_v0 = vmul.f32 %v6672_v47, %v8419_v58  ;;  %v6955_v21 = vld [vmem:[%s7088_s19 + $0x8] sm:$0xff] }
 0x34c   : > { %v6674_v24 = vpop.eup %6673  ;;  %3203 = vadd.xlane.f32.xlu0 %v3202_v22 }
 0x34d   : > { %v2137_v52 = vpack.c.bf16 %v2109_v61, %v2106_v50  ;;  %v2136_v55 = vpack.c.bf16 %v2108_v18, %v2105_v0  ;;  %v2112_v45 = vmul.f32 %v6674_v24, %v8431_v6  ;;  %v2111_v31 = vmul.f32 %v6674_v24, %v8427_v8  ;;  %v6959_v50 = vld [vmem:[%s7088_s19] sm:$0xff]  ;;  %v6960_v61 = vld [vmem:[%s7088_s19 + $0x28] sm:$0xff]  ;;  %v2073_v18 = vpop.xlane.xlu1 %2072 }
 0x34e   : > { %v6961_v24 = vld [vmem:[%s7088_s19 + $0x40] sm:$0xff] }
 0x34f   : > { %2336 = vmatprep.mubr.bf16.mxu1 %v2137_v52  ;;  %v2139_v42 = vpack.c.bf16 %v2115_v57, %v2112_v45  ;;  %v2138_v58 = vpack.c.bf16 %v2114_v2, %v2111_v31  ;;  %v6962_v45 = vld [vmem:[%s7088_s19 + $0x30] sm:$0xff] }
 0x350   : > { %2337 = vmatmul.mubr.bf16.gmra.mrb[48].mxu1 %v2136_v55 }
 0x351   : > { %2344 = vmatprep.mubr.bf16.mxu1 %v2139_v42  ;;  %v6363_v42 = vld [vmem:[%s9912_s5 + $0x40] sm:$0xff]  }
 0x352   : > { %6031 = vmatprep.subr.bf16.mxu0 %v6363_v42 }
 0x353   : > { %3785 = vperm.xlu1 %6290, %v6955_v21   ;;  %6032 = vmatpush3.bf16.msra.mxu0 %v6363_v42 }
 0x357   : > { %3789 = vperm.xlu1 %6290, %v6956_v4  }
 0x358   : > { %2345 = vmatmul.mubr.bf16.gmra.mrb[52].mxu1 %v2138_v58  ;;  %v5695_v6 = vpop.f32.mrb[0].mxu1  ;;  %v6963_v58 = vld [vmem:[%s7088_s19 + $0x50] sm:$0xff] }
 0x359   : > { %v5696_v15 = vpop.f32.mrb[1].mxu1 }
 0x35a   : > { %v5697_v11 = vadd.f32 %v5696_v15, %v5695_v6  ;;  %v5698_v41 = vpop.f32.mrb[2].mxu1 }
 0x35b   : > { %3793 = vperm.xlu1 %6290, %v6957_v17   ;;  %v5699_v13 = vpop.f32.mrb[3].mxu1 }
 0x35c   : > { %v1547_v53 = vmin.f32 %v5697_v11, 0.0  ;;  %v5700_v47 = vadd.f32 %v5699_v13, %v5698_v41  ;;  %v6964_v41 = vld [vmem:[%s7088_s19 + $0x38] sm:$0xff]  ;;  %v6364_v13 = vld [vmem:[%s9912_s5 + $0x48] sm:$0xff]   ;;  %vm1531_vm15 = vcmp.gt.f32.partialorder %v5697_v11, 0.0 }
 0x35d   : > { %6033 = vmatprep.subr.bf16.mxu0 %v6364_v13 }
 0x35e   : > { %v1563_v8 = vmul.f32 1.442695, %v1547_v53  ;;  %v1548_v22 = vmin.f32 %v5700_v47, 0.0  ;;  %6034 = vmatpush3.bf16.msra.mxu0 %v6364_v13  ;;  %vm1532_vm0 = vcmp.gt.f32.partialorder %v5700_v47, 0.0 }
 0x35f   : > { %3797 = vperm.xlu1 %6290, %v6958_v7  }
 0x360   : > { %6675 = vpow2.f32 %v1563_v8  ;;  %v1565_v26 = vmul.f32 1.442695, %v1548_v22 }
 0x362   : > { %3781 = vperm.xlu0 %6289, %v6959_v50   ;;  %6677 = vpow2.f32 %v1565_v26  ;;  %v6965_v26 = vld [vmem:[%s7088_s19 + $0x60] sm:$0xff] }
 0x363   : > { %3801 = vperm.xlu1 %6290, %v6960_v61   ;;  %6679 = vrcp.f32 %v2073_v18  ;;  %v6966_v61 = vld [vmem:[%s7088_s19 + $0x48] sm:$0xff] }
 0x364   : > { %v5701_v0 = vpop.f32.mrb[4].mxu1 }
 0x365   : > { %v5702_v52 = vpop.f32.mrb[5].mxu1 }
 0x366   : > { %3813 = vperm.xlu0 %6289, %v6961_v24   ;;  %v8689_v55 = vadd.f32 %v5702_v52, %v5701_v0  ;;  %v5704_v57 = vpop.f32.mrb[6].mxu1  ;;  %v6365_v0 = vld [vmem:[%s9912_s5 + $0x50] sm:$0xff]  }
 0x367   : > { %3805 = vperm.xlu1 %6290, %v6962_v45   ;;  %v5705_v21 = vpop.f32.mrb[7].mxu1  ;;  %6035 = vmatprep.subr.bf16.mxu0 %v6365_v0  ;;  %v6967_v45 = vld [vmem:[%s7088_s19 + $0x70] sm:$0xff] }
 0x368   : > { %v1549_v31 = vmin.f32 %v8689_v55, 0.0  ;;  %v8696_v2 = vadd.f32 %v5705_v21, %v5704_v57  ;;  %6036 = vmatpush3.bf16.msra.mxu0 %v6365_v0  ;;  %vm1533_vm11 = vcmp.gt.f32.partialorder %v8689_v55, 0.0 }
 0x369   : > { %v2070_v4 = vpop.xlane.xlu0 %2069 }
 0x36a   : > { %3821 = vperm.xlu0 %6289, %v6963_v58   ;;  %v6676_v6 = vpop.eup %6675  ;;  %v1567_v15 = vmul.f32 1.442695, %v1549_v31  ;;  %v1550_v17 = vmin.f32 %v8696_v2, 0.0  ;;  %6681 = vrcp.f32 %v2070_v4  ;;  %v6968_v31 = vld [vmem:[%s7088_s19 + $0x58] sm:$0xff]  ;;  %vm1534_vm9 = vcmp.gt.f32.partialorder %v8696_v2, 0.0 }
 0x36b   : > { %3809 = vperm.xlu1 %6290, %v6964_v41   ;;  %v5403_v53 = vadd.f32 -1.0, %v6676_v6 }
 0x36c   : > { %v6678_v8 = vpop.eup %6677  ;;  %6683 = vpow2.f32 %v1567_v15  ;;  %v1569_v22 = vmul.f32 1.442695, %v1550_v17 }
 0x36d   : > { %v5404_v7 = vadd.f32 -1.0, %v6678_v8  ;;  %v2076_v50 = vpop.xlane.xlu0 %2075  ;;  %v8709_v18 = vsel %vm1531_vm15, %v5697_v11, %v5403_v53  ;;  %v6680_v42 = vpop.eup %6679 }
 0x36e   : > { %3829 = vperm.xlu0 %6289, %v6965_v26   ;;  %6685 = vpow2.f32 %v1569_v22  ;;  %10402 = vst [vmem:[#allocation56_spill] sm:$0xff] %v8709_v18  ;;  %v2121_v17 = vmul.f32 %v6680_v42, %v8417_v36  ;;  %v2120_v13 = vmul.f32 %v6680_v42, %v8413_v35  ;;  %v6969_v26 = vld [vmem:[%s7088_s19 + $0x68] sm:$0xff] }
 0x36f   : > { %3817 = vperm.xlu1 %6290, %v6966_v61   ;;  %v8711_v24 = vsel %vm1532_vm0, %v5700_v47, %v5404_v7  ;;  %6687 = vrcp.f32 %v2076_v50 }
 0x370   : > { %10403 = vst [vmem:[#allocation57_spill] sm:$0xff] %v8711_v24 }
 0x371   : > { %v2079_v57 = vpop.xlane.xlu1 %2078 }
 0x372   : > { %3837 = vperm.xlu0 %6289, %v6967_v45   ;;  %v5707_v21 = vpop.f32.mrb[8].mxu1  ;;  %6689 = vrcp.f32 %v2079_v57 }
 0x373   : > { %3825 = vperm.xlu1 %6290, %v6968_v31   ;;  %v5708_v58 = vpop.f32.mrb[9].mxu1 }
 0x374   : > { %v6682_v11 = vpop.eup %6681  ;;  %v8717_v4 = vadd.f32 %v5708_v58, %v5707_v21  ;;  %v5710_v47 = vpop.f32.mrb[10].mxu1  ;;  %v6970_v21 = vld [vmem:[%s7088_s19 + $0x78] sm:$0xff]  ;;  %s9797_s19 = scalar_lea.vmem %s9915_s8, %s5354_s26 }
 0x375   : > { %v5711_v6 = vpop.f32.mrb[11].mxu1  ;;  %v2118_v15 = vmul.f32 %v6682_v11, %v8447_v33  ;;  %v2117_v41 = vmul.f32 %v6682_v11, %v8445_v12  ;;  %v3162_v22 = vpop.xlane.xlu0 %3161 }
 0x376   : > { %v6684_v53 = vpop.eup %6683  ;;  %v1551_v8 = vmin.f32 %v8717_v4, 0.0  ;;  %v8724_v7 = vadd.f32 %v5711_v6, %v5710_v47  ;;  %6691 = vrcp.f32 %v3162_v22  ;;  %vm1535_vm10 = vcmp.gt.f32.partialorder %v8717_v4, 0.0 }
 0x377   : > { %3833 = vperm.xlu1 %6290, %v6969_v26   ;;  %v5405_v50 = vadd.f32 -1.0, %v6684_v53  ;;  %v2141_v61 = vpack.c.bf16 %v2121_v17, %v2118_v15  ;;  %v2140_v0 = vpack.c.bf16 %v2120_v13, %v2117_v41 }
 0x378   : > { %v6686_v45 = vpop.eup %6685  ;;  %v1571_v33 = vmul.f32 1.442695, %v1551_v8  ;;  %v1552_v36 = vmin.f32 %v8724_v7, 0.0  ;;  %vm1536_vm3 = vcmp.gt.f32.partialorder %v8724_v7, 0.0 }
 0x379   : > { %v5406_v57 = vadd.f32 -1.0, %v6686_v45  ;;  %v3165_v12 = vpop.xlane.xlu1 %3164  ;;  %2352 = vmatprep.mubr.bf16.mxu1 %v2141_v61  ;;  %v6688_v35 = vpop.eup %6687  ;;  %v8732_v31 = vsel %vm1533_vm11, %v8689_v55, %v5405_v50  ;;  %v6366_v55 = vld [vmem:[%s9912_s5 + $0x58] sm:$0xff]   ;;  %v6369_v61 = vld [vmem:[%s9912_s5 + $0x70] sm:$0xff]  }
 0x37a   : > { %6693 = vpow2.f32 %v1571_v33  ;;  %v1573_v42 = vmul.f32 1.442695, %v1552_v36  ;;  %2353 = vmatmul.mubr.bf16.gmra.mrb[56].mxu1 %v2140_v0  ;;  %10404 = vst [vmem:[#allocation58_spill] sm:$0xff] %v8732_v31  ;;  %v2124_v15 = vmul.f32 %v6688_v35, %v8453_v20  ;;  %v2123_v41 = vmul.f32 %v6688_v35, %v8443_v49  ;;  %6037 = vmatprep.subr.bf16.mxu0 %v6366_v55  ;;  %v6368_v49 = vld [vmem:[%s9912_s5 + $0x68] sm:$0xff]  }
 0x37b   : > { %3841 = vperm.xlu1 %6290, %v6970_v21   ;;  %v8735_v58 = vsel %vm1534_vm9, %v8696_v2, %v5406_v57  ;;  %6695 = vrcp.f32 %v3165_v12  ;;  %v6367_v2 = vld [vmem:[%s9912_s5 + $0x60] sm:$0xff]   ;;  %6038 = vmatpush3.bf16.msra.mxu0 %v6366_v55 }
 0x37c   : > { %10405 = vst [vmem:[#allocation59_spill] sm:$0xff] %v8735_v58  ;;  %v6690_v11 = vpop.eup %6689  ;;  %6697 = vpow2.f32 %v1573_v42  ;;  %v3168_v6 = vpop.xlane.xlu0 %3167  ;;  %6039 = vmatprep.subr.bf16.mxu0 %v6367_v2 }
 0x37d   : > { %v2127_v17 = vmul.f32 %v6690_v11, %v8465_v48  ;;  %v2126_v13 = vmul.f32 %v6690_v11, %v8463_v16  ;;  %6699 = vrcp.f32 %v3168_v6 }
 0x37f   : > { %v2143_v53 = vpack.c.bf16 %v2127_v17, %v2124_v15  ;;  %v2142_v8 = vpack.c.bf16 %v2126_v13, %v2123_v41  ;;  %6040 = vmatpush3.bf16.msra.mxu0 %v6367_v2 }
 0x380   : > { %v6692_v16 = vpop.eup %6691  ;;  %6041 = vmatprep.subr.bf16.mxu0 %v6368_v49 }
 0x381   : > { %v3171_v20 = vpop.xlane.xlu1 %3170  ;;  %2360 = vmatprep.mubr.bf16.mxu1 %v2143_v53  ;;  %v3209_v45 = vmul.f32 %v6692_v16, %v8467_v43  ;;  %v3210_v36 = vmul.f32 %v6692_v16, %v8473_v60 }
 0x382   : > { %6701 = vrcp.f32 %v3171_v20  ;;  %2361 = vmatmul.mubr.bf16.gmra.mrb[60].mxu1 %v2142_v8 }
 0x383   : > { %6042 = vmatpush3.bf16.msra.mxu0 %v6368_v49 }
 0x384   : > { %v6694_v48 = vpop.eup %6693  ;;  %v3174_v50 = vpop.xlane.xlu0 %3173  ;;  %6043 = vmatprep.subr.bf16.mxu0 %v6369_v61 }
 0x385   : > { %v6696_v22 = vpop.eup %6695  ;;  %v5407_v26 = vadd.f32 -1.0, %v6694_v48  ;;  %6703 = vrcp.f32 %v3174_v50 }
 0x386   : > { %v6698_v0 = vpop.eup %6697  ;;  %v3212_v33 = vmul.f32 %v6696_v22, %v8483_v23  ;;  %v3213_v57 = vmul.f32 %v6696_v22, %v8485_v34  ;;  %v6370_v23 = vld [vmem:[%s9912_s5 + $0x78] sm:$0xff]  }
 0x387   : > { %v5408_v12 = vadd.f32 -1.0, %v6698_v0  ;;  %v8762_v11 = vsel %vm1535_vm10, %v8717_v4, %v5407_v26  ;;  %v6700_v60 = vpop.eup %6699  ;;  %6044 = vmatpush3.bf16.msra.mxu0 %v6369_v61 }
 0x388   : > { %v3257_v35 = vpack.c.bf16 %v3213_v57, %v3210_v36  ;;  %v3256_v42 = vpack.c.bf16 %v3212_v33, %v3209_v45  ;;  %10406 = vst [vmem:[#allocation60_spill] sm:$0xff] %v8762_v11  ;;  %v3216_v4 = vmul.f32 %v6700_v60, %v8493_v27  ;;  %6045 = vmatprep.subr.bf16.mxu0 %v6370_v23  ;;  %v10408_v57 = vld [vmem:[#allocation12_spill] sm:$0xff] }
 0x389   : > { %v3177_v21 = vpop.xlane.xlu1 %3176  ;;  %v8765_v43 = vsel %vm1536_vm3, %v8724_v7, %v5408_v12  ;;  %v3215_v7 = vmul.f32 %v6700_v60, %v8487_v46 }
 0x38a   : > { %10407 = vst [vmem:[#allocation26_spill] sm:$0xff] %v8765_v43  ;;  %6705 = vrcp.f32 %v3177_v21  ;;  %3432 = vmatprep.mubr.bf16.mxu1 %v3257_v35  ;;  %v10409_v35 = vld [vmem:[#allocation66_spill] sm:$0xff] }
 0x38b   : > { %3433 = vmatmul.mubr.bf16.vlgmr.msra.gmra.mrb[64].mxu1 %v3256_v42  ;;  %v3180_v15 = vpop.xlane.xlu0 %3179  ;;  %6046 = vmatpush3.bf16.msra.mxu0 %v6370_v23 }
 0x38c   : > { %v6702_v6 = vpop.eup %6701  ;;  %6707 = vrcp.f32 %v3180_v15 }
 0x38d   : > { %v3219_v17 = vmul.f32 %v6702_v6, %v8505_v28  ;;  %v3218_v41 = vmul.f32 %v6702_v6, %v8503_v56 }
 0x38f   : > { %v3259_v13 = vpack.c.bf16 %v3219_v17, %v3216_v4  ;;  %v3258_v55 = vpack.c.bf16 %v3218_v41, %v3215_v7  ;;  %v6704_v53 = vpop.eup %6703 }
 0x390   : > { %v3222_v27 = vmul.f32 %v6704_v53, %v8513_v3  ;;  %v3221_v46 = vmul.f32 %v6704_v53, %v8507_v25 }
 0x391   : > { %v3183_v2 = vpop.xlane.xlu1 %3182  ;;  %3440 = vmatprep.mubr.bf16.mxu1 %v3259_v13 }
 0x392   : > { %6709 = vrcp.f32 %v3183_v2 }
 0x393   : > { %3441 = vmatmul.mubr.bf16.gmra.mrb[68].mxu1 %v3258_v55  ;;  %v3186_v20 = vpop.xlane.xlu0 %3185 }
 0x394   : > { %v6706_v8 = vpop.eup %6705  ;;  %6711 = vrcp.f32 %v3186_v20 }
 0x395   : > { %v3225_v28 = vmul.f32 %v6706_v8, %v8528_v29  ;;  %v3224_v56 = vmul.f32 %v6706_v8, %v8526_v10 }
 0x396   : > { %v6708_v22 = vpop.eup %6707 }
 0x397   : > { %v3261_v49 = vpack.c.bf16 %v3225_v28, %v3222_v27  ;;  %v3260_v16 = vpack.c.bf16 %v3224_v56, %v3221_v46  ;;  %v3228_v50 = vmul.f32 %v6708_v22, %v8536_v14  ;;  %v3227_v3 = vmul.f32 %v6708_v22, %v8530_v62 }
 0x399   : > { %v3189_v48 = vpop.xlane.xlu1 %3188  ;;  %3448 = vmatprep.mubr.bf16.mxu1 %v3261_v49 }
 0x39a   : > { %6713 = vrcp.f32 %v3189_v48 }
 0x39b   : > { %3449 = vmatmul.mubr.bf16.gmra.mrb[72].mxu1 %v3260_v16 }
 0x39c   : > { %v6710_v26 = vpop.eup %6709 }
 0x39d   : > { %v3231_v61 = vmul.f32 %v6710_v26, %v8546_v59  ;;  %v3230_v29 = vmul.f32 %v6710_v26, %v8544_v1 }
 0x39e   : > { %v6712_v10 = vpop.eup %6711 }
 0x39f   : > { %v3263_v25 = vpack.c.bf16 %v3231_v61, %v3228_v50  ;;  %v3262_v0 = vpack.c.bf16 %v3230_v29, %v3227_v3  ;;  %v3234_v33 = vmul.f32 %v6712_v10, %v8554_v54  ;;  %v3233_v12 = vmul.f32 %v6712_v10, %v10408_v57 }
 0x3a1   : > { %3456 = vmatprep.mubr.bf16.mxu1 %v3263_v25  ;;  %v3195_v2 = vpop.xlane.xlu1 %3194 }
 0x3a3   : > { %3457 = vmatmul.mubr.bf16.gmra.mrb[76].mxu1 %v3262_v0 }
 0x3a4   : > { %v6714_v45 = vpop.eup %6713 }
 0x3a5   : > { %v3237_v36 = vmul.f32 %v6714_v45, %v8572_v40  ;;  %v3236_v14 = vmul.f32 %v6714_v45, %v10409_v35 }
 0x3a7   : > { %v3265_v42 = vpack.c.bf16 %v3237_v36, %v3234_v33  ;;  %v3264_v59 = vpack.c.bf16 %v3236_v14, %v3233_v12  ;;  %v5509_v33 = vld [vmem:[%s9911_s4 + $0x3] ss:$4 sm:$0x3] }
 0x3a9   : > { %3464 = vmatprep.mubr.bf16.mxu1 %v3265_v42  ;;  %v10412_v42 = vld [vmem:[#allocation2_spill] sm:$0xff] }
 0x3ab   : > { %3465 = vmatmul.mubr.bf16.gmra.mrb[80].mxu1 %v3264_v59  ;;  %v8809_v59 = vrot.slane %v5509_v33, %v10412_v42 }
 0x3ac   : > { %v3201_v25 = vpop.xlane.xlu1 %3200 }
 0x3b3   : > { %v5713_v62 = vpop.f32.mrb[12].mxu1 }
 0x3b4   : > { %v5714_v1 = vpop.f32.mrb[13].mxu1 }
 0x3b5   : > { %v5715_v21 = vadd.f32 %v5714_v1, %v5713_v62  ;;  %v5716_v60 = vpop.f32.mrb[14].mxu1 }
 0x3b6   : > { %v5717_v23 = vpop.f32.mrb[15].mxu1 }
 0x3b7   : > { %v1553_v6 = vmin.f32 %v5715_v21, 0.0  ;;  %v5718_v15 = vadd.f32 %v5717_v23, %v5716_v60  ;;  %vm1537_vm14 = vcmp.gt.f32.partialorder %v5715_v21, 0.0 }
 0x3b9   : > { %v1575_v4 = vmul.f32 1.442695, %v1553_v6  ;;  %v1554_v17 = vmin.f32 %v5718_v15, 0.0  ;;  %vm1538_vm15 = vcmp.gt.f32.partialorder %v5718_v15, 0.0 }
 0x3bb   : > { %6715 = vpow2.f32 %v1575_v4  ;;  %v1577_v54 = vmul.f32 1.442695, %v1554_v17  ;;  %v10413_v4 = vld [vmem:[#allocation3_spill] sm:$0xff] }
 0x3bc   : > { %v8815_v17 = vrot.slane %v5509_v33, %v10413_v4 }
 0x3bd   : > { %6717 = vpow2.f32 %v1577_v54  ;;  %v5719_v40 = vpop.f32.mrb[16].mxu1 }
 0x3be   : > { %v5720_v7 = vpop.f32.mrb[17].mxu1  ;;  %6719 = vrcp.f32 %v3195_v2 }
 0x3bf   : > { %v8788_v41 = vadd.f32 %v5720_v7, %v5719_v40  ;;  %v5722_v13 = vpop.f32.mrb[18].mxu1 }
 0x3c0   : > { %v5723_v55 = vpop.f32.mrb[19].mxu1 }
 0x3c1   : > { %v1555_v53 = vmin.f32 %v8788_v41, 0.0  ;;  %v8791_v8 = vadd.f32 %v5723_v55, %v5722_v13  ;;  %vm1539_vm0 = vcmp.gt.f32.partialorder %v8788_v41, 0.0 }
 0x3c3   : > { %v1579_v20 = vmul.f32 1.442695, %v1555_v53  ;;  %v1556_v27 = vmin.f32 %v8791_v8, 0.0  ;;  %vm1540_vm11 = vcmp.gt.f32.partialorder %v8791_v8, 0.0 }
 0x3c5   : > { %v6716_v28 = vpop.eup %6715  ;;  %v1581_v46 = vmul.f32 1.442695, %v1556_v27  ;;  %v5725_v56 = vpop.f32.mrb[20].mxu1  ;;  %6721 = vpow2.f32 %v1579_v20 }
 0x3c6   : > { %v5409_v49 = vadd.f32 -1.0, %v6716_v28  ;;  %v5726_v16 = vpop.f32.mrb[21].mxu1 }
 0x3c7   : > { %v6718_v48 = vpop.eup %6717  ;;  %6723 = vpow2.f32 %v1581_v46  ;;  %v8794_v22 = vadd.f32 %v5726_v16, %v5725_v56  ;;  %v5728_v26 = vpop.f32.mrb[22].mxu1 }
 0x3c8   : > { %v5410_v50 = vadd.f32 -1.0, %v6718_v48  ;;  %v5729_v61 = vpop.f32.mrb[23].mxu1  ;;  %v8798_v0 = vsel %vm1537_vm14, %v5715_v21, %v5409_v49  ;;  %v6720_v12 = vpop.eup %6719 }
 0x3c9   : > { %v3192_v3 = vpop.xlane.xlu0 %3191  ;;  %v8796_v29 = vadd.f32 %v5729_v61, %v5728_v26  ;;  %10410 = vst [vmem:[#allocation20_spill] sm:$0xff] %v8798_v0  ;;  %v1557_v45 = vmin.f32 %v8794_v22, 0.0  ;;  %v3243_v13 = vmul.f32 %v6720_v12, %v8596_v38  ;;  %v3242_v53 = vmul.f32 %v6720_v12, %v8591_v19 }
 0x3ca   : > { %6725 = vrcp.f32 %v3192_v3  ;;  %v8800_v10 = vsel %vm1538_vm15, %v5718_v15, %v5410_v50 }
 0x3cb   : > { %10411 = vst [vmem:[#allocation25_spill] sm:$0xff] %v8800_v10  ;;  %6727 = vrcp.f32 %v3201_v25  ;;  %v1583_v62 = vmul.f32 1.442695, %v1557_v45  ;;  %v1558_v1 = vmin.f32 %v8796_v29, 0.0 }
 0x3cd   : > { %v5731_v57 = vpop.f32.mrb[24].mxu1  ;;  %v1585_v28 = vmul.f32 1.442695, %v1558_v1 }
 0x3ce   : > { %v5732_v35 = vpop.f32.mrb[25].mxu1 }
 0x3cf   : > { %v3207_v14 = vpop.xlane.xlu1 %3206  ;;  %v8812_v21 = vadd.f32 %v5732_v35, %v5731_v57  ;;  %v5734_v60 = vpop.f32.mrb[26].mxu1 }
 0x3d0   : > { %v6722_v23 = vpop.eup %6721  ;;  %v5735_v6 = vpop.f32.mrb[27].mxu1 }
 0x3d1   : > { %v3198_v15 = vpop.xlane.xlu0 %3197  ;;  %v6724_v54 = vpop.eup %6723  ;;  %v1559_v40 = vmin.f32 %v8812_v21, 0.0  ;;  %v8818_v7 = vadd.f32 %v5735_v6, %v5734_v60  ;;  %v5411_v27 = vadd.f32 -1.0, %v6722_v23 }
 0x3d2   : > { %6729 = vrcp.f32 %v3198_v15  ;;  %v5412_v55 = vadd.f32 -1.0, %v6724_v54 }
 0x3d3   : > { %v3786_v2 = vpop.permute.xlu1 %3785  ;;  %6731 = vpow2.f32 %v1583_v62  ;;  %v1560_v56 = vmin.f32 %v8818_v7, 0.0  ;;  %v1587_v48 = vmul.f32 1.442695, %v1559_v40 }
 0x3d4   : > { %v6726_v20 = vpop.eup %6725  ;;  %v3857_v46 = vadd.f32 %v8809_v59, %v3786_v2  ;;  %v3858_v49 = vadd.f32 %v8815_v17, %v3786_v2  ;;  %v8832_v19 = vsel %vm1540_vm11, %v8791_v8, %v5412_v55  ;;  %6733 = vpow2.f32 %v1585_v28 }
 0x3d5   : > { %v3240_v38 = vmul.f32 %v6726_v20, %v8642_v32  ;;  %v3239_v16 = vmul.f32 %v6726_v20, %v8640_v9  ;;  %v5737_v50 = vpop.f32.mrb[28].mxu1  ;;  %10414 = vst [vmem:[#allocation19_spill] sm:$0xff] %v8832_v19  ;;  %v8839_v9 = vsel %vm1539_vm0, %v8788_v41, %v5411_v27  ;;  %v1589_v12 = vmul.f32 1.442695, %v1560_v56  ;;  %v6728_v42 = vpop.eup %6727 }
 0x3d6   : > { %vm3889_vm9 = vcmp.gt.f32.partialorder %v3857_v46, 0.0  ;;  %v3921_v26 = vmul.f32 0.2, %v3857_v46  ;;  %vm3890_vm10 = vcmp.gt.f32.partialorder %v3858_v49, 0.0  ;;  %v3922_v61 = vmul.f32 0.2, %v3858_v49 }
 0x3d7   : > { %v5738_v3 = vpop.f32.mrb[29].mxu1  ;;  %v3790_v25 = vpop.permute.xlu1 %3789  ;;  %v3267_v45 = vpack.c.bf16 %v3243_v13, %v3240_v38  ;;  %v3266_v33 = vpack.c.bf16 %v3242_v53, %v3239_v16  ;;  %10415 = vst [vmem:[#allocation17_spill] sm:$0xff] %v8839_v9  ;;  %6735 = vpow2.f32 %v1587_v48  ;;  %v3249_v13 = vmul.f32 %v6728_v42, %v8617_v37 }
 0x3d8   : > { %v8834_v57 = vadd.f32 %v5738_v3, %v5737_v50  ;;  %v5740_v32 = vpop.f32.mrb[30].mxu1  ;;  %v3953_v1 = vsel %vm3889_vm9, %v3857_v46, %v3921_v26  ;;  %v3954_v60 = vsel %vm3890_vm10, %v3858_v49, %v3922_v61  ;;  %6737 = vrcp.f32 %v3207_v14 }
 0x3d9   : > { %v5741_v35 = vpop.f32.mrb[31].mxu1  ;;  %3472 = vmatprep.mubr.bf16.mxu1 %v3267_v45  ;;  %v3204_v23 = vpop.xlane.xlu0 %3203  ;;  %6739 = vpow2.f32 %v1589_v12  ;;  %v8849_v4 = vsel %vm752_vm6, %v3953_v1, -9e+15  ;;  %v8853_v40 = vsel %vm753_vm8, %v3954_v60, -9e+15  ;;  %v8861_v28 = vadd.f32 %v8809_v59, %v3790_v25 }
 0x3da   : > { %v8843_v62 = vadd.f32 %v5741_v35, %v5740_v32  ;;  %3473 = vmatmul.mubr.bf16.gmra.mrb[84].mxu1 %v3266_v33  ;;  %10418 = vst [vmem:[#allocation69_spill] sm:$0xff] %v8849_v4  ;;  %10420 = vst [vmem:[#allocation18_spill] sm:$0xff] %v8853_v40  ;;  %v1561_v2 = vmin.f32 %v8834_v57, 0.0  ;;  %6741 = vrcp.f32 %v3204_v23  ;;  %v4018_v14 = vmax.f32 %v8849_v4, %v8853_v40  ;;  %v10421_v32 = vld [vmem:[#allocation55_spill] sm:$0xff] }
 0x3db   : > { %v3794_v41 = vpop.permute.xlu1 %3793  ;;  %v8864_v49 = vadd.f32 %v8815_v17, %v3790_v25  ;;  %v3248_v12 = vmul.f32 %v6728_v42, %v10421_v32  ;;  %v8883_v60 = vmul.f32 0.2, %v8861_v28  ;;  %vm3891_vm14 = vcmp.gt.f32.partialorder %v8861_v28, 0.0 }
 0x3dc   : > { %10416 = vst [vmem:[#allocation68_spill] sm:$0xff] %v8843_v62  ;;  %v6730_v6 = vpop.eup %6729  ;;  %4019 = vmax.xlane.f32.xlu1 %v4018_v14  ;;  %v1591_v26 = vmul.f32 1.442695, %v1561_v2  ;;  %v1562_v50 = vmin.f32 %v8843_v62, 0.0  ;;  %v8874_v45 = vadd.f32 %v8815_v17, %v3794_v41 }
 0x3dd   : > { %v6732_v55 = vpop.eup %6731  ;;  %v5759_v53 = vpop.f32.mrb[32].mxu1  ;;  %v3246_v20 = vmul.f32 %v6730_v6, %v8660_v39  ;;  %v3245_v48 = vmul.f32 %v6730_v6, %v8656_v63  ;;  %v8871_v39 = vadd.f32 %v8809_v59, %v3794_v41  ;;  %v8890_v41 = vmul.f32 0.2, %v8864_v49 }
 0x3de   : > { %v5760_v46 = vpop.f32.mrb[33].mxu1  ;;  %v6734_v3 = vpop.eup %6733  ;;  %v8880_v1 = vadd.f32 -1.0, %v6732_v55  ;;  %6743 = vpow2.f32 %v1591_v26  ;;  %v8895_v55 = vmul.f32 1.442695, %v1562_v50  ;;  %vm3892_vm15 = vcmp.gt.f32.partialorder %v8864_v49, 0.0 }
 0x3df   : > { %v3798_v27 = vpop.permute.xlu1 %3797  ;;  %v3269_v56 = vpack.c.bf16 %v3249_v13, %v3246_v20  ;;  %v8866_v37 = vadd.f32 %v5760_v46, %v5759_v53  ;;  %v5762_v38 = vpop.f32.mrb[34].mxu1  ;;  %v3268_v42 = vpack.c.bf16 %v3248_v12, %v3245_v48  ;;  %v8893_v53 = vadd.f32 -1.0, %v6734_v3 }
 0x3e0   : > { %v5763_v61 = vpop.f32.mrb[35].mxu1  ;;  %v3863_v23 = vadd.f32 %v8809_v59, %v3798_v27  ;;  %v3864_v6 = vadd.f32 %v8815_v17, %v3798_v27  ;;  %v8898_v14 = vmul.f32 0.2, %v8871_v39 }
 0x3e1   : > { %v3782_v16 = vpop.permute.xlu0 %3781  ;;  %3480 = vmatprep.mubr.bf16.mxu1 %v3269_v56  ;;  %v2385_v25 = vmin.f32 %v8866_v37, 0.0  ;;  %v8877_v33 = vadd.f32 %v5763_v61, %v5762_v38  ;;  %v6736_v63 = vpop.eup %6735  ;;  %v8903_v56 = vmul.f32 0.2, %v8874_v45 }
 0x3e2   : > { %v8887_v15 = vpop.eup %6737  ;;  %v8900_v46 = vadd.f32 -1.0, %v6736_v63  ;;  %v8906_v61 = vadd.f32 %v8809_v59, %v3782_v16  ;;  %3481 = vmatmul.mubr.bf16.gmra.mrb[88].mxu1 %v3268_v42  ;;  %vm3895_vm6 = vcmp.gt.f32.partialorder %v3863_v23, 0.0  ;;  %vm3896_vm8 = vcmp.gt.f32.partialorder %v3864_v6, 0.0  ;;  %v8917_v42 = vld [vmem:[%s9912_s5] sm:$0xff]  }
 0x3e3   : > { %v3802_v35 = vpop.permute.xlu1 %3801  ;;  %v2401_v54 = vmul.f32 1.442695, %v2385_v25  ;;  %v2386_v13 = vmin.f32 %v8877_v33, 0.0  ;;  %v6740_v27 = vpop.eup %6739  ;;  %v3255_v50 = vmul.f32 %v8887_v15, %v8654_v30  ;;  %v3927_v25 = vmul.f32 0.2, %v3863_v23  ;;  %6063 = vmatprep.subr.bf16.mxu0 %v8917_v42 }
 0x3e4   : > { %v6742_v26 = vpop.eup %6741  ;;  %v3856_v32 = vadd.f32 %v8815_v17, %v3782_v16  ;;  %v8912_v12 = vadd.f32 %v8809_v59, %v3802_v35  ;;  %v8922_v8 = vadd.f32 %v8815_v17, %v3802_v35  ;;  %v3928_v36 = vmul.f32 0.2, %v3864_v6 }
 0x3e5   : > { %v3814_v2 = vpop.permute.xlu0 %3813  ;;  %v5765_v20 = vpop.f32.mrb[36].mxu1  ;;  %v2403_v38 = vmul.f32 1.442695, %v2386_v13  ;;  %6745 = vpow2.f32 %v2401_v54  ;;  %v8919_v54 = vadd.f32 -1.0, %v6740_v27  ;;  %vm3887_vm3 = vcmp.gt.f32.partialorder %v8906_v61, 0.0 }
 0x3e6   : > { %v5766_v48 = vpop.f32.mrb[37].mxu1  ;;  %v8925_v30 = vadd.f32 %v8809_v59, %v3814_v2  ;;  %v3252_v47 = vmul.f32 %v6742_v26, %v8670_v51  ;;  %v3919_v35 = vmul.f32 0.2, %v8906_v61  ;;  %v8938_v27 = vadd.f32 %v8815_v17, %v3814_v2 }
 0x3e7   : > { %v3806_v3 = vpop.permute.xlu1 %3805  ;;  %6747 = vpow2.f32 %v2403_v38  ;;  %v5768_v63 = vpop.f32.mrb[38].mxu1  ;;  %v8927_v38 = vadd.f32 %v5766_v48, %v5765_v20  ;;  %vm3888_vm0 = vcmp.gt.f32.partialorder %v3856_v32, 0.0  ;;  %v8945_v51 = vmul.f32 0.2, %v8912_v12 }
 0x3e8   : > { %v5769_v16 = vpop.f32.mrb[39].mxu1  ;;  %v8942_v48 = vadd.f32 %v8809_v59, %v3806_v3  ;;  %v8949_v9 = vmul.f32 0.2, %v8922_v8  ;;  %v8952_v19 = vmul.f32 0.2, %v8925_v30  ;;  %v3271_v0 = vpack.c.bf16 %v3255_v50, %v3252_v47  ;;  %v8959_v18 = vpop.eup %6743 }
 0x3e9   : > { %v3822_v13 = vpop.permute.xlu0 %3821  ;;  %v8930_v34 = vadd.f32 %v5769_v16, %v5768_v63  ;;  %v2387_v20 = vmin.f32 %v8927_v38, 0.0  ;;  %v3920_v16 = vmul.f32 0.2, %v3856_v32  ;;  %v8955_v11 = vadd.f32 %v8815_v17, %v3806_v3  ;;  %v10422_v3 = vld [vmem:[#allocation13_spill] sm:$0xff] }
 0x3ea   : > { %v3959_v43 = vsel %vm3895_vm6, %v3863_v23, %v3927_v25  ;;  %v3960_v31 = vsel %vm3896_vm8, %v3864_v6, %v3928_v36  ;;  %v8962_v24 = vmul.f32 0.2, %v8938_v27  ;;  %vm3899_vm11 = vcmp.gt.f32.partialorder %v8942_v48, 0.0  ;;  %3488 = vmatprep.mubr.bf16.mxu1 %v3271_v0  ;;  %v10425_v36 = vld [vmem:[#allocation14_spill] sm:$0xff] }
 0x3eb   : > { %v3810_v63 = vpop.permute.xlu1 %3809  ;;  %v2388_v52 = vmin.f32 %v8930_v34, 0.0  ;;  %v2405_v2 = vmul.f32 1.442695, %v2387_v20  ;;  %v3251_v47 = vmul.f32 %v6742_v26, %v8668_v5  ;;  %vm10423_vm9 = vcmp.gt.f32.partialorder %v10422_v3, 0.0 }
 0x3ec   : > { %v8971_v23 = vsel %vm10423_vm9, %v3959_v43, -9e+15  ;;  %vm10426_vm10 = vcmp.gt.f32.partialorder %v10425_v36, 0.0  ;;  %vm3893_vm6 = vcmp.gt.f32.partialorder %v8871_v39, 0.0  ;;  %vm3894_vm8 = vcmp.gt.f32.partialorder %v8874_v45, 0.0 }
 0x3ed   : > { %v2407_v10 = vmul.f32 1.442695, %v2388_v52  ;;  %v3830_v58 = vpop.permute.xlu0 %3829  ;;  %6749 = vpow2.f32 %v2405_v2  ;;  %v8967_v52 = vadd.f32 %v8809_v59, %v3822_v13  ;;  %10424 = vst [vmem:[#allocation33_spill] sm:$0xff] %v8971_v23  ;;  %v8975_v6 = vsel %vm10426_vm10, %v3960_v31, -9e+15 }
 0x3ee   : > { %10427 = vst [vmem:[#allocation71_spill] sm:$0xff] %v8975_v6  ;;  %v8980_v0 = vadd.f32 %v8815_v17, %v3822_v13  ;;  %v4027_v5 = vmax.f32 %v8971_v23, %v8975_v6  ;;  %v3951_v43 = vsel %vm3887_vm3, %v8906_v61, %v3919_v35  ;;  %vm3900_vm9 = vcmp.gt.f32.partialorder %v8955_v11, 0.0  ;;  %v10435_v6 = vld [vmem:[#allocation9_spill] sm:$0xff] }
 0x3ef   : > { %6751 = vpow2.f32 %v2407_v10  ;;  %v6746_v50 = vpop.eup %6745  ;;  %v3254_v10 = vmul.f32 %v8887_v15, %v8652_v44  ;;  %v3818_v31 = vpop.permute.xlu1 %3817  ;;  %v3931_v25 = vmul.f32 0.2, %v8942_v48  ;;  %v3952_v20 = vsel %vm3888_vm0, %v3856_v32, %v3920_v16 }
 0x3f0   : > { %v8994_v2 = vsel %vm750_vm4, %v3951_v43, -9e+15  ;;  %vm2371_vm10 = vcmp.gt.f32.partialorder %v8927_v38, 0.0  ;;  %4028 = vmax.xlane.f32.xlu1 %v4027_v5  ;;  %v8999_v3 = vsel %vm751_vm5, %v3952_v20, -9e+15  ;;  %v9002_v61 = vadd.f32 %v8809_v59, %v3810_v63 }
 0x3f1   : > { %v6748_v26 = vpop.eup %6747  ;;  %10429 = vst [vmem:[#allocation70_spill] sm:$0xff] %v8994_v2  ;;  %v3270_v44 = vpack.c.bf16 %v3254_v10, %v3251_v47  ;;  %10431 = vst [vmem:[#allocation75_spill] sm:$0xff] %v8999_v3  ;;  %v9005_v35 = vadd.f32 %v8815_v17, %v3810_v63  ;;  %vm3897_vm3 = vcmp.gt.f32.partialorder %v8912_v12, 0.0  ;;  %vm3898_vm0 = vcmp.gt.f32.partialorder %v8922_v8, 0.0  ;;  %v3838_v36 = vpop.permute.xlu0 %3837 }
 0x3f2   : > { %vm3903_vm4 = vcmp.gt.f32.partialorder %v8925_v30, 0.0  ;;  %vm3904_vm2 = vcmp.gt.f32.partialorder %v8938_v27, 0.0  ;;  %vm2372_vm7 = vcmp.gt.f32.partialorder %v8930_v34, 0.0  ;;  %v3932_v32 = vmul.f32 0.2, %v8955_v11 }
 0x3f3   : > { %v9014_v16 = vmul.f32 0.2, %v8967_v52  ;;  %v4015_v47 = vmax.f32 %v8994_v2, %v8999_v3  ;;  %v9019_v63 = vadd.f32 %v8809_v59, %v3830_v58  ;;  %v9021_v5 = vadd.f32 -1.0, %v6746_v50  ;;  %3489 = vmatmul.mubr.bf16.gmra.mrb[92].mxu1 %v3270_v44 }
 0x3f4   : > { %v9023_v10 = vadd.f32 -1.0, %v6748_v26  ;;  %v9026_v43 = vmul.f32 0.2, %v8980_v0  ;;  %v9029_v20 = vadd.f32 %v8815_v17, %v3830_v58  ;;  %v3955_v13 = vsel %vm3891_vm14, %v8861_v28, %v8883_v60 }
 0x3f5   : > { %4016 = vmax.xlane.f32.xlu0 %v4015_v47  ;;  %v3956_v50 = vsel %vm3892_vm15, %v8864_v49, %v8890_v41  ;;  %v9040_v26 = vadd.f32 %v8809_v59, %v3818_v31  ;;  %v9043_v15 = vadd.f32 %v8815_v17, %v3818_v31  ;;  %v9046_v58 = vmul.f32 0.2, %v9002_v61  ;;  %v10432_v47 = vld [vmem:[#allocation8_spill] sm:$0xff]  ;;  %v3826_v49 = vpop.permute.xlu1 %3825 }
 0x3f6   : > { %v9049_v44 = vmul.f32 0.2, %v9005_v35  ;;  %vm10433_vm5 = vcmp.gt.f32.partialorder %v10432_v47, 0.0  ;;  %v9056_v60 = vadd.f32 %v8809_v59, %v3838_v36  ;;  %6753 = vpow2.f32 %v8895_v55 }
 0x3f7   : > { %v9053_v28 = vsel %vm10433_vm5, %v3955_v13, -9e+15  ;;  %vm2369_vm14 = vcmp.gt.f32.partialorder %v8866_v37, 0.0  ;;  %vm3901_vm15 = vcmp.gt.f32.partialorder %v9002_v61, 0.0  ;;  %v9062_v41 = vmul.f32 0.2, %v9019_v63  ;;  %v6750_v47 = vpop.eup %6749 }
 0x3f8   : > { %10434 = vst [vmem:[#allocation74_spill] sm:$0xff] %v9053_v28  ;;  %v9065_v31 = vmul.f32 0.2, %v9029_v20  ;;  %vm10436_vm1 = vcmp.gt.f32.partialorder %v10435_v6, 0.0  ;;  %vm2370_vm5 = vcmp.gt.f32.partialorder %v8877_v33, 0.0  ;;  %v9081_v2 = vadd.f32 %v8815_v17, %v3838_v36 }
 0x3f9   : > { %v9069_v13 = vsel %vm10436_vm1, %v3956_v50, -9e+15  ;;  %v9075_v23 = vmul.f32 0.2, %v9040_v26  ;;  %v9078_v3 = vmul.f32 0.2, %v9043_v15  ;;  %v6752_v40 = vpop.eup %6751  ;;  %v3963_v50 = vsel %vm3899_vm11, %v8942_v48, %v3931_v25 }
 0x3fa   : > { %10437 = vst [vmem:[#allocation34_spill] sm:$0xff] %v9069_v13  ;;  %v4021_v55 = vmax.f32 %v9053_v28, %v9069_v13  ;;  %v5438_v4 = vadd.f32 -1.0, %v6750_v47  ;;  %v9085_v6 = vmul.f32 0.2, %v9056_v60  ;;  %v3964_v13 = vsel %vm3900_vm9, %v8955_v11, %v3932_v32  ;;  %v10438_v47 = vld [vmem:[#allocation21_spill] sm:$0xff]  ;;  %v10440_v11 = vld [vmem:[#allocation22_spill] sm:$0xff] }
 0x3fb   : > { %v5439_v28 = vadd.f32 -1.0, %v6752_v40  ;;  %vm3902_vm13 = vcmp.gt.f32.partialorder %v9005_v35, 0.0  ;;  %v9096_v36 = vmul.f32 0.2, %v9081_v2  ;;  %vm10439_vm1 = vcmp.gt.f32.partialorder %v10438_v47, 0.0 }
 0x3fc   : > { %4022 = vmax.xlane.f32.xlu0 %v4021_v55  ;;  %v9100_v62 = vsel %vm10439_vm1, %v3963_v50, -9e+15  ;;  %v2451_v48 = vsel %vm2371_vm10, %v8927_v38, %v5438_v4  ;;  %vm3905_vm11 = vcmp.gt.f32.partialorder %v9040_v26, 0.0  ;;  %vm3906_vm9 = vcmp.gt.f32.partialorder %v9043_v15, 0.0  ;;  %v10442_v55 = vld [vmem:[#allocation10_spill] sm:$0xff]  ;;  %v10444_v50 = vld [vmem:[#allocation11_spill] sm:$0xff] }
 0x3fd   : > { %vm10441_vm12 = vcmp.gt.f32.partialorder %v10440_v11, 0.0  ;;  %v3957_v25 = vsel %vm3893_vm6, %v8871_v39, %v8898_v14  ;;  %v3958_v32 = vsel %vm3894_vm8, %v8874_v45, %v8903_v56  ;;  %v2452_v4 = vsel %vm2372_vm7, %v8930_v34, %v5439_v28  ;;  %v3834_v39 = vpop.permute.xlu1 %3833 }
 0x3fe   : > { %v9109_v40 = vsel %vm10441_vm12, %v3964_v13, -9e+15  ;;  %vm10443_vm12 = vcmp.gt.f32.partialorder %v10442_v55, 0.0  ;;  %vm10445_vm10 = vcmp.gt.f32.partialorder %v10444_v50, 0.0  ;;  %v2466_v14 = vpack.c.bf16 %v2452_v4, %v2451_v48 }
 0x3ff   : > { %v4033_v38 = vmax.f32 %v9100_v62, %v9109_v40  ;;  %v9126_v13 = vsel %vm10443_vm12, %v3957_v25, -9e+15  ;;  %v9130_v47 = vsel %vm10445_vm10, %v3958_v32, -9e+15  ;;  %vm3911_vm6 = vcmp.gt.f32.partialorder %v9019_v63, 0.0 }
 0x400   : > { %v4024_v45 = vmax.f32 %v9126_v13, %v9130_v47  ;;  %v9136_v34 = vadd.f32 %v8809_v59, %v3826_v49  ;;  %v9139_v56 = vadd.f32 %v8815_v17, %v3826_v49  ;;  %vm3912_vm7 = vcmp.gt.f32.partialorder %v9029_v20, 0.0  ;;  %v9180_v32 = vpop.eup %6753 }
 0x401   : > { %4034 = vmax.xlane.f32.xlu1 %v4033_v38  ;;  %v3961_v28 = vsel %vm3897_vm3, %v8912_v12, %v8945_v51  ;;  %v3962_v48 = vsel %vm3898_vm0, %v8922_v8, %v8949_v9  ;;  %v3967_v11 = vsel %vm3903_vm4, %v8925_v30, %v8952_v19  ;;  %v3968_v49 = vsel %vm3904_vm2, %v8938_v27, %v8962_v24  ;;  %v10446_v8 = vld [vmem:[#allocation15_spill] sm:$0xff]  ;;  %v10448_v30 = vld [vmem:[#allocation16_spill] sm:$0xff]  ;;  %v10450_v27 = vld [vmem:[#allocation29_spill] sm:$0xff] }
 0x402   : > { %vm3915_vm8 = vcmp.gt.f32.partialorder %v9056_v60, 0.0  ;;  %4025 = vmax.xlane.f32.xlu0 %v4024_v45  ;;  %vm3909_vm3 = vcmp.gt.f32.partialorder %v9136_v34, 0.0  ;;  %vm3910_vm1 = vcmp.gt.f32.partialorder %v9139_v56, 0.0  ;;  %v3941_v12 = vmul.f32 0.2, %v9136_v34  ;;  %v10452_v38 = vld [vmem:[#allocation30_spill] sm:$0xff] }
 0x403   : > { %v3942_v9 = vmul.f32 0.2, %v9139_v56  ;;  %vm3916_vm0 = vcmp.gt.f32.partialorder %v9081_v2, 0.0  ;;  %vm10447_vm4 = vcmp.gt.f32.partialorder %v10446_v8, 0.0  ;;  %vm10449_vm12 = vcmp.gt.f32.partialorder %v10448_v30, 0.0 }
 0x404   : > { %v9166_v19 = vsel %vm10447_vm4, %v3961_v28, -9e+15  ;;  %v9170_v24 = vsel %vm10449_vm12, %v3962_v48, -9e+15  ;;  %vm10451_vm2 = vcmp.gt.f32.partialorder %v10450_v27, 0.0  ;;  %v2449_v25 = vsel %vm2369_vm14, %v8866_v37, %v9021_v5 }
 0x405   : > { %v9174_v51 = vsel %vm10451_vm2, %v3967_v11, -9e+15  ;;  %v4030_v4 = vmax.f32 %v9166_v19, %v9170_v24  ;;  %vm10453_vm10 = vcmp.gt.f32.partialorder %v10452_v38, 0.0  ;;  %v2450_v50 = vsel %vm2370_vm5, %v8877_v33, %v9023_v10  ;;  %v3842_v11 = vpop.permute.xlu1 %3841 }
 0x406   : > { %v9186_v55 = vsel %vm10453_vm10, %v3968_v49, -9e+15  ;;  %v9193_v45 = vadd.f32 %v8809_v59, %v3834_v39  ;;  %v2465_v5 = vpack.c.bf16 %v2450_v50, %v2449_v25  ;;  %v3882_v28 = vadd.f32 %v8815_v17, %v3834_v39  ;;  %v10454_v49 = vld [vmem:[#allocation23_spill] sm:$0xff]  ;;  %v10460_v25 = vld [vmem:[#allocation37_spill] sm:$0xff] }
 0x407   : > { %v4039_v37 = vmax.f32 %v9174_v51, %v9186_v55  ;;  %v3965_v48 = vsel %vm3901_vm15, %v9002_v61, %v9046_v58  ;;  %4031 = vmax.xlane.f32.xlu0 %v4030_v4  ;;  %v3966_v10 = vsel %vm3902_vm13, %v9005_v35, %v9049_v44  ;;  %vm10455_vm5 = vcmp.gt.f32.partialorder %v10454_v49, 0.0  ;;  %v6372_v39 = vld [vmem:[%s9912_s5 + $0x8] sm:$0xff]   ;;  %v10456_v58 = vld [vmem:[#allocation24_spill] sm:$0xff] }
 0x408   : > { %vm3913_vm14 = vcmp.gt.f32.partialorder %v9193_v45, 0.0  ;;  %v3945_v33 = vmul.f32 0.2, %v9193_v45  ;;  %v9210_v8 = vsel %vm10455_vm5, %v3965_v48, -9e+15  ;;  %6047 = vmatprep.mubr.bf16.mxu0 %v2465_v5  ;;  %vm3914_vm15 = vcmp.gt.f32.partialorder %v3882_v28, 0.0 }
 0x409   : > { %4040 = vmax.xlane.f32.xlu1 %v4039_v37  ;;  %v3946_v61 = vmul.f32 0.2, %v3882_v28  ;;  %vm10457_vm4 = vcmp.gt.f32.partialorder %v10456_v58, 0.0  ;;  %vm10458_vm13 = vcmp.gt.f32.partialorder %v8967_v52, 0.0  ;;  %vm10459_vm2 = vcmp.gt.f32.partialorder %v8980_v0, 0.0  ;;  %6048 = vmatmul.mubr.bf16.vlgmr.msra.gmra.mrb[32].mxu0 %v2466_v14  ;;  %v10464_v37 = vld [vmem:[#allocation31_spill] sm:$0xff] }
 0x40a   : > { %v9217_v30 = vsel %vm10457_vm4, %v3966_v10, -9e+15  ;;  %v3971_v35 = vsel %vm10458_vm13, %v8967_v52, %v9014_v16  ;;  %v3972_v27 = vsel %vm10459_vm2, %v8980_v0, %v9026_v43  ;;  %vm10461_vm10 = vcmp.gt.f32.partialorder %v10460_v25, 0.0  ;;  %v10462_v52 = vld [vmem:[#allocation38_spill] sm:$0xff]  ;;  %6064 = vmatpush3.bf16.msra.mxu0 %v8917_v42 }
 0x40b   : > { %v4036_v44 = vmax.f32 %v9210_v8, %v9217_v30  ;;  %v9232_v4 = vsel %vm10461_vm10, %v3971_v35, -9e+15  ;;  %v3885_v38 = vadd.f32 %v8809_v59, %v3842_v11  ;;  %vm1542_vm5 = vcmp.gt.f32.partialorder %v8796_v29, 0.0  ;;  %6065 = vmatprep.subr.bf16.mxu0 %v6372_v39  ;;  %v10470_v58 = vld [vmem:[#allocation46_spill] sm:$0xff]  ;;  %v10472_v35 = vld [vmem:[#allocation39_spill] sm:$0xff] }
 0x40c   : > { %vm1543_vm4 = vcmp.gt.f32.partialorder %v8812_v21, 0.0  ;;  %vm1544_vm13 = vcmp.gt.f32.partialorder %v8818_v7, 0.0  ;;  %vm10463_vm12 = vcmp.gt.f32.partialorder %v10462_v52, 0.0  ;;  %v3886_v50 = vadd.f32 %v8815_v17, %v3842_v11  ;;  %v10468_v11 = vld [vmem:[#allocation45_spill] sm:$0xff] }
 0x40d   : > { %v9240_v16 = vsel %vm10463_vm12, %v3972_v27, -9e+15  ;;  %v3969_v0 = vsel %vm3905_vm11, %v9040_v26, %v9075_v23  ;;  %v3970_v59 = vsel %vm3906_vm9, %v9043_v15, %v9078_v3  ;;  %4037 = vmax.xlane.f32.xlu0 %v4036_v44  ;;  %vm3917_vm12 = vcmp.gt.f32.partialorder %v3885_v38, 0.0  ;;  %v6373_v23 = vld [vmem:[%s9912_s5 + $0x10] sm:$0xff]  }
 0x40e   : > { %v4045_v43 = vmax.f32 %v9232_v4, %v9240_v16  ;;  %v3949_v14 = vmul.f32 0.2, %v3885_v38  ;;  %vm10465_vm2 = vcmp.gt.f32.partialorder %v10464_v37, 0.0  ;;  %vm3918_vm11 = vcmp.gt.f32.partialorder %v3886_v50, 0.0  ;;  %v10466_v3 = vld [vmem:[#allocation32_spill] sm:$0xff]  ;;  %6066 = vmatpush3.bf16.msra.mxu0 %v6372_v39  ;;  %v10478_v39 = vld [vmem:[#allocation50_spill] sm:$0xff] }
 0x40f   : > { %v9256_v17 = vsel %vm10465_vm2, %v3969_v0, -9e+15  ;;  %v3950_v26 = vmul.f32 0.2, %v3886_v50  ;;  %vm10467_vm9 = vcmp.gt.f32.partialorder %v10466_v3, 0.0  ;;  %v3975_v15 = vsel %vm3911_vm6, %v9019_v63, %v9062_v41  ;;  %6067 = vmatprep.subr.bf16.mxu0 %v6373_v23  ;;  %v10482_v37 = vld [vmem:[#allocation48_spill] sm:$0xff] }
 0x410   : > { %v9263_v42 = vsel %vm10467_vm9, %v3970_v59, -9e+15  ;;  %4046 = vmax.xlane.f32.xlu1 %v4045_v43  ;;  %v3976_v48 = vsel %vm3912_vm7, %v9029_v20, %v9065_v31  ;;  %vm10469_vm10 = vcmp.gt.f32.partialorder %v10468_v11, 0.0  ;;  %v3973_v49 = vsel %vm3909_vm3, %v9136_v34, %v3941_v12  ;;  %v10474_v34 = vld [vmem:[#allocation40_spill] sm:$0xff]  ;;  %v6376_v11 = vld [vmem:[%s9912_s5 + $0x28] sm:$0xff]  }
 0x411   : > { %v4042_v5 = vmax.f32 %v9256_v17, %v9263_v42  ;;  %v9277_v10 = vsel %vm10469_vm10, %v3975_v15, -9e+15  ;;  %vm10471_vm2 = vcmp.gt.f32.partialorder %v10470_v58, 0.0  ;;  %v3974_v41 = vsel %vm3910_vm1, %v9139_v56, %v3942_v9  ;;  %v10476_v9 = vld [vmem:[#allocation49_spill] sm:$0xff] }
 0x412   : > { %v9284_v63 = vsel %vm10471_vm2, %v3976_v48, -9e+15  ;;  %vm10473_vm6 = vcmp.gt.f32.partialorder %v10472_v35, 0.0  ;;  %v3979_v20 = vsel %vm3915_vm8, %v9056_v60, %v9085_v6  ;;  %vm10475_vm7 = vcmp.gt.f32.partialorder %v10474_v34, 0.0  ;;  %v6374_v60 = vld [vmem:[%s9912_s5 + $0x18] sm:$0xff]   ;;  %6068 = vmatpush3.bf16.msra.mxu0 %v6373_v23  ;;  %v10488_v23 = vld [vmem:[#allocation52_spill] sm:$0xff] }
 0x413   : > { %v9291_v44 = vsel %vm10473_vm6, %v3973_v49, -9e+15  ;;  %4043 = vmax.xlane.f32.xlu0 %v4042_v5  ;;  %v4051_v31 = vmax.f32 %v9277_v10, %v9284_v63  ;;  %v9301_v12 = vsel %vm10475_vm7, %v3974_v41, -9e+15  ;;  %v3980_v56 = vsel %vm3916_vm0, %v9081_v2, %v9096_v36  ;;  %6069 = vmatprep.subr.bf16.mxu0 %v6374_v60  ;;  %v6377_v34 = vld [vmem:[%s9912_s5 + $0x30] sm:$0xff]  }
 0x414   : > { %vm10477_vm3 = vcmp.gt.f32.partialorder %v10476_v9, 0.0  ;;  %v5417_v6 = vadd.f32 -1.0, %v8959_v18  ;;  %vm10479_vm8 = vcmp.gt.f32.partialorder %v10478_v39, 0.0  ;;  %v3977_v52 = vsel %vm3913_vm14, %v9193_v45, %v3945_v33  ;;  %v10480_v18 = vld [vmem:[#allocation47_spill] sm:$0xff]  ;;  %v6375_v33 = vld [vmem:[%s9912_s5 + $0x20] sm:$0xff]  }
 0x415   : > { %v9309_v27 = vsel %vm10477_vm3, %v3979_v20, -9e+15  ;;  %v9317_v25 = vsel %vm10479_vm8, %v3980_v56, -9e+15  ;;  %v3978_v2 = vsel %vm3914_vm15, %v3882_v28, %v3946_v61  ;;  %v5418_v36 = vadd.f32 -1.0, %v9180_v32  ;;  %4052 = vmax.xlane.f32.xlu1 %v4051_v31 }
 0x416   : > { %v4048_v0 = vmax.f32 %v9291_v44, %v9301_v12  ;;  %v4057_v59 = vmax.f32 %v9309_v27, %v9317_v25  ;;  %vm10481_vm1 = vcmp.gt.f32.partialorder %v10480_v18, 0.0  ;;  %vm10483_vm0 = vcmp.gt.f32.partialorder %v10482_v37, 0.0  ;;  %6070 = vmatpush3.bf16.msra.mxu0 %v6374_v60 }
 0x417   : > { %v9330_v43 = vsel %vm10481_vm1, %v3977_v52, -9e+15  ;;  %v9334_v3 = vsel %vm10483_vm0, %v3978_v2, -9e+15  ;;  %v3981_v45 = vsel %vm3917_vm12, %v3885_v38, %v3949_v14  ;;  %v3982_v28 = vsel %vm3918_vm11, %v3886_v50, %v3950_v26  ;;  %6071 = vmatprep.subr.bf16.mxu0 %v6375_v33 }
 0x418   : > { %vm10484_vm14 = vcmp.gt.f32.partialorder %v8794_v22, 0.0  ;;  %4049 = vmax.xlane.f32.xlu0 %v4048_v0  ;;  %v9351_v61 = vsel %vm1542_vm5, %v8796_v29, %v8893_v53  ;;  %v9357_v38 = vsel %vm1543_vm4, %v8812_v21, %v8900_v46  ;;  %vm1545_vm15 = vcmp.gt.f32.partialorder %v8834_v57, 0.0  ;;  %v5771_v46 = vpop.f32.mrb[40].mxu1 }
 0x419   : > { %v9342_v32 = vsel %vm10484_vm14, %v8794_v22, %v8880_v1  ;;  %v9363_v22 = vsel %vm1544_vm13, %v8818_v7, %v8919_v54  ;;  %v10485_v1 = vld [vmem:[#allocation68_spill] sm:$0xff]  ;;  %4058 = vmax.xlane.f32.xlu1 %v4057_v59  ;;  %v4054_v21 = vmax.f32 %v9330_v43, %v9334_v3  ;;  %v9374_v50 = vsel %vm1545_vm15, %v8834_v57, %v5417_v6  ;;  %v10486_v54 = vld [vmem:[#allocation51_spill] sm:$0xff]  ;;  %v5772_v15 = vpop.f32.mrb[41].mxu1  ;;  %v6378_v6 = vld [vmem:[%s9912_s5 + $0x38] sm:$0xff]  }
 0x41a   : > { %vm1546_vm12 = vcmp.gt.f32.partialorder %v10485_v1, 0.0  ;;  %v1632_v29 = vpack.c.bf16 %v9351_v61, %v9342_v32  ;;  %v1633_v53 = vpack.c.bf16 %v9363_v22, %v9357_v38  ;;  %vm10487_vm5 = vcmp.gt.f32.partialorder %v10486_v54, 0.0  ;;  %v5774_v57 = vpop.f32.mrb[42].mxu1  ;;  %6072 = vmatpush3.bf16.msra.mxu0 %v6375_v33  ;;  %v9403_v59 = vld [vmem:[%s9912_s5 + $0x80] sm:$0xff]   ;;  %v6385_v32 = vld [vmem:[%s9912_s5 + $0xb0] sm:$0xff]  }
 0x41b   : > { %v9377_v7 = vsel %vm1546_vm12, %v10485_v1, %v5418_v36  ;;  %v9381_v14 = vsel %vm10487_vm5, %v3981_v45, -9e+15  ;;  %vm10489_vm4 = vcmp.gt.f32.partialorder %v10488_v23, 0.0  ;;  %v5773_v48 = vadd.f32 %v5772_v15, %v5771_v46  ;;  %v5775_v49 = vpop.f32.mrb[43].mxu1  ;;  %6073 = vmatprep.subr.bf16.mxu0 %v6376_v11 }
 0x41c   : > { %v9385_v26 = vsel %vm10489_vm4, %v3982_v28, -9e+15  ;;  %v1634_v5 = vpack.c.bf16 %v9377_v7, %v9374_v50  ;;  %4055 = vmax.xlane.f32.xlu0 %v4054_v21  ;;  %v5776_v35 = vadd.f32 %v5775_v49, %v5774_v57  ;;  %v5777_v9 = vpop.f32.mrb[44].mxu1 }
 0x41d   : > { %v4060_v58 = vmax.f32 %v9381_v14, %v9385_v26  ;;  %v2389_v41 = vmin.f32 %v5773_v48, 0.0  ;;  %v5778_v60 = vpop.f32.mrb[45].mxu1  ;;  %vm2373_vm13 = vcmp.gt.f32.partialorder %v5773_v48, 0.0 }
 0x41e   : > { %v2390_v31 = vmin.f32 %v5776_v35, 0.0  ;;  %6074 = vmatpush3.bf16.msra.mxu0 %v6376_v11  ;;  %v5779_v39 = vadd.f32 %v5778_v60, %v5777_v9  ;;  %v5780_v52 = vpop.f32.mrb[46].mxu1  ;;  %vm2374_vm11 = vcmp.gt.f32.partialorder %v5776_v35, 0.0 }
 0x41f   : > { %v2409_v20 = vmul.f32 1.442695, %v2389_v41  ;;  %6075 = vmatprep.subr.bf16.mxu0 %v6377_v34  ;;  %v5781_v2 = vpop.f32.mrb[47].mxu1 }
 0x420   : > { %4061 = vmax.xlane.f32.xlu0 %v4060_v58  ;;  %v2411_v56 = vmul.f32 1.442695, %v2390_v31  ;;  %v2391_v36 = vmin.f32 %v5779_v39, 0.0  ;;  %v5782_v0 = vadd.f32 %v5781_v2, %v5780_v52  ;;  %vm2375_vm9 = vcmp.gt.f32.partialorder %v5779_v39, 0.0 }
 0x421   : > { %6755 = vpow2.f32 %v2409_v20 }
 0x422   : > { %6757 = vpow2.f32 %v2411_v56  ;;  %6076 = vmatpush3.bf16.msra.mxu0 %v6377_v34  ;;  %v2413_v18 = vmul.f32 1.442695, %v2391_v36  ;;  %v2392_v37 = vmin.f32 %v5782_v0, 0.0  ;;  %vm2376_vm10 = vcmp.gt.f32.partialorder %v5782_v0, 0.0 }
 0x423   : > { %6077 = vmatprep.subr.bf16.mxu0 %v6378_v6  ;;  %v5783_v28 = vpop.f32.mrb[48].mxu1 }
 0x424   : > { %6759 = vpow2.f32 %v2413_v18  ;;  %v2415_v45 = vmul.f32 1.442695, %v2392_v37  ;;  %v5784_v1 = vpop.f32.mrb[49].mxu1 }
 0x425   : > { %v5785_v46 = vadd.f32 %v5784_v1, %v5783_v28  ;;  %v5786_v54 = vpop.f32.mrb[50].mxu1 }
 0x426   : > { %6078 = vmatpush3.bf16.msra.mxu0 %v6378_v6  ;;  %6761 = vpow2.f32 %v2415_v45  ;;  %v5787_v15 = vpop.f32.mrb[51].mxu1 }
 0x427   : > { %6095 = vmatprep.subr.bf16.mxu0 %v9403_v59  ;;  %v2393_v11 = vmin.f32 %v5785_v46, 0.0  ;;  %v5788_v49 = vadd.f32 %v5787_v15, %v5786_v54  ;;  %vm2377_vm2 = vcmp.gt.f32.partialorder %v5785_v46, 0.0 }
 0x429   : > { %v2417_v58 = vmul.f32 1.442695, %v2393_v11  ;;  %v2394_v41 = vmin.f32 %v5788_v49, 0.0  ;;  %vm2378_vm6 = vcmp.gt.f32.partialorder %v5788_v49, 0.0 }
 0x42b   : > { %v6756_v33 = vpop.eup %6755  ;;  %6763 = vpow2.f32 %v2417_v58  ;;  %v2419_v56 = vmul.f32 1.442695, %v2394_v41  ;;  %v5789_v9 = vpop.f32.mrb[52].mxu1 }
 0x42c   : > { %v5440_v21 = vadd.f32 -1.0, %v6756_v33  ;;  %v6758_v23 = vpop.eup %6757  ;;  %v5790_v60 = vpop.f32.mrb[53].mxu1 }
 0x42d   : > { %v5441_v57 = vadd.f32 -1.0, %v6758_v23  ;;  %6765 = vpow2.f32 %v2419_v56  ;;  %v5791_v52 = vadd.f32 %v5790_v60, %v5789_v9  ;;  %v5792_v2 = vpop.f32.mrb[54].mxu1 }
 0x42e   : > { %v2453_v20 = vsel %vm2373_vm13, %v5773_v48, %v5440_v21  ;;  %v6760_v6 = vpop.eup %6759  ;;  %v5793_v18 = vpop.f32.mrb[55].mxu1 }
 0x42f   : > { %v2454_v31 = vsel %vm2374_vm11, %v5776_v35, %v5441_v57  ;;  %v5442_v36 = vadd.f32 -1.0, %v6760_v6  ;;  %v2395_v45 = vmin.f32 %v5791_v52, 0.0  ;;  %v5794_v28 = vadd.f32 %v5793_v18, %v5792_v2 }
 0x430   : > { %v2467_v34 = vpack.c.bf16 %v2454_v31, %v2453_v20  ;;  %v6762_v37 = vpop.eup %6761  ;;  %vm2379_vm7 = vcmp.gt.f32.partialorder %v5791_v52, 0.0 }
 0x431   : > { %v5443_v33 = vadd.f32 -1.0, %v6762_v37  ;;  %v2421_v48 = vmul.f32 1.442695, %v2395_v45  ;;  %v2396_v35 = vmin.f32 %v5794_v28, 0.0  ;;  %v2455_v1 = vsel %vm2375_vm9, %v5779_v39, %v5442_v36 }
 0x432   : > { %6051 = vmatprep.mubr.bf16.mxu0 %v2467_v34  ;;  %vm2380_vm3 = vcmp.gt.f32.partialorder %v5794_v28, 0.0 }
 0x433   : > { %v2456_v21 = vsel %vm2376_vm10, %v5782_v0, %v5443_v33  ;;  %6767 = vpow2.f32 %v2421_v48  ;;  %v2423_v54 = vmul.f32 1.442695, %v2396_v35 }
 0x434   : > { %v2468_v23 = vpack.c.bf16 %v2456_v21, %v2455_v1 }
 0x435   : > { %v6764_v15 = vpop.eup %6763  ;;  %6769 = vpow2.f32 %v2423_v54 }
 0x436   : > { %6052 = vmatmul.mubr.bf16.gmra.mrb[36].mxu0 %v2468_v23  ;;  %v5444_v57 = vadd.f32 -1.0, %v6764_v15 }
 0x437   : > { %v6766_v11 = vpop.eup %6765 }
 0x438   : > { %v5445_v58 = vadd.f32 -1.0, %v6766_v11  ;;  %v2457_v41 = vsel %vm2377_vm2, %v5785_v46, %v5444_v57 }
 0x43a   : > { %v2458_v20 = vsel %vm2378_vm6, %v5788_v49, %v5445_v58 }
 0x43b   : > { %v2469_v31 = vpack.c.bf16 %v2458_v20, %v2457_v41 }
 0x43d   : > { %v6768_v34 = vpop.eup %6767  ;;  %6055 = vmatprep.mubr.bf16.mxu0 %v2469_v31 }
 0x43e   : > { %v5446_v56 = vadd.f32 -1.0, %v6768_v34 }
 0x43f   : > { %v6770_v9 = vpop.eup %6769 }
 0x440   : > { %v5447_v39 = vadd.f32 -1.0, %v6770_v9  ;;  %v2459_v0 = vsel %vm2379_vm7, %v5791_v52, %v5446_v56 }
 0x442   : > { %v2460_v60 = vsel %vm2380_vm3, %v5794_v28, %v5447_v39 }
 0x443   : > { %v2470_v6 = vpack.c.bf16 %v2460_v60, %v2459_v0 }
 0x445   : > { %6056 = vmatmul.mubr.bf16.gmra.mrb[40].mxu0 %v2470_v6 }
 0x44d   : > { %v5795_v2 = vpop.f32.mrb[56].mxu1 }
 0x44e   : > { %v5796_v36 = vpop.f32.mrb[57].mxu1 }
 0x44f   : > { %v5797_v18 = vadd.f32 %v5796_v36, %v5795_v2  ;;  %v5798_v37 = vpop.f32.mrb[58].mxu1 }
 0x450   : > { %v5799_v45 = vpop.f32.mrb[59].mxu1 }
 0x451   : > { %v2397_v33 = vmin.f32 %v5797_v18, 0.0  ;;  %v5800_v46 = vadd.f32 %v5799_v45, %v5798_v37  ;;  %vm2381_vm8 = vcmp.gt.f32.partialorder %v5797_v18, 0.0 }
 0x453   : > { %v2425_v49 = vmul.f32 1.442695, %v2397_v33  ;;  %v2398_v48 = vmin.f32 %v5800_v46, 0.0  ;;  %vm2382_vm1 = vcmp.gt.f32.partialorder %v5800_v46, 0.0 }
 0x455   : > { %6771 = vpow2.f32 %v2425_v49  ;;  %v2427_v35 = vmul.f32 1.442695, %v2398_v48  ;;  %v5801_v1 = vpop.f32.mrb[60].mxu1 }
 0x456   : > { %v5802_v21 = vpop.f32.mrb[61].mxu1 }
 0x457   : > { %6773 = vpow2.f32 %v2427_v35  ;;  %v5803_v54 = vadd.f32 %v5802_v21, %v5801_v1  ;;  %v5804_v23 = vpop.f32.mrb[62].mxu1 }
 0x458   : > { %v5805_v52 = vpop.f32.mrb[63].mxu1 }
 0x459   : > { %v2399_v28 = vmin.f32 %v5803_v54, 0.0  ;;  %v5806_v15 = vadd.f32 %v5805_v52, %v5804_v23  ;;  %vm2383_vm0 = vcmp.gt.f32.partialorder %v5803_v54, 0.0 }
 0x45b   : > { %v2429_v57 = vmul.f32 1.442695, %v2399_v28  ;;  %v2400_v11 = vmin.f32 %v5806_v15, 0.0  ;;  %vm2384_vm14 = vcmp.gt.f32.partialorder %v5806_v15, 0.0 }
 0x45d   : > { %6775 = vpow2.f32 %v2429_v57  ;;  %v2431_v58 = vmul.f32 1.442695, %v2400_v11 }
 0x45e   : > { %v5855_v41 = vpop.f32.mrb[64].mxu1 }
 0x45f   : > { %v6772_v20 = vpop.eup %6771  ;;  %6777 = vpow2.f32 %v2431_v58  ;;  %v5856_v31 = vpop.f32.mrb[65].mxu1 }
 0x460   : > { %v5448_v34 = vadd.f32 -1.0, %v6772_v20  ;;  %v9406_v56 = vadd.f32 %v5856_v31, %v5855_v41  ;;  %v5858_v9 = vpop.f32.mrb[66].mxu1 }
 0x461   : > { %v6774_v39 = vpop.eup %6773  ;;  %v5859_v0 = vpop.f32.mrb[67].mxu1 }
 0x462   : > { %v5449_v60 = vadd.f32 -1.0, %v6774_v39  ;;  %v3513_v6 = vmin.f32 %v9406_v56, 0.0  ;;  %v5860_v2 = vadd.f32 %v5859_v0, %v5858_v9  ;;  %v2461_v45 = vsel %vm2381_vm8, %v5797_v18, %v5448_v34  ;;  %v10490_v39 = vld [vmem:[#allocation69_spill] sm:$0xff] }
 0x463   : > { %vm3497_vm15 = vcmp.gt.f32.partialorder %v9406_v56, 0.0 }
 0x464   : > { %v3529_v36 = vmul.f32 1.442695, %v3513_v6  ;;  %v3514_v37 = vmin.f32 %v5860_v2, 0.0  ;;  %v2462_v33 = vsel %vm2382_vm1, %v5800_v46, %v5449_v60  ;;  %v10491_v60 = vld [vmem:[#allocation18_spill] sm:$0xff]  ;;  %vm3498_vm12 = vcmp.gt.f32.partialorder %v5860_v2, 0.0 }
 0x465   : > { %v2471_v49 = vpack.c.bf16 %v2462_v33, %v2461_v45 }
 0x466   : > { %6779 = vpow2.f32 %v3529_v36  ;;  %v3531_v48 = vmul.f32 1.442695, %v3514_v37  ;;  %v5861_v35 = vpop.f32.mrb[68].mxu1 }
 0x467   : > { %v6776_v1 = vpop.eup %6775  ;;  %v5862_v21 = vpop.f32.mrb[69].mxu1  ;;  %6059 = vmatprep.mubr.bf16.mxu0 %v2471_v49 }
 0x468   : > { %v5450_v23 = vadd.f32 -1.0, %v6776_v1  ;;  %6781 = vpow2.f32 %v3531_v48  ;;  %v9409_v52 = vadd.f32 %v5862_v21, %v5861_v35  ;;  %v5864_v28 = vpop.f32.mrb[70].mxu1 }
 0x469   : > { %v6778_v57 = vpop.eup %6777  ;;  %v5865_v11 = vpop.f32.mrb[71].mxu1 }
 0x46a   : > { %v5451_v58 = vadd.f32 -1.0, %v6778_v57  ;;  %v3515_v41 = vmin.f32 %v9409_v52, 0.0  ;;  %v9412_v20 = vadd.f32 %v5865_v11, %v5864_v28  ;;  %v4020_v46 = vpop.xlane.xlu1 %4019  ;;  %v2463_v34 = vsel %vm2383_vm0, %v5803_v54, %v5450_v23  ;;  %v10492_v28 = vld [vmem:[#allocation57_spill] sm:$0xff]  ;;  %v10493_v54 = vld [vmem:[#allocation56_spill] sm:$0xff] }
 0x46b   : > { %v4065_v0 = vsub.f32 %v10490_v39, %v4020_v46  ;;  %v4066_v6 = vsub.f32 %v10491_v60, %v4020_v46  ;;  %vm3499_vm5 = vcmp.gt.f32.partialorder %v9409_v52, 0.0 }
 0x46c   : > { %v3533_v18 = vmul.f32 1.442695, %v3515_v41  ;;  %v3516_v31 = vmin.f32 %v9412_v20, 0.0  ;;  %v2464_v9 = vsel %vm2384_vm14, %v5806_v15, %v5451_v58  ;;  %v10494_v15 = vpack.c.bf16 %v10492_v28, %v10493_v54 }
 0x46d   : > { %v2472_v36 = vpack.c.bf16 %v2464_v9, %v2463_v34  ;;  %v4099_v33 = vmul.f32 1.442695, %v4065_v0  ;;  %v4101_v49 = vmul.f32 1.442695, %v4066_v6  ;;  %v6380_v34 = vld [vmem:[%s9912_s5 + $0x88] sm:$0xff]   ;;  %vm3500_vm4 = vcmp.gt.f32.partialorder %v9412_v20, 0.0 }
 0x46e   : > { %6783 = vpow2.f32 %v3533_v18  ;;  %v3535_v37 = vmul.f32 1.442695, %v3516_v31  ;;  %v5867_v45 = vpop.f32.mrb[72].mxu1 }
 0x46f   : > { %v5868_v48 = vpop.f32.mrb[73].mxu1  ;;  %6060 = vmatmul.mubr.bf16.gmra.mrb[44].mxu0 %v2472_v36 }
 0x470   : > { %v6780_v35 = vpop.eup %6779  ;;  %6785 = vpow2.f32 %v3535_v37  ;;  %v9417_v1 = vadd.f32 %v5868_v48, %v5867_v45  ;;  %v5870_v21 = vpop.f32.mrb[74].mxu1  ;;  %6079 = vmatprep.mubr.bf16.mxu0 %v10494_v15  ;;  %v10495_v37 = vld [vmem:[#allocation59_spill] sm:$0xff]  ;;  %v10496_v45 = vld [vmem:[#allocation58_spill] sm:$0xff]  ;;  %v6381_v15 = vld [vmem:[%s9912_s5 + $0x90] sm:$0xff]  }
 0x471   : > { %v5485_v23 = vadd.f32 -1.0, %v6780_v35  ;;  %6787 = vpow2.f32 %v4099_v33  ;;  %v5871_v57 = vpop.f32.mrb[75].mxu1  ;;  %v10497_v33 = vpack.c.bf16 %v10495_v37, %v10496_v45  ;;  %v6382_v37 = vld [vmem:[%s9912_s5 + $0x98] sm:$0xff]  }
 0x472   : > { %v6782_v11 = vpop.eup %6781  ;;  %6789 = vpow2.f32 %v4101_v49  ;;  %v3517_v58 = vmin.f32 %v9417_v1, 0.0  ;;  %v9423_v41 = vadd.f32 %v5871_v57, %v5870_v21  ;;  %v10499_v21 = vld [vmem:[#allocation60_spill] sm:$0xff]  ;;  %vm3501_vm13 = vcmp.gt.f32.partialorder %v9417_v1, 0.0 }
 0x473   : > { %v5486_v18 = vadd.f32 -1.0, %v6782_v11  ;;  %v9431_v9 = vsel %vm3497_vm15, %v9406_v56, %v5485_v23  ;;  %v10498_v56 = vld [vmem:[#allocation26_spill] sm:$0xff] }
 0x474   : > { %v3537_v46 = vmul.f32 1.442695, %v3517_v58  ;;  %v3518_v31 = vmin.f32 %v9423_v41, 0.0  ;;  %vm3502_vm11 = vcmp.gt.f32.partialorder %v9423_v41, 0.0 }
 0x475   : > { %v9433_v39 = vsel %vm3498_vm12, %v5860_v2, %v5486_v18  ;;  %v10500_v2 = vpack.c.bf16 %v10498_v56, %v10499_v21 }
 0x476   : > { %6791 = vpow2.f32 %v3537_v46  ;;  %v3539_v0 = vmul.f32 1.442695, %v3518_v31  ;;  %v5873_v60 = vpop.f32.mrb[76].mxu1 }
 0x477   : > { %v5874_v36 = vpop.f32.mrb[77].mxu1  ;;  %6080 = vmatmul.mubr.bf16.vlgmr.msra.gmra.mrb[32].mxu0 %v10497_v33 }
 0x478   : > { %v6784_v49 = vpop.eup %6783  ;;  %6793 = vpow2.f32 %v3539_v0  ;;  %v9440_v48 = vadd.f32 %v5874_v36, %v5873_v60  ;;  %v5876_v35 = vpop.f32.mrb[78].mxu1  ;;  %6083 = vmatprep.mubr.bf16.mxu0 %v10500_v2  ;;  %6096 = vmatpush3.bf16.msra.mxu0 %v9403_v59 }
 0x479   : > { %v5487_v28 = vadd.f32 -1.0, %v6784_v49  ;;  %v5877_v54 = vpop.f32.mrb[79].mxu1  ;;  %6097 = vmatprep.subr.bf16.mxu0 %v6380_v34  ;;  %v10501_v49 = vld [vmem:[#allocation25_spill] sm:$0xff] }
 0x47a   : > { %v6786_v23 = vpop.eup %6785  ;;  %v3519_v57 = vmin.f32 %v9440_v48, 0.0  ;;  %v9450_v11 = vadd.f32 %v5877_v54, %v5876_v35  ;;  %v10502_v35 = vld [vmem:[#allocation20_spill] sm:$0xff]  ;;  %v10505_v54 = vld [vmem:[#allocation17_spill] sm:$0xff]  ;;  %vm3503_vm9 = vcmp.gt.f32.partialorder %v9440_v48, 0.0 }
 0x47b   : > { %v9452_v58 = vpop.eup %6787  ;;  %v5488_v18 = vadd.f32 -1.0, %v6786_v23  ;;  %v9460_v0 = vsel %vm3499_vm5, %v9409_v52, %v5487_v28  ;;  %v10504_v28 = vld [vmem:[#allocation19_spill] sm:$0xff] }
 0x47c   : > { %v9454_v46 = vpop.eup %6789  ;;  %v3541_v59 = vmul.f32 1.442695, %v3519_v57  ;;  %v3520_v31 = vmin.f32 %v9450_v11, 0.0  ;;  %6098 = vmatpush3.bf16.msra.mxu0 %v6380_v34  ;;  %v10506_v23 = vpack.c.bf16 %v10504_v28, %v10505_v54  ;;  %vm3504_vm10 = vcmp.gt.f32.partialorder %v9450_v11, 0.0 }
 0x47d   : > { %v9463_v60 = vsel %vm3500_vm4, %v9412_v20, %v5488_v18  ;;  %v4162_v36 = vadd.f32 %v9454_v46, %v9452_v58  ;;  %6099 = vmatprep.subr.bf16.mxu0 %v6381_v15  ;;  %v10503_v20 = vpack.c.bf16 %v10501_v49, %v10502_v35 }
 0x47e   : > { %6795 = vpow2.f32 %v3541_v59  ;;  %v3543_v33 = vmul.f32 1.442695, %v3520_v31  ;;  %v5879_v34 = vpop.f32.mrb[80].mxu1  ;;  %v6383_v59 = vld [vmem:[%s9912_s5 + $0xa0] sm:$0xff]  }
 0x47f   : > { %4163 = vadd.xlane.f32.xlu0 %v4162_v36  ;;  %v5880_v52 = vpop.f32.mrb[81].mxu1  ;;  %6084 = vmatmul.mubr.bf16.gmra.mrb[36].mxu0 %v10503_v20  ;;  %v10508_v20 = vld [vmem:[#allocation75_spill] sm:$0xff] }
 0x480   : > { %v6792_v56 = vpop.eup %6791  ;;  %6797 = vpow2.f32 %v3543_v33  ;;  %v9475_v21 = vadd.f32 %v5880_v52, %v5879_v34  ;;  %v5882_v2 = vpop.f32.mrb[82].mxu1  ;;  %6087 = vmatprep.mubr.bf16.mxu0 %v10506_v23  ;;  %6100 = vmatpush3.bf16.msra.mxu0 %v6381_v15  ;;  %v10507_v15 = vld [vmem:[#allocation70_spill] sm:$0xff] }
 0x481   : > { %v5489_v57 = vadd.f32 -1.0, %v6792_v56  ;;  %v5883_v18 = vpop.f32.mrb[83].mxu1  ;;  %6101 = vmatprep.subr.bf16.mxu0 %v6382_v37  ;;  %v4029_v34 = vpop.xlane.xlu1 %4028 }
 0x482   : > { %v6794_v31 = vpop.eup %6793  ;;  %v3521_v36 = vmin.f32 %v9475_v21, 0.0  ;;  %v9484_v49 = vadd.f32 %v5883_v18, %v5882_v2  ;;  %v4017_v52 = vpop.xlane.xlu0 %4016  ;;  %v6384_v2 = vld [vmem:[%s9912_s5 + $0xa8] sm:$0xff]   ;;  %vm3505_vm2 = vcmp.gt.f32.partialorder %v9475_v21, 0.0 }
 0x483   : > { %v5490_v33 = vadd.f32 -1.0, %v6794_v31  ;;  %v4063_v35 = vsub.f32 %v10507_v15, %v4017_v52  ;;  %v4064_v56 = vsub.f32 %v10508_v20, %v4017_v52  ;;  %v9495_v23 = vsel %vm3501_vm13, %v9417_v1, %v5489_v57  ;;  %v10509_v31 = vld [vmem:[#allocation33_spill] sm:$0xff]  ;;  %v10510_v20 = vld [vmem:[#allocation71_spill] sm:$0xff] }
 0x484   : > { %v3545_v28 = vmul.f32 1.442695, %v3521_v36  ;;  %6102 = vmatpush3.bf16.msra.mxu0 %v6382_v37  ;;  %v3522_v54 = vmin.f32 %v9484_v49, 0.0  ;;  %v4071_v45 = vsub.f32 %v10509_v31, %v4029_v34  ;;  %v4072_v1 = vsub.f32 %v10510_v20, %v4029_v34 }
 0x485   : > { %6103 = vmatprep.subr.bf16.mxu0 %v6383_v59  ;;  %v9498_v18 = vsel %vm3502_vm11, %v9423_v41, %v5490_v33  ;;  %v4095_v15 = vmul.f32 1.442695, %v4063_v35  ;;  %v4097_v6 = vmul.f32 1.442695, %v4064_v56  ;;  %v10511_v33 = vld [vmem:[#allocation74_spill] sm:$0xff]  ;;  %vm3506_vm6 = vcmp.gt.f32.partialorder %v9484_v49, 0.0 }
 0x486   : > { %v3595_v37 = vpack.c.bf16 %v9498_v18, %v9495_v23  ;;  %6799 = vpow2.f32 %v3545_v28  ;;  %v3547_v36 = vmul.f32 1.442695, %v3522_v54  ;;  %v10512_v56 = vld [vmem:[#allocation34_spill] sm:$0xff] }
 0x487   : > { %6088 = vmatmul.mubr.bf16.gmra.mrb[40].mxu0 %v1632_v29  ;;  %6801 = vpow2.f32 %v4095_v15  ;;  %v4111_v29 = vmul.f32 1.442695, %v4071_v45  ;;  %v6386_v15 = vld [vmem:[%s9912_s5 + $0xb8] sm:$0xff]  }
 0x488   : > { %v6796_v52 = vpop.eup %6795  ;;  %6091 = vmatprep.mubr.bf16.mxu0 %v1633_v53  ;;  %6104 = vmatpush3.bf16.msra.mxu0 %v6383_v59  ;;  %6803 = vpow2.f32 %v4097_v6  ;;  %v4113_v53 = vmul.f32 1.442695, %v4072_v1 }
 0x489   : > { %v4023_v57 = vpop.xlane.xlu0 %4022  ;;  %v5491_v41 = vadd.f32 -1.0, %v6796_v52  ;;  %6105 = vmatprep.subr.bf16.mxu0 %v6384_v2  ;;  %6805 = vpow2.f32 %v3547_v36 }
 0x48a   : > { %v4067_v35 = vsub.f32 %v10511_v33, %v4023_v57  ;;  %v4068_v28 = vsub.f32 %v10512_v56, %v4023_v57  ;;  %v6798_v61 = vpop.eup %6797  ;;  %v6387_v57 = vld [vmem:[%s9909_s2 + $0x10c] ss:$16 sps:$4 sm:$0xff]  }
 0x48b   : > { %v5492_v34 = vadd.f32 -1.0, %v6798_v61  ;;  %v9518_v59 = vsel %vm3503_vm9, %v9440_v48, %v5491_v41  ;;  %v6388_v56 = vld [vmem:[%s9909_s2 + $0xc] ss:$16 sps:$4 sm:$0xff]  }
 0x48c   : > { %v4103_v38 = vmul.f32 1.442695, %v4067_v35  ;;  %v4105_v22 = vmul.f32 1.442695, %v4068_v28  ;;  %6106 = vmatpush3.bf16.msra.mxu0 %v6384_v2 }
 0x48d   : > { %6107 = vmatprep.subr.bf16.mxu0 %v6385_v32  ;;  %v9526_v36 = vsel %vm3504_vm10, %v9450_v11, %v5492_v34  ;;  %v10513_v11 = vpack.c.bf16 %v9433_v39, %v9431_v9 }
 0x48e   : > { %v4035_v6 = vpop.xlane.xlu1 %4034  ;;  %6807 = vpow2.f32 %v4103_v38  ;;  %v3596_v52 = vpack.c.bf16 %v9526_v36, %v9518_v59 }
 0x48f   : > { %v4075_v54 = vsub.f32 %v9100_v62, %v4035_v6  ;;  %v4076_v31 = vsub.f32 %v9109_v40, %v4035_v6  ;;  %v4026_v45 = vpop.xlane.xlu0 %4025  ;;  %6809 = vpow2.f32 %v4105_v22  ;;  %6092 = vmatmul.mubr.bf16.gmra.mrb[44].mxu0 %v1634_v5 }
 0x490   : > { %v4069_v2 = vsub.f32 %v9126_v13, %v4026_v45  ;;  %v4070_v48 = vsub.f32 %v9130_v47, %v4026_v45  ;;  %6811 = vpow2.f32 %v4111_v29  ;;  %6108 = vmatpush3.bf16.msra.mxu0 %v6385_v32  ;;  %6111 = vmatprep.mubr.bf16.mxu0 %v10513_v11  ;;  %v6800_v13 = vpop.eup %6799 }
 0x491   : > { %v4119_v62 = vmul.f32 1.442695, %v4075_v54  ;;  %v4121_v40 = vmul.f32 1.442695, %v4076_v31  ;;  %6813 = vpow2.f32 %v4113_v53  ;;  %6109 = vmatprep.subr.bf16.mxu0 %v6386_v15  ;;  %v9541_v41 = vpop.eup %6801  ;;  %v5493_v9 = vadd.f32 -1.0, %v6800_v13 }
 0x492   : > { %v4107_v20 = vmul.f32 1.442695, %v4069_v2  ;;  %v4109_v1 = vmul.f32 1.442695, %v4070_v48  ;;  %v9545_v33 = vpop.eup %6803  ;;  %v10514_v54 = vpack.c.bf16 %v9463_v60, %v9460_v0  ;;  %v6390_v0 = vld [vmem:[%s9909_s2 + $0x2c] ss:$16 sps:$4 sm:$0xff]  }
 0x493   : > { %6815 = vpow2.f32 %v4119_v62  ;;  %v6806_v28 = vpop.eup %6805  ;;  %v3585_v31 = vsel %vm3505_vm2, %v9475_v21, %v5493_v9 }
 0x494   : > { %v4032_v47 = vpop.xlane.xlu0 %4031  ;;  %6817 = vpow2.f32 %v4121_v40  ;;  %6110 = vmatpush3.bf16.msra.mxu0 %v6386_v15 }
 0x495   : > { %v4073_v7 = vsub.f32 %v9166_v19, %v4032_v47  ;;  %v4074_v5 = vsub.f32 %v9170_v24, %v4032_v47  ;;  %6819 = vpow2.f32 %v4107_v20  ;;  %v4159_v19 = vadd.f32 %v9545_v33, %v9541_v41  ;;  %v6389_v24 = vld [vmem:[%s9909_s2 + $0x12c] ss:$16 sps:$4 sm:$0xff]   ;;  %5919 = vmatprep.subr.bf16.mxu0 %v6387_v57 }
 0x496   : > { %v4041_v50 = vpop.xlane.xlu1 %4040  ;;  %6821 = vpow2.f32 %v4109_v1 }
 0x497   : > { %v4079_v39 = vsub.f32 %v9174_v51, %v4041_v50  ;;  %v4080_v35 = vsub.f32 %v9186_v55, %v4041_v50  ;;  %v4115_v32 = vmul.f32 1.442695, %v4073_v7  ;;  %v4117_v61 = vmul.f32 1.442695, %v4074_v5  ;;  %4160 = vadd.xlane.f32.xlu1 %v4159_v19  ;;  %6112 = vmatmul.mubr.bf16.vlgmr.msra.gmra.mrb[32].mxu0 %v10514_v54 }
 0x498   : > { %v5494_v51 = vadd.f32 -1.0, %v6806_v28  ;;  %v9561_v53 = vpop.eup %6807  ;;  %6115 = vmatprep.mubr.bf16.mxu0 %v3595_v37  ;;  %5920 = vmatpush3.bf16.msra.mxu0 %v6388_v56 }
 0x499   : > { %v4127_v55 = vmul.f32 1.442695, %v4079_v39  ;;  %v4129_v29 = vmul.f32 1.442695, %v4080_v35  ;;  %6823 = vpow2.f32 %v4115_v32  ;;  %v9568_v15 = vpop.eup %6809  ;;  %5921 = vmatprep.subr.bf16.mxu0 %v6389_v24 }
 0x49a   : > { %v4038_v34 = vpop.xlane.xlu0 %4037  ;;  %v3586_v45 = vsel %vm3506_vm6, %v9484_v49, %v5494_v51  ;;  %v9578_v60 = vpop.eup %6811 }
 0x49b   : > { %v4077_v38 = vsub.f32 %v9210_v8, %v4038_v34  ;;  %v4078_v22 = vsub.f32 %v9217_v30, %v4038_v34  ;;  %6825 = vpow2.f32 %v4127_v55  ;;  %v3597_v48 = vpack.c.bf16 %v3586_v45, %v3585_v31  ;;  %v9585_v23 = vpop.eup %6813 }
 0x49c   : > { %6827 = vpow2.f32 %v4129_v29  ;;  %5922 = vmatpush3.bf16.msra.mxu0 %v6390_v0 }
 0x49d   : > { %v4047_v6 = vpop.xlane.xlu1 %4046  ;;  %v4123_v2 = vmul.f32 1.442695, %v4077_v38  ;;  %6829 = vpow2.f32 %v4117_v61  ;;  %v4125_v21 = vmul.f32 1.442695, %v4078_v22  ;;  %v9588_v40 = vpop.eup %6815 }
 0x49e   : > { %v4083_v8 = vsub.f32 %v9232_v4, %v4047_v6  ;;  %v4084_v30 = vsub.f32 %v9240_v16, %v4047_v6  ;;  %v4165_v4 = vadd.f32 %v9568_v15, %v9561_v53  ;;  %v6391_v16 = vld [vmem:[%s9909_s2 + $0x14c] ss:$16 sps:$4 sm:$0xff]   ;;  %v9591_v11 = vpop.eup %6817 }
 0x49f   : > { %6831 = vpow2.f32 %v4123_v2  ;;  %v9598_v50 = vpop.eup %6819  ;;  %5923 = vmatprep.subr.bf16.mxu0 %v6391_v16  ;;  %6116 = vmatmul.mubr.bf16.gmra.mrb[36].mxu0 %v3596_v52  ;;  %v4177_v36 = vadd.f32 %v9591_v11, %v9588_v40 }
 0x4a0   : > { %v4044_v49 = vpop.xlane.xlu0 %4043  ;;  %v4135_v18 = vmul.f32 1.442695, %v4083_v8  ;;  %v4137_v37 = vmul.f32 1.442695, %v4084_v30  ;;  %6833 = vpow2.f32 %v4125_v21  ;;  %4166 = vadd.xlane.f32.xlu1 %v4165_v4  ;;  %6119 = vmatprep.mubr.bf16.mxu0 %v3597_v48 }
 0x4a1   : > { %v4081_v62 = vsub.f32 %v9256_v17, %v4044_v49  ;;  %v4082_v1 = vsub.f32 %v9263_v42, %v4044_v49  ;;  %v6392_v17 = vld [vmem:[%s9909_s2 + $0x4c] ss:$16 sps:$4 sm:$0xff]   ;;  %v4171_v42 = vadd.f32 %v9585_v23, %v9578_v60 }
 0x4a2   : > { %v4053_v20 = vpop.xlane.xlu1 %4052  ;;  %6835 = vpow2.f32 %v4135_v18  ;;  %5924 = vmatpush3.bf16.msra.mxu0 %v6392_v17 }
 0x4a3   : > { %v4087_v13 = vsub.f32 %v9277_v10, %v4053_v20  ;;  %v4088_v47 = vsub.f32 %v9284_v63, %v4053_v20  ;;  %v4131_v57 = vmul.f32 1.442695, %v4081_v62  ;;  %6837 = vpow2.f32 %v4137_v37  ;;  %v6393_v10 = vld [vmem:[%s9909_s2 + $0x16c] ss:$16 sps:$4 sm:$0xff]   ;;  %v9605_v63 = vpop.eup %6821 }
 0x4a4   : > { %v4133_v7 = vmul.f32 1.442695, %v4082_v1  ;;  %4172 = vadd.xlane.f32.xlu1 %v4171_v42  ;;  %v4168_v32 = vadd.f32 %v9605_v63, %v9598_v50  ;;  %v9614_v61 = vpop.eup %6823  ;;  %5925 = vmatprep.subr.bf16.mxu0 %v6393_v10 }
 0x4a5   : > { %v4050_v5 = vpop.xlane.xlu0 %4049  ;;  %v4143_v9 = vmul.f32 1.442695, %v4087_v13  ;;  %v4145_v39 = vmul.f32 1.442695, %v4088_v47  ;;  %6839 = vpow2.f32 %v4131_v57  ;;  %v9621_v51 = vpop.eup %6825 }
 0x4a6   : > { %v4085_v35 = vsub.f32 %v9291_v44, %v4050_v5  ;;  %6841 = vpow2.f32 %v4133_v7  ;;  %v4059_v56 = vpop.xlane.xlu1 %4058  ;;  %v4086_v28 = vsub.f32 %v9301_v12, %v4050_v5  ;;  %v6394_v12 = vld [vmem:[%s9909_s2 + $0x6c] ss:$16 sps:$4 sm:$0xff]   ;;  %4169 = vadd.xlane.f32.xlu0 %v4168_v32 }
 0x4a7   : > { %6843 = vpow2.f32 %v4143_v9  ;;  %v4091_v19 = vsub.f32 %v9309_v27, %v4059_v56  ;;  %v4092_v24 = vsub.f32 %v9317_v25, %v4059_v56  ;;  %v6395_v27 = vld [vmem:[%s9909_s2 + $0x18c] ss:$16 sps:$4 sm:$0xff]   ;;  %v9628_v25 = vpop.eup %6827  ;;  %5926 = vmatpush3.bf16.msra.mxu0 %v6394_v12 }
 0x4a8   : > { %v4139_v44 = vmul.f32 1.442695, %v4085_v35  ;;  %6845 = vpow2.f32 %v4145_v39  ;;  %v4141_v55 = vmul.f32 1.442695, %v4086_v28  ;;  %v9631_v38 = vpop.eup %6829  ;;  %4178 = vadd.xlane.f32.xlu1 %v4177_v36  ;;  %5927 = vmatprep.subr.bf16.mxu0 %v6395_v27  ;;  %v6396_v39 = vld [vmem:[%s9909_s2 + $0x8c] ss:$16 sps:$4 sm:$0xff]  }
 0x4a9   : > { %v4056_v59 = vpop.xlane.xlu0 %4055  ;;  %v4151_v52 = vmul.f32 1.442695, %v4091_v19  ;;  %v4153_v29 = vmul.f32 1.442695, %v4092_v24  ;;  %v9634_v6 = vpop.eup %6831  ;;  %v4174_v31 = vadd.f32 %v9631_v38, %v9614_v61  ;;  %v6397_v35 = vld [vmem:[%s9909_s2 + $0x1ac] ss:$16 sps:$4 sm:$0xff]  }
 0x4aa   : > { %6847 = vpow2.f32 %v4139_v44  ;;  %v4089_v34 = vsub.f32 %v9330_v43, %v4056_v59  ;;  %v4090_v22 = vsub.f32 %v9334_v3, %v4056_v59  ;;  %v9638_v45 = vpop.eup %6833  ;;  %v4183_v43 = vadd.f32 %v9628_v25, %v9621_v51  ;;  %v6398_v44 = vld [vmem:[%s9909_s2 + $0xac] ss:$16 sps:$4 sm:$0xff]  }
 0x4ab   : > { %6849 = vpow2.f32 %v4141_v55  ;;  %4175 = vadd.xlane.f32.xlu0 %v4174_v31  ;;  %v4180_v21 = vadd.f32 %v9638_v45, %v9634_v6  ;;  %5928 = vmatpush3.bf16.msra.mxu0 %v6396_v39  ;;  %v6399_v36 = vld [vmem:[%s9909_s2 + $0x1cc] ss:$16 sps:$4 sm:$0xff]  }
 0x4ac   : > { %6851 = vpow2.f32 %v4151_v52  ;;  %v4147_v54 = vmul.f32 1.442695, %v4089_v34  ;;  %v4149_v8 = vmul.f32 1.442695, %v4090_v22  ;;  %v9642_v2 = vpop.eup %6835  ;;  %4184 = vadd.xlane.f32.xlu1 %v4183_v43  ;;  %5929 = vmatprep.subr.bf16.mxu0 %v6397_v35  ;;  %v6400_v34 = vld [vmem:[%s9909_s2 + $0xcc] ss:$16 sps:$4 sm:$0xff]  }
 0x4ad   : > { %6853 = vpow2.f32 %v4153_v29  ;;  %v4062_v30 = vpop.xlane.xlu0 %4061  ;;  %v9648_v49 = vpop.eup %6837 }
 0x4ae   : > { %6855 = vpow2.f32 %v4147_v54  ;;  %v4093_v3 = vsub.f32 %v9381_v14, %v4062_v30  ;;  %v4094_v0 = vsub.f32 %v9385_v26, %v4062_v30  ;;  %v4189_v37 = vadd.f32 %v9648_v49, %v9642_v2  ;;  %v5885_v1 = vpop.f32.mrb[84].mxu1  ;;  %v6401_v54 = vld [vmem:[%s9909_s2 + $0x1ec] ss:$16 sps:$4 sm:$0xff]  }
 0x4af   : > { %6857 = vpow2.f32 %v4149_v8  ;;  %v9650_v4 = vpop.eup %6839  ;;  %4181 = vadd.xlane.f32.xlu0 %v4180_v21  ;;  %v5886_v57 = vpop.f32.mrb[85].mxu1  ;;  %5930 = vmatpush3.bf16.msra.mxu0 %v6398_v44  ;;  %v6402_v8 = vld [vmem:[%s9909_s2 + $0xec] ss:$16 sps:$4 sm:$0xff]  }
 0x4b0   : > { %v4155_v48 = vmul.f32 1.442695, %v4093_v3  ;;  %v4157_v16 = vmul.f32 1.442695, %v4094_v0  ;;  %v9652_v18 = vpop.eup %6841  ;;  %4190 = vadd.xlane.f32.xlu1 %v4189_v37  ;;  %v5887_v5 = vadd.f32 %v5886_v57, %v5885_v1  ;;  %v5888_v42 = vpop.f32.mrb[86].mxu1  ;;  %5931 = vmatprep.subr.bf16.mxu0 %v6399_v36 }
 0x4b1   : > { %v9656_v62 = vpop.eup %6843  ;;  %v4186_v14 = vadd.f32 %v9652_v18, %v9650_v4  ;;  %v5889_v9 = vpop.f32.mrb[87].mxu1 }
 0x4b2   : > { %6859 = vpow2.f32 %v4155_v48  ;;  %v9660_v26 = vpop.eup %6845  ;;  %v3523_v28 = vmin.f32 %v5887_v5, 0.0  ;;  %v5890_v32 = vadd.f32 %v5889_v9, %v5888_v42  ;;  %vm3507_vm7 = vcmp.gt.f32.partialorder %v5887_v5, 0.0 }
 0x4b3   : > { %6861 = vpow2.f32 %v4157_v16  ;;  %v4195_v47 = vadd.f32 %v9660_v26, %v9656_v62  ;;  %4187 = vadd.xlane.f32.xlu0 %v4186_v14  ;;  %5932 = vmatpush3.bf16.msra.mxu0 %v6400_v34 }
 0x4b4   : > { %v9662_v20 = vpop.eup %6847  ;;  %v3549_v55 = vmul.f32 1.442695, %v3523_v28  ;;  %v3524_v59 = vmin.f32 %v5890_v32, 0.0  ;;  %5933 = vmatprep.subr.bf16.mxu0 %v6401_v54  ;;  %vm3508_vm3 = vcmp.gt.f32.partialorder %v5890_v32, 0.0 }
 0x4b5   : > { %v9664_v13 = vpop.eup %6849  ;;  %4196 = vadd.xlane.f32.xlu1 %v4195_v47  ;;  %v5891_v31 = vpop.f32.mrb[88].mxu1 }
 0x4b6   : > { %v9668_v17 = vpop.eup %6851  ;;  %v4192_v7 = vadd.f32 %v9664_v13, %v9662_v20  ;;  %6863 = vpow2.f32 %v3549_v55  ;;  %v3551_v52 = vmul.f32 1.442695, %v3524_v59  ;;  %v5892_v30 = vpop.f32.mrb[89].mxu1 }
 0x4b7   : > { %v9672_v10 = vpop.eup %6853  ;;  %v5893_v43 = vadd.f32 %v5892_v30, %v5891_v31  ;;  %v5894_v3 = vpop.f32.mrb[90].mxu1  ;;  %5934 = vmatpush3.bf16.msra.mxu0 %v6402_v8 }
 0x4b8   : > { %v9680_v56 = vpop.eup %6855  ;;  %v4201_v24 = vadd.f32 %v9672_v10, %v9668_v17  ;;  %4193 = vadd.xlane.f32.xlu0 %v4192_v7  ;;  %6865 = vpow2.f32 %v3551_v52  ;;  %v5895_v0 = vpop.f32.mrb[91].mxu1 }
 0x4b9   : > { %v9682_v19 = vpop.eup %6857  ;;  %v3525_v21 = vmin.f32 %v5893_v43, 0.0  ;;  %v5896_v48 = vadd.f32 %v5895_v0, %v5894_v3  ;;  %vm3509_vm8 = vcmp.gt.f32.partialorder %v5893_v43, 0.0 }
 0x4ba   : > { %v4198_v12 = vadd.f32 %v9682_v19, %v9680_v56  ;;  %4202 = vadd.xlane.f32.xlu1 %v4201_v24 }
 0x4bb   : > { %v3553_v14 = vmul.f32 1.442695, %v3525_v21  ;;  %v3526_v1 = vmin.f32 %v5896_v48, 0.0  ;;  %vm3510_vm1 = vcmp.gt.f32.partialorder %v5896_v48, 0.0 }
 0x4bc   : > { %v9694_v27 = vpop.eup %6859  ;;  %4199 = vadd.xlane.f32.xlu0 %v4198_v12 }
 0x4bd   : > { %v9696_v29 = vpop.eup %6861  ;;  %6867 = vpow2.f32 %v3553_v14  ;;  %v3555_v7 = vmul.f32 1.442695, %v3526_v1 }
 0x4be   : > { %v4204_v22 = vadd.f32 %v9696_v29, %v9694_v27 }
 0x4bf   : > { %6869 = vpow2.f32 %v3555_v7 }
 0x4c0   : > { %4205 = vadd.xlane.f32.xlu0 %v4204_v22  ;;  %v6864_v16 = vpop.eup %6863 }
 0x4c1   : > { %v5495_v37 = vadd.f32 -1.0, %v6864_v16 }
 0x4c2   : > { %v6866_v47 = vpop.eup %6865 }
 0x4c3   : > { %v5496_v57 = vadd.f32 -1.0, %v6866_v47  ;;  %v3587_v42 = vsel %vm3507_vm7, %v5887_v5, %v5495_v37  ;;  %v6403_v47 = vld [vmem:[%s9912_s5 + $0xc0] sm:$0xff]  }
 0x4c4   : > { %6127 = vmatprep.subr.bf16.mxu0 %v6403_v47 }
 0x4c5   : > { %v3588_v9 = vsel %vm3508_vm3, %v5890_v32, %v5496_v57 }
 0x4c6   : > { %v3598_v39 = vpack.c.bf16 %v3588_v9, %v3587_v42  ;;  %v5897_v35 = vpop.f32.mrb[92].mxu1 }
 0x4c7   : > { %v5898_v28 = vpop.f32.mrb[93].mxu1  ;;  %v6868_v12 = vpop.eup %6867 }
 0x4c8   : > { %6120 = vmatmul.mubr.bf16.gmra.mrb[40].mxu0 %v3598_v39  ;;  %v5899_v24 = vadd.f32 %v5898_v28, %v5897_v35  ;;  %v5900_v44 = vpop.f32.mrb[94].mxu1  ;;  %v5497_v59 = vadd.f32 -1.0, %v6868_v12 }
 0x4c9   : > { %v5901_v55 = vpop.f32.mrb[95].mxu1  ;;  %v6870_v34 = vpop.eup %6869 }
 0x4ca   : > { %v3527_v36 = vmin.f32 %v5899_v24, 0.0  ;;  %v5902_v52 = vadd.f32 %v5901_v55, %v5900_v44  ;;  %v5498_v22 = vadd.f32 -1.0, %v6870_v34  ;;  %v3589_v32 = vsel %vm3509_vm8, %v5893_v43, %v5497_v59 }
 0x4cb   : > { %vm3511_vm0 = vcmp.gt.f32.partialorder %v5899_v24, 0.0 }
 0x4cc   : > { %v3557_v54 = vmul.f32 1.442695, %v3527_v36  ;;  %v3528_v31 = vmin.f32 %v5902_v52, 0.0  ;;  %v3590_v8 = vsel %vm3510_vm1, %v5896_v48, %v5498_v22  ;;  %vm3512_vm14 = vcmp.gt.f32.partialorder %v5902_v52, 0.0 }
 0x4cd   : > { %v3599_v30 = vpack.c.bf16 %v3590_v8, %v3589_v32 }
 0x4ce   : > { %6871 = vpow2.f32 %v3557_v54  ;;  %v3559_v5 = vmul.f32 1.442695, %v3528_v31 }
 0x4cf   : > { %6123 = vmatprep.mubr.bf16.mxu0 %v3599_v30 }
 0x4d0   : > { %6873 = vpow2.f32 %v3559_v5 }
 0x4d8   : > { %v6872_v3 = vpop.eup %6871 }
 0x4d9   : > { %v5499_v0 = vadd.f32 -1.0, %v6872_v3 }
 0x4da   : > { %v6874_v21 = vpop.eup %6873 }
 0x4db   : > { %v5500_v16 = vadd.f32 -1.0, %v6874_v21  ;;  %v3591_v37 = vsel %vm3511_vm0, %v5899_v24, %v5499_v0 }
 0x4dd   : > { %v3592_v14 = vsel %vm3512_vm14, %v5902_v52, %v5500_v16 }
 0x4de   : > { %v3600_v1 = vpack.c.bf16 %v3592_v14, %v3591_v37 }
 0x4e0   : > { %6124 = vmatmul.mubr.bf16.gmra.mrb[44].mxu0 %v3600_v1 }
 0x50c   : > { %v4164_v43 = vpop.xlane.xlu0 %4163 }
 0x50d   : > { %6875 = vrcp.f32 %v4164_v43 }
 0x517   : > { %v6876_v7 = vpop.eup %6875 }
 0x518   : > { %v4211_v9 = vmul.f32 %v6876_v7, %v9452_v58  ;;  %v4212_v44 = vmul.f32 %v6876_v7, %v9454_v46 }
 0x524   : > { %v4161_v48 = vpop.xlane.xlu1 %4160 }
 0x525   : > { %6877 = vrcp.f32 %v4161_v48 }
 0x52d   : > { %v4167_v57 = vpop.xlane.xlu1 %4166 }
 0x52e   : > { %6879 = vrcp.f32 %v4167_v57 }
 0x52f   : > { %v6878_v42 = vpop.eup %6877 }
 0x530   : > { %v4208_v28 = vmul.f32 %v6878_v42, %v9541_v41  ;;  %v4209_v24 = vmul.f32 %v6878_v42, %v9545_v33 }
 0x531   : > { %v4173_v39 = vpop.xlane.xlu1 %4172 }
 0x532   : > { %v4256_v12 = vpack.c.bf16 %v4212_v44, %v4209_v24  ;;  %v4255_v55 = vpack.c.bf16 %v4211_v9, %v4208_v28 }
 0x533   : > { %v4170_v35 = vpop.xlane.xlu0 %4169 }
 0x534   : > { %6881 = vrcp.f32 %v4170_v35  ;;  %4431 = vmatprep.mubr.bf16.mxu0 %v4256_v12 }
 0x535   : > { %6883 = vrcp.f32 %v4173_v39  ;;  %v4179_v36 = vpop.xlane.xlu1 %4178  ;;  %4432 = vmatmul.mubr.bf16.vlgmr.msra.gmra.mrb[48].mxu0 %v4255_v55 }
 0x536   : > { %6128 = vmatpush3.bf16.msra.mxu0 %v6403_v47 }
 0x538   : > { %v4176_v59 = vpop.xlane.xlu0 %4175  ;;  %v6880_v52 = vpop.eup %6879 }
 0x539   : > { %6885 = vrcp.f32 %v4176_v59  ;;  %v4215_v41 = vmul.f32 %v6880_v52, %v9568_v15  ;;  %v4214_v46 = vmul.f32 %v6880_v52, %v9561_v53  ;;  %v4185_v5 = vpop.xlane.xlu1 %4184 }
 0x53a   : > { %6887 = vrcp.f32 %v4179_v36 }
 0x53c   : > { %v4182_v58 = vpop.xlane.xlu0 %4181 }
 0x53d   : > { %6889 = vrcp.f32 %v4182_v58  ;;  %v4191_v14 = vpop.xlane.xlu1 %4190 }
 0x53e   : > { %v6882_v34 = vpop.eup %6881 }
 0x53f   : > { %v4218_v33 = vmul.f32 %v6882_v34, %v9605_v63  ;;  %v4217_v22 = vmul.f32 %v6882_v34, %v9598_v50  ;;  %v6884_v31 = vpop.eup %6883 }
 0x540   : > { %v4188_v54 = vpop.xlane.xlu0 %4187  ;;  %v4221_v3 = vmul.f32 %v6884_v31, %v9585_v23  ;;  %v4220_v16 = vmul.f32 %v6884_v31, %v9578_v60  ;;  %v6411_v31 = vld [vmem:[%s9913_s6] sm:$0xff]  }
 0x541   : > { %v4258_v32 = vpack.c.bf16 %v4218_v33, %v4215_v41  ;;  %v4257_v8 = vpack.c.bf16 %v4217_v22, %v4214_v46  ;;  %6891 = vrcp.f32 %v4188_v54  ;;  %v6410_v54 = vld [vmem:[%s9912_s5 + $0xf8] sm:$0xff]   ;;  %6159 = vmatprep.subr.bf16.mxu1 %v6411_v31 }
 0x542   : > { %6893 = vrcp.f32 %v4185_v5  ;;  %v4197_v7 = vpop.xlane.xlu1 %4196  ;;  %v6412_v5 = vld [vmem:[%s9913_s6 + $0x8] sm:$0xff]   ;;  %6160 = vmatpush3.bf16.msra.mxu1 %v6411_v31 }
 0x543   : > { %v6886_v30 = vpop.eup %6885  ;;  %4439 = vmatprep.mubr.bf16.mxu0 %v4258_v32  ;;  %6161 = vmatprep.subr.bf16.mxu1 %v6412_v5  ;;  %v6413_v32 = vld [vmem:[%s9913_s6 + $0x10] sm:$0xff]  }
 0x544   : > { %4440 = vmatmul.mubr.bf16.gmra.mrb[52].mxu0 %v4257_v8  ;;  %v4224_v15 = vmul.f32 %v6886_v30, %v9631_v38  ;;  %v6888_v0 = vpop.eup %6887  ;;  %v4223_v53 = vmul.f32 %v6886_v30, %v9614_v61  ;;  %v6414_v8 = vld [vmem:[%s9913_s6 + $0x18] sm:$0xff]   ;;  %v6415_v30 = vld [vmem:[%s9913_s6 + $0x20] sm:$0xff]  }
 0x545   : > { %v4194_v50 = vpop.xlane.xlu0 %4193  ;;  %v4227_v1 = vmul.f32 %v6888_v0, %v9591_v11  ;;  %v4226_v60 = vmul.f32 %v6888_v0, %v9588_v40 }
 0x546   : > { %v4260_v63 = vpack.c.bf16 %v4224_v15, %v4221_v3  ;;  %6895 = vrcp.f32 %v4194_v50  ;;  %v4259_v47 = vpack.c.bf16 %v4223_v53, %v4220_v16  ;;  %6162 = vmatpush3.bf16.msra.mxu1 %v6412_v5  ;;  %v6416_v3 = vld [vmem:[%s9913_s6 + $0x28] sm:$0xff]   ;;  %v6417_v15 = vld [vmem:[%s9913_s6 + $0x30] sm:$0xff]  }
 0x547   : > { %v6890_v21 = vpop.eup %6889  ;;  %6897 = vrcp.f32 %v4191_v14  ;;  %v4203_v24 = vpop.xlane.xlu1 %4202  ;;  %6163 = vmatprep.subr.bf16.mxu1 %v6413_v32 }
 0x548   : > { %4447 = vmatprep.mubr.bf16.mxu0 %v4260_v63  ;;  %v4230_v37 = vmul.f32 %v6890_v21, %v9638_v45  ;;  %v4229_v61 = vmul.f32 %v6890_v21, %v9634_v6 }
 0x549   : > { %v4200_v48 = vpop.xlane.xlu0 %4199 }
 0x54a   : > { %v4262_v43 = vpack.c.bf16 %v4230_v37, %v4227_v1  ;;  %6899 = vrcp.f32 %v4200_v48  ;;  %v4261_v11 = vpack.c.bf16 %v4229_v61, %v4226_v60  ;;  %6164 = vmatpush3.bf16.msra.mxu1 %v6413_v32 }
 0x54b   : > { %v6892_v23 = vpop.eup %6891  ;;  %6901 = vrcp.f32 %v4197_v7  ;;  %6165 = vmatprep.subr.bf16.mxu1 %v6414_v8 }
 0x54c   : > { %4448 = vmatmul.mubr.bf16.gmra.mrb[56].mxu0 %v4259_v47  ;;  %v6894_v38 = vpop.eup %6893  ;;  %v4236_v57 = vmul.f32 %v6892_v23, %v9652_v18  ;;  %v4235_v35 = vmul.f32 %v6892_v23, %v9650_v4 }
 0x54d   : > { %4455 = vmatprep.mubr.bf16.mxu0 %v4262_v43  ;;  %v4233_v45 = vmul.f32 %v6894_v38, %v9628_v25  ;;  %v4206_v28 = vpop.xlane.xlu0 %4205  ;;  %v4232_v18 = vmul.f32 %v6894_v38, %v9621_v51 }
 0x54e   : > { %6903 = vrcp.f32 %v4206_v28  ;;  %6166 = vmatpush3.bf16.msra.mxu1 %v6414_v8 }
 0x54f   : > { %v4264_v42 = vpack.c.bf16 %v4236_v57, %v4233_v45  ;;  %v4263_v25 = vpack.c.bf16 %v4235_v35, %v4232_v18  ;;  %6905 = vrcp.f32 %v4203_v24  ;;  %6167 = vmatprep.subr.bf16.mxu1 %v6415_v30 }
 0x550   : > { %v6896_v9 = vpop.eup %6895 }
 0x551   : > { %v6898_v39 = vpop.eup %6897  ;;  %v4242_v6 = vmul.f32 %v6896_v9, %v9664_v13  ;;  %v4241_v59 = vmul.f32 %v6896_v9, %v9662_v20 }
 0x552   : > { %v4239_v40 = vmul.f32 %v6898_v39, %v9648_v49  ;;  %v4238_v36 = vmul.f32 %v6898_v39, %v9642_v2  ;;  %6168 = vmatpush3.bf16.msra.mxu1 %v6415_v30 }
 0x553   : > { %6169 = vmatprep.subr.bf16.mxu1 %v6416_v3 }
 0x554   : > { %4456 = vmatmul.mubr.bf16.gmra.mrb[60].mxu0 %v4261_v11  ;;  %v4266_v44 = vpack.c.bf16 %v4242_v6, %v4239_v40  ;;  %v6900_v12 = vpop.eup %6899  ;;  %v4265_v51 = vpack.c.bf16 %v4241_v59, %v4238_v36 }
 0x555   : > { %4463 = vmatprep.mubr.bf16.mxu0 %v4264_v42  ;;  %v6902_v55 = vpop.eup %6901  ;;  %v4248_v4 = vmul.f32 %v6900_v12, %v9682_v19  ;;  %v4247_v34 = vmul.f32 %v6900_v12, %v9680_v56  ;;  %v6404_v56 = vld [vmem:[%s9912_s5 + $0xc8] sm:$0xff]  }
 0x556   : > { %v4245_v13 = vmul.f32 %v6902_v55, %v9660_v26  ;;  %v4244_v33 = vmul.f32 %v6902_v55, %v9656_v62  ;;  %6129 = vmatprep.subr.bf16.mxu0 %v6404_v56  ;;  %v6405_v62 = vld [vmem:[%s9912_s5 + $0xd0] sm:$0xff]   ;;  %6170 = vmatpush3.bf16.msra.mxu1 %v6416_v3 }
 0x557   : > { %6130 = vmatpush3.bf16.msra.mxu0 %v6404_v56  ;;  %6171 = vmatprep.subr.bf16.mxu1 %v6417_v15 }
 0x558   : > { %v4268_v52 = vpack.c.bf16 %v4248_v4, %v4245_v13  ;;  %v6904_v58 = vpop.eup %6903  ;;  %v4267_v46 = vpack.c.bf16 %v4247_v34, %v4244_v33  ;;  %6131 = vmatprep.subr.bf16.mxu0 %v6405_v62 }
 0x559   : > { %v6906_v49 = vpop.eup %6905  ;;  %v4254_v41 = vmul.f32 %v6904_v58, %v9696_v29  ;;  %v4253_v2 = vmul.f32 %v6904_v58, %v9694_v27  ;;  %v6408_v27 = vld [vmem:[%s9912_s5 + $0xe8] sm:$0xff]   ;;  %v6409_v29 = vld [vmem:[%s9912_s5 + $0xf0] sm:$0xff]  }
 0x55a   : > { %v4251_v20 = vmul.f32 %v6906_v49, %v9672_v10  ;;  %v4250_v26 = vmul.f32 %v6906_v49, %v9668_v17  ;;  %v6406_v10 = vld [vmem:[%s9912_s5 + $0xd8] sm:$0xff]   ;;  %v6407_v17 = vld [vmem:[%s9912_s5 + $0xe0] sm:$0xff]   ;;  %6172 = vmatpush3.bf16.msra.mxu1 %v6417_v15 }
 0x55b   : > { %6132 = vmatpush3.bf16.msra.mxu0 %v6405_v62 }
 0x55c   : > { %4464 = vmatmul.mubr.bf16.gmra.mrb[64].mxu0 %v4263_v25  ;;  %v4270_v19 = vpack.c.bf16 %v4254_v41, %v4251_v20  ;;  %v4269_v22 = vpack.c.bf16 %v4253_v2, %v4250_v26  ;;  %6133 = vmatprep.subr.bf16.mxu0 %v6406_v10 }
 0x55d   : > { %4471 = vmatprep.mubr.bf16.mxu0 %v4266_v44 }
 0x55f   : > { %6134 = vmatpush3.bf16.msra.mxu0 %v6406_v10 }
 0x560   : > { %6135 = vmatprep.subr.bf16.mxu0 %v6407_v17 }
 0x563   : > { %6136 = vmatpush3.bf16.msra.mxu0 %v6407_v17 }
 0x564   : > { %4472 = vmatmul.mubr.bf16.gmra.mrb[68].mxu0 %v4265_v51  ;;  %6137 = vmatprep.subr.bf16.mxu0 %v6408_v27 }
 0x565   : > { %4479 = vmatprep.mubr.bf16.mxu0 %v4268_v52 }
 0x567   : > { %6138 = vmatpush3.bf16.msra.mxu0 %v6408_v27 }
 0x568   : > { %6139 = vmatprep.subr.bf16.mxu0 %v6409_v29 }
 0x56b   : > { %6140 = vmatpush3.bf16.msra.mxu0 %v6409_v29 }
 0x56c   : > { %4480 = vmatmul.mubr.bf16.gmra.mrb[72].mxu0 %v4267_v46  ;;  %6141 = vmatprep.subr.bf16.mxu0 %v6410_v54 }
 0x56d   : > { %4487 = vmatprep.mubr.bf16.mxu0 %v4270_v19 }
 0x56f   : > { %6142 = vmatpush3.bf16.msra.mxu0 %v6410_v54 }
 0x574   : > { %4488 = vmatmul.mubr.bf16.gmra.mrb[76].mxu0 %v4269_v22 }
 0x608   : > { %v5935_v0 = vpop.f32.mrb[48].mxu0 }
 0x609   : > { %v5936_v63 = vpop.f32.mrb[49].mxu0 }
 0x60a   : > { %v5937_v53 = vadd.f32 %v5936_v63, %v5935_v0  ;;  %v5938_v21 = vpop.f32.mrb[50].mxu0 }
 0x60b   : > { %v5939_v50 = vpop.f32.mrb[51].mxu0 }
 0x60c   : > { %v4512_v16 = vmin.f32 %v5937_v53, 0.0  ;;  %v5940_v37 = vadd.f32 %v5939_v50, %v5938_v21  ;;  %vm4496_vm15 = vcmp.gt.f32.partialorder %v5937_v53, 0.0 }
 0x60e   : > { %v4528_v14 = vmul.f32 1.442695, %v4512_v16  ;;  %v4513_v1 = vmin.f32 %v5940_v37, 0.0  ;;  %vm4497_vm12 = vcmp.gt.f32.partialorder %v5940_v37, 0.0 }
 0x610   : > { %6907 = vpow2.f32 %v4528_v14  ;;  %v4530_v47 = vmul.f32 1.442695, %v4513_v1 }
 0x612   : > { %6909 = vpow2.f32 %v4530_v47 }
 0x617   : > { %v5941_v43 = vpop.f32.mrb[52].mxu0 }
 0x618   : > { %v5942_v23 = vpop.f32.mrb[53].mxu0 }
 0x619   : > { %v5943_v38 = vadd.f32 %v5942_v23, %v5941_v43  ;;  %v5944_v61 = vpop.f32.mrb[54].mxu0 }
 0x61a   : > { %v5945_v48 = vpop.f32.mrb[55].mxu0  ;;  %v6908_v11 = vpop.eup %6907 }
 0x61b   : > { %v4514_v57 = vmin.f32 %v5943_v38, 0.0  ;;  %v5946_v60 = vadd.f32 %v5945_v48, %v5944_v61  ;;  %v5526_v42 = vadd.f32 -1.0, %v6908_v11  ;;  %vm4498_vm5 = vcmp.gt.f32.partialorder %v5943_v38, 0.0 }
 0x61c   : > { %v6910_v35 = vpop.eup %6909 }
 0x61d   : > { %v4532_v7 = vmul.f32 1.442695, %v4514_v57  ;;  %v4515_v45 = vmin.f32 %v5946_v60, 0.0  ;;  %v5527_v6 = vadd.f32 -1.0, %v6910_v35  ;;  %v4576_v12 = vsel %vm4496_vm15, %v5937_v53, %v5526_v42 }
 0x61e   : > { %vm4499_vm4 = vcmp.gt.f32.partialorder %v5946_v60, 0.0  ;;  %vm5018_vm15 = vcmask 7168  }
 0x61f   : > { %6911 = vpow2.f32 %v4532_v7  ;;  %v4534_v9 = vmul.f32 1.442695, %v4515_v45  ;;  %v5947_v39 = vpop.f32.mrb[56].mxu0  ;;  %v4577_v55 = vsel %vm4497_vm12, %v5940_v37, %v5527_v6 }
 0x620   : > { %v5948_v28 = vpop.f32.mrb[57].mxu0  ;;  %v4592_v59 = vpack.c.bf16 %v4577_v55, %v4576_v12 }
 0x621   : > { %6913 = vpow2.f32 %v4534_v9  ;;  %v5949_v18 = vadd.f32 %v5948_v28, %v5947_v39  ;;  %v5950_v24 = vpop.f32.mrb[58].mxu0 }
 0x622   : > { %v5951_v40 = vpop.f32.mrb[59].mxu0  ;;  %6143 = vmatprep.mubr.bf16.mxu0 %v4592_v59 }
 0x623   : > { %v4516_v25 = vmin.f32 %v5949_v18, 0.0  ;;  %v5952_v44 = vadd.f32 %v5951_v40, %v5950_v24  ;;  %vm4500_vm13 = vcmp.gt.f32.partialorder %v5949_v18, 0.0 }
 0x625   : > { %v4536_v4 = vmul.f32 1.442695, %v4516_v25  ;;  %v4517_v36 = vmin.f32 %v5952_v44, 0.0  ;;  %vm4501_vm11 = vcmp.gt.f32.partialorder %v5952_v44, 0.0 }
 0x627   : > { %6915 = vpow2.f32 %v4536_v4  ;;  %v4538_v13 = vmul.f32 1.442695, %v4517_v36  ;;  %v5953_v51 = vpop.f32.mrb[60].mxu0 }
 0x628   : > { %v5954_v52 = vpop.f32.mrb[61].mxu0 }
 0x629   : > { %v6912_v58 = vpop.eup %6911  ;;  %6917 = vpow2.f32 %v4538_v13  ;;  %v5955_v49 = vadd.f32 %v5954_v52, %v5953_v51  ;;  %v5956_v34 = vpop.f32.mrb[62].mxu0 }
 0x62a   : > { %v5528_v41 = vadd.f32 -1.0, %v6912_v58  ;;  %v5957_v33 = vpop.f32.mrb[63].mxu0 }
 0x62b   : > { %v6914_v20 = vpop.eup %6913  ;;  %v4518_v46 = vmin.f32 %v5955_v49, 0.0  ;;  %v5958_v19 = vadd.f32 %v5957_v33, %v5956_v34  ;;  %vm4502_vm9 = vcmp.gt.f32.partialorder %v5955_v49, 0.0 }
 0x62c   : > { %v5529_v2 = vadd.f32 -1.0, %v6914_v20  ;;  %v4578_v56 = vsel %vm4498_vm5, %v5943_v38, %v5528_v41 }
 0x62d   : > { %v4540_v26 = vmul.f32 1.442695, %v4518_v46  ;;  %v4519_v22 = vmin.f32 %v5958_v19, 0.0  ;;  %vm4503_vm10 = vcmp.gt.f32.partialorder %v5958_v19, 0.0 }
 0x62e   : > { %v4579_v62 = vsel %vm4499_vm4, %v5946_v60, %v5529_v2 }
 0x62f   : > { %v4593_v10 = vpack.c.bf16 %v4579_v62, %v4578_v56  ;;  %6919 = vpow2.f32 %v4540_v26  ;;  %v4542_v17 = vmul.f32 1.442695, %v4519_v22  ;;  %v5959_v27 = vpop.f32.mrb[64].mxu0 }
 0x630   : > { %v5960_v29 = vpop.f32.mrb[65].mxu0 }
 0x631   : > { %v6916_v54 = vpop.eup %6915  ;;  %6921 = vpow2.f32 %v4542_v17  ;;  %v5961_v31 = vadd.f32 %v5960_v29, %v5959_v27  ;;  %v5962_v5 = vpop.f32.mrb[66].mxu0  ;;  %6144 = vmatmul.mubr.bf16.vlgmr.msra.gmra.mrb[32].mxu0 %v4593_v10 }
 0x632   : > { %v5530_v32 = vadd.f32 -1.0, %v6916_v54  ;;  %v5963_v8 = vpop.f32.mrb[67].mxu0 }
 0x633   : > { %v6918_v30 = vpop.eup %6917  ;;  %v4520_v3 = vmin.f32 %v5961_v31, 0.0  ;;  %v5964_v15 = vadd.f32 %v5963_v8, %v5962_v5  ;;  %vm4504_vm2 = vcmp.gt.f32.partialorder %v5961_v31, 0.0 }
 0x634   : > { %v5531_v0 = vadd.f32 -1.0, %v6918_v30  ;;  %v4580_v21 = vsel %vm4500_vm13, %v5949_v18, %v5530_v32 }
 0x635   : > { %v4544_v63 = vmul.f32 1.442695, %v4520_v3  ;;  %v4521_v53 = vmin.f32 %v5964_v15, 0.0  ;;  %vm4505_vm6 = vcmp.gt.f32.partialorder %v5964_v15, 0.0 }
 0x636   : > { %v4581_v50 = vsel %vm4501_vm11, %v5952_v44, %v5531_v0 }
 0x637   : > { %6923 = vpow2.f32 %v4544_v63  ;;  %v4546_v16 = vmul.f32 1.442695, %v4521_v53  ;;  %v5965_v37 = vpop.f32.mrb[68].mxu0  ;;  %v4594_v14 = vpack.c.bf16 %v4581_v50, %v4580_v21 }
 0x638   : > { %v5966_v1 = vpop.f32.mrb[69].mxu0 }
 0x639   : > { %v6920_v47 = vpop.eup %6919  ;;  %6925 = vpow2.f32 %v4546_v16  ;;  %v5967_v43 = vadd.f32 %v5966_v1, %v5965_v37  ;;  %v5968_v23 = vpop.f32.mrb[70].mxu0  ;;  %6147 = vmatprep.mubr.bf16.mxu0 %v4594_v14  ;;  %v6418_v1 = vld [vmem:[%s9913_s6 + $0x38] sm:$0xff]  }
 0x63a   : > { %v5532_v38 = vadd.f32 -1.0, %v6920_v47  ;;  %v5969_v61 = vpop.f32.mrb[71].mxu0  ;;  %6173 = vmatprep.subr.bf16.mxu1 %v6418_v1  ;;  %v6419_v47 = vld [vmem:[%s9914_s7] sm:$0xff]  }
 0x63b   : > { %v6922_v48 = vpop.eup %6921  ;;  %v4522_v57 = vmin.f32 %v5967_v43, 0.0  ;;  %v5970_v60 = vadd.f32 %v5969_v61, %v5968_v23  ;;  %vm4506_vm7 = vcmp.gt.f32.partialorder %v5967_v43, 0.0  ;;  %6174 = vmatpush3.bf16.msra.mxu1 %v6418_v1 }
 0x63c   : > { %v5533_v7 = vadd.f32 -1.0, %v6922_v48  ;;  %v4582_v42 = vsel %vm4502_vm9, %v5955_v49, %v5532_v38  ;;  %6191 = vmatprep.subr.bf16.mxu1 %v6419_v47 }
 0x63d   : > { %v4548_v45 = vmul.f32 1.442695, %v4522_v57  ;;  %v4523_v11 = vmin.f32 %v5970_v60, 0.0  ;;  %vm4507_vm3 = vcmp.gt.f32.partialorder %v5970_v60, 0.0 }
 0x63e   : > { %v4583_v9 = vsel %vm4503_vm10, %v5958_v19, %v5533_v7  ;;  %v6421_v7 = vld [vmem:[%s9914_s7 + $0x10] sm:$0xff]  }
 0x63f   : > { %6927 = vpow2.f32 %v4548_v45  ;;  %v4550_v39 = vmul.f32 1.442695, %v4523_v11  ;;  %v5971_v35 = vpop.f32.mrb[72].mxu0  ;;  %v4595_v28 = vpack.c.bf16 %v4583_v9, %v4582_v42  ;;  %v6422_v45 = vld [vmem:[%s9914_s7 + $0x18] sm:$0xff]   ;;  %v6423_v9 = vld [vmem:[%s9914_s7 + $0x20] sm:$0xff]  }
 0x640   : > { %v5972_v6 = vpop.f32.mrb[73].mxu0 }
 0x641   : > { %v6924_v18 = vpop.eup %6923  ;;  %6929 = vpow2.f32 %v4550_v39  ;;  %v5973_v24 = vadd.f32 %v5972_v6, %v5971_v35  ;;  %v5974_v40 = vpop.f32.mrb[74].mxu0  ;;  %6148 = vmatmul.mubr.bf16.gmra.mrb[36].mxu0 %v4595_v28 }
 0x642   : > { %v5534_v25 = vadd.f32 -1.0, %v6924_v18  ;;  %v5975_v44 = vpop.f32.mrb[75].mxu0  ;;  %v6424_v18 = vld [vmem:[%s9914_s7 + $0x28] sm:$0xff]  }
 0x643   : > { %v6926_v12 = vpop.eup %6925  ;;  %v4524_v55 = vmin.f32 %v5973_v24, 0.0  ;;  %v5976_v59 = vadd.f32 %v5975_v44, %v5974_v40  ;;  %vm4508_vm8 = vcmp.gt.f32.partialorder %v5973_v24, 0.0  ;;  %v6426_v40 = vld [vmem:[%s9914_s7 + $0x38] sm:$0xff]  }
 0x644   : > { %v5535_v4 = vadd.f32 -1.0, %v6926_v12  ;;  %v4584_v51 = vsel %vm4504_vm2, %v5961_v31, %v5534_v25 }
 0x645   : > { %v4552_v36 = vmul.f32 1.442695, %v4524_v55  ;;  %v4525_v13 = vmin.f32 %v5976_v59, 0.0  ;;  %vm4509_vm1 = vcmp.gt.f32.partialorder %v5976_v59, 0.0 }
 0x646   : > { %v4585_v52 = vsel %vm4505_vm6, %v5964_v15, %v5535_v4 }
 0x647   : > { %6931 = vpow2.f32 %v4552_v36  ;;  %v4554_v58 = vmul.f32 1.442695, %v4525_v13  ;;  %v5977_v49 = vpop.f32.mrb[76].mxu0  ;;  %v4596_v34 = vpack.c.bf16 %v4585_v52, %v4584_v51 }
 0x648   : > { %v5978_v41 = vpop.f32.mrb[77].mxu0 }
 0x649   : > { %v6928_v33 = vpop.eup %6927  ;;  %6933 = vpow2.f32 %v4554_v58  ;;  %v5979_v20 = vadd.f32 %v5978_v41, %v5977_v49  ;;  %v5980_v46 = vpop.f32.mrb[78].mxu0  ;;  %6151 = vmatprep.mubr.bf16.mxu0 %v4596_v34 }
 0x64a   : > { %v5536_v19 = vadd.f32 -1.0, %v6928_v33  ;;  %v5981_v2 = vpop.f32.mrb[79].mxu0 }
 0x64b   : > { %v6930_v26 = vpop.eup %6929  ;;  %v4526_v22 = vmin.f32 %v5979_v20, 0.0  ;;  %v5982_v56 = vadd.f32 %v5981_v2, %v5980_v46  ;;  %vm4510_vm0 = vcmp.gt.f32.partialorder %v5979_v20, 0.0 }
 0x64c   : > { %v5537_v62 = vadd.f32 -1.0, %v6930_v26  ;;  %v4586_v27 = vsel %vm4506_vm7, %v5967_v43, %v5536_v19 }
 0x64d   : > { %v4556_v10 = vmul.f32 1.442695, %v4526_v22  ;;  %v4527_v17 = vmin.f32 %v5982_v56, 0.0  ;;  %vm4511_vm14 = vcmp.gt.f32.partialorder %v5982_v56, 0.0 }
 0x64e   : > { %v4587_v29 = vsel %vm4507_vm3, %v5970_v60, %v5537_v62  ;;  %v6420_v60 = vld [vmem:[%s9914_s7 + $0x8] sm:$0xff]  }
 0x64f   : > { %6935 = vpow2.f32 %v4556_v10  ;;  %v4558_v54 = vmul.f32 1.442695, %v4527_v17  ;;  %v4597_v31 = vpack.c.bf16 %v4587_v29, %v4586_v27 }
 0x651   : > { %v6932_v5 = vpop.eup %6931  ;;  %6937 = vpow2.f32 %v4558_v54  ;;  %6152 = vmatmul.mubr.bf16.gmra.mrb[40].mxu0 %v4597_v31 }
 0x652   : > { %v5538_v32 = vadd.f32 -1.0, %v6932_v5 }
 0x653   : > { %v6934_v8 = vpop.eup %6933 }
 0x654   : > { %v5539_v30 = vadd.f32 -1.0, %v6934_v8  ;;  %v4588_v3 = vsel %vm4508_vm8, %v5973_v24, %v5538_v32  ;;  %v6425_v24 = vld [vmem:[%s9914_s7 + $0x30] sm:$0xff]  }
 0x656   : > { %v4589_v15 = vsel %vm4509_vm1, %v5976_v59, %v5539_v30 }
 0x657   : > { %v4598_v0 = vpack.c.bf16 %v4589_v15, %v4588_v3 }
 0x659   : > { %v6936_v63 = vpop.eup %6935  ;;  %6155 = vmatprep.mubr.bf16.mxu0 %v4598_v0 }
 0x65a   : > { %v5540_v53 = vadd.f32 -1.0, %v6936_v63 }
 0x65b   : > { %v6938_v21 = vpop.eup %6937 }
 0x65c   : > { %v5541_v50 = vadd.f32 -1.0, %v6938_v21  ;;  %v4590_v16 = vsel %vm4510_vm0, %v5979_v20, %v5540_v53 }
 0x65e   : > { %v4591_v37 = vsel %vm4511_vm14, %v5982_v56, %v5541_v50 }
 0x65f   : > { %v4599_v14 = vpack.c.bf16 %v4591_v37, %v4590_v16 }
 0x661   : > { %6156 = vmatmul.mubr.bf16.gmra.mrb[44].mxu0 %v4599_v14 }
 0x704   : > { %v6145_v43 = vpop.f32.mrb[32].mxu0 }
 0x705   : > { %v4698_v23 = vpop.f32.mrb[33].mxu0 }
 0x706   : > { %v6146_v38 = vpop.f32.mrb[34].mxu0 }
 0x707   : > { %v4778_v61 = vpack.c.bf16 %v6146_v38, %v6145_v43  ;;  %v4701_v48 = vpop.f32.mrb[35].mxu0 }
 0x708   : > { %v4777_v57 = vpack.c.bf16 %v4701_v48, %v4698_v23 }
 0x709   : > { %5640 = vst [vmem:[%s9797_s19 + $0x8] sm:$0xff] %v4778_v61  }
 0x70a   : > { %5604 = vst [vmem:[%s9797_s19] sm:$0xff] %v4777_v57   ;;  %6175 = vmatprep.mubr.bf16.mxu1 %v4777_v57 }
 0x70b   : > { %6176 = vmatmul.mubr.bf16.vlgmr.msra.gmra.mrb[96].mxu1 %v4778_v61 }
 0x70c   : > { %6192 = vmatpush3.bf16.msra.mxu1 %v6419_v47 }
 0x70d   : > { %6193 = vmatprep.subr.bf16.mxu1 %v6420_v60 }
 0x710   : > { %6194 = vmatpush3.bf16.msra.mxu1 %v6420_v60 }
 0x711   : > { %6195 = vmatprep.subr.bf16.mxu1 %v6421_v7 }
 0x714   : > { %v6149_v11 = vpop.f32.mrb[36].mxu0  ;;  %6196 = vmatpush3.bf16.msra.mxu1 %v6421_v7 }
 0x715   : > { %v4714_v42 = vpop.f32.mrb[37].mxu0  ;;  %6197 = vmatprep.subr.bf16.mxu1 %v6422_v45 }
 0x716   : > { %v6150_v39 = vpop.f32.mrb[38].mxu0 }
 0x717   : > { %v4780_v35 = vpack.c.bf16 %v6150_v39, %v6149_v11  ;;  %v4717_v28 = vpop.f32.mrb[39].mxu0 }
 0x718   : > { %v4779_v6 = vpack.c.bf16 %v4717_v28, %v4714_v42  ;;  %6198 = vmatpush3.bf16.msra.mxu1 %v6422_v45 }
 0x719   : > { %5642 = vst [vmem:[%s9797_s19 + $0x18] sm:$0xff] %v4780_v35   ;;  %6199 = vmatprep.subr.bf16.mxu1 %v6423_v9 }
 0x71a   : > { %5641 = vst [vmem:[%s9797_s19 + $0x10] sm:$0xff] %v4779_v6   ;;  %6179 = vmatprep.mubr.bf16.mxu1 %v4779_v6 }
 0x71b   : > { %6180 = vmatmul.mubr.bf16.gmra.mrb[100].mxu1 %v4780_v35 }
 0x71c   : > { %6200 = vmatpush3.bf16.msra.mxu1 %v6423_v9 }
 0x71d   : > { %6201 = vmatprep.subr.bf16.mxu1 %v6424_v18 }
 0x720   : > { %6202 = vmatpush3.bf16.msra.mxu1 %v6424_v18 }
 0x721   : > { %6203 = vmatprep.subr.bf16.mxu1 %v6425_v24 }
 0x724   : > { %v6153_v25 = vpop.f32.mrb[40].mxu0  ;;  %6204 = vmatpush3.bf16.msra.mxu1 %v6425_v24 }
 0x725   : > { %v4730_v44 = vpop.f32.mrb[41].mxu0  ;;  %6205 = vmatprep.subr.bf16.mxu1 %v6426_v40 }
 0x726   : > { %v6154_v12 = vpop.f32.mrb[42].mxu0 }
 0x727   : > { %v4782_v55 = vpack.c.bf16 %v6154_v12, %v6153_v25  ;;  %v4733_v59 = vpop.f32.mrb[43].mxu0 }
 0x728   : > { %v4781_v4 = vpack.c.bf16 %v4733_v59, %v4730_v44  ;;  %6206 = vmatpush3.bf16.msra.mxu1 %v6426_v40 }
 0x729   : > { %5644 = vst [vmem:[%s9797_s19 + $0x28] sm:$0xff] %v4782_v55  }
 0x72a   : > { %5643 = vst [vmem:[%s9797_s19 + $0x20] sm:$0xff] %v4781_v4   ;;  %6183 = vmatprep.mubr.bf16.mxu1 %v4781_v4 }
 0x72b   : > { %6184 = vmatmul.mubr.bf16.gmra.mrb[104].mxu1 %v4782_v55 }
 0x734   : > { %v6157_v36 = vpop.f32.mrb[44].mxu0 }
 0x735   : > { %v4746_v13 = vpop.f32.mrb[45].mxu0 }
 0x736   : > { %v6158_v51 = vpop.f32.mrb[46].mxu0 }
 0x737   : > { %v4784_v52 = vpack.c.bf16 %v6158_v51, %v6157_v36  ;;  %v4749_v58 = vpop.f32.mrb[47].mxu0 }
 0x738   : > { %v4783_v49 = vpack.c.bf16 %v4749_v58, %v4746_v13 }
 0x739   : > { %5646 = vst [vmem:[%s9797_s19 + $0x38] sm:$0xff] %v4784_v52  }
 0x73a   : > { %5645 = vst [vmem:[%s9797_s19 + $0x30] sm:$0xff] %v4783_v49   ;;  %6187 = vmatprep.mubr.bf16.mxu1 %v4783_v49 }
 0x73b   : > { %6188 = vmatmul.mubr.bf16.gmra.mrb[108].mxu1 %v4784_v52 }
 0x73c   : > { %6207 = vmatprep.mubr.bf16.mxu1 %v4777_v57 }
 0x743   : > { %6208 = vmatmul.mubr.bf16.vlgmr.msra.gmra.mrb[112].mxu1 %v4778_v61 }
 0x744   : > { %6211 = vmatprep.mubr.bf16.mxu1 %v4779_v6 }
 0x74b   : > { %6212 = vmatmul.mubr.bf16.gmra.mrb[116].mxu1 %v4780_v35 }
 0x74c   : > { %6215 = vmatprep.mubr.bf16.mxu1 %v4781_v4 }
 0x753   : > { %6216 = vmatmul.mubr.bf16.gmra.mrb[120].mxu1 %v4782_v55 }
 0x754   : > { %6219 = vmatprep.mubr.bf16.mxu1 %v4783_v49 }
 0x75b   : > { %6220 = vmatmul.mubr.bf16.gmra.mrb[124].mxu1 %v4784_v52 }
 0x7de   : > { %v6177_v34 = vpop.f32.mrb[96].mxu1 }
 0x7df   : > { %5021 = vst.msk [vmem:[%s9832_s29 + $0x10] sm:$0xff] %vm5018_vm15, %v6177_v34  ;;  %v4955_v41 = vpop.f32.mrb[97].mxu1 }
 0x7e0   : > { %5019 = vst.msk [vmem:[%s9832_s29] sm:$0xff] %vm5018_vm15, %v4955_v41  ;;  %v6178_v33 = vpop.f32.mrb[98].mxu1 }
 0x7e1   : > { %5022 = vst.msk [vmem:[%s9832_s29 + $0x18] sm:$0xff] %vm5018_vm15, %v6178_v33  ;;  %v4958_v20 = vpop.f32.mrb[99].mxu1 }
 0x7e2   : > { %5020 = vst.msk [vmem:[%s9832_s29 + $0x8] sm:$0xff] %vm5018_vm15, %v4958_v20 }
 0x7ee   : > { %v6181_v46 = vpop.f32.mrb[100].mxu1 }
 0x7ef   : > { %5025 = vst.msk [vmem:[%s9832_s29 + $0x30] sm:$0xff] %vm5018_vm15, %v6181_v46  ;;  %v4971_v19 = vpop.f32.mrb[101].mxu1 }
 0x7f0   : > { %5023 = vst.msk [vmem:[%s9832_s29 + $0x20] sm:$0xff] %vm5018_vm15, %v4971_v19  ;;  %v6182_v2 = vpop.f32.mrb[102].mxu1 }
 0x7f1   : > { %5026 = vst.msk [vmem:[%s9832_s29 + $0x38] sm:$0xff] %vm5018_vm15, %v6182_v2  ;;  %v4974_v26 = vpop.f32.mrb[103].mxu1 }
 0x7f2   : > { %5024 = vst.msk [vmem:[%s9832_s29 + $0x28] sm:$0xff] %vm5018_vm15, %v4974_v26 }
 0x7fe   : > { %v6185_v22 = vpop.f32.mrb[104].mxu1 }
 0x7ff   : > { %5029 = vst.msk [vmem:[%s9832_s29 + $0x50] sm:$0xff] %vm5018_vm15, %v6185_v22  ;;  %v4987_v56 = vpop.f32.mrb[105].mxu1 }
 0x800   : > { %5027 = vst.msk [vmem:[%s9832_s29 + $0x40] sm:$0xff] %vm5018_vm15, %v4987_v56  ;;  %v6186_v62 = vpop.f32.mrb[106].mxu1 }
 0x801   : > { %5030 = vst.msk [vmem:[%s9832_s29 + $0x58] sm:$0xff] %vm5018_vm15, %v6186_v62  ;;  %v4990_v10 = vpop.f32.mrb[107].mxu1 }
 0x802   : > { %5028 = vst.msk [vmem:[%s9832_s29 + $0x48] sm:$0xff] %vm5018_vm15, %v4990_v10 }
 0x80e   : > { %v6189_v17 = vpop.f32.mrb[108].mxu1 }
 0x80f   : > { %5033 = vst.msk [vmem:[%s9832_s29 + $0x70] sm:$0xff] %vm5018_vm15, %v6189_v17  ;;  %v5003_v27 = vpop.f32.mrb[109].mxu1 }
 0x810   : > { %5031 = vst.msk [vmem:[%s9832_s29 + $0x60] sm:$0xff] %vm5018_vm15, %v5003_v27  ;;  %v6190_v29 = vpop.f32.mrb[110].mxu1 }
 0x811   : > { %5034 = vst.msk [vmem:[%s9832_s29 + $0x78] sm:$0xff] %vm5018_vm15, %v6190_v29  ;;  %v5006_v54 = vpop.f32.mrb[111].mxu1 }
 0x812   : > { %5032 = vst.msk [vmem:[%s9832_s29 + $0x68] sm:$0xff] %vm5018_vm15, %v5006_v54 }
 0x816   : > { %v6209_v31 = vpop.f32.mrb[112].mxu1 }
 0x817   : > { %5198 = vst.msk [vmem:[%s9870_s28 + $0x10] sm:$0xff] %vm5018_vm15, %v6209_v31  ;;  %v5133_v5 = vpop.f32.mrb[113].mxu1 }
 0x818   : > { %5196 = vst.msk [vmem:[%s9870_s28] sm:$0xff] %vm5018_vm15, %v5133_v5  ;;  %v6210_v32 = vpop.f32.mrb[114].mxu1 }
 0x819   : > { %5199 = vst.msk [vmem:[%s9870_s28 + $0x18] sm:$0xff] %vm5018_vm15, %v6210_v32  ;;  %v5136_v8 = vpop.f32.mrb[115].mxu1 }
 0x81a   : > { %5197 = vst.msk [vmem:[%s9870_s28 + $0x8] sm:$0xff] %vm5018_vm15, %v5136_v8 }
 0x81e   : > { %v6213_v30 = vpop.f32.mrb[116].mxu1 }
 0x81f   : > { %5202 = vst.msk [vmem:[%s9870_s28 + $0x30] sm:$0xff] %vm5018_vm15, %v6213_v30  ;;  %v5149_v3 = vpop.f32.mrb[117].mxu1 }
 0x820   : > { %5200 = vst.msk [vmem:[%s9870_s28 + $0x20] sm:$0xff] %vm5018_vm15, %v5149_v3  ;;  %v6214_v15 = vpop.f32.mrb[118].mxu1 }
 0x821   : > { %5203 = vst.msk [vmem:[%s9870_s28 + $0x38] sm:$0xff] %vm5018_vm15, %v6214_v15  ;;  %v5152_v0 = vpop.f32.mrb[119].mxu1 }
 0x822   : > { %5201 = vst.msk [vmem:[%s9870_s28 + $0x28] sm:$0xff] %vm5018_vm15, %v5152_v0 }
 0x826   : > { %v6217_v63 = vpop.f32.mrb[120].mxu1 }
 0x827   : > { %5206 = vst.msk [vmem:[%s9870_s28 + $0x50] sm:$0xff] %vm5018_vm15, %v6217_v63  ;;  %v5165_v53 = vpop.f32.mrb[121].mxu1 }
 0x828   : > { %5204 = vst.msk [vmem:[%s9870_s28 + $0x40] sm:$0xff] %vm5018_vm15, %v5165_v53  ;;  %v6218_v21 = vpop.f32.mrb[122].mxu1 }
 0x829   : > { %5207 = vst.msk [vmem:[%s9870_s28 + $0x58] sm:$0xff] %vm5018_vm15, %v6218_v21  ;;  %v5168_v50 = vpop.f32.mrb[123].mxu1 }
 0x82a   : > { %5205 = vst.msk [vmem:[%s9870_s28 + $0x48] sm:$0xff] %vm5018_vm15, %v5168_v50 }
 0x82e   : > { %v6221_v16 = vpop.f32.mrb[124].mxu1 }
 0x82f   : > { %5210 = vst.msk [vmem:[%s9870_s28 + $0x70] sm:$0xff] %vm5018_vm15, %v6221_v16  ;;  %v5181_v37 = vpop.f32.mrb[125].mxu1 }
 0x830   : > { %5208 = vst.msk [vmem:[%s9870_s28 + $0x60] sm:$0xff] %vm5018_vm15, %v5181_v37  ;;  %v6222_v14 = vpop.f32.mrb[126].mxu1 }
 0x831   : > { %5211 = vst.msk [vmem:[%s9870_s28 + $0x78] sm:$0xff] %vm5018_vm15, %v6222_v14  ;;  %v5184_v1 = vpop.f32.mrb[127].mxu1 }
 0x832   : > { %5209 = vst.msk [vmem:[%s9870_s28 + $0x68] sm:$0xff] %vm5018_vm15, %v5184_v1 }
 0x833 PF: > { %s21_s13 = sadd.s32 1, %s6977_s13  }
 0x834   : > { %p18_p4 = scmp.ge.s32.totalorder %s21_s13, 4  }
 0x836   :  { %20 = sbr.rel (!%p18_p4) target bundleno = 1 (0x1), region = 112 }

</bundles_post_ra>
